<compile_context>
chip_gen: v7x
topology: tpu7x:2x2x1
jax: 0.10.0
libtpu: 0.0.40
codegen_flags: <defaults>
</compile_context>

<pallas_src>
import math
import jax
import jax.numpy as jnp
from jax.experimental import pallas as pl
from jax.experimental.pallas import tpu as pltpu

EPS = 1e-5

CFG = dict(
    in_channels=3,
    gen_input_image_size=16,
    gen_latent_texture_size=8,
    gen_latent_texture_depth=2,
    gen_latent_texture_channels=4,
    gen_num_channels=8,
    enc_channel_mult=1.0,
    gen_max_channels=16,
)

NUM_2D_BLOCKS = int(math.log(CFG['gen_input_image_size'] // CFG['gen_latent_texture_size'], 2))

# ---------------- static geometry (padded-flat layout, sublane-aligned) ----------------
H = W = CFG['gen_input_image_size']     # 16
P = 4                                    # buffer pad (>= max conv pad 3; makes Wp a multiple of 8)
WP = W + 2 * P                           # 24
HP = H + 2 * P                           # 24
R = HP * WP                              # 576 rows per image (padded-flat)
SLAB0 = 96                               # aligned start of computed slab (interior is [100, 476))
LSLAB = 384                              # aligned slab length = 3 * 128
CH = 128                                 # chunk rows -> (128,16) f32 accumulator = 16 vregs
NCH = LSLAB // CH                        # 3
HO = WO = H // 2                         # 8
NPOOL = 2 * WP - 8                       # 40 contiguous rows covering one pooled output row


# ----------------------------- param helpers -----------------------------

def _conv_init(key, cin, cout, k, bias=True):
    kw_, kb_ = jax.random.split(key)
    fan_in = cin * k * k
    w = jax.random.normal(kw_, (cout, cin, k, k), jnp.float32) / math.sqrt(fan_in)
    b = (0.01 * jax.random.normal(kb_, (cout,), jnp.float32)
         if bias else jnp.zeros((cout,), jnp.float32))
    return {'w': w, 'b': b}


def _bn_init(key, c):
    k1, k2, k3 = jax.random.split(key, 3)
    return {
        'gamma': 1.0 + 0.1 * jax.random.normal(k1, (c,), jnp.float32),
        'beta': 0.1 * jax.random.normal(k2, (c,), jnp.float32),
        'mean': 0.05 * jax.random.normal(k3, (c,), jnp.float32),
        'var': jnp.ones((c,), jnp.float32),
    }


def init_params(key):
    keys = iter(jax.random.split(key, 64))
    out_ch = int(CFG['gen_num_channels'] * CFG['enc_channel_mult'])
    params = {'from_rgb': _conv_init(next(keys), CFG['in_channels'], out_ch, 7)}
    for i in range(NUM_2D_BLOCKS):
        in_ch = out_ch
        out_ch = min(out_ch * 2, CFG['gen_max_channels'])
        params[f'enc_{i}'] = {
            'norm1': _bn_init(next(keys), in_ch),
            'conv1': _conv_init(next(keys), in_ch, out_ch, 3),
            'norm2': _bn_init(next(keys), out_ch),
            'conv2': _conv_init(next(keys), out_ch, out_ch, 3),
            'skip':  _conv_init(next(keys), in_ch, out_ch, 1, bias=False),
        }
    final_out = CFG['gen_latent_texture_channels'] * CFG['gen_latent_texture_depth']
    params['finale_norm'] = _bn_init(next(keys), out_ch)
    params['finale_conv'] = _conv_init(next(keys), out_ch, final_out, 1)
    return params


def _fold_bn(bn):
    # eval-mode BatchNorm folded into per-channel affine (scale, shift), kept f32.
    scale = bn['gamma'] / jnp.sqrt(bn['var'] + EPS)
    shift = bn['beta'] - bn['mean'] * scale
    return scale.reshape(1, -1), shift.reshape(1, -1)


# ----------------------------- fused forward (single pallas_call, grid over batch) -----------------------------

def local_encoder_forward(params, source_img_nchw):
    x = jnp.transpose(source_img_nchw, (0, 2, 3, 1)).astype(jnp.float32)   # NHWC
    Nb, Hi, Wi, Cin = x.shape
    assert Hi == H and Wi == W and Cin == CFG['in_channels']
    # TODO(synk): kernel is specialized to a single encoder block (this config); more blocks
    #             would need one padded-slab stage per resolution.
    assert NUM_2D_BLOCKS == 1

    c_rgb = int(CFG['gen_num_channels'] * CFG['enc_channel_mult'])                 # 8
    c_blk = min(c_rgb * 2, CFG['gen_max_channels'])                                # 16
    c_out = CFG['gen_latent_texture_channels'] * CFG['gen_latent_texture_depth']   # 8

    # ---- w-direction im2col of the (tiny) input, built by XLA outside the kernel, cast to bf16.
    # xq[n, g, dw*Cin:(dw+1)*Cin] = x_padded[n, g + dw - 3, :]  (zeros at pad positions)
    xw = jnp.pad(x, ((0, 0), (0, 0), (3, 3), (0, 0)))                              # (Nb,16,22,3)
    xq = jnp.concatenate([xw[:, :, dw:dw + W, :] for dw in range(7)], axis=-1)     # (Nb,16,16,21)
    xq = jnp.pad(xq, ((0, 0), (P, P), (P, P), (0, 0)))                             # (Nb,24,24,21)
    xq = xq.reshape(Nb, R, 7 * Cin).astype(jnp.bfloat16)

    # ---- weights (per-tap layout, pre-cast to bf16) and folded BN params (f32) ----
    w_rgb = jnp.transpose(params['from_rgb']['w'], (2, 3, 1, 0)) \
               .reshape(7, 7 * Cin, c_rgb).astype(jnp.bfloat16)          # per-dh (21, 8)
    b_rgb = params['from_rgb']['b'].reshape(1, -1)
    bp = params['enc_0']
    s1, t1 = _fold_bn(bp['norm1'])
    w_c1 = jnp.transpose(bp['conv1']['w'], (2, 3, 1, 0)) \
              .reshape(9, c_rgb, c_blk).astype(jnp.bfloat16)             # tap dh*3+dw : (8, 16)
    b_c1 = bp['conv1']['b'].reshape(1, -1)
    s2, t2 = _fold_bn(bp['norm2'])
    w_c2 = jnp.transpose(bp['conv2']['w'], (2, 3, 1, 0)) \
              .reshape(9, c_blk, c_blk).astype(jnp.bfloat16)             # tap dh*3+dw : (16, 16)
    b_c2 = bp['conv2']['b'].reshape(1, -1)
    w_sk = jnp.transpose(bp['skip']['w'], (2, 3, 1, 0)) \
              .reshape(c_rgb, c_blk).astype(jnp.bfloat16)                # (8, 16), no bias
    sf, tf = _fold_bn(params['finale_norm'])
    w_f = jnp.transpose(params['finale_conv']['w'], (2, 3, 1, 0)).reshape(c_blk, c_out)  # f32
    b_f = params['finale_conv']['b'].reshape(1, -1)

    def kernel(xq_ref, wrgb_ref, brgb_ref, s1_ref, t1_ref,
               wc1_ref, bc1_ref, s2_ref, t2_ref,
               wc2_ref, bc2_ref, wsk_ref,
               sf_ref, tf_ref, wf_ref, bf_ref,
               o_ref, y1, h1, h2, res):
        f32 = jnp.float32
        bf16 = jnp.bfloat16

        def zero_pad_positions(buf):
            # Exact-zero 'same' padding for buffers feeding a 3x3 conv: zero everything outside
            # the interior with static stores (head, tail, and 15 runs of 8 between image rows).
            c = buf.shape[1]
            buf[pl.ds(0, SLAB0 + P), :] = jnp.zeros((SLAB0 + P, c), buf.dtype)            # [0,100)
            buf[pl.ds(SLAB0 + LSLAB - P, R - SLAB0 - LSLAB + P), :] = \
                jnp.zeros((R - SLAB0 - LSLAB + P, c), buf.dtype)                           # [476,576)
            zrun = jnp.zeros((2 * P, c), buf.dtype)
            for r in range(P, P + H - 1):
                buf[pl.ds(r * WP + P + W, 2 * P), :] = zrun

        # ---- Stage A: from_rgb 7x7 (7 dh-aligned matmuls/chunk on the wrapper im2col) + bias,
        #      fused BN1+ReLU; in-register f32 accumulation, one store per chunk per buffer. ----
        for ci in range(NCH):
            s = SLAB0 + ci * CH
            acc = jnp.zeros((CH, c_rgb), f32)
            for dh in range(7):
                acc = acc + jnp.dot(xq_ref[pl.ds(s + (dh - 3) * WP, CH), :], wrgb_ref[dh],
                                    preferred_element_type=f32)
            acc = acc + brgb_ref[...]
            y1[pl.ds(s, CH), :] = acc.astype(bf16)                                        # skip input
            h1[pl.ds(s, CH), :] = jnp.maximum(acc * s1_ref[...] + t1_ref[...], 0.0).astype(bf16)
        zero_pad_positions(h1)

        # ---- Stage B: conv1 3x3 per-tap (9 shifted slab reads) + bias, fused BN2+ReLU ----
        for ci in range(NCH):
            s = SLAB0 + ci * CH
            acc = jnp.zeros((CH, c_blk), f32)
            for dh in range(3):
                for dw in range(3):
                    off = (dh - 1) * WP + (dw - 1)
                    acc = acc + jnp.dot(h1[pl.ds(s + off, CH), :], wc1_ref[dh * 3 + dw],
                                        preferred_element_type=f32)
            acc = acc + bc1_ref[...]
            h2[pl.ds(s, CH), :] = jnp.maximum(acc * s2_ref[...] + t2_ref[...], 0.0).astype(bf16)
        zero_pad_positions(h2)

        # ---- Stage C: conv2 3x3 per-tap + bias + 1x1 skip(y1), single store per chunk ----
        for ci in range(NCH):
            s = SLAB0 + ci * CH
            acc = jnp.dot(y1[pl.ds(s, CH), :], wsk_ref[...], preferred_element_type=f32)
            for dh in range(3):
                for dw in range(3):
                    off = (dh - 1) * WP + (dw - 1)
                    acc = acc + jnp.dot(h2[pl.ds(s + off, CH), :], wc2_ref[dh * 3 + dw],
                                        preferred_element_type=f32)
            res[pl.ds(s, CH), :] = acc + bc2_ref[...]
        # res pad positions hold finite garbage; pooling below multiplies them by exact 0.

        # ---- Stage D: 2x2 avg-pool only on kept rows (constant (8,40) pooling matmul per output
        #      row) + finale BN + ReLU + 1x1 conv (f32), compact (64, c_out) output. ----
        jj = jax.lax.broadcasted_iota(jnp.int32, (WO, NPOOL), 0)
        kk = jax.lax.broadcasted_iota(jnp.int32, (WO, NPOOL), 1)
        sel = ((kk == 2 * jj) | (kk == 2 * jj + 1) |
               (kk == 2 * jj + WP) | (kk == 2 * jj + WP + 1))
        pool = jnp.where(sel, 0.25, 0.0).astype(f32)
        zs = []
        for oi in range(HO):
            blk = res[pl.ds((2 * oi + P) * WP + P, NPOOL), :]                 # (40, c_blk) f32
            p = jnp.dot(pool, blk, preferred_element_type=f32)                # (8, c_blk)
            zs.append(jnp.maximum(p * sf_ref[...] + tf_ref[...], 0.0))
        z = jnp.concatenate(zs, axis=0)                                        # (64, c_blk)
        o_ref[...] = jnp.dot(z, wf_ref[...], preferred_element_type=f32) + bf_ref[...]

    def _pspec(a):
        return pl.BlockSpec(a.shape, lambda n: (0,) * a.ndim)

    out = pl.pallas_call(
        kernel,
        grid=(Nb,),
        in_specs=[
            pl.BlockSpec((None, R, 7 * Cin), lambda n: (n, 0, 0)),
            _pspec(w_rgb), _pspec(b_rgb), _pspec(s1), _pspec(t1),
            _pspec(w_c1), _pspec(b_c1), _pspec(s2), _pspec(t2),
            _pspec(w_c2), _pspec(b_c2), _pspec(w_sk),
            _pspec(sf), _pspec(tf), _pspec(w_f), _pspec(b_f),
        ],
        out_specs=pl.BlockSpec((None, HO * WO, c_out), lambda n: (n, 0, 0)),
        out_shape=jax.ShapeDtypeStruct((Nb, HO * WO, c_out), jnp.float32),
        scratch_shapes=[
            pltpu.VMEM((R, c_rgb), jnp.bfloat16),   # y1  : from_rgb output (padded-flat)
            pltpu.VMEM((R, c_rgb), jnp.bfloat16),   # h1  : relu(bn1(y1)), pads zeroed
            pltpu.VMEM((R, c_blk), jnp.bfloat16),   # h2  : relu(bn2(conv1)), pads zeroed
            pltpu.VMEM((R, c_blk), jnp.float32),    # res : conv2 + skip (f32 for finale accuracy)
        ],
        compiler_params=pltpu.CompilerParams(dimension_semantics=("parallel",)),
    )(xq, w_rgb, b_rgb, s1, t1, w_c1, b_c1, s2, t2, w_c2, b_c2, w_sk, sf, tf, w_f, b_f)

    y = out.reshape(Nb, HO, WO, c_out)
    return jnp.transpose(y, (0, 3, 1, 2))


# ----------------------------- plain-JAX reference (for verification) -----------------------------

def _conv_ref(x, w, b, pad):
    y = jax.lax.conv_general_dilated(
        x, jnp.transpose(w, (2, 3, 1, 0)),
        window_strides=(1, 1), padding=[(pad, pad), (pad, pad)],
        dimension_numbers=('NHWC', 'HWIO', 'NHWC'))
    return y + b.reshape(1, 1, 1, -1)


def _bn_relu_ref(x, bn):
    s = bn['gamma'] / jnp.sqrt(bn['var'] + EPS)
    t = bn['beta'] - bn['mean'] * s
    return jnp.maximum(x * s + t, 0.0)


def reference_forward(params, img):
    x = jnp.transpose(img, (0, 2, 3, 1)).astype(jnp.float32)
    x = _conv_ref(x, params['from_rgb']['w'], params['from_rgb']['b'], 3)
    bp = params['enc_0']
    h = _bn_relu_ref(x, bp['norm1'])
    h = _conv_ref(h, bp['conv1']['w'], bp['conv1']['b'], 1)
    h = _bn_relu_ref(h, bp['norm2'])
    h = _conv_ref(h, bp['conv2']['w'], bp['conv2']['b'], 1)
    skip = _conv_ref(x, bp['skip']['w'], bp['skip']['b'], 0)
    s = h + skip
    n, hh, ww, c = s.shape
    s = s.reshape(n, hh // 2, 2, ww // 2, 2, c).mean(axis=(2, 4))
    s = _bn_relu_ref(s, params['finale_norm'])
    s = _conv_ref(s, params['finale_conv']['w'], params['finale_conv']['b'], 0)
    return jnp.transpose(s, (0, 3, 1, 2))


# ----------------------------- main -----------------------------

if __name__ == "__main__":
    key = jax.random.PRNGKey(0)
    kx, kp = jax.random.split(key)
    source_img = jax.random.normal(
        kx, (2, CFG['in_channels'], CFG['gen_input_image_size'], CFG['gen_input_image_size']),
        jnp.float32)
    params = init_params(kp)

    fwd = jax.jit(local_encoder_forward)
    out = fwd(params, source_img)
    jax.block_until_ready(out)

    expected = (2,
                CFG['gen_latent_texture_channels'] * CFG['gen_latent_texture_depth'],
                CFG['gen_latent_texture_size'],
                CFG['gen_latent_texture_size'])
    assert out.shape == expected, (out.shape, expected)
    assert bool(jnp.all(jnp.isfinite(out)))

    # numerical check vs plain-JAX f32 reference (bf16 MXU operands -> moderate tolerance)
    ref = reference_forward(params, source_img)
    err = float(jnp.max(jnp.abs(out - ref)))
    assert bool(jnp.allclose(out, ref, rtol=5e-2, atol=5e-2)), err

    print("KERNEL_OK")
</pallas_src>

<mosaic_0001>
module attributes {stable_mosaic.version = 11 : i64} {
  func.func @kernel(%arg0: i32, %arg1: memref<1x576x21xbf16, #tpu.memory_space<vmem>>, %arg2: memref<7x21x8xbf16, #tpu.memory_space<vmem>>, %arg3: memref<1x8xf32, #tpu.memory_space<vmem>>, %arg4: memref<1x8xf32, #tpu.memory_space<vmem>>, %arg5: memref<1x8xf32, #tpu.memory_space<vmem>>, %arg6: memref<9x8x16xbf16, #tpu.memory_space<vmem>>, %arg7: memref<1x16xf32, #tpu.memory_space<vmem>>, %arg8: memref<1x16xf32, #tpu.memory_space<vmem>>, %arg9: memref<1x16xf32, #tpu.memory_space<vmem>>, %arg10: memref<9x16x16xbf16, #tpu.memory_space<vmem>>, %arg11: memref<1x16xf32, #tpu.memory_space<vmem>>, %arg12: memref<8x16xbf16, #tpu.memory_space<vmem>>, %arg13: memref<1x16xf32, #tpu.memory_space<vmem>>, %arg14: memref<1x16xf32, #tpu.memory_space<vmem>>, %arg15: memref<16x8xf32, #tpu.memory_space<vmem>>, %arg16: memref<1x8xf32, #tpu.memory_space<vmem>>, %arg17: memref<1x64x8xf32, #tpu.memory_space<vmem>>, %arg18: memref<576x8xbf16, #tpu.memory_space<vmem>>, %arg19: memref<576x8xbf16, #tpu.memory_space<vmem>>, %arg20: memref<576x16xbf16, #tpu.memory_space<vmem>>, %arg21: memref<576x16xf32, #tpu.memory_space<vmem>>) attributes {dimension_semantics = [#tpu.dimension_semantics<parallel>], iteration_bounds = array<i64: 2>, scalar_prefetch = 0 : i64, scratch_operands = 4 : i64, tpu.core_type = #tpu.core_type<tc>, window_params = [{transform_indices = @transform_0, window_bounds = array<i64: 1, 576, 21>}, {pipeline_mode = #tpu.pipeline_mode<synchronous>, transform_indices = @transform_1, window_bounds = array<i64: 7, 21, 8>}, {pipeline_mode = #tpu.pipeline_mode<synchronous>, transform_indices = @transform_2, window_bounds = array<i64: 1, 8>}, {pipeline_mode = #tpu.pipeline_mode<synchronous>, transform_indices = @transform_3, window_bounds = array<i64: 1, 8>}, {pipeline_mode = #tpu.pipeline_mode<synchronous>, transform_indices = @transform_4, window_bounds = array<i64: 1, 8>}, {pipeline_mode = #tpu.pipeline_mode<synchronous>, transform_indices = @transform_5, window_bounds = array<i64: 9, 8, 16>}, {pipeline_mode = #tpu.pipeline_mode<synchronous>, transform_indices = @transform_6, window_bounds = array<i64: 1, 16>}, {pipeline_mode = #tpu.pipeline_mode<synchronous>, transform_indices = @transform_7, window_bounds = array<i64: 1, 16>}, {pipeline_mode = #tpu.pipeline_mode<synchronous>, transform_indices = @transform_8, window_bounds = array<i64: 1, 16>}, {pipeline_mode = #tpu.pipeline_mode<synchronous>, transform_indices = @transform_9, window_bounds = array<i64: 9, 16, 16>}, {pipeline_mode = #tpu.pipeline_mode<synchronous>, transform_indices = @transform_10, window_bounds = array<i64: 1, 16>}, {pipeline_mode = #tpu.pipeline_mode<synchronous>, transform_indices = @transform_11, window_bounds = array<i64: 8, 16>}, {pipeline_mode = #tpu.pipeline_mode<synchronous>, transform_indices = @transform_12, window_bounds = array<i64: 1, 16>}, {pipeline_mode = #tpu.pipeline_mode<synchronous>, transform_indices = @transform_13, window_bounds = array<i64: 1, 16>}, {pipeline_mode = #tpu.pipeline_mode<synchronous>, transform_indices = @transform_14, window_bounds = array<i64: 16, 8>}, {pipeline_mode = #tpu.pipeline_mode<synchronous>, transform_indices = @transform_15, window_bounds = array<i64: 1, 8>}, {transform_indices = @transform_16, window_bounds = array<i64: 1, 64, 8>}]} {
    %cst = arith.constant 0.000000e+00 : f32
    %0 = vector.broadcast %cst : f32 to vector<128x8xf32>
    %c0 = arith.constant 0 : index
    %c24 = arith.constant 24 : index
    %c0_0 = arith.constant 0 : index
    %1 = vector.load %arg1[%c0, %c24, %c0_0] : memref<1x576x21xbf16, #tpu.memory_space<vmem>>, vector<1x128x21xbf16>
    %2 = vector.shape_cast %1 : vector<1x128x21xbf16> to vector<128x21xbf16>
    %c0_1 = arith.constant 0 : index
    %c0_2 = arith.constant 0 : index
    %c0_3 = arith.constant 0 : index
    %3 = vector.load %arg2[%c0_1, %c0_2, %c0_3] : memref<7x21x8xbf16, #tpu.memory_space<vmem>>, vector<1x21x8xbf16>
    %4 = vector.shape_cast %3 : vector<1x21x8xbf16> to vector<21x8xbf16>
    %cst_4 = arith.constant dense<0.000000e+00> : vector<128x8xf32>
    %5 = tpu.matmul %2, %4, %cst_4 {dimension_numbers = #tpu.dot_dimension_numbers<[1], [0], [0], [1], [0, 0, 1, 1], [], []>} : vector<128x21xbf16>, vector<21x8xbf16>, vector<128x8xf32> -> vector<128x8xf32>
    %6 = arith.addf %0, %5 : vector<128x8xf32>
    %c0_5 = arith.constant 0 : index
    %c48 = arith.constant 48 : index
    %c0_6 = arith.constant 0 : index
    %7 = vector.load %arg1[%c0_5, %c48, %c0_6] : memref<1x576x21xbf16, #tpu.memory_space<vmem>>, vector<1x128x21xbf16>
    %8 = vector.shape_cast %7 : vector<1x128x21xbf16> to vector<128x21xbf16>
    %c1 = arith.constant 1 : index
    %c0_7 = arith.constant 0 : index
    %c0_8 = arith.constant 0 : index
    %9 = vector.load %arg2[%c1, %c0_7, %c0_8] : memref<7x21x8xbf16, #tpu.memory_space<vmem>>, vector<1x21x8xbf16>
    %10 = vector.shape_cast %9 : vector<1x21x8xbf16> to vector<21x8xbf16>
    %cst_9 = arith.constant dense<0.000000e+00> : vector<128x8xf32>
    %11 = tpu.matmul %8, %10, %cst_9 {dimension_numbers = #tpu.dot_dimension_numbers<[1], [0], [0], [1], [0, 0, 1, 1], [], []>} : vector<128x21xbf16>, vector<21x8xbf16>, vector<128x8xf32> -> vector<128x8xf32>
    %12 = arith.addf %6, %11 : vector<128x8xf32>
    %c0_10 = arith.constant 0 : index
    %c72 = arith.constant 72 : index
    %c0_11 = arith.constant 0 : index
    %13 = vector.load %arg1[%c0_10, %c72, %c0_11] : memref<1x576x21xbf16, #tpu.memory_space<vmem>>, vector<1x128x21xbf16>
    %14 = vector.shape_cast %13 : vector<1x128x21xbf16> to vector<128x21xbf16>
    %c2 = arith.constant 2 : index
    %c0_12 = arith.constant 0 : index
    %c0_13 = arith.constant 0 : index
    %15 = vector.load %arg2[%c2, %c0_12, %c0_13] : memref<7x21x8xbf16, #tpu.memory_space<vmem>>, vector<1x21x8xbf16>
    %16 = vector.shape_cast %15 : vector<1x21x8xbf16> to vector<21x8xbf16>
    %cst_14 = arith.constant dense<0.000000e+00> : vector<128x8xf32>
    %17 = tpu.matmul %14, %16, %cst_14 {dimension_numbers = #tpu.dot_dimension_numbers<[1], [0], [0], [1], [0, 0, 1, 1], [], []>} : vector<128x21xbf16>, vector<21x8xbf16>, vector<128x8xf32> -> vector<128x8xf32>
    %18 = arith.addf %12, %17 : vector<128x8xf32>
    %c0_15 = arith.constant 0 : index
    %c96 = arith.constant 96 : index
    %c0_16 = arith.constant 0 : index
    %19 = vector.load %arg1[%c0_15, %c96, %c0_16] : memref<1x576x21xbf16, #tpu.memory_space<vmem>>, vector<1x128x21xbf16>
    %20 = vector.shape_cast %19 : vector<1x128x21xbf16> to vector<128x21xbf16>
    %c3 = arith.constant 3 : index
    %c0_17 = arith.constant 0 : index
    %c0_18 = arith.constant 0 : index
    %21 = vector.load %arg2[%c3, %c0_17, %c0_18] : memref<7x21x8xbf16, #tpu.memory_space<vmem>>, vector<1x21x8xbf16>
    %22 = vector.shape_cast %21 : vector<1x21x8xbf16> to vector<21x8xbf16>
    %cst_19 = arith.constant dense<0.000000e+00> : vector<128x8xf32>
    %23 = tpu.matmul %20, %22, %cst_19 {dimension_numbers = #tpu.dot_dimension_numbers<[1], [0], [0], [1], [0, 0, 1, 1], [], []>} : vector<128x21xbf16>, vector<21x8xbf16>, vector<128x8xf32> -> vector<128x8xf32>
    %24 = arith.addf %18, %23 : vector<128x8xf32>
    %c0_20 = arith.constant 0 : index
    %c120 = arith.constant 120 : index
    %c0_21 = arith.constant 0 : index
    %25 = vector.load %arg1[%c0_20, %c120, %c0_21] : memref<1x576x21xbf16, #tpu.memory_space<vmem>>, vector<1x128x21xbf16>
    %26 = vector.shape_cast %25 : vector<1x128x21xbf16> to vector<128x21xbf16>
    %c4 = arith.constant 4 : index
    %c0_22 = arith.constant 0 : index
    %c0_23 = arith.constant 0 : index
    %27 = vector.load %arg2[%c4, %c0_22, %c0_23] : memref<7x21x8xbf16, #tpu.memory_space<vmem>>, vector<1x21x8xbf16>
    %28 = vector.shape_cast %27 : vector<1x21x8xbf16> to vector<21x8xbf16>
    %cst_24 = arith.constant dense<0.000000e+00> : vector<128x8xf32>
    %29 = tpu.matmul %26, %28, %cst_24 {dimension_numbers = #tpu.dot_dimension_numbers<[1], [0], [0], [1], [0, 0, 1, 1], [], []>} : vector<128x21xbf16>, vector<21x8xbf16>, vector<128x8xf32> -> vector<128x8xf32>
    %30 = arith.addf %24, %29 : vector<128x8xf32>
    %c0_25 = arith.constant 0 : index
    %c144 = arith.constant 144 : index
    %c0_26 = arith.constant 0 : index
    %31 = vector.load %arg1[%c0_25, %c144, %c0_26] : memref<1x576x21xbf16, #tpu.memory_space<vmem>>, vector<1x128x21xbf16>
    %32 = vector.shape_cast %31 : vector<1x128x21xbf16> to vector<128x21xbf16>
    %c5 = arith.constant 5 : index
    %c0_27 = arith.constant 0 : index
    %c0_28 = arith.constant 0 : index
    %33 = vector.load %arg2[%c5, %c0_27, %c0_28] : memref<7x21x8xbf16, #tpu.memory_space<vmem>>, vector<1x21x8xbf16>
    %34 = vector.shape_cast %33 : vector<1x21x8xbf16> to vector<21x8xbf16>
    %cst_29 = arith.constant dense<0.000000e+00> : vector<128x8xf32>
    %35 = tpu.matmul %32, %34, %cst_29 {dimension_numbers = #tpu.dot_dimension_numbers<[1], [0], [0], [1], [0, 0, 1, 1], [], []>} : vector<128x21xbf16>, vector<21x8xbf16>, vector<128x8xf32> -> vector<128x8xf32>
    %36 = arith.addf %30, %35 : vector<128x8xf32>
    %c0_30 = arith.constant 0 : index
    %c168 = arith.constant 168 : index
    %c0_31 = arith.constant 0 : index
    %37 = vector.load %arg1[%c0_30, %c168, %c0_31] : memref<1x576x21xbf16, #tpu.memory_space<vmem>>, vector<1x128x21xbf16>
    %38 = vector.shape_cast %37 : vector<1x128x21xbf16> to vector<128x21xbf16>
    %c6 = arith.constant 6 : index
    %c0_32 = arith.constant 0 : index
    %c0_33 = arith.constant 0 : index
    %39 = vector.load %arg2[%c6, %c0_32, %c0_33] : memref<7x21x8xbf16, #tpu.memory_space<vmem>>, vector<1x21x8xbf16>
    %40 = vector.shape_cast %39 : vector<1x21x8xbf16> to vector<21x8xbf16>
    %cst_34 = arith.constant dense<0.000000e+00> : vector<128x8xf32>
    %41 = tpu.matmul %38, %40, %cst_34 {dimension_numbers = #tpu.dot_dimension_numbers<[1], [0], [0], [1], [0, 0, 1, 1], [], []>} : vector<128x21xbf16>, vector<21x8xbf16>, vector<128x8xf32> -> vector<128x8xf32>
    %42 = arith.addf %36, %41 : vector<128x8xf32>
    %c0_35 = arith.constant 0 : index
    %c0_36 = arith.constant 0 : index
    %43 = vector.load %arg3[%c0_35, %c0_36] : memref<1x8xf32, #tpu.memory_space<vmem>>, vector<1x8xf32>
    %44 = vector.broadcast %43 : vector<1x8xf32> to vector<128x8xf32>
    %45 = arith.addf %42, %44 : vector<128x8xf32>
    %46 = arith.truncf %45 : vector<128x8xf32> to vector<128x8xbf16>
    %c96_37 = arith.constant 96 : index
    %c0_38 = arith.constant 0 : index
    %47 = vector.load %arg18[%c96_37, %c0_38] : memref<576x8xbf16, #tpu.memory_space<vmem>>, vector<128x8xbf16>
    tpu.vector_store %arg18[%c96_37, %c0_38], %46 {strides = array<i32>} : memref<576x8xbf16, #tpu.memory_space<vmem>>, vector<128x8xbf16>,
    %c0_39 = arith.constant 0 : index
    %c0_40 = arith.constant 0 : index
    %48 = vector.load %arg4[%c0_39, %c0_40] : memref<1x8xf32, #tpu.memory_space<vmem>>, vector<1x8xf32>
    %49 = vector.broadcast %48 : vector<1x8xf32> to vector<128x8xf32>
    %50 = arith.mulf %45, %49 : vector<128x8xf32>
    %c0_41 = arith.constant 0 : index
    %c0_42 = arith.constant 0 : index
    %51 = vector.load %arg5[%c0_41, %c0_42] : memref<1x8xf32, #tpu.memory_space<vmem>>, vector<1x8xf32>
    %52 = vector.broadcast %51 : vector<1x8xf32> to vector<128x8xf32>
    %53 = arith.addf %50, %52 : vector<128x8xf32>
    %cst_43 = arith.constant 0.000000e+00 : f32
    %54 = vector.broadcast %cst_43 : f32 to vector<128x8xf32>
    %55 = arith.maximumf %53, %54 : vector<128x8xf32>
    %56 = arith.truncf %55 : vector<128x8xf32> to vector<128x8xbf16>
    %c96_44 = arith.constant 96 : index
    %c0_45 = arith.constant 0 : index
    %57 = vector.load %arg19[%c96_44, %c0_45] : memref<576x8xbf16, #tpu.memory_space<vmem>>, vector<128x8xbf16>
    tpu.vector_store %arg19[%c96_44, %c0_45], %56 {strides = array<i32>} : memref<576x8xbf16, #tpu.memory_space<vmem>>, vector<128x8xbf16>,
    %cst_46 = arith.constant 0.000000e+00 : f32
    %58 = vector.broadcast %cst_46 : f32 to vector<128x8xf32>
    %c0_47 = arith.constant 0 : index
    %c152 = arith.constant 152 : index
    %c0_48 = arith.constant 0 : index
    %59 = vector.load %arg1[%c0_47, %c152, %c0_48] : memref<1x576x21xbf16, #tpu.memory_space<vmem>>, vector<1x128x21xbf16>
    %60 = vector.shape_cast %59 : vector<1x128x21xbf16> to vector<128x21xbf16>
    %c0_49 = arith.constant 0 : index
    %c0_50 = arith.constant 0 : index
    %c0_51 = arith.constant 0 : index
    %61 = vector.load %arg2[%c0_49, %c0_50, %c0_51] : memref<7x21x8xbf16, #tpu.memory_space<vmem>>, vector<1x21x8xbf16>
    %62 = vector.shape_cast %61 : vector<1x21x8xbf16> to vector<21x8xbf16>
    %cst_52 = arith.constant dense<0.000000e+00> : vector<128x8xf32>
    %63 = tpu.matmul %60, %62, %cst_52 {dimension_numbers = #tpu.dot_dimension_numbers<[1], [0], [0], [1], [0, 0, 1, 1], [], []>} : vector<128x21xbf16>, vector<21x8xbf16>, vector<128x8xf32> -> vector<128x8xf32>
    %64 = arith.addf %58, %63 : vector<128x8xf32>
    %c0_53 = arith.constant 0 : index
    %c176 = arith.constant 176 : index
    %c0_54 = arith.constant 0 : index
    %65 = vector.load %arg1[%c0_53, %c176, %c0_54] : memref<1x576x21xbf16, #tpu.memory_space<vmem>>, vector<1x128x21xbf16>
    %66 = vector.shape_cast %65 : vector<1x128x21xbf16> to vector<128x21xbf16>
    %c1_55 = arith.constant 1 : index
    %c0_56 = arith.constant 0 : index
    %c0_57 = arith.constant 0 : index
    %67 = vector.load %arg2[%c1_55, %c0_56, %c0_57] : memref<7x21x8xbf16, #tpu.memory_space<vmem>>, vector<1x21x8xbf16>
    %68 = vector.shape_cast %67 : vector<1x21x8xbf16> to vector<21x8xbf16>
    %cst_58 = arith.constant dense<0.000000e+00> : vector<128x8xf32>
    %69 = tpu.matmul %66, %68, %cst_58 {dimension_numbers = #tpu.dot_dimension_numbers<[1], [0], [0], [1], [0, 0, 1, 1], [], []>} : vector<128x21xbf16>, vector<21x8xbf16>, vector<128x8xf32> -> vector<128x8xf32>
    %70 = arith.addf %64, %69 : vector<128x8xf32>
    %c0_59 = arith.constant 0 : index
    %c200 = arith.constant 200 : index
    %c0_60 = arith.constant 0 : index
    %71 = vector.load %arg1[%c0_59, %c200, %c0_60] : memref<1x576x21xbf16, #tpu.memory_space<vmem>>, vector<1x128x21xbf16>
    %72 = vector.shape_cast %71 : vector<1x128x21xbf16> to vector<128x21xbf16>
    %c2_61 = arith.constant 2 : index
    %c0_62 = arith.constant 0 : index
    %c0_63 = arith.constant 0 : index
    %73 = vector.load %arg2[%c2_61, %c0_62, %c0_63] : memref<7x21x8xbf16, #tpu.memory_space<vmem>>, vector<1x21x8xbf16>
    %74 = vector.shape_cast %73 : vector<1x21x8xbf16> to vector<21x8xbf16>
    %cst_64 = arith.constant dense<0.000000e+00> : vector<128x8xf32>
    %75 = tpu.matmul %72, %74, %cst_64 {dimension_numbers = #tpu.dot_dimension_numbers<[1], [0], [0], [1], [0, 0, 1, 1], [], []>} : vector<128x21xbf16>, vector<21x8xbf16>, vector<128x8xf32> -> vector<128x8xf32>
    %76 = arith.addf %70, %75 : vector<128x8xf32>
    %c0_65 = arith.constant 0 : index
    %c224 = arith.constant 224 : index
    %c0_66 = arith.constant 0 : index
    %77 = vector.load %arg1[%c0_65, %c224, %c0_66] : memref<1x576x21xbf16, #tpu.memory_space<vmem>>, vector<1x128x21xbf16>
    %78 = vector.shape_cast %77 : vector<1x128x21xbf16> to vector<128x21xbf16>
    %c3_67 = arith.constant 3 : index
    %c0_68 = arith.constant 0 : index
    %c0_69 = arith.constant 0 : index
    %79 = vector.load %arg2[%c3_67, %c0_68, %c0_69] : memref<7x21x8xbf16, #tpu.memory_space<vmem>>, vector<1x21x8xbf16>
    %80 = vector.shape_cast %79 : vector<1x21x8xbf16> to vector<21x8xbf16>
    %cst_70 = arith.constant dense<0.000000e+00> : vector<128x8xf32>
    %81 = tpu.matmul %78, %80, %cst_70 {dimension_numbers = #tpu.dot_dimension_numbers<[1], [0], [0], [1], [0, 0, 1, 1], [], []>} : vector<128x21xbf16>, vector<21x8xbf16>, vector<128x8xf32> -> vector<128x8xf32>
    %82 = arith.addf %76, %81 : vector<128x8xf32>
    %c0_71 = arith.constant 0 : index
    %c248 = arith.constant 248 : index
    %c0_72 = arith.constant 0 : index
    %83 = vector.load %arg1[%c0_71, %c248, %c0_72] : memref<1x576x21xbf16, #tpu.memory_space<vmem>>, vector<1x128x21xbf16>
    %84 = vector.shape_cast %83 : vector<1x128x21xbf16> to vector<128x21xbf16>
    %c4_73 = arith.constant 4 : index
    %c0_74 = arith.constant 0 : index
    %c0_75 = arith.constant 0 : index
    %85 = vector.load %arg2[%c4_73, %c0_74, %c0_75] : memref<7x21x8xbf16, #tpu.memory_space<vmem>>, vector<1x21x8xbf16>
    %86 = vector.shape_cast %85 : vector<1x21x8xbf16> to vector<21x8xbf16>
    %cst_76 = arith.constant dense<0.000000e+00> : vector<128x8xf32>
    %87 = tpu.matmul %84, %86, %cst_76 {dimension_numbers = #tpu.dot_dimension_numbers<[1], [0], [0], [1], [0, 0, 1, 1], [], []>} : vector<128x21xbf16>, vector<21x8xbf16>, vector<128x8xf32> -> vector<128x8xf32>
    %88 = arith.addf %82, %87 : vector<128x8xf32>
    %c0_77 = arith.constant 0 : index
    %c272 = arith.constant 272 : index
    %c0_78 = arith.constant 0 : index
    %89 = vector.load %arg1[%c0_77, %c272, %c0_78] : memref<1x576x21xbf16, #tpu.memory_space<vmem>>, vector<1x128x21xbf16>
    %90 = vector.shape_cast %89 : vector<1x128x21xbf16> to vector<128x21xbf16>
    %c5_79 = arith.constant 5 : index
    %c0_80 = arith.constant 0 : index
    %c0_81 = arith.constant 0 : index
    %91 = vector.load %arg2[%c5_79, %c0_80, %c0_81] : memref<7x21x8xbf16, #tpu.memory_space<vmem>>, vector<1x21x8xbf16>
    %92 = vector.shape_cast %91 : vector<1x21x8xbf16> to vector<21x8xbf16>
    %cst_82 = arith.constant dense<0.000000e+00> : vector<128x8xf32>
    %93 = tpu.matmul %90, %92, %cst_82 {dimension_numbers = #tpu.dot_dimension_numbers<[1], [0], [0], [1], [0, 0, 1, 1], [], []>} : vector<128x21xbf16>, vector<21x8xbf16>, vector<128x8xf32> -> vector<128x8xf32>
    %94 = arith.addf %88, %93 : vector<128x8xf32>
    %c0_83 = arith.constant 0 : index
    %c296 = arith.constant 296 : index
    %c0_84 = arith.constant 0 : index
    %95 = vector.load %arg1[%c0_83, %c296, %c0_84] : memref<1x576x21xbf16, #tpu.memory_space<vmem>>, vector<1x128x21xbf16>
    %96 = vector.shape_cast %95 : vector<1x128x21xbf16> to vector<128x21xbf16>
    %c6_85 = arith.constant 6 : index
    %c0_86 = arith.constant 0 : index
    %c0_87 = arith.constant 0 : index
    %97 = vector.load %arg2[%c6_85, %c0_86, %c0_87] : memref<7x21x8xbf16, #tpu.memory_space<vmem>>, vector<1x21x8xbf16>
    %98 = vector.shape_cast %97 : vector<1x21x8xbf16> to vector<21x8xbf16>
    %cst_88 = arith.constant dense<0.000000e+00> : vector<128x8xf32>
    %99 = tpu.matmul %96, %98, %cst_88 {dimension_numbers = #tpu.dot_dimension_numbers<[1], [0], [0], [1], [0, 0, 1, 1], [], []>} : vector<128x21xbf16>, vector<21x8xbf16>, vector<128x8xf32> -> vector<128x8xf32>
    %100 = arith.addf %94, %99 : vector<128x8xf32>
    %c0_89 = arith.constant 0 : index
    %c0_90 = arith.constant 0 : index
    %101 = vector.load %arg3[%c0_89, %c0_90] : memref<1x8xf32, #tpu.memory_space<vmem>>, vector<1x8xf32>
    %102 = vector.broadcast %101 : vector<1x8xf32> to vector<128x8xf32>
    %103 = arith.addf %100, %102 : vector<128x8xf32>
    %104 = arith.truncf %103 : vector<128x8xf32> to vector<128x8xbf16>
    %c224_91 = arith.constant 224 : index
    %c0_92 = arith.constant 0 : index
    %105 = vector.load %arg18[%c224_91, %c0_92] : memref<576x8xbf16, #tpu.memory_space<vmem>>, vector<128x8xbf16>
    tpu.vector_store %arg18[%c224_91, %c0_92], %104 {strides = array<i32>} : memref<576x8xbf16, #tpu.memory_space<vmem>>, vector<128x8xbf16>,
    %c0_93 = arith.constant 0 : index
    %c0_94 = arith.constant 0 : index
    %106 = vector.load %arg4[%c0_93, %c0_94] : memref<1x8xf32, #tpu.memory_space<vmem>>, vector<1x8xf32>
    %107 = vector.broadcast %106 : vector<1x8xf32> to vector<128x8xf32>
    %108 = arith.mulf %103, %107 : vector<128x8xf32>
    %c0_95 = arith.constant 0 : index
    %c0_96 = arith.constant 0 : index
    %109 = vector.load %arg5[%c0_95, %c0_96] : memref<1x8xf32, #tpu.memory_space<vmem>>, vector<1x8xf32>
    %110 = vector.broadcast %109 : vector<1x8xf32> to vector<128x8xf32>
    %111 = arith.addf %108, %110 : vector<128x8xf32>
    %cst_97 = arith.constant 0.000000e+00 : f32
    %112 = vector.broadcast %cst_97 : f32 to vector<128x8xf32>
    %113 = arith.maximumf %111, %112 : vector<128x8xf32>
    %114 = arith.truncf %113 : vector<128x8xf32> to vector<128x8xbf16>
    %c224_98 = arith.constant 224 : index
    %c0_99 = arith.constant 0 : index
    %115 = vector.load %arg19[%c224_98, %c0_99] : memref<576x8xbf16, #tpu.memory_space<vmem>>, vector<128x8xbf16>
    tpu.vector_store %arg19[%c224_98, %c0_99], %114 {strides = array<i32>} : memref<576x8xbf16, #tpu.memory_space<vmem>>, vector<128x8xbf16>,
    %cst_100 = arith.constant 0.000000e+00 : f32
    %116 = vector.broadcast %cst_100 : f32 to vector<128x8xf32>
    %c0_101 = arith.constant 0 : index
    %c280 = arith.constant 280 : index
    %c0_102 = arith.constant 0 : index
    %117 = vector.load %arg1[%c0_101, %c280, %c0_102] : memref<1x576x21xbf16, #tpu.memory_space<vmem>>, vector<1x128x21xbf16>
    %118 = vector.shape_cast %117 : vector<1x128x21xbf16> to vector<128x21xbf16>
    %c0_103 = arith.constant 0 : index
    %c0_104 = arith.constant 0 : index
    %c0_105 = arith.constant 0 : index
    %119 = vector.load %arg2[%c0_103, %c0_104, %c0_105] : memref<7x21x8xbf16, #tpu.memory_space<vmem>>, vector<1x21x8xbf16>
    %120 = vector.shape_cast %119 : vector<1x21x8xbf16> to vector<21x8xbf16>
    %cst_106 = arith.constant dense<0.000000e+00> : vector<128x8xf32>
    %121 = tpu.matmul %118, %120, %cst_106 {dimension_numbers = #tpu.dot_dimension_numbers<[1], [0], [0], [1], [0, 0, 1, 1], [], []>} : vector<128x21xbf16>, vector<21x8xbf16>, vector<128x8xf32> -> vector<128x8xf32>
    %122 = arith.addf %116, %121 : vector<128x8xf32>
    %c0_107 = arith.constant 0 : index
    %c304 = arith.constant 304 : index
    %c0_108 = arith.constant 0 : index
    %123 = vector.load %arg1[%c0_107, %c304, %c0_108] : memref<1x576x21xbf16, #tpu.memory_space<vmem>>, vector<1x128x21xbf16>
    %124 = vector.shape_cast %123 : vector<1x128x21xbf16> to vector<128x21xbf16>
    %c1_109 = arith.constant 1 : index
    %c0_110 = arith.constant 0 : index
    %c0_111 = arith.constant 0 : index
    %125 = vector.load %arg2[%c1_109, %c0_110, %c0_111] : memref<7x21x8xbf16, #tpu.memory_space<vmem>>, vector<1x21x8xbf16>
    %126 = vector.shape_cast %125 : vector<1x21x8xbf16> to vector<21x8xbf16>
    %cst_112 = arith.constant dense<0.000000e+00> : vector<128x8xf32>
    %127 = tpu.matmul %124, %126, %cst_112 {dimension_numbers = #tpu.dot_dimension_numbers<[1], [0], [0], [1], [0, 0, 1, 1], [], []>} : vector<128x21xbf16>, vector<21x8xbf16>, vector<128x8xf32> -> vector<128x8xf32>
    %128 = arith.addf %122, %127 : vector<128x8xf32>
    %c0_113 = arith.constant 0 : index
    %c328 = arith.constant 328 : index
    %c0_114 = arith.constant 0 : index
    %129 = vector.load %arg1[%c0_113, %c328, %c0_114] : memref<1x576x21xbf16, #tpu.memory_space<vmem>>, vector<1x128x21xbf16>
    %130 = vector.shape_cast %129 : vector<1x128x21xbf16> to vector<128x21xbf16>
    %c2_115 = arith.constant 2 : index
    %c0_116 = arith.constant 0 : index
    %c0_117 = arith.constant 0 : index
    %131 = vector.load %arg2[%c2_115, %c0_116, %c0_117] : memref<7x21x8xbf16, #tpu.memory_space<vmem>>, vector<1x21x8xbf16>
    %132 = vector.shape_cast %131 : vector<1x21x8xbf16> to vector<21x8xbf16>
    %cst_118 = arith.constant dense<0.000000e+00> : vector<128x8xf32>
    %133 = tpu.matmul %130, %132, %cst_118 {dimension_numbers = #tpu.dot_dimension_numbers<[1], [0], [0], [1], [0, 0, 1, 1], [], []>} : vector<128x21xbf16>, vector<21x8xbf16>, vector<128x8xf32> -> vector<128x8xf32>
    %134 = arith.addf %128, %133 : vector<128x8xf32>
    %c0_119 = arith.constant 0 : index
    %c352 = arith.constant 352 : index
    %c0_120 = arith.constant 0 : index
    %135 = vector.load %arg1[%c0_119, %c352, %c0_120] : memref<1x576x21xbf16, #tpu.memory_space<vmem>>, vector<1x128x21xbf16>
    %136 = vector.shape_cast %135 : vector<1x128x21xbf16> to vector<128x21xbf16>
    %c3_121 = arith.constant 3 : index
    %c0_122 = arith.constant 0 : index
    %c0_123 = arith.constant 0 : index
    %137 = vector.load %arg2[%c3_121, %c0_122, %c0_123] : memref<7x21x8xbf16, #tpu.memory_space<vmem>>, vector<1x21x8xbf16>
    %138 = vector.shape_cast %137 : vector<1x21x8xbf16> to vector<21x8xbf16>
    %cst_124 = arith.constant dense<0.000000e+00> : vector<128x8xf32>
    %139 = tpu.matmul %136, %138, %cst_124 {dimension_numbers = #tpu.dot_dimension_numbers<[1], [0], [0], [1], [0, 0, 1, 1], [], []>} : vector<128x21xbf16>, vector<21x8xbf16>, vector<128x8xf32> -> vector<128x8xf32>
    %140 = arith.addf %134, %139 : vector<128x8xf32>
    %c0_125 = arith.constant 0 : index
    %c376 = arith.constant 376 : index
    %c0_126 = arith.constant 0 : index
    %141 = vector.load %arg1[%c0_125, %c376, %c0_126] : memref<1x576x21xbf16, #tpu.memory_space<vmem>>, vector<1x128x21xbf16>
    %142 = vector.shape_cast %141 : vector<1x128x21xbf16> to vector<128x21xbf16>
    %c4_127 = arith.constant 4 : index
    %c0_128 = arith.constant 0 : index
    %c0_129 = arith.constant 0 : index
    %143 = vector.load %arg2[%c4_127, %c0_128, %c0_129] : memref<7x21x8xbf16, #tpu.memory_space<vmem>>, vector<1x21x8xbf16>
    %144 = vector.shape_cast %143 : vector<1x21x8xbf16> to vector<21x8xbf16>
    %cst_130 = arith.constant dense<0.000000e+00> : vector<128x8xf32>
    %145 = tpu.matmul %142, %144, %cst_130 {dimension_numbers = #tpu.dot_dimension_numbers<[1], [0], [0], [1], [0, 0, 1, 1], [], []>} : vector<128x21xbf16>, vector<21x8xbf16>, vector<128x8xf32> -> vector<128x8xf32>
    %146 = arith.addf %140, %145 : vector<128x8xf32>
    %c0_131 = arith.constant 0 : index
    %c400 = arith.constant 400 : index
    %c0_132 = arith.constant 0 : index
    %147 = vector.load %arg1[%c0_131, %c400, %c0_132] : memref<1x576x21xbf16, #tpu.memory_space<vmem>>, vector<1x128x21xbf16>
    %148 = vector.shape_cast %147 : vector<1x128x21xbf16> to vector<128x21xbf16>
    %c5_133 = arith.constant 5 : index
    %c0_134 = arith.constant 0 : index
    %c0_135 = arith.constant 0 : index
    %149 = vector.load %arg2[%c5_133, %c0_134, %c0_135] : memref<7x21x8xbf16, #tpu.memory_space<vmem>>, vector<1x21x8xbf16>
    %150 = vector.shape_cast %149 : vector<1x21x8xbf16> to vector<21x8xbf16>
    %cst_136 = arith.constant dense<0.000000e+00> : vector<128x8xf32>
    %151 = tpu.matmul %148, %150, %cst_136 {dimension_numbers = #tpu.dot_dimension_numbers<[1], [0], [0], [1], [0, 0, 1, 1], [], []>} : vector<128x21xbf16>, vector<21x8xbf16>, vector<128x8xf32> -> vector<128x8xf32>
    %152 = arith.addf %146, %151 : vector<128x8xf32>
    %c0_137 = arith.constant 0 : index
    %c424 = arith.constant 424 : index
    %c0_138 = arith.constant 0 : index
    %153 = vector.load %arg1[%c0_137, %c424, %c0_138] : memref<1x576x21xbf16, #tpu.memory_space<vmem>>, vector<1x128x21xbf16>
    %154 = vector.shape_cast %153 : vector<1x128x21xbf16> to vector<128x21xbf16>
    %c6_139 = arith.constant 6 : index
    %c0_140 = arith.constant 0 : index
    %c0_141 = arith.constant 0 : index
    %155 = vector.load %arg2[%c6_139, %c0_140, %c0_141] : memref<7x21x8xbf16, #tpu.memory_space<vmem>>, vector<1x21x8xbf16>
    %156 = vector.shape_cast %155 : vector<1x21x8xbf16> to vector<21x8xbf16>
    %cst_142 = arith.constant dense<0.000000e+00> : vector<128x8xf32>
    %157 = tpu.matmul %154, %156, %cst_142 {dimension_numbers = #tpu.dot_dimension_numbers<[1], [0], [0], [1], [0, 0, 1, 1], [], []>} : vector<128x21xbf16>, vector<21x8xbf16>, vector<128x8xf32> -> vector<128x8xf32>
    %158 = arith.addf %152, %157 : vector<128x8xf32>
    %c0_143 = arith.constant 0 : index
    %c0_144 = arith.constant 0 : index
    %159 = vector.load %arg3[%c0_143, %c0_144] : memref<1x8xf32, #tpu.memory_space<vmem>>, vector<1x8xf32>
    %160 = vector.broadcast %159 : vector<1x8xf32> to vector<128x8xf32>
    %161 = arith.addf %158, %160 : vector<128x8xf32>
    %162 = arith.truncf %161 : vector<128x8xf32> to vector<128x8xbf16>
    %c352_145 = arith.constant 352 : index
    %c0_146 = arith.constant 0 : index
    %163 = vector.load %arg18[%c352_145, %c0_146] : memref<576x8xbf16, #tpu.memory_space<vmem>>, vector<128x8xbf16>
    tpu.vector_store %arg18[%c352_145, %c0_146], %162 {strides = array<i32>} : memref<576x8xbf16, #tpu.memory_space<vmem>>, vector<128x8xbf16>,
    %c0_147 = arith.constant 0 : index
    %c0_148 = arith.constant 0 : index
    %164 = vector.load %arg4[%c0_147, %c0_148] : memref<1x8xf32, #tpu.memory_space<vmem>>, vector<1x8xf32>
    %165 = vector.broadcast %164 : vector<1x8xf32> to vector<128x8xf32>
    %166 = arith.mulf %161, %165 : vector<128x8xf32>
    %c0_149 = arith.constant 0 : index
    %c0_150 = arith.constant 0 : index
    %167 = vector.load %arg5[%c0_149, %c0_150] : memref<1x8xf32, #tpu.memory_space<vmem>>, vector<1x8xf32>
    %168 = vector.broadcast %167 : vector<1x8xf32> to vector<128x8xf32>
    %169 = arith.addf %166, %168 : vector<128x8xf32>
    %cst_151 = arith.constant 0.000000e+00 : f32
    %170 = vector.broadcast %cst_151 : f32 to vector<128x8xf32>
    %171 = arith.maximumf %169, %170 : vector<128x8xf32>
    %172 = arith.truncf %171 : vector<128x8xf32> to vector<128x8xbf16>
    %c352_152 = arith.constant 352 : index
    %c0_153 = arith.constant 0 : index
    %173 = vector.load %arg19[%c352_152, %c0_153] : memref<576x8xbf16, #tpu.memory_space<vmem>>, vector<128x8xbf16>
    tpu.vector_store %arg19[%c352_152, %c0_153], %172 {strides = array<i32>} : memref<576x8xbf16, #tpu.memory_space<vmem>>, vector<128x8xbf16>,
    %cst_154 = arith.constant 0.000000e+00 : bf16
    %174 = vector.broadcast %cst_154 : bf16 to vector<100x8xbf16>
    %c0_155 = arith.constant 0 : index
    %c0_156 = arith.constant 0 : index
    %175 = vector.load %arg19[%c0_155, %c0_156] : memref<576x8xbf16, #tpu.memory_space<vmem>>, vector<100x8xbf16>
    tpu.vector_store %arg19[%c0_155, %c0_156], %174 {strides = array<i32>} : memref<576x8xbf16, #tpu.memory_space<vmem>>, vector<100x8xbf16>,
    %cst_157 = arith.constant 0.000000e+00 : bf16
    %176 = vector.broadcast %cst_157 : bf16 to vector<100x8xbf16>
    %c476 = arith.constant 476 : index
    %c0_158 = arith.constant 0 : index
    %177 = vector.load %arg19[%c476, %c0_158] : memref<576x8xbf16, #tpu.memory_space<vmem>>, vector<100x8xbf16>
    tpu.vector_store %arg19[%c476, %c0_158], %176 {strides = array<i32>} : memref<576x8xbf16, #tpu.memory_space<vmem>>, vector<100x8xbf16>,
    %cst_159 = arith.constant 0.000000e+00 : bf16
    %178 = vector.broadcast %cst_159 : bf16 to vector<8x8xbf16>
    %c116 = arith.constant 116 : index
    %c0_160 = arith.constant 0 : index
    %179 = vector.load %arg19[%c116, %c0_160] : memref<576x8xbf16, #tpu.memory_space<vmem>>, vector<8x8xbf16>
    tpu.vector_store %arg19[%c116, %c0_160], %178 {strides = array<i32>} : memref<576x8xbf16, #tpu.memory_space<vmem>>, vector<8x8xbf16>,
    %c140 = arith.constant 140 : index
    %c0_161 = arith.constant 0 : index
    %180 = vector.load %arg19[%c140, %c0_161] : memref<576x8xbf16, #tpu.memory_space<vmem>>, vector<8x8xbf16>
    tpu.vector_store %arg19[%c140, %c0_161], %178 {strides = array<i32>} : memref<576x8xbf16, #tpu.memory_space<vmem>>, vector<8x8xbf16>,
    %c164 = arith.constant 164 : index
    %c0_162 = arith.constant 0 : index
    %181 = vector.load %arg19[%c164, %c0_162] : memref<576x8xbf16, #tpu.memory_space<vmem>>, vector<8x8xbf16>
    tpu.vector_store %arg19[%c164, %c0_162], %178 {strides = array<i32>} : memref<576x8xbf16, #tpu.memory_space<vmem>>, vector<8x8xbf16>,
    %c188 = arith.constant 188 : index
    %c0_163 = arith.constant 0 : index
    %182 = vector.load %arg19[%c188, %c0_163] : memref<576x8xbf16, #tpu.memory_space<vmem>>, vector<8x8xbf16>
    tpu.vector_store %arg19[%c188, %c0_163], %178 {strides = array<i32>} : memref<576x8xbf16, #tpu.memory_space<vmem>>, vector<8x8xbf16>,
    %c212 = arith.constant 212 : index
    %c0_164 = arith.constant 0 : index
    %183 = vector.load %arg19[%c212, %c0_164] : memref<576x8xbf16, #tpu.memory_space<vmem>>, vector<8x8xbf16>
    tpu.vector_store %arg19[%c212, %c0_164], %178 {strides = array<i32>} : memref<576x8xbf16, #tpu.memory_space<vmem>>, vector<8x8xbf16>,
    %c236 = arith.constant 236 : index
    %c0_165 = arith.constant 0 : index
    %184 = vector.load %arg19[%c236, %c0_165] : memref<576x8xbf16, #tpu.memory_space<vmem>>, vector<8x8xbf16>
    tpu.vector_store %arg19[%c236, %c0_165], %178 {strides = array<i32>} : memref<576x8xbf16, #tpu.memory_space<vmem>>, vector<8x8xbf16>,
    %c260 = arith.constant 260 : index
    %c0_166 = arith.constant 0 : index
    %185 = vector.load %arg19[%c260, %c0_166] : memref<576x8xbf16, #tpu.memory_space<vmem>>, vector<8x8xbf16>
    tpu.vector_store %arg19[%c260, %c0_166], %178 {strides = array<i32>} : memref<576x8xbf16, #tpu.memory_space<vmem>>, vector<8x8xbf16>,
    %c284 = arith.constant 284 : index
    %c0_167 = arith.constant 0 : index
    %186 = vector.load %arg19[%c284, %c0_167] : memref<576x8xbf16, #tpu.memory_space<vmem>>, vector<8x8xbf16>
    tpu.vector_store %arg19[%c284, %c0_167], %178 {strides = array<i32>} : memref<576x8xbf16, #tpu.memory_space<vmem>>, vector<8x8xbf16>,
    %c308 = arith.constant 308 : index
    %c0_168 = arith.constant 0 : index
    %187 = vector.load %arg19[%c308, %c0_168] : memref<576x8xbf16, #tpu.memory_space<vmem>>, vector<8x8xbf16>
    tpu.vector_store %arg19[%c308, %c0_168], %178 {strides = array<i32>} : memref<576x8xbf16, #tpu.memory_space<vmem>>, vector<8x8xbf16>,
    %c332 = arith.constant 332 : index
    %c0_169 = arith.constant 0 : index
    %188 = vector.load %arg19[%c332, %c0_169] : memref<576x8xbf16, #tpu.memory_space<vmem>>, vector<8x8xbf16>
    tpu.vector_store %arg19[%c332, %c0_169], %178 {strides = array<i32>} : memref<576x8xbf16, #tpu.memory_space<vmem>>, vector<8x8xbf16>,
    %c356 = arith.constant 356 : index
    %c0_170 = arith.constant 0 : index
    %189 = vector.load %arg19[%c356, %c0_170] : memref<576x8xbf16, #tpu.memory_space<vmem>>, vector<8x8xbf16>
    tpu.vector_store %arg19[%c356, %c0_170], %178 {strides = array<i32>} : memref<576x8xbf16, #tpu.memory_space<vmem>>, vector<8x8xbf16>,
    %c380 = arith.constant 380 : index
    %c0_171 = arith.constant 0 : index
    %190 = vector.load %arg19[%c380, %c0_171] : memref<576x8xbf16, #tpu.memory_space<vmem>>, vector<8x8xbf16>
    tpu.vector_store %arg19[%c380, %c0_171], %178 {strides = array<i32>} : memref<576x8xbf16, #tpu.memory_space<vmem>>, vector<8x8xbf16>,
    %c404 = arith.constant 404 : index
    %c0_172 = arith.constant 0 : index
    %191 = vector.load %arg19[%c404, %c0_172] : memref<576x8xbf16, #tpu.memory_space<vmem>>, vector<8x8xbf16>
    tpu.vector_store %arg19[%c404, %c0_172], %178 {strides = array<i32>} : memref<576x8xbf16, #tpu.memory_space<vmem>>, vector<8x8xbf16>,
    %c428 = arith.constant 428 : index
    %c0_173 = arith.constant 0 : index
    %192 = vector.load %arg19[%c428, %c0_173] : memref<576x8xbf16, #tpu.memory_space<vmem>>, vector<8x8xbf16>
    tpu.vector_store %arg19[%c428, %c0_173], %178 {strides = array<i32>} : memref<576x8xbf16, #tpu.memory_space<vmem>>, vector<8x8xbf16>,
    %c452 = arith.constant 452 : index
    %c0_174 = arith.constant 0 : index
    %193 = vector.load %arg19[%c452, %c0_174] : memref<576x8xbf16, #tpu.memory_space<vmem>>, vector<8x8xbf16>
    tpu.vector_store %arg19[%c452, %c0_174], %178 {strides = array<i32>} : memref<576x8xbf16, #tpu.memory_space<vmem>>, vector<8x8xbf16>,
    %cst_175 = arith.constant 0.000000e+00 : f32
    %194 = vector.broadcast %cst_175 : f32 to vector<128x16xf32>
    %c71 = arith.constant 71 : index
    %c0_176 = arith.constant 0 : index
    %195 = vector.load %arg19[%c71, %c0_176] : memref<576x8xbf16, #tpu.memory_space<vmem>>, vector<128x8xbf16>
    %c0_177 = arith.constant 0 : index
    %c0_178 = arith.constant 0 : index
    %c0_179 = arith.constant 0 : index
    %196 = vector.load %arg6[%c0_177, %c0_178, %c0_179] : memref<9x8x16xbf16, #tpu.memory_space<vmem>>, vector<1x8x16xbf16>
    %197 = vector.shape_cast %196 : vector<1x8x16xbf16> to vector<8x16xbf16>
    %cst_180 = arith.constant dense<0.000000e+00> : vector<128x16xf32>
    %198 = tpu.matmul %195, %197, %cst_180 {dimension_numbers = #tpu.dot_dimension_numbers<[1], [0], [0], [1], [0, 0, 1, 1], [], []>} : vector<128x8xbf16>, vector<8x16xbf16>, vector<128x16xf32> -> vector<128x16xf32>
    %199 = arith.addf %194, %198 : vector<128x16xf32>
    %c72_181 = arith.constant 72 : index
    %c0_182 = arith.constant 0 : index
    %200 = vector.load %arg19[%c72_181, %c0_182] : memref<576x8xbf16, #tpu.memory_space<vmem>>, vector<128x8xbf16>
    %c1_183 = arith.constant 1 : index
    %c0_184 = arith.constant 0 : index
    %c0_185 = arith.constant 0 : index
    %201 = vector.load %arg6[%c1_183, %c0_184, %c0_185] : memref<9x8x16xbf16, #tpu.memory_space<vmem>>, vector<1x8x16xbf16>
    %202 = vector.shape_cast %201 : vector<1x8x16xbf16> to vector<8x16xbf16>
    %cst_186 = arith.constant dense<0.000000e+00> : vector<128x16xf32>
    %203 = tpu.matmul %200, %202, %cst_186 {dimension_numbers = #tpu.dot_dimension_numbers<[1], [0], [0], [1], [0, 0, 1, 1], [], []>} : vector<128x8xbf16>, vector<8x16xbf16>, vector<128x16xf32> -> vector<128x16xf32>
    %204 = arith.addf %199, %203 : vector<128x16xf32>
    %c73 = arith.constant 73 : index
    %c0_187 = arith.constant 0 : index
    %205 = vector.load %arg19[%c73, %c0_187] : memref<576x8xbf16, #tpu.memory_space<vmem>>, vector<128x8xbf16>
    %c2_188 = arith.constant 2 : index
    %c0_189 = arith.constant 0 : index
    %c0_190 = arith.constant 0 : index
    %206 = vector.load %arg6[%c2_188, %c0_189, %c0_190] : memref<9x8x16xbf16, #tpu.memory_space<vmem>>, vector<1x8x16xbf16>
    %207 = vector.shape_cast %206 : vector<1x8x16xbf16> to vector<8x16xbf16>
    %cst_191 = arith.constant dense<0.000000e+00> : vector<128x16xf32>
    %208 = tpu.matmul %205, %207, %cst_191 {dimension_numbers = #tpu.dot_dimension_numbers<[1], [0], [0], [1], [0, 0, 1, 1], [], []>} : vector<128x8xbf16>, vector<8x16xbf16>, vector<128x16xf32> -> vector<128x16xf32>
    %209 = arith.addf %204, %208 : vector<128x16xf32>
    %c95 = arith.constant 95 : index
    %c0_192 = arith.constant 0 : index
    %210 = vector.load %arg19[%c95, %c0_192] : memref<576x8xbf16, #tpu.memory_space<vmem>>, vector<128x8xbf16>
    %c3_193 = arith.constant 3 : index
    %c0_194 = arith.constant 0 : index
    %c0_195 = arith.constant 0 : index
    %211 = vector.load %arg6[%c3_193, %c0_194, %c0_195] : memref<9x8x16xbf16, #tpu.memory_space<vmem>>, vector<1x8x16xbf16>
    %212 = vector.shape_cast %211 : vector<1x8x16xbf16> to vector<8x16xbf16>
    %cst_196 = arith.constant dense<0.000000e+00> : vector<128x16xf32>
    %213 = tpu.matmul %210, %212, %cst_196 {dimension_numbers = #tpu.dot_dimension_numbers<[1], [0], [0], [1], [0, 0, 1, 1], [], []>} : vector<128x8xbf16>, vector<8x16xbf16>, vector<128x16xf32> -> vector<128x16xf32>
    %214 = arith.addf %209, %213 : vector<128x16xf32>
    %c96_197 = arith.constant 96 : index
    %c0_198 = arith.constant 0 : index
    %215 = vector.load %arg19[%c96_197, %c0_198] : memref<576x8xbf16, #tpu.memory_space<vmem>>, vector<128x8xbf16>
    %c4_199 = arith.constant 4 : index
    %c0_200 = arith.constant 0 : index
    %c0_201 = arith.constant 0 : index
    %216 = vector.load %arg6[%c4_199, %c0_200, %c0_201] : memref<9x8x16xbf16, #tpu.memory_space<vmem>>, vector<1x8x16xbf16>
    %217 = vector.shape_cast %216 : vector<1x8x16xbf16> to vector<8x16xbf16>
    %cst_202 = arith.constant dense<0.000000e+00> : vector<128x16xf32>
    %218 = tpu.matmul %215, %217, %cst_202 {dimension_numbers = #tpu.dot_dimension_numbers<[1], [0], [0], [1], [0, 0, 1, 1], [], []>} : vector<128x8xbf16>, vector<8x16xbf16>, vector<128x16xf32> -> vector<128x16xf32>
    %219 = arith.addf %214, %218 : vector<128x16xf32>
    %c97 = arith.constant 97 : index
    %c0_203 = arith.constant 0 : index
    %220 = vector.load %arg19[%c97, %c0_203] : memref<576x8xbf16, #tpu.memory_space<vmem>>, vector<128x8xbf16>
    %c5_204 = arith.constant 5 : index
    %c0_205 = arith.constant 0 : index
    %c0_206 = arith.constant 0 : index
    %221 = vector.load %arg6[%c5_204, %c0_205, %c0_206] : memref<9x8x16xbf16, #tpu.memory_space<vmem>>, vector<1x8x16xbf16>
    %222 = vector.shape_cast %221 : vector<1x8x16xbf16> to vector<8x16xbf16>
    %cst_207 = arith.constant dense<0.000000e+00> : vector<128x16xf32>
    %223 = tpu.matmul %220, %222, %cst_207 {dimension_numbers = #tpu.dot_dimension_numbers<[1], [0], [0], [1], [0, 0, 1, 1], [], []>} : vector<128x8xbf16>, vector<8x16xbf16>, vector<128x16xf32> -> vector<128x16xf32>
    %224 = arith.addf %219, %223 : vector<128x16xf32>
    %c119 = arith.constant 119 : index
    %c0_208 = arith.constant 0 : index
    %225 = vector.load %arg19[%c119, %c0_208] : memref<576x8xbf16, #tpu.memory_space<vmem>>, vector<128x8xbf16>
    %c6_209 = arith.constant 6 : index
    %c0_210 = arith.constant 0 : index
    %c0_211 = arith.constant 0 : index
    %226 = vector.load %arg6[%c6_209, %c0_210, %c0_211] : memref<9x8x16xbf16, #tpu.memory_space<vmem>>, vector<1x8x16xbf16>
    %227 = vector.shape_cast %226 : vector<1x8x16xbf16> to vector<8x16xbf16>
    %cst_212 = arith.constant dense<0.000000e+00> : vector<128x16xf32>
    %228 = tpu.matmul %225, %227, %cst_212 {dimension_numbers = #tpu.dot_dimension_numbers<[1], [0], [0], [1], [0, 0, 1, 1], [], []>} : vector<128x8xbf16>, vector<8x16xbf16>, vector<128x16xf32> -> vector<128x16xf32>
    %229 = arith.addf %224, %228 : vector<128x16xf32>
    %c120_213 = arith.constant 120 : index
    %c0_214 = arith.constant 0 : index
    %230 = vector.load %arg19[%c120_213, %c0_214] : memref<576x8xbf16, #tpu.memory_space<vmem>>, vector<128x8xbf16>
    %c7 = arith.constant 7 : index
    %c0_215 = arith.constant 0 : index
    %c0_216 = arith.constant 0 : index
    %231 = vector.load %arg6[%c7, %c0_215, %c0_216] : memref<9x8x16xbf16, #tpu.memory_space<vmem>>, vector<1x8x16xbf16>
    %232 = vector.shape_cast %231 : vector<1x8x16xbf16> to vector<8x16xbf16>
    %cst_217 = arith.constant dense<0.000000e+00> : vector<128x16xf32>
    %233 = tpu.matmul %230, %232, %cst_217 {dimension_numbers = #tpu.dot_dimension_numbers<[1], [0], [0], [1], [0, 0, 1, 1], [], []>} : vector<128x8xbf16>, vector<8x16xbf16>, vector<128x16xf32> -> vector<128x16xf32>
    %234 = arith.addf %229, %233 : vector<128x16xf32>
    %c121 = arith.constant 121 : index
    %c0_218 = arith.constant 0 : index
    %235 = vector.load %arg19[%c121, %c0_218] : memref<576x8xbf16, #tpu.memory_space<vmem>>, vector<128x8xbf16>
    %c8 = arith.constant 8 : index
    %c0_219 = arith.constant 0 : index
    %c0_220 = arith.constant 0 : index
    %236 = vector.load %arg6[%c8, %c0_219, %c0_220] : memref<9x8x16xbf16, #tpu.memory_space<vmem>>, vector<1x8x16xbf16>
    %237 = vector.shape_cast %236 : vector<1x8x16xbf16> to vector<8x16xbf16>
    %cst_221 = arith.constant dense<0.000000e+00> : vector<128x16xf32>
    %238 = tpu.matmul %235, %237, %cst_221 {dimension_numbers = #tpu.dot_dimension_numbers<[1], [0], [0], [1], [0, 0, 1, 1], [], []>} : vector<128x8xbf16>, vector<8x16xbf16>, vector<128x16xf32> -> vector<128x16xf32>
    %239 = arith.addf %234, %238 : vector<128x16xf32>
    %c0_222 = arith.constant 0 : index
    %c0_223 = arith.constant 0 : index
    %240 = vector.load %arg7[%c0_222, %c0_223] : memref<1x16xf32, #tpu.memory_space<vmem>>, vector<1x16xf32>
    %241 = vector.broadcast %240 : vector<1x16xf32> to vector<128x16xf32>
    %242 = arith.addf %239, %241 : vector<128x16xf32>
    %c0_224 = arith.constant 0 : index
    %c0_225 = arith.constant 0 : index
    %243 = vector.load %arg8[%c0_224, %c0_225] : memref<1x16xf32, #tpu.memory_space<vmem>>, vector<1x16xf32>
    %244 = vector.broadcast %243 : vector<1x16xf32> to vector<128x16xf32>
    %245 = arith.mulf %242, %244 : vector<128x16xf32>
    %c0_226 = arith.constant 0 : index
    %c0_227 = arith.constant 0 : index
    %246 = vector.load %arg9[%c0_226, %c0_227] : memref<1x16xf32, #tpu.memory_space<vmem>>, vector<1x16xf32>
    %247 = vector.broadcast %246 : vector<1x16xf32> to vector<128x16xf32>
    %248 = arith.addf %245, %247 : vector<128x16xf32>
    %cst_228 = arith.constant 0.000000e+00 : f32
    %249 = vector.broadcast %cst_228 : f32 to vector<128x16xf32>
    %250 = arith.maximumf %248, %249 : vector<128x16xf32>
    %251 = arith.truncf %250 : vector<128x16xf32> to vector<128x16xbf16>
    %c96_229 = arith.constant 96 : index
    %c0_230 = arith.constant 0 : index
    %252 = vector.load %arg20[%c96_229, %c0_230] : memref<576x16xbf16, #tpu.memory_space<vmem>>, vector<128x16xbf16>
    tpu.vector_store %arg20[%c96_229, %c0_230], %251 {strides = array<i32>} : memref<576x16xbf16, #tpu.memory_space<vmem>>, vector<128x16xbf16>,
    %cst_231 = arith.constant 0.000000e+00 : f32
    %253 = vector.broadcast %cst_231 : f32 to vector<128x16xf32>
    %c199 = arith.constant 199 : index
    %c0_232 = arith.constant 0 : index
    %254 = vector.load %arg19[%c199, %c0_232] : memref<576x8xbf16, #tpu.memory_space<vmem>>, vector<128x8xbf16>
    %c0_233 = arith.constant 0 : index
    %c0_234 = arith.constant 0 : index
    %c0_235 = arith.constant 0 : index
    %255 = vector.load %arg6[%c0_233, %c0_234, %c0_235] : memref<9x8x16xbf16, #tpu.memory_space<vmem>>, vector<1x8x16xbf16>
    %256 = vector.shape_cast %255 : vector<1x8x16xbf16> to vector<8x16xbf16>
    %cst_236 = arith.constant dense<0.000000e+00> : vector<128x16xf32>
    %257 = tpu.matmul %254, %256, %cst_236 {dimension_numbers = #tpu.dot_dimension_numbers<[1], [0], [0], [1], [0, 0, 1, 1], [], []>} : vector<128x8xbf16>, vector<8x16xbf16>, vector<128x16xf32> -> vector<128x16xf32>
    %258 = arith.addf %253, %257 : vector<128x16xf32>
    %c200_237 = arith.constant 200 : index
    %c0_238 = arith.constant 0 : index
    %259 = vector.load %arg19[%c200_237, %c0_238] : memref<576x8xbf16, #tpu.memory_space<vmem>>, vector<128x8xbf16>
    %c1_239 = arith.constant 1 : index
    %c0_240 = arith.constant 0 : index
    %c0_241 = arith.constant 0 : index
    %260 = vector.load %arg6[%c1_239, %c0_240, %c0_241] : memref<9x8x16xbf16, #tpu.memory_space<vmem>>, vector<1x8x16xbf16>
    %261 = vector.shape_cast %260 : vector<1x8x16xbf16> to vector<8x16xbf16>
    %cst_242 = arith.constant dense<0.000000e+00> : vector<128x16xf32>
    %262 = tpu.matmul %259, %261, %cst_242 {dimension_numbers = #tpu.dot_dimension_numbers<[1], [0], [0], [1], [0, 0, 1, 1], [], []>} : vector<128x8xbf16>, vector<8x16xbf16>, vector<128x16xf32> -> vector<128x16xf32>
    %263 = arith.addf %258, %262 : vector<128x16xf32>
    %c201 = arith.constant 201 : index
    %c0_243 = arith.constant 0 : index
    %264 = vector.load %arg19[%c201, %c0_243] : memref<576x8xbf16, #tpu.memory_space<vmem>>, vector<128x8xbf16>
    %c2_244 = arith.constant 2 : index
    %c0_245 = arith.constant 0 : index
    %c0_246 = arith.constant 0 : index
    %265 = vector.load %arg6[%c2_244, %c0_245, %c0_246] : memref<9x8x16xbf16, #tpu.memory_space<vmem>>, vector<1x8x16xbf16>
    %266 = vector.shape_cast %265 : vector<1x8x16xbf16> to vector<8x16xbf16>
    %cst_247 = arith.constant dense<0.000000e+00> : vector<128x16xf32>
    %267 = tpu.matmul %264, %266, %cst_247 {dimension_numbers = #tpu.dot_dimension_numbers<[1], [0], [0], [1], [0, 0, 1, 1], [], []>} : vector<128x8xbf16>, vector<8x16xbf16>, vector<128x16xf32> -> vector<128x16xf32>
    %268 = arith.addf %263, %267 : vector<128x16xf32>
    %c223 = arith.constant 223 : index
    %c0_248 = arith.constant 0 : index
    %269 = vector.load %arg19[%c223, %c0_248] : memref<576x8xbf16, #tpu.memory_space<vmem>>, vector<128x8xbf16>
    %c3_249 = arith.constant 3 : index
    %c0_250 = arith.constant 0 : index
    %c0_251 = arith.constant 0 : index
    %270 = vector.load %arg6[%c3_249, %c0_250, %c0_251] : memref<9x8x16xbf16, #tpu.memory_space<vmem>>, vector<1x8x16xbf16>
    %271 = vector.shape_cast %270 : vector<1x8x16xbf16> to vector<8x16xbf16>
    %cst_252 = arith.constant dense<0.000000e+00> : vector<128x16xf32>
    %272 = tpu.matmul %269, %271, %cst_252 {dimension_numbers = #tpu.dot_dimension_numbers<[1], [0], [0], [1], [0, 0, 1, 1], [], []>} : vector<128x8xbf16>, vector<8x16xbf16>, vector<128x16xf32> -> vector<128x16xf32>
    %273 = arith.addf %268, %272 : vector<128x16xf32>
    %c224_253 = arith.constant 224 : index
    %c0_254 = arith.constant 0 : index
    %274 = vector.load %arg19[%c224_253, %c0_254] : memref<576x8xbf16, #tpu.memory_space<vmem>>, vector<128x8xbf16>
    %c4_255 = arith.constant 4 : index
    %c0_256 = arith.constant 0 : index
    %c0_257 = arith.constant 0 : index
    %275 = vector.load %arg6[%c4_255, %c0_256, %c0_257] : memref<9x8x16xbf16, #tpu.memory_space<vmem>>, vector<1x8x16xbf16>
    %276 = vector.shape_cast %275 : vector<1x8x16xbf16> to vector<8x16xbf16>
    %cst_258 = arith.constant dense<0.000000e+00> : vector<128x16xf32>
    %277 = tpu.matmul %274, %276, %cst_258 {dimension_numbers = #tpu.dot_dimension_numbers<[1], [0], [0], [1], [0, 0, 1, 1], [], []>} : vector<128x8xbf16>, vector<8x16xbf16>, vector<128x16xf32> -> vector<128x16xf32>
    %278 = arith.addf %273, %277 : vector<128x16xf32>
    %c225 = arith.constant 225 : index
    %c0_259 = arith.constant 0 : index
    %279 = vector.load %arg19[%c225, %c0_259] : memref<576x8xbf16, #tpu.memory_space<vmem>>, vector<128x8xbf16>
    %c5_260 = arith.constant 5 : index
    %c0_261 = arith.constant 0 : index
    %c0_262 = arith.constant 0 : index
    %280 = vector.load %arg6[%c5_260, %c0_261, %c0_262] : memref<9x8x16xbf16, #tpu.memory_space<vmem>>, vector<1x8x16xbf16>
    %281 = vector.shape_cast %280 : vector<1x8x16xbf16> to vector<8x16xbf16>
    %cst_263 = arith.constant dense<0.000000e+00> : vector<128x16xf32>
    %282 = tpu.matmul %279, %281, %cst_263 {dimension_numbers = #tpu.dot_dimension_numbers<[1], [0], [0], [1], [0, 0, 1, 1], [], []>} : vector<128x8xbf16>, vector<8x16xbf16>, vector<128x16xf32> -> vector<128x16xf32>
    %283 = arith.addf %278, %282 : vector<128x16xf32>
    %c247 = arith.constant 247 : index
    %c0_264 = arith.constant 0 : index
    %284 = vector.load %arg19[%c247, %c0_264] : memref<576x8xbf16, #tpu.memory_space<vmem>>, vector<128x8xbf16>
    %c6_265 = arith.constant 6 : index
    %c0_266 = arith.constant 0 : index
    %c0_267 = arith.constant 0 : index
    %285 = vector.load %arg6[%c6_265, %c0_266, %c0_267] : memref<9x8x16xbf16, #tpu.memory_space<vmem>>, vector<1x8x16xbf16>
    %286 = vector.shape_cast %285 : vector<1x8x16xbf16> to vector<8x16xbf16>
    %cst_268 = arith.constant dense<0.000000e+00> : vector<128x16xf32>
    %287 = tpu.matmul %284, %286, %cst_268 {dimension_numbers = #tpu.dot_dimension_numbers<[1], [0], [0], [1], [0, 0, 1, 1], [], []>} : vector<128x8xbf16>, vector<8x16xbf16>, vector<128x16xf32> -> vector<128x16xf32>
    %288 = arith.addf %283, %287 : vector<128x16xf32>
    %c248_269 = arith.constant 248 : index
    %c0_270 = arith.constant 0 : index
    %289 = vector.load %arg19[%c248_269, %c0_270] : memref<576x8xbf16, #tpu.memory_space<vmem>>, vector<128x8xbf16>
    %c7_271 = arith.constant 7 : index
    %c0_272 = arith.constant 0 : index
    %c0_273 = arith.constant 0 : index
    %290 = vector.load %arg6[%c7_271, %c0_272, %c0_273] : memref<9x8x16xbf16, #tpu.memory_space<vmem>>, vector<1x8x16xbf16>
    %291 = vector.shape_cast %290 : vector<1x8x16xbf16> to vector<8x16xbf16>
    %cst_274 = arith.constant dense<0.000000e+00> : vector<128x16xf32>
    %292 = tpu.matmul %289, %291, %cst_274 {dimension_numbers = #tpu.dot_dimension_numbers<[1], [0], [0], [1], [0, 0, 1, 1], [], []>} : vector<128x8xbf16>, vector<8x16xbf16>, vector<128x16xf32> -> vector<128x16xf32>
    %293 = arith.addf %288, %292 : vector<128x16xf32>
    %c249 = arith.constant 249 : index
    %c0_275 = arith.constant 0 : index
    %294 = vector.load %arg19[%c249, %c0_275] : memref<576x8xbf16, #tpu.memory_space<vmem>>, vector<128x8xbf16>
    %c8_276 = arith.constant 8 : index
    %c0_277 = arith.constant 0 : index
    %c0_278 = arith.constant 0 : index
    %295 = vector.load %arg6[%c8_276, %c0_277, %c0_278] : memref<9x8x16xbf16, #tpu.memory_space<vmem>>, vector<1x8x16xbf16>
    %296 = vector.shape_cast %295 : vector<1x8x16xbf16> to vector<8x16xbf16>
    %cst_279 = arith.constant dense<0.000000e+00> : vector<128x16xf32>
    %297 = tpu.matmul %294, %296, %cst_279 {dimension_numbers = #tpu.dot_dimension_numbers<[1], [0], [0], [1], [0, 0, 1, 1], [], []>} : vector<128x8xbf16>, vector<8x16xbf16>, vector<128x16xf32> -> vector<128x16xf32>
    %298 = arith.addf %293, %297 : vector<128x16xf32>
    %c0_280 = arith.constant 0 : index
    %c0_281 = arith.constant 0 : index
    %299 = vector.load %arg7[%c0_280, %c0_281] : memref<1x16xf32, #tpu.memory_space<vmem>>, vector<1x16xf32>
    %300 = vector.broadcast %299 : vector<1x16xf32> to vector<128x16xf32>
    %301 = arith.addf %298, %300 : vector<128x16xf32>
    %c0_282 = arith.constant 0 : index
    %c0_283 = arith.constant 0 : index
    %302 = vector.load %arg8[%c0_282, %c0_283] : memref<1x16xf32, #tpu.memory_space<vmem>>, vector<1x16xf32>
    %303 = vector.broadcast %302 : vector<1x16xf32> to vector<128x16xf32>
    %304 = arith.mulf %301, %303 : vector<128x16xf32>
    %c0_284 = arith.constant 0 : index
    %c0_285 = arith.constant 0 : index
    %305 = vector.load %arg9[%c0_284, %c0_285] : memref<1x16xf32, #tpu.memory_space<vmem>>, vector<1x16xf32>
    %306 = vector.broadcast %305 : vector<1x16xf32> to vector<128x16xf32>
    %307 = arith.addf %304, %306 : vector<128x16xf32>
    %cst_286 = arith.constant 0.000000e+00 : f32
    %308 = vector.broadcast %cst_286 : f32 to vector<128x16xf32>
    %309 = arith.maximumf %307, %308 : vector<128x16xf32>
    %310 = arith.truncf %309 : vector<128x16xf32> to vector<128x16xbf16>
    %c224_287 = arith.constant 224 : index
    %c0_288 = arith.constant 0 : index
    %311 = vector.load %arg20[%c224_287, %c0_288] : memref<576x16xbf16, #tpu.memory_space<vmem>>, vector<128x16xbf16>
    tpu.vector_store %arg20[%c224_287, %c0_288], %310 {strides = array<i32>} : memref<576x16xbf16, #tpu.memory_space<vmem>>, vector<128x16xbf16>,
    %cst_289 = arith.constant 0.000000e+00 : f32
    %312 = vector.broadcast %cst_289 : f32 to vector<128x16xf32>
    %c327 = arith.constant 327 : index
    %c0_290 = arith.constant 0 : index
    %313 = vector.load %arg19[%c327, %c0_290] : memref<576x8xbf16, #tpu.memory_space<vmem>>, vector<128x8xbf16>
    %c0_291 = arith.constant 0 : index
    %c0_292 = arith.constant 0 : index
    %c0_293 = arith.constant 0 : index
    %314 = vector.load %arg6[%c0_291, %c0_292, %c0_293] : memref<9x8x16xbf16, #tpu.memory_space<vmem>>, vector<1x8x16xbf16>
    %315 = vector.shape_cast %314 : vector<1x8x16xbf16> to vector<8x16xbf16>
    %cst_294 = arith.constant dense<0.000000e+00> : vector<128x16xf32>
    %316 = tpu.matmul %313, %315, %cst_294 {dimension_numbers = #tpu.dot_dimension_numbers<[1], [0], [0], [1], [0, 0, 1, 1], [], []>} : vector<128x8xbf16>, vector<8x16xbf16>, vector<128x16xf32> -> vector<128x16xf32>
    %317 = arith.addf %312, %316 : vector<128x16xf32>
    %c328_295 = arith.constant 328 : index
    %c0_296 = arith.constant 0 : index
    %318 = vector.load %arg19[%c328_295, %c0_296] : memref<576x8xbf16, #tpu.memory_space<vmem>>, vector<128x8xbf16>
    %c1_297 = arith.constant 1 : index
    %c0_298 = arith.constant 0 : index
    %c0_299 = arith.constant 0 : index
    %319 = vector.load %arg6[%c1_297, %c0_298, %c0_299] : memref<9x8x16xbf16, #tpu.memory_space<vmem>>, vector<1x8x16xbf16>
    %320 = vector.shape_cast %319 : vector<1x8x16xbf16> to vector<8x16xbf16>
    %cst_300 = arith.constant dense<0.000000e+00> : vector<128x16xf32>
    %321 = tpu.matmul %318, %320, %cst_300 {dimension_numbers = #tpu.dot_dimension_numbers<[1], [0], [0], [1], [0, 0, 1, 1], [], []>} : vector<128x8xbf16>, vector<8x16xbf16>, vector<128x16xf32> -> vector<128x16xf32>
    %322 = arith.addf %317, %321 : vector<128x16xf32>
    %c329 = arith.constant 329 : index
    %c0_301 = arith.constant 0 : index
    %323 = vector.load %arg19[%c329, %c0_301] : memref<576x8xbf16, #tpu.memory_space<vmem>>, vector<128x8xbf16>
    %c2_302 = arith.constant 2 : index
    %c0_303 = arith.constant 0 : index
    %c0_304 = arith.constant 0 : index
    %324 = vector.load %arg6[%c2_302, %c0_303, %c0_304] : memref<9x8x16xbf16, #tpu.memory_space<vmem>>, vector<1x8x16xbf16>
    %325 = vector.shape_cast %324 : vector<1x8x16xbf16> to vector<8x16xbf16>
    %cst_305 = arith.constant dense<0.000000e+00> : vector<128x16xf32>
    %326 = tpu.matmul %323, %325, %cst_305 {dimension_numbers = #tpu.dot_dimension_numbers<[1], [0], [0], [1], [0, 0, 1, 1], [], []>} : vector<128x8xbf16>, vector<8x16xbf16>, vector<128x16xf32> -> vector<128x16xf32>
    %327 = arith.addf %322, %326 : vector<128x16xf32>
    %c351 = arith.constant 351 : index
    %c0_306 = arith.constant 0 : index
    %328 = vector.load %arg19[%c351, %c0_306] : memref<576x8xbf16, #tpu.memory_space<vmem>>, vector<128x8xbf16>
    %c3_307 = arith.constant 3 : index
    %c0_308 = arith.constant 0 : index
    %c0_309 = arith.constant 0 : index
    %329 = vector.load %arg6[%c3_307, %c0_308, %c0_309] : memref<9x8x16xbf16, #tpu.memory_space<vmem>>, vector<1x8x16xbf16>
    %330 = vector.shape_cast %329 : vector<1x8x16xbf16> to vector<8x16xbf16>
    %cst_310 = arith.constant dense<0.000000e+00> : vector<128x16xf32>
    %331 = tpu.matmul %328, %330, %cst_310 {dimension_numbers = #tpu.dot_dimension_numbers<[1], [0], [0], [1], [0, 0, 1, 1], [], []>} : vector<128x8xbf16>, vector<8x16xbf16>, vector<128x16xf32> -> vector<128x16xf32>
    %332 = arith.addf %327, %331 : vector<128x16xf32>
    %c352_311 = arith.constant 352 : index
    %c0_312 = arith.constant 0 : index
    %333 = vector.load %arg19[%c352_311, %c0_312] : memref<576x8xbf16, #tpu.memory_space<vmem>>, vector<128x8xbf16>
    %c4_313 = arith.constant 4 : index
    %c0_314 = arith.constant 0 : index
    %c0_315 = arith.constant 0 : index
    %334 = vector.load %arg6[%c4_313, %c0_314, %c0_315] : memref<9x8x16xbf16, #tpu.memory_space<vmem>>, vector<1x8x16xbf16>
    %335 = vector.shape_cast %334 : vector<1x8x16xbf16> to vector<8x16xbf16>
    %cst_316 = arith.constant dense<0.000000e+00> : vector<128x16xf32>
    %336 = tpu.matmul %333, %335, %cst_316 {dimension_numbers = #tpu.dot_dimension_numbers<[1], [0], [0], [1], [0, 0, 1, 1], [], []>} : vector<128x8xbf16>, vector<8x16xbf16>, vector<128x16xf32> -> vector<128x16xf32>
    %337 = arith.addf %332, %336 : vector<128x16xf32>
    %c353 = arith.constant 353 : index
    %c0_317 = arith.constant 0 : index
    %338 = vector.load %arg19[%c353, %c0_317] : memref<576x8xbf16, #tpu.memory_space<vmem>>, vector<128x8xbf16>
    %c5_318 = arith.constant 5 : index
    %c0_319 = arith.constant 0 : index
    %c0_320 = arith.constant 0 : index
    %339 = vector.load %arg6[%c5_318, %c0_319, %c0_320] : memref<9x8x16xbf16, #tpu.memory_space<vmem>>, vector<1x8x16xbf16>
    %340 = vector.shape_cast %339 : vector<1x8x16xbf16> to vector<8x16xbf16>
    %cst_321 = arith.constant dense<0.000000e+00> : vector<128x16xf32>
    %341 = tpu.matmul %338, %340, %cst_321 {dimension_numbers = #tpu.dot_dimension_numbers<[1], [0], [0], [1], [0, 0, 1, 1], [], []>} : vector<128x8xbf16>, vector<8x16xbf16>, vector<128x16xf32> -> vector<128x16xf32>
    %342 = arith.addf %337, %341 : vector<128x16xf32>
    %c375 = arith.constant 375 : index
    %c0_322 = arith.constant 0 : index
    %343 = vector.load %arg19[%c375, %c0_322] : memref<576x8xbf16, #tpu.memory_space<vmem>>, vector<128x8xbf16>
    %c6_323 = arith.constant 6 : index
    %c0_324 = arith.constant 0 : index
    %c0_325 = arith.constant 0 : index
    %344 = vector.load %arg6[%c6_323, %c0_324, %c0_325] : memref<9x8x16xbf16, #tpu.memory_space<vmem>>, vector<1x8x16xbf16>
    %345 = vector.shape_cast %344 : vector<1x8x16xbf16> to vector<8x16xbf16>
    %cst_326 = arith.constant dense<0.000000e+00> : vector<128x16xf32>
    %346 = tpu.matmul %343, %345, %cst_326 {dimension_numbers = #tpu.dot_dimension_numbers<[1], [0], [0], [1], [0, 0, 1, 1], [], []>} : vector<128x8xbf16>, vector<8x16xbf16>, vector<128x16xf32> -> vector<128x16xf32>
    %347 = arith.addf %342, %346 : vector<128x16xf32>
    %c376_327 = arith.constant 376 : index
    %c0_328 = arith.constant 0 : index
    %348 = vector.load %arg19[%c376_327, %c0_328] : memref<576x8xbf16, #tpu.memory_space<vmem>>, vector<128x8xbf16>
    %c7_329 = arith.constant 7 : index
    %c0_330 = arith.constant 0 : index
    %c0_331 = arith.constant 0 : index
    %349 = vector.load %arg6[%c7_329, %c0_330, %c0_331] : memref<9x8x16xbf16, #tpu.memory_space<vmem>>, vector<1x8x16xbf16>
    %350 = vector.shape_cast %349 : vector<1x8x16xbf16> to vector<8x16xbf16>
    %cst_332 = arith.constant dense<0.000000e+00> : vector<128x16xf32>
    %351 = tpu.matmul %348, %350, %cst_332 {dimension_numbers = #tpu.dot_dimension_numbers<[1], [0], [0], [1], [0, 0, 1, 1], [], []>} : vector<128x8xbf16>, vector<8x16xbf16>, vector<128x16xf32> -> vector<128x16xf32>
    %352 = arith.addf %347, %351 : vector<128x16xf32>
    %c377 = arith.constant 377 : index
    %c0_333 = arith.constant 0 : index
    %353 = vector.load %arg19[%c377, %c0_333] : memref<576x8xbf16, #tpu.memory_space<vmem>>, vector<128x8xbf16>
    %c8_334 = arith.constant 8 : index
    %c0_335 = arith.constant 0 : index
    %c0_336 = arith.constant 0 : index
    %354 = vector.load %arg6[%c8_334, %c0_335, %c0_336] : memref<9x8x16xbf16, #tpu.memory_space<vmem>>, vector<1x8x16xbf16>
    %355 = vector.shape_cast %354 : vector<1x8x16xbf16> to vector<8x16xbf16>
    %cst_337 = arith.constant dense<0.000000e+00> : vector<128x16xf32>
    %356 = tpu.matmul %353, %355, %cst_337 {dimension_numbers = #tpu.dot_dimension_numbers<[1], [0], [0], [1], [0, 0, 1, 1], [], []>} : vector<128x8xbf16>, vector<8x16xbf16>, vector<128x16xf32> -> vector<128x16xf32>
    %357 = arith.addf %352, %356 : vector<128x16xf32>
    %c0_338 = arith.constant 0 : index
    %c0_339 = arith.constant 0 : index
    %358 = vector.load %arg7[%c0_338, %c0_339] : memref<1x16xf32, #tpu.memory_space<vmem>>, vector<1x16xf32>
    %359 = vector.broadcast %358 : vector<1x16xf32> to vector<128x16xf32>
    %360 = arith.addf %357, %359 : vector<128x16xf32>
    %c0_340 = arith.constant 0 : index
    %c0_341 = arith.constant 0 : index
    %361 = vector.load %arg8[%c0_340, %c0_341] : memref<1x16xf32, #tpu.memory_space<vmem>>, vector<1x16xf32>
    %362 = vector.broadcast %361 : vector<1x16xf32> to vector<128x16xf32>
    %363 = arith.mulf %360, %362 : vector<128x16xf32>
    %c0_342 = arith.constant 0 : index
    %c0_343 = arith.constant 0 : index
    %364 = vector.load %arg9[%c0_342, %c0_343] : memref<1x16xf32, #tpu.memory_space<vmem>>, vector<1x16xf32>
    %365 = vector.broadcast %364 : vector<1x16xf32> to vector<128x16xf32>
    %366 = arith.addf %363, %365 : vector<128x16xf32>
    %cst_344 = arith.constant 0.000000e+00 : f32
    %367 = vector.broadcast %cst_344 : f32 to vector<128x16xf32>
    %368 = arith.maximumf %366, %367 : vector<128x16xf32>
    %369 = arith.truncf %368 : vector<128x16xf32> to vector<128x16xbf16>
    %c352_345 = arith.constant 352 : index
    %c0_346 = arith.constant 0 : index
    %370 = vector.load %arg20[%c352_345, %c0_346] : memref<576x16xbf16, #tpu.memory_space<vmem>>, vector<128x16xbf16>
    tpu.vector_store %arg20[%c352_345, %c0_346], %369 {strides = array<i32>} : memref<576x16xbf16, #tpu.memory_space<vmem>>, vector<128x16xbf16>,
    %cst_347 = arith.constant 0.000000e+00 : bf16
    %371 = vector.broadcast %cst_347 : bf16 to vector<100x16xbf16>
    %c0_348 = arith.constant 0 : index
    %c0_349 = arith.constant 0 : index
    %372 = vector.load %arg20[%c0_348, %c0_349] : memref<576x16xbf16, #tpu.memory_space<vmem>>, vector<100x16xbf16>
    tpu.vector_store %arg20[%c0_348, %c0_349], %371 {strides = array<i32>} : memref<576x16xbf16, #tpu.memory_space<vmem>>, vector<100x16xbf16>,
    %cst_350 = arith.constant 0.000000e+00 : bf16
    %373 = vector.broadcast %cst_350 : bf16 to vector<100x16xbf16>
    %c476_351 = arith.constant 476 : index
    %c0_352 = arith.constant 0 : index
    %374 = vector.load %arg20[%c476_351, %c0_352] : memref<576x16xbf16, #tpu.memory_space<vmem>>, vector<100x16xbf16>
    tpu.vector_store %arg20[%c476_351, %c0_352], %373 {strides = array<i32>} : memref<576x16xbf16, #tpu.memory_space<vmem>>, vector<100x16xbf16>,
    %cst_353 = arith.constant 0.000000e+00 : bf16
    %375 = vector.broadcast %cst_353 : bf16 to vector<8x16xbf16>
    %c116_354 = arith.constant 116 : index
    %c0_355 = arith.constant 0 : index
    %376 = vector.load %arg20[%c116_354, %c0_355] : memref<576x16xbf16, #tpu.memory_space<vmem>>, vector<8x16xbf16>
    tpu.vector_store %arg20[%c116_354, %c0_355], %375 {strides = array<i32>} : memref<576x16xbf16, #tpu.memory_space<vmem>>, vector<8x16xbf16>,
    %c140_356 = arith.constant 140 : index
    %c0_357 = arith.constant 0 : index
    %377 = vector.load %arg20[%c140_356, %c0_357] : memref<576x16xbf16, #tpu.memory_space<vmem>>, vector<8x16xbf16>
    tpu.vector_store %arg20[%c140_356, %c0_357], %375 {strides = array<i32>} : memref<576x16xbf16, #tpu.memory_space<vmem>>, vector<8x16xbf16>,
    %c164_358 = arith.constant 164 : index
    %c0_359 = arith.constant 0 : index
    %378 = vector.load %arg20[%c164_358, %c0_359] : memref<576x16xbf16, #tpu.memory_space<vmem>>, vector<8x16xbf16>
    tpu.vector_store %arg20[%c164_358, %c0_359], %375 {strides = array<i32>} : memref<576x16xbf16, #tpu.memory_space<vmem>>, vector<8x16xbf16>,
    %c188_360 = arith.constant 188 : index
    %c0_361 = arith.constant 0 : index
    %379 = vector.load %arg20[%c188_360, %c0_361] : memref<576x16xbf16, #tpu.memory_space<vmem>>, vector<8x16xbf16>
    tpu.vector_store %arg20[%c188_360, %c0_361], %375 {strides = array<i32>} : memref<576x16xbf16, #tpu.memory_space<vmem>>, vector<8x16xbf16>,
    %c212_362 = arith.constant 212 : index
    %c0_363 = arith.constant 0 : index
    %380 = vector.load %arg20[%c212_362, %c0_363] : memref<576x16xbf16, #tpu.memory_space<vmem>>, vector<8x16xbf16>
    tpu.vector_store %arg20[%c212_362, %c0_363], %375 {strides = array<i32>} : memref<576x16xbf16, #tpu.memory_space<vmem>>, vector<8x16xbf16>,
    %c236_364 = arith.constant 236 : index
    %c0_365 = arith.constant 0 : index
    %381 = vector.load %arg20[%c236_364, %c0_365] : memref<576x16xbf16, #tpu.memory_space<vmem>>, vector<8x16xbf16>
    tpu.vector_store %arg20[%c236_364, %c0_365], %375 {strides = array<i32>} : memref<576x16xbf16, #tpu.memory_space<vmem>>, vector<8x16xbf16>,
    %c260_366 = arith.constant 260 : index
    %c0_367 = arith.constant 0 : index
    %382 = vector.load %arg20[%c260_366, %c0_367] : memref<576x16xbf16, #tpu.memory_space<vmem>>, vector<8x16xbf16>
    tpu.vector_store %arg20[%c260_366, %c0_367], %375 {strides = array<i32>} : memref<576x16xbf16, #tpu.memory_space<vmem>>, vector<8x16xbf16>,
    %c284_368 = arith.constant 284 : index
    %c0_369 = arith.constant 0 : index
    %383 = vector.load %arg20[%c284_368, %c0_369] : memref<576x16xbf16, #tpu.memory_space<vmem>>, vector<8x16xbf16>
    tpu.vector_store %arg20[%c284_368, %c0_369], %375 {strides = array<i32>} : memref<576x16xbf16, #tpu.memory_space<vmem>>, vector<8x16xbf16>,
    %c308_370 = arith.constant 308 : index
    %c0_371 = arith.constant 0 : index
    %384 = vector.load %arg20[%c308_370, %c0_371] : memref<576x16xbf16, #tpu.memory_space<vmem>>, vector<8x16xbf16>
    tpu.vector_store %arg20[%c308_370, %c0_371], %375 {strides = array<i32>} : memref<576x16xbf16, #tpu.memory_space<vmem>>, vector<8x16xbf16>,
    %c332_372 = arith.constant 332 : index
    %c0_373 = arith.constant 0 : index
    %385 = vector.load %arg20[%c332_372, %c0_373] : memref<576x16xbf16, #tpu.memory_space<vmem>>, vector<8x16xbf16>
    tpu.vector_store %arg20[%c332_372, %c0_373], %375 {strides = array<i32>} : memref<576x16xbf16, #tpu.memory_space<vmem>>, vector<8x16xbf16>,
    %c356_374 = arith.constant 356 : index
    %c0_375 = arith.constant 0 : index
    %386 = vector.load %arg20[%c356_374, %c0_375] : memref<576x16xbf16, #tpu.memory_space<vmem>>, vector<8x16xbf16>
    tpu.vector_store %arg20[%c356_374, %c0_375], %375 {strides = array<i32>} : memref<576x16xbf16, #tpu.memory_space<vmem>>, vector<8x16xbf16>,
    %c380_376 = arith.constant 380 : index
    %c0_377 = arith.constant 0 : index
    %387 = vector.load %arg20[%c380_376, %c0_377] : memref<576x16xbf16, #tpu.memory_space<vmem>>, vector<8x16xbf16>
    tpu.vector_store %arg20[%c380_376, %c0_377], %375 {strides = array<i32>} : memref<576x16xbf16, #tpu.memory_space<vmem>>, vector<8x16xbf16>,
    %c404_378 = arith.constant 404 : index
    %c0_379 = arith.constant 0 : index
    %388 = vector.load %arg20[%c404_378, %c0_379] : memref<576x16xbf16, #tpu.memory_space<vmem>>, vector<8x16xbf16>
    tpu.vector_store %arg20[%c404_378, %c0_379], %375 {strides = array<i32>} : memref<576x16xbf16, #tpu.memory_space<vmem>>, vector<8x16xbf16>,
    %c428_380 = arith.constant 428 : index
    %c0_381 = arith.constant 0 : index
    %389 = vector.load %arg20[%c428_380, %c0_381] : memref<576x16xbf16, #tpu.memory_space<vmem>>, vector<8x16xbf16>
    tpu.vector_store %arg20[%c428_380, %c0_381], %375 {strides = array<i32>} : memref<576x16xbf16, #tpu.memory_space<vmem>>, vector<8x16xbf16>,
    %c452_382 = arith.constant 452 : index
    %c0_383 = arith.constant 0 : index
    %390 = vector.load %arg20[%c452_382, %c0_383] : memref<576x16xbf16, #tpu.memory_space<vmem>>, vector<8x16xbf16>
    tpu.vector_store %arg20[%c452_382, %c0_383], %375 {strides = array<i32>} : memref<576x16xbf16, #tpu.memory_space<vmem>>, vector<8x16xbf16>,
    %c96_384 = arith.constant 96 : index
    %c0_385 = arith.constant 0 : index
    %391 = vector.load %arg18[%c96_384, %c0_385] : memref<576x8xbf16, #tpu.memory_space<vmem>>, vector<128x8xbf16>
    %c0_386 = arith.constant 0 : index
    %c0_387 = arith.constant 0 : index
    %392 = vector.load %arg12[%c0_386, %c0_387] : memref<8x16xbf16, #tpu.memory_space<vmem>>, vector<8x16xbf16>
    %cst_388 = arith.constant dense<0.000000e+00> : vector<128x16xf32>
    %393 = tpu.matmul %391, %392, %cst_388 {dimension_numbers = #tpu.dot_dimension_numbers<[1], [0], [0], [1], [0, 0, 1, 1], [], []>} : vector<128x8xbf16>, vector<8x16xbf16>, vector<128x16xf32> -> vector<128x16xf32>
    %c71_389 = arith.constant 71 : index
    %c0_390 = arith.constant 0 : index
    %394 = vector.load %arg20[%c71_389, %c0_390] : memref<576x16xbf16, #tpu.memory_space<vmem>>, vector<128x16xbf16>
    %c0_391 = arith.constant 0 : index
    %c0_392 = arith.constant 0 : index
    %c0_393 = arith.constant 0 : index
    %395 = vector.load %arg10[%c0_391, %c0_392, %c0_393] : memref<9x16x16xbf16, #tpu.memory_space<vmem>>, vector<1x16x16xbf16>
    %396 = vector.shape_cast %395 : vector<1x16x16xbf16> to vector<16x16xbf16>
    %cst_394 = arith.constant dense<0.000000e+00> : vector<128x16xf32>
    %397 = tpu.matmul %394, %396, %cst_394 {dimension_numbers = #tpu.dot_dimension_numbers<[1], [0], [0], [1], [0, 0, 1, 1], [], []>} : vector<128x16xbf16>, vector<16x16xbf16>, vector<128x16xf32> -> vector<128x16xf32>
    %398 = arith.addf %393, %397 : vector<128x16xf32>
    %c72_395 = arith.constant 72 : index
    %c0_396 = arith.constant 0 : index
    %399 = vector.load %arg20[%c72_395, %c0_396] : memref<576x16xbf16, #tpu.memory_space<vmem>>, vector<128x16xbf16>
    %c1_397 = arith.constant 1 : index
    %c0_398 = arith.constant 0 : index
    %c0_399 = arith.constant 0 : index
    %400 = vector.load %arg10[%c1_397, %c0_398, %c0_399] : memref<9x16x16xbf16, #tpu.memory_space<vmem>>, vector<1x16x16xbf16>
    %401 = vector.shape_cast %400 : vector<1x16x16xbf16> to vector<16x16xbf16>
    %cst_400 = arith.constant dense<0.000000e+00> : vector<128x16xf32>
    %402 = tpu.matmul %399, %401, %cst_400 {dimension_numbers = #tpu.dot_dimension_numbers<[1], [0], [0], [1], [0, 0, 1, 1], [], []>} : vector<128x16xbf16>, vector<16x16xbf16>, vector<128x16xf32> -> vector<128x16xf32>
    %403 = arith.addf %398, %402 : vector<128x16xf32>
    %c73_401 = arith.constant 73 : index
    %c0_402 = arith.constant 0 : index
    %404 = vector.load %arg20[%c73_401, %c0_402] : memref<576x16xbf16, #tpu.memory_space<vmem>>, vector<128x16xbf16>
    %c2_403 = arith.constant 2 : index
    %c0_404 = arith.constant 0 : index
    %c0_405 = arith.constant 0 : index
    %405 = vector.load %arg10[%c2_403, %c0_404, %c0_405] : memref<9x16x16xbf16, #tpu.memory_space<vmem>>, vector<1x16x16xbf16>
    %406 = vector.shape_cast %405 : vector<1x16x16xbf16> to vector<16x16xbf16>
    %cst_406 = arith.constant dense<0.000000e+00> : vector<128x16xf32>
    %407 = tpu.matmul %404, %406, %cst_406 {dimension_numbers = #tpu.dot_dimension_numbers<[1], [0], [0], [1], [0, 0, 1, 1], [], []>} : vector<128x16xbf16>, vector<16x16xbf16>, vector<128x16xf32> -> vector<128x16xf32>
    %408 = arith.addf %403, %407 : vector<128x16xf32>
    %c95_407 = arith.constant 95 : index
    %c0_408 = arith.constant 0 : index
    %409 = vector.load %arg20[%c95_407, %c0_408] : memref<576x16xbf16, #tpu.memory_space<vmem>>, vector<128x16xbf16>
    %c3_409 = arith.constant 3 : index
    %c0_410 = arith.constant 0 : index
    %c0_411 = arith.constant 0 : index
    %410 = vector.load %arg10[%c3_409, %c0_410, %c0_411] : memref<9x16x16xbf16, #tpu.memory_space<vmem>>, vector<1x16x16xbf16>
    %411 = vector.shape_cast %410 : vector<1x16x16xbf16> to vector<16x16xbf16>
    %cst_412 = arith.constant dense<0.000000e+00> : vector<128x16xf32>
    %412 = tpu.matmul %409, %411, %cst_412 {dimension_numbers = #tpu.dot_dimension_numbers<[1], [0], [0], [1], [0, 0, 1, 1], [], []>} : vector<128x16xbf16>, vector<16x16xbf16>, vector<128x16xf32> -> vector<128x16xf32>
    %413 = arith.addf %408, %412 : vector<128x16xf32>
    %c96_413 = arith.constant 96 : index
    %c0_414 = arith.constant 0 : index
    %414 = vector.load %arg20[%c96_413, %c0_414] : memref<576x16xbf16, #tpu.memory_space<vmem>>, vector<128x16xbf16>
    %c4_415 = arith.constant 4 : index
    %c0_416 = arith.constant 0 : index
    %c0_417 = arith.constant 0 : index
    %415 = vector.load %arg10[%c4_415, %c0_416, %c0_417] : memref<9x16x16xbf16, #tpu.memory_space<vmem>>, vector<1x16x16xbf16>
    %416 = vector.shape_cast %415 : vector<1x16x16xbf16> to vector<16x16xbf16>
    %cst_418 = arith.constant dense<0.000000e+00> : vector<128x16xf32>
    %417 = tpu.matmul %414, %416, %cst_418 {dimension_numbers = #tpu.dot_dimension_numbers<[1], [0], [0], [1], [0, 0, 1, 1], [], []>} : vector<128x16xbf16>, vector<16x16xbf16>, vector<128x16xf32> -> vector<128x16xf32>
    %418 = arith.addf %413, %417 : vector<128x16xf32>
    %c97_419 = arith.constant 97 : index
    %c0_420 = arith.constant 0 : index
    %419 = vector.load %arg20[%c97_419, %c0_420] : memref<576x16xbf16, #tpu.memory_space<vmem>>, vector<128x16xbf16>
    %c5_421 = arith.constant 5 : index
    %c0_422 = arith.constant 0 : index
    %c0_423 = arith.constant 0 : index
    %420 = vector.load %arg10[%c5_421, %c0_422, %c0_423] : memref<9x16x16xbf16, #tpu.memory_space<vmem>>, vector<1x16x16xbf16>
    %421 = vector.shape_cast %420 : vector<1x16x16xbf16> to vector<16x16xbf16>
    %cst_424 = arith.constant dense<0.000000e+00> : vector<128x16xf32>
    %422 = tpu.matmul %419, %421, %cst_424 {dimension_numbers = #tpu.dot_dimension_numbers<[1], [0], [0], [1], [0, 0, 1, 1], [], []>} : vector<128x16xbf16>, vector<16x16xbf16>, vector<128x16xf32> -> vector<128x16xf32>
    %423 = arith.addf %418, %422 : vector<128x16xf32>
    %c119_425 = arith.constant 119 : index
    %c0_426 = arith.constant 0 : index
    %424 = vector.load %arg20[%c119_425, %c0_426] : memref<576x16xbf16, #tpu.memory_space<vmem>>, vector<128x16xbf16>
    %c6_427 = arith.constant 6 : index
    %c0_428 = arith.constant 0 : index
    %c0_429 = arith.constant 0 : index
    %425 = vector.load %arg10[%c6_427, %c0_428, %c0_429] : memref<9x16x16xbf16, #tpu.memory_space<vmem>>, vector<1x16x16xbf16>
    %426 = vector.shape_cast %425 : vector<1x16x16xbf16> to vector<16x16xbf16>
    %cst_430 = arith.constant dense<0.000000e+00> : vector<128x16xf32>
    %427 = tpu.matmul %424, %426, %cst_430 {dimension_numbers = #tpu.dot_dimension_numbers<[1], [0], [0], [1], [0, 0, 1, 1], [], []>} : vector<128x16xbf16>, vector<16x16xbf16>, vector<128x16xf32> -> vector<128x16xf32>
    %428 = arith.addf %423, %427 : vector<128x16xf32>
    %c120_431 = arith.constant 120 : index
    %c0_432 = arith.constant 0 : index
    %429 = vector.load %arg20[%c120_431, %c0_432] : memref<576x16xbf16, #tpu.memory_space<vmem>>, vector<128x16xbf16>
    %c7_433 = arith.constant 7 : index
    %c0_434 = arith.constant 0 : index
    %c0_435 = arith.constant 0 : index
    %430 = vector.load %arg10[%c7_433, %c0_434, %c0_435] : memref<9x16x16xbf16, #tpu.memory_space<vmem>>, vector<1x16x16xbf16>
    %431 = vector.shape_cast %430 : vector<1x16x16xbf16> to vector<16x16xbf16>
    %cst_436 = arith.constant dense<0.000000e+00> : vector<128x16xf32>
    %432 = tpu.matmul %429, %431, %cst_436 {dimension_numbers = #tpu.dot_dimension_numbers<[1], [0], [0], [1], [0, 0, 1, 1], [], []>} : vector<128x16xbf16>, vector<16x16xbf16>, vector<128x16xf32> -> vector<128x16xf32>
    %433 = arith.addf %428, %432 : vector<128x16xf32>
    %c121_437 = arith.constant 121 : index
    %c0_438 = arith.constant 0 : index
    %434 = vector.load %arg20[%c121_437, %c0_438] : memref<576x16xbf16, #tpu.memory_space<vmem>>, vector<128x16xbf16>
    %c8_439 = arith.constant 8 : index
    %c0_440 = arith.constant 0 : index
    %c0_441 = arith.constant 0 : index
    %435 = vector.load %arg10[%c8_439, %c0_440, %c0_441] : memref<9x16x16xbf16, #tpu.memory_space<vmem>>, vector<1x16x16xbf16>
    %436 = vector.shape_cast %435 : vector<1x16x16xbf16> to vector<16x16xbf16>
    %cst_442 = arith.constant dense<0.000000e+00> : vector<128x16xf32>
    %437 = tpu.matmul %434, %436, %cst_442 {dimension_numbers = #tpu.dot_dimension_numbers<[1], [0], [0], [1], [0, 0, 1, 1], [], []>} : vector<128x16xbf16>, vector<16x16xbf16>, vector<128x16xf32> -> vector<128x16xf32>
    %438 = arith.addf %433, %437 : vector<128x16xf32>
    %c0_443 = arith.constant 0 : index
    %c0_444 = arith.constant 0 : index
    %439 = vector.load %arg11[%c0_443, %c0_444] : memref<1x16xf32, #tpu.memory_space<vmem>>, vector<1x16xf32>
    %440 = vector.broadcast %439 : vector<1x16xf32> to vector<128x16xf32>
    %441 = arith.addf %438, %440 : vector<128x16xf32>
    %c96_445 = arith.constant 96 : index
    %c0_446 = arith.constant 0 : index
    %442 = vector.load %arg21[%c96_445, %c0_446] : memref<576x16xf32, #tpu.memory_space<vmem>>, vector<128x16xf32>
    tpu.vector_store %arg21[%c96_445, %c0_446], %441 {strides = array<i32>} : memref<576x16xf32, #tpu.memory_space<vmem>>, vector<128x16xf32>,
    %c224_447 = arith.constant 224 : index
    %c0_448 = arith.constant 0 : index
    %443 = vector.load %arg18[%c224_447, %c0_448] : memref<576x8xbf16, #tpu.memory_space<vmem>>, vector<128x8xbf16>
    %c0_449 = arith.constant 0 : index
    %c0_450 = arith.constant 0 : index
    %444 = vector.load %arg12[%c0_449, %c0_450] : memref<8x16xbf16, #tpu.memory_space<vmem>>, vector<8x16xbf16>
    %cst_451 = arith.constant dense<0.000000e+00> : vector<128x16xf32>
    %445 = tpu.matmul %443, %444, %cst_451 {dimension_numbers = #tpu.dot_dimension_numbers<[1], [0], [0], [1], [0, 0, 1, 1], [], []>} : vector<128x8xbf16>, vector<8x16xbf16>, vector<128x16xf32> -> vector<128x16xf32>
    %c199_452 = arith.constant 199 : index
    %c0_453 = arith.constant 0 : index
    %446 = vector.load %arg20[%c199_452, %c0_453] : memref<576x16xbf16, #tpu.memory_space<vmem>>, vector<128x16xbf16>
    %c0_454 = arith.constant 0 : index
    %c0_455 = arith.constant 0 : index
    %c0_456 = arith.constant 0 : index
    %447 = vector.load %arg10[%c0_454, %c0_455, %c0_456] : memref<9x16x16xbf16, #tpu.memory_space<vmem>>, vector<1x16x16xbf16>
    %448 = vector.shape_cast %447 : vector<1x16x16xbf16> to vector<16x16xbf16>
    %cst_457 = arith.constant dense<0.000000e+00> : vector<128x16xf32>
    %449 = tpu.matmul %446, %448, %cst_457 {dimension_numbers = #tpu.dot_dimension_numbers<[1], [0], [0], [1], [0, 0, 1, 1], [], []>} : vector<128x16xbf16>, vector<16x16xbf16>, vector<128x16xf32> -> vector<128x16xf32>
    %450 = arith.addf %445, %449 : vector<128x16xf32>
    %c200_458 = arith.constant 200 : index
    %c0_459 = arith.constant 0 : index
    %451 = vector.load %arg20[%c200_458, %c0_459] : memref<576x16xbf16, #tpu.memory_space<vmem>>, vector<128x16xbf16>
    %c1_460 = arith.constant 1 : index
    %c0_461 = arith.constant 0 : index
    %c0_462 = arith.constant 0 : index
    %452 = vector.load %arg10[%c1_460, %c0_461, %c0_462] : memref<9x16x16xbf16, #tpu.memory_space<vmem>>, vector<1x16x16xbf16>
    %453 = vector.shape_cast %452 : vector<1x16x16xbf16> to vector<16x16xbf16>
    %cst_463 = arith.constant dense<0.000000e+00> : vector<128x16xf32>
    %454 = tpu.matmul %451, %453, %cst_463 {dimension_numbers = #tpu.dot_dimension_numbers<[1], [0], [0], [1], [0, 0, 1, 1], [], []>} : vector<128x16xbf16>, vector<16x16xbf16>, vector<128x16xf32> -> vector<128x16xf32>
    %455 = arith.addf %450, %454 : vector<128x16xf32>
    %c201_464 = arith.constant 201 : index
    %c0_465 = arith.constant 0 : index
    %456 = vector.load %arg20[%c201_464, %c0_465] : memref<576x16xbf16, #tpu.memory_space<vmem>>, vector<128x16xbf16>
    %c2_466 = arith.constant 2 : index
    %c0_467 = arith.constant 0 : index
    %c0_468 = arith.constant 0 : index
    %457 = vector.load %arg10[%c2_466, %c0_467, %c0_468] : memref<9x16x16xbf16, #tpu.memory_space<vmem>>, vector<1x16x16xbf16>
    %458 = vector.shape_cast %457 : vector<1x16x16xbf16> to vector<16x16xbf16>
    %cst_469 = arith.constant dense<0.000000e+00> : vector<128x16xf32>
    %459 = tpu.matmul %456, %458, %cst_469 {dimension_numbers = #tpu.dot_dimension_numbers<[1], [0], [0], [1], [0, 0, 1, 1], [], []>} : vector<128x16xbf16>, vector<16x16xbf16>, vector<128x16xf32> -> vector<128x16xf32>
    %460 = arith.addf %455, %459 : vector<128x16xf32>
    %c223_470 = arith.constant 223 : index
    %c0_471 = arith.constant 0 : index
    %461 = vector.load %arg20[%c223_470, %c0_471] : memref<576x16xbf16, #tpu.memory_space<vmem>>, vector<128x16xbf16>
    %c3_472 = arith.constant 3 : index
    %c0_473 = arith.constant 0 : index
    %c0_474 = arith.constant 0 : index
    %462 = vector.load %arg10[%c3_472, %c0_473, %c0_474] : memref<9x16x16xbf16, #tpu.memory_space<vmem>>, vector<1x16x16xbf16>
    %463 = vector.shape_cast %462 : vector<1x16x16xbf16> to vector<16x16xbf16>
    %cst_475 = arith.constant dense<0.000000e+00> : vector<128x16xf32>
    %464 = tpu.matmul %461, %463, %cst_475 {dimension_numbers = #tpu.dot_dimension_numbers<[1], [0], [0], [1], [0, 0, 1, 1], [], []>} : vector<128x16xbf16>, vector<16x16xbf16>, vector<128x16xf32> -> vector<128x16xf32>
    %465 = arith.addf %460, %464 : vector<128x16xf32>
    %c224_476 = arith.constant 224 : index
    %c0_477 = arith.constant 0 : index
    %466 = vector.load %arg20[%c224_476, %c0_477] : memref<576x16xbf16, #tpu.memory_space<vmem>>, vector<128x16xbf16>
    %c4_478 = arith.constant 4 : index
    %c0_479 = arith.constant 0 : index
    %c0_480 = arith.constant 0 : index
    %467 = vector.load %arg10[%c4_478, %c0_479, %c0_480] : memref<9x16x16xbf16, #tpu.memory_space<vmem>>, vector<1x16x16xbf16>
    %468 = vector.shape_cast %467 : vector<1x16x16xbf16> to vector<16x16xbf16>
    %cst_481 = arith.constant dense<0.000000e+00> : vector<128x16xf32>
    %469 = tpu.matmul %466, %468, %cst_481 {dimension_numbers = #tpu.dot_dimension_numbers<[1], [0], [0], [1], [0, 0, 1, 1], [], []>} : vector<128x16xbf16>, vector<16x16xbf16>, vector<128x16xf32> -> vector<128x16xf32>
    %470 = arith.addf %465, %469 : vector<128x16xf32>
    %c225_482 = arith.constant 225 : index
    %c0_483 = arith.constant 0 : index
    %471 = vector.load %arg20[%c225_482, %c0_483] : memref<576x16xbf16, #tpu.memory_space<vmem>>, vector<128x16xbf16>
    %c5_484 = arith.constant 5 : index
    %c0_485 = arith.constant 0 : index
    %c0_486 = arith.constant 0 : index
    %472 = vector.load %arg10[%c5_484, %c0_485, %c0_486] : memref<9x16x16xbf16, #tpu.memory_space<vmem>>, vector<1x16x16xbf16>
    %473 = vector.shape_cast %472 : vector<1x16x16xbf16> to vector<16x16xbf16>
    %cst_487 = arith.constant dense<0.000000e+00> : vector<128x16xf32>
    %474 = tpu.matmul %471, %473, %cst_487 {dimension_numbers = #tpu.dot_dimension_numbers<[1], [0], [0], [1], [0, 0, 1, 1], [], []>} : vector<128x16xbf16>, vector<16x16xbf16>, vector<128x16xf32> -> vector<128x16xf32>
    %475 = arith.addf %470, %474 : vector<128x16xf32>
    %c247_488 = arith.constant 247 : index
    %c0_489 = arith.constant 0 : index
    %476 = vector.load %arg20[%c247_488, %c0_489] : memref<576x16xbf16, #tpu.memory_space<vmem>>, vector<128x16xbf16>
    %c6_490 = arith.constant 6 : index
    %c0_491 = arith.constant 0 : index
    %c0_492 = arith.constant 0 : index
    %477 = vector.load %arg10[%c6_490, %c0_491, %c0_492] : memref<9x16x16xbf16, #tpu.memory_space<vmem>>, vector<1x16x16xbf16>
    %478 = vector.shape_cast %477 : vector<1x16x16xbf16> to vector<16x16xbf16>
    %cst_493 = arith.constant dense<0.000000e+00> : vector<128x16xf32>
    %479 = tpu.matmul %476, %478, %cst_493 {dimension_numbers = #tpu.dot_dimension_numbers<[1], [0], [0], [1], [0, 0, 1, 1], [], []>} : vector<128x16xbf16>, vector<16x16xbf16>, vector<128x16xf32> -> vector<128x16xf32>
    %480 = arith.addf %475, %479 : vector<128x16xf32>
    %c248_494 = arith.constant 248 : index
    %c0_495 = arith.constant 0 : index
    %481 = vector.load %arg20[%c248_494, %c0_495] : memref<576x16xbf16, #tpu.memory_space<vmem>>, vector<128x16xbf16>
    %c7_496 = arith.constant 7 : index
    %c0_497 = arith.constant 0 : index
    %c0_498 = arith.constant 0 : index
    %482 = vector.load %arg10[%c7_496, %c0_497, %c0_498] : memref<9x16x16xbf16, #tpu.memory_space<vmem>>, vector<1x16x16xbf16>
    %483 = vector.shape_cast %482 : vector<1x16x16xbf16> to vector<16x16xbf16>
    %cst_499 = arith.constant dense<0.000000e+00> : vector<128x16xf32>
    %484 = tpu.matmul %481, %483, %cst_499 {dimension_numbers = #tpu.dot_dimension_numbers<[1], [0], [0], [1], [0, 0, 1, 1], [], []>} : vector<128x16xbf16>, vector<16x16xbf16>, vector<128x16xf32> -> vector<128x16xf32>
    %485 = arith.addf %480, %484 : vector<128x16xf32>
    %c249_500 = arith.constant 249 : index
    %c0_501 = arith.constant 0 : index
    %486 = vector.load %arg20[%c249_500, %c0_501] : memref<576x16xbf16, #tpu.memory_space<vmem>>, vector<128x16xbf16>
    %c8_502 = arith.constant 8 : index
    %c0_503 = arith.constant 0 : index
    %c0_504 = arith.constant 0 : index
    %487 = vector.load %arg10[%c8_502, %c0_503, %c0_504] : memref<9x16x16xbf16, #tpu.memory_space<vmem>>, vector<1x16x16xbf16>
    %488 = vector.shape_cast %487 : vector<1x16x16xbf16> to vector<16x16xbf16>
    %cst_505 = arith.constant dense<0.000000e+00> : vector<128x16xf32>
    %489 = tpu.matmul %486, %488, %cst_505 {dimension_numbers = #tpu.dot_dimension_numbers<[1], [0], [0], [1], [0, 0, 1, 1], [], []>} : vector<128x16xbf16>, vector<16x16xbf16>, vector<128x16xf32> -> vector<128x16xf32>
    %490 = arith.addf %485, %489 : vector<128x16xf32>
    %c0_506 = arith.constant 0 : index
    %c0_507 = arith.constant 0 : index
    %491 = vector.load %arg11[%c0_506, %c0_507] : memref<1x16xf32, #tpu.memory_space<vmem>>, vector<1x16xf32>
    %492 = vector.broadcast %491 : vector<1x16xf32> to vector<128x16xf32>
    %493 = arith.addf %490, %492 : vector<128x16xf32>
    %c224_508 = arith.constant 224 : index
    %c0_509 = arith.constant 0 : index
    %494 = vector.load %arg21[%c224_508, %c0_509] : memref<576x16xf32, #tpu.memory_space<vmem>>, vector<128x16xf32>
    tpu.vector_store %arg21[%c224_508, %c0_509], %493 {strides = array<i32>} : memref<576x16xf32, #tpu.memory_space<vmem>>, vector<128x16xf32>,
    %c352_510 = arith.constant 352 : index
    %c0_511 = arith.constant 0 : index
    %495 = vector.load %arg18[%c352_510, %c0_511] : memref<576x8xbf16, #tpu.memory_space<vmem>>, vector<128x8xbf16>
    %c0_512 = arith.constant 0 : index
    %c0_513 = arith.constant 0 : index
    %496 = vector.load %arg12[%c0_512, %c0_513] : memref<8x16xbf16, #tpu.memory_space<vmem>>, vector<8x16xbf16>
    %cst_514 = arith.constant dense<0.000000e+00> : vector<128x16xf32>
    %497 = tpu.matmul %495, %496, %cst_514 {dimension_numbers = #tpu.dot_dimension_numbers<[1], [0], [0], [1], [0, 0, 1, 1], [], []>} : vector<128x8xbf16>, vector<8x16xbf16>, vector<128x16xf32> -> vector<128x16xf32>
    %c327_515 = arith.constant 327 : index
    %c0_516 = arith.constant 0 : index
    %498 = vector.load %arg20[%c327_515, %c0_516] : memref<576x16xbf16, #tpu.memory_space<vmem>>, vector<128x16xbf16>
    %c0_517 = arith.constant 0 : index
    %c0_518 = arith.constant 0 : index
    %c0_519 = arith.constant 0 : index
    %499 = vector.load %arg10[%c0_517, %c0_518, %c0_519] : memref<9x16x16xbf16, #tpu.memory_space<vmem>>, vector<1x16x16xbf16>
    %500 = vector.shape_cast %499 : vector<1x16x16xbf16> to vector<16x16xbf16>
    %cst_520 = arith.constant dense<0.000000e+00> : vector<128x16xf32>
    %501 = tpu.matmul %498, %500, %cst_520 {dimension_numbers = #tpu.dot_dimension_numbers<[1], [0], [0], [1], [0, 0, 1, 1], [], []>} : vector<128x16xbf16>, vector<16x16xbf16>, vector<128x16xf32> -> vector<128x16xf32>
    %502 = arith.addf %497, %501 : vector<128x16xf32>
    %c328_521 = arith.constant 328 : index
    %c0_522 = arith.constant 0 : index
    %503 = vector.load %arg20[%c328_521, %c0_522] : memref<576x16xbf16, #tpu.memory_space<vmem>>, vector<128x16xbf16>
    %c1_523 = arith.constant 1 : index
    %c0_524 = arith.constant 0 : index
    %c0_525 = arith.constant 0 : index
    %504 = vector.load %arg10[%c1_523, %c0_524, %c0_525] : memref<9x16x16xbf16, #tpu.memory_space<vmem>>, vector<1x16x16xbf16>
    %505 = vector.shape_cast %504 : vector<1x16x16xbf16> to vector<16x16xbf16>
    %cst_526 = arith.constant dense<0.000000e+00> : vector<128x16xf32>
    %506 = tpu.matmul %503, %505, %cst_526 {dimension_numbers = #tpu.dot_dimension_numbers<[1], [0], [0], [1], [0, 0, 1, 1], [], []>} : vector<128x16xbf16>, vector<16x16xbf16>, vector<128x16xf32> -> vector<128x16xf32>
    %507 = arith.addf %502, %506 : vector<128x16xf32>
    %c329_527 = arith.constant 329 : index
    %c0_528 = arith.constant 0 : index
    %508 = vector.load %arg20[%c329_527, %c0_528] : memref<576x16xbf16, #tpu.memory_space<vmem>>, vector<128x16xbf16>
    %c2_529 = arith.constant 2 : index
    %c0_530 = arith.constant 0 : index
    %c0_531 = arith.constant 0 : index
    %509 = vector.load %arg10[%c2_529, %c0_530, %c0_531] : memref<9x16x16xbf16, #tpu.memory_space<vmem>>, vector<1x16x16xbf16>
    %510 = vector.shape_cast %509 : vector<1x16x16xbf16> to vector<16x16xbf16>
    %cst_532 = arith.constant dense<0.000000e+00> : vector<128x16xf32>
    %511 = tpu.matmul %508, %510, %cst_532 {dimension_numbers = #tpu.dot_dimension_numbers<[1], [0], [0], [1], [0, 0, 1, 1], [], []>} : vector<128x16xbf16>, vector<16x16xbf16>, vector<128x16xf32> -> vector<128x16xf32>
    %512 = arith.addf %507, %511 : vector<128x16xf32>
    %c351_533 = arith.constant 351 : index
    %c0_534 = arith.constant 0 : index
    %513 = vector.load %arg20[%c351_533, %c0_534] : memref<576x16xbf16, #tpu.memory_space<vmem>>, vector<128x16xbf16>
    %c3_535 = arith.constant 3 : index
    %c0_536 = arith.constant 0 : index
    %c0_537 = arith.constant 0 : index
    %514 = vector.load %arg10[%c3_535, %c0_536, %c0_537] : memref<9x16x16xbf16, #tpu.memory_space<vmem>>, vector<1x16x16xbf16>
    %515 = vector.shape_cast %514 : vector<1x16x16xbf16> to vector<16x16xbf16>
    %cst_538 = arith.constant dense<0.000000e+00> : vector<128x16xf32>
    %516 = tpu.matmul %513, %515, %cst_538 {dimension_numbers = #tpu.dot_dimension_numbers<[1], [0], [0], [1], [0, 0, 1, 1], [], []>} : vector<128x16xbf16>, vector<16x16xbf16>, vector<128x16xf32> -> vector<128x16xf32>
    %517 = arith.addf %512, %516 : vector<128x16xf32>
    %c352_539 = arith.constant 352 : index
    %c0_540 = arith.constant 0 : index
    %518 = vector.load %arg20[%c352_539, %c0_540] : memref<576x16xbf16, #tpu.memory_space<vmem>>, vector<128x16xbf16>
    %c4_541 = arith.constant 4 : index
    %c0_542 = arith.constant 0 : index
    %c0_543 = arith.constant 0 : index
    %519 = vector.load %arg10[%c4_541, %c0_542, %c0_543] : memref<9x16x16xbf16, #tpu.memory_space<vmem>>, vector<1x16x16xbf16>
    %520 = vector.shape_cast %519 : vector<1x16x16xbf16> to vector<16x16xbf16>
    %cst_544 = arith.constant dense<0.000000e+00> : vector<128x16xf32>
    %521 = tpu.matmul %518, %520, %cst_544 {dimension_numbers = #tpu.dot_dimension_numbers<[1], [0], [0], [1], [0, 0, 1, 1], [], []>} : vector<128x16xbf16>, vector<16x16xbf16>, vector<128x16xf32> -> vector<128x16xf32>
    %522 = arith.addf %517, %521 : vector<128x16xf32>
    %c353_545 = arith.constant 353 : index
    %c0_546 = arith.constant 0 : index
    %523 = vector.load %arg20[%c353_545, %c0_546] : memref<576x16xbf16, #tpu.memory_space<vmem>>, vector<128x16xbf16>
    %c5_547 = arith.constant 5 : index
    %c0_548 = arith.constant 0 : index
    %c0_549 = arith.constant 0 : index
    %524 = vector.load %arg10[%c5_547, %c0_548, %c0_549] : memref<9x16x16xbf16, #tpu.memory_space<vmem>>, vector<1x16x16xbf16>
    %525 = vector.shape_cast %524 : vector<1x16x16xbf16> to vector<16x16xbf16>
    %cst_550 = arith.constant dense<0.000000e+00> : vector<128x16xf32>
    %526 = tpu.matmul %523, %525, %cst_550 {dimension_numbers = #tpu.dot_dimension_numbers<[1], [0], [0], [1], [0, 0, 1, 1], [], []>} : vector<128x16xbf16>, vector<16x16xbf16>, vector<128x16xf32> -> vector<128x16xf32>
    %527 = arith.addf %522, %526 : vector<128x16xf32>
    %c375_551 = arith.constant 375 : index
    %c0_552 = arith.constant 0 : index
    %528 = vector.load %arg20[%c375_551, %c0_552] : memref<576x16xbf16, #tpu.memory_space<vmem>>, vector<128x16xbf16>
    %c6_553 = arith.constant 6 : index
    %c0_554 = arith.constant 0 : index
    %c0_555 = arith.constant 0 : index
    %529 = vector.load %arg10[%c6_553, %c0_554, %c0_555] : memref<9x16x16xbf16, #tpu.memory_space<vmem>>, vector<1x16x16xbf16>
    %530 = vector.shape_cast %529 : vector<1x16x16xbf16> to vector<16x16xbf16>
    %cst_556 = arith.constant dense<0.000000e+00> : vector<128x16xf32>
    %531 = tpu.matmul %528, %530, %cst_556 {dimension_numbers = #tpu.dot_dimension_numbers<[1], [0], [0], [1], [0, 0, 1, 1], [], []>} : vector<128x16xbf16>, vector<16x16xbf16>, vector<128x16xf32> -> vector<128x16xf32>
    %532 = arith.addf %527, %531 : vector<128x16xf32>
    %c376_557 = arith.constant 376 : index
    %c0_558 = arith.constant 0 : index
    %533 = vector.load %arg20[%c376_557, %c0_558] : memref<576x16xbf16, #tpu.memory_space<vmem>>, vector<128x16xbf16>
    %c7_559 = arith.constant 7 : index
    %c0_560 = arith.constant 0 : index
    %c0_561 = arith.constant 0 : index
    %534 = vector.load %arg10[%c7_559, %c0_560, %c0_561] : memref<9x16x16xbf16, #tpu.memory_space<vmem>>, vector<1x16x16xbf16>
    %535 = vector.shape_cast %534 : vector<1x16x16xbf16> to vector<16x16xbf16>
    %cst_562 = arith.constant dense<0.000000e+00> : vector<128x16xf32>
    %536 = tpu.matmul %533, %535, %cst_562 {dimension_numbers = #tpu.dot_dimension_numbers<[1], [0], [0], [1], [0, 0, 1, 1], [], []>} : vector<128x16xbf16>, vector<16x16xbf16>, vector<128x16xf32> -> vector<128x16xf32>
    %537 = arith.addf %532, %536 : vector<128x16xf32>
    %c377_563 = arith.constant 377 : index
    %c0_564 = arith.constant 0 : index
    %538 = vector.load %arg20[%c377_563, %c0_564] : memref<576x16xbf16, #tpu.memory_space<vmem>>, vector<128x16xbf16>
    %c8_565 = arith.constant 8 : index
    %c0_566 = arith.constant 0 : index
    %c0_567 = arith.constant 0 : index
    %539 = vector.load %arg10[%c8_565, %c0_566, %c0_567] : memref<9x16x16xbf16, #tpu.memory_space<vmem>>, vector<1x16x16xbf16>
    %540 = vector.shape_cast %539 : vector<1x16x16xbf16> to vector<16x16xbf16>
    %cst_568 = arith.constant dense<0.000000e+00> : vector<128x16xf32>
    %541 = tpu.matmul %538, %540, %cst_568 {dimension_numbers = #tpu.dot_dimension_numbers<[1], [0], [0], [1], [0, 0, 1, 1], [], []>} : vector<128x16xbf16>, vector<16x16xbf16>, vector<128x16xf32> -> vector<128x16xf32>
    %542 = arith.addf %537, %541 : vector<128x16xf32>
    %c0_569 = arith.constant 0 : index
    %c0_570 = arith.constant 0 : index
    %543 = vector.load %arg11[%c0_569, %c0_570] : memref<1x16xf32, #tpu.memory_space<vmem>>, vector<1x16xf32>
    %544 = vector.broadcast %543 : vector<1x16xf32> to vector<128x16xf32>
    %545 = arith.addf %542, %544 : vector<128x16xf32>
    %c352_571 = arith.constant 352 : index
    %c0_572 = arith.constant 0 : index
    %546 = vector.load %arg21[%c352_571, %c0_572] : memref<576x16xf32, #tpu.memory_space<vmem>>, vector<128x16xf32>
    tpu.vector_store %arg21[%c352_571, %c0_572], %545 {strides = array<i32>} : memref<576x16xf32, #tpu.memory_space<vmem>>, vector<128x16xf32>,
    %547 = tpu.iota {dimensions = array<i32: 0>} : vector<8x40xi32>
    %548 = tpu.iota {dimensions = array<i32: 1>} : vector<8x40xi32>
    %c2_i32 = arith.constant 2 : i32
    %549 = vector.broadcast %c2_i32 : i32 to vector<8x40xi32>
    %550 = arith.muli %549, %547 : vector<8x40xi32>
    %551 = arith.cmpi eq, %548, %550 : vector<8x40xi32>
    %c2_i32_573 = arith.constant 2 : i32
    %552 = vector.broadcast %c2_i32_573 : i32 to vector<8x40xi32>
    %553 = arith.muli %552, %547 : vector<8x40xi32>
    %c1_i32 = arith.constant 1 : i32
    %554 = vector.broadcast %c1_i32 : i32 to vector<8x40xi32>
    %555 = arith.addi %553, %554 : vector<8x40xi32>
    %556 = arith.cmpi eq, %548, %555 : vector<8x40xi32>
    %557 = arith.ori %551, %556 : vector<8x40xi1>
    %c2_i32_574 = arith.constant 2 : i32
    %558 = vector.broadcast %c2_i32_574 : i32 to vector<8x40xi32>
    %559 = arith.muli %558, %547 : vector<8x40xi32>
    %c24_i32 = arith.constant 24 : i32
    %560 = vector.broadcast %c24_i32 : i32 to vector<8x40xi32>
    %561 = arith.addi %559, %560 : vector<8x40xi32>
    %562 = arith.cmpi eq, %548, %561 : vector<8x40xi32>
    %563 = arith.ori %557, %562 : vector<8x40xi1>
    %c2_i32_575 = arith.constant 2 : i32
    %564 = vector.broadcast %c2_i32_575 : i32 to vector<8x40xi32>
    %565 = arith.muli %564, %547 : vector<8x40xi32>
    %c24_i32_576 = arith.constant 24 : i32
    %566 = vector.broadcast %c24_i32_576 : i32 to vector<8x40xi32>
    %567 = arith.addi %565, %566 : vector<8x40xi32>
    %c1_i32_577 = arith.constant 1 : i32
    %568 = vector.broadcast %c1_i32_577 : i32 to vector<8x40xi32>
    %569 = arith.addi %567, %568 : vector<8x40xi32>
    %570 = arith.cmpi eq, %548, %569 : vector<8x40xi32>
    %571 = arith.ori %563, %570 : vector<8x40xi1>
    %cst_578 = arith.constant 2.500000e-01 : f32
    %cst_579 = arith.constant 0.000000e+00 : f32
    %572 = vector.broadcast %cst_578 : f32 to vector<8x40xf32>
    %573 = vector.broadcast %cst_579 : f32 to vector<8x40xf32>
    %574 = arith.select %571, %572, %573 : vector<8x40xi1>, vector<8x40xf32>
    %c100 = arith.constant 100 : index
    %c0_580 = arith.constant 0 : index
    %575 = vector.load %arg21[%c100, %c0_580] : memref<576x16xf32, #tpu.memory_space<vmem>>, vector<40x16xf32>
    %cst_581 = arith.constant dense<0.000000e+00> : vector<8x16xf32>
    %576 = tpu.matmul %574, %575, %cst_581 {dimension_numbers = #tpu.dot_dimension_numbers<[1], [0], [0], [1], [0, 0, 1, 1], [], []>} : vector<8x40xf32>, vector<40x16xf32>, vector<8x16xf32> -> vector<8x16xf32>
    %c0_582 = arith.constant 0 : index
    %c0_583 = arith.constant 0 : index
    %577 = vector.load %arg13[%c0_582, %c0_583] : memref<1x16xf32, #tpu.memory_space<vmem>>, vector<1x16xf32>
    %578 = vector.broadcast %577 : vector<1x16xf32> to vector<8x16xf32>
    %579 = arith.mulf %576, %578 : vector<8x16xf32>
    %c0_584 = arith.constant 0 : index
    %c0_585 = arith.constant 0 : index
    %580 = vector.load %arg14[%c0_584, %c0_585] : memref<1x16xf32, #tpu.memory_space<vmem>>, vector<1x16xf32>
    %581 = vector.broadcast %580 : vector<1x16xf32> to vector<8x16xf32>
    %582 = arith.addf %579, %581 : vector<8x16xf32>
    %cst_586 = arith.constant 0.000000e+00 : f32
    %583 = vector.broadcast %cst_586 : f32 to vector<8x16xf32>
    %584 = arith.maximumf %582, %583 : vector<8x16xf32>
    %c148 = arith.constant 148 : index
    %c0_587 = arith.constant 0 : index
    %585 = vector.load %arg21[%c148, %c0_587] : memref<576x16xf32, #tpu.memory_space<vmem>>, vector<40x16xf32>
    %cst_588 = arith.constant dense<0.000000e+00> : vector<8x16xf32>
    %586 = tpu.matmul %574, %585, %cst_588 {dimension_numbers = #tpu.dot_dimension_numbers<[1], [0], [0], [1], [0, 0, 1, 1], [], []>} : vector<8x40xf32>, vector<40x16xf32>, vector<8x16xf32> -> vector<8x16xf32>
    %c0_589 = arith.constant 0 : index
    %c0_590 = arith.constant 0 : index
    %587 = vector.load %arg13[%c0_589, %c0_590] : memref<1x16xf32, #tpu.memory_space<vmem>>, vector<1x16xf32>
    %588 = vector.broadcast %587 : vector<1x16xf32> to vector<8x16xf32>
    %589 = arith.mulf %586, %588 : vector<8x16xf32>
    %c0_591 = arith.constant 0 : index
    %c0_592 = arith.constant 0 : index
    %590 = vector.load %arg14[%c0_591, %c0_592] : memref<1x16xf32, #tpu.memory_space<vmem>>, vector<1x16xf32>
    %591 = vector.broadcast %590 : vector<1x16xf32> to vector<8x16xf32>
    %592 = arith.addf %589, %591 : vector<8x16xf32>
    %cst_593 = arith.constant 0.000000e+00 : f32
    %593 = vector.broadcast %cst_593 : f32 to vector<8x16xf32>
    %594 = arith.maximumf %592, %593 : vector<8x16xf32>
    %c196 = arith.constant 196 : index
    %c0_594 = arith.constant 0 : index
    %595 = vector.load %arg21[%c196, %c0_594] : memref<576x16xf32, #tpu.memory_space<vmem>>, vector<40x16xf32>
    %cst_595 = arith.constant dense<0.000000e+00> : vector<8x16xf32>
    %596 = tpu.matmul %574, %595, %cst_595 {dimension_numbers = #tpu.dot_dimension_numbers<[1], [0], [0], [1], [0, 0, 1, 1], [], []>} : vector<8x40xf32>, vector<40x16xf32>, vector<8x16xf32> -> vector<8x16xf32>
    %c0_596 = arith.constant 0 : index
    %c0_597 = arith.constant 0 : index
    %597 = vector.load %arg13[%c0_596, %c0_597] : memref<1x16xf32, #tpu.memory_space<vmem>>, vector<1x16xf32>
    %598 = vector.broadcast %597 : vector<1x16xf32> to vector<8x16xf32>
    %599 = arith.mulf %596, %598 : vector<8x16xf32>
    %c0_598 = arith.constant 0 : index
    %c0_599 = arith.constant 0 : index
    %600 = vector.load %arg14[%c0_598, %c0_599] : memref<1x16xf32, #tpu.memory_space<vmem>>, vector<1x16xf32>
    %601 = vector.broadcast %600 : vector<1x16xf32> to vector<8x16xf32>
    %602 = arith.addf %599, %601 : vector<8x16xf32>
    %cst_600 = arith.constant 0.000000e+00 : f32
    %603 = vector.broadcast %cst_600 : f32 to vector<8x16xf32>
    %604 = arith.maximumf %602, %603 : vector<8x16xf32>
    %c244 = arith.constant 244 : index
    %c0_601 = arith.constant 0 : index
    %605 = vector.load %arg21[%c244, %c0_601] : memref<576x16xf32, #tpu.memory_space<vmem>>, vector<40x16xf32>
    %cst_602 = arith.constant dense<0.000000e+00> : vector<8x16xf32>
    %606 = tpu.matmul %574, %605, %cst_602 {dimension_numbers = #tpu.dot_dimension_numbers<[1], [0], [0], [1], [0, 0, 1, 1], [], []>} : vector<8x40xf32>, vector<40x16xf32>, vector<8x16xf32> -> vector<8x16xf32>
    %c0_603 = arith.constant 0 : index
    %c0_604 = arith.constant 0 : index
    %607 = vector.load %arg13[%c0_603, %c0_604] : memref<1x16xf32, #tpu.memory_space<vmem>>, vector<1x16xf32>
    %608 = vector.broadcast %607 : vector<1x16xf32> to vector<8x16xf32>
    %609 = arith.mulf %606, %608 : vector<8x16xf32>
    %c0_605 = arith.constant 0 : index
    %c0_606 = arith.constant 0 : index
    %610 = vector.load %arg14[%c0_605, %c0_606] : memref<1x16xf32, #tpu.memory_space<vmem>>, vector<1x16xf32>
    %611 = vector.broadcast %610 : vector<1x16xf32> to vector<8x16xf32>
    %612 = arith.addf %609, %611 : vector<8x16xf32>
    %cst_607 = arith.constant 0.000000e+00 : f32
    %613 = vector.broadcast %cst_607 : f32 to vector<8x16xf32>
    %614 = arith.maximumf %612, %613 : vector<8x16xf32>
    %c292 = arith.constant 292 : index
    %c0_608 = arith.constant 0 : index
    %615 = vector.load %arg21[%c292, %c0_608] : memref<576x16xf32, #tpu.memory_space<vmem>>, vector<40x16xf32>
    %cst_609 = arith.constant dense<0.000000e+00> : vector<8x16xf32>
    %616 = tpu.matmul %574, %615, %cst_609 {dimension_numbers = #tpu.dot_dimension_numbers<[1], [0], [0], [1], [0, 0, 1, 1], [], []>} : vector<8x40xf32>, vector<40x16xf32>, vector<8x16xf32> -> vector<8x16xf32>
    %c0_610 = arith.constant 0 : index
    %c0_611 = arith.constant 0 : index
    %617 = vector.load %arg13[%c0_610, %c0_611] : memref<1x16xf32, #tpu.memory_space<vmem>>, vector<1x16xf32>
    %618 = vector.broadcast %617 : vector<1x16xf32> to vector<8x16xf32>
    %619 = arith.mulf %616, %618 : vector<8x16xf32>
    %c0_612 = arith.constant 0 : index
    %c0_613 = arith.constant 0 : index
    %620 = vector.load %arg14[%c0_612, %c0_613] : memref<1x16xf32, #tpu.memory_space<vmem>>, vector<1x16xf32>
    %621 = vector.broadcast %620 : vector<1x16xf32> to vector<8x16xf32>
    %622 = arith.addf %619, %621 : vector<8x16xf32>
    %cst_614 = arith.constant 0.000000e+00 : f32
    %623 = vector.broadcast %cst_614 : f32 to vector<8x16xf32>
    %624 = arith.maximumf %622, %623 : vector<8x16xf32>
    %c340 = arith.constant 340 : index
    %c0_615 = arith.constant 0 : index
    %625 = vector.load %arg21[%c340, %c0_615] : memref<576x16xf32, #tpu.memory_space<vmem>>, vector<40x16xf32>
    %cst_616 = arith.constant dense<0.000000e+00> : vector<8x16xf32>
    %626 = tpu.matmul %574, %625, %cst_616 {dimension_numbers = #tpu.dot_dimension_numbers<[1], [0], [0], [1], [0, 0, 1, 1], [], []>} : vector<8x40xf32>, vector<40x16xf32>, vector<8x16xf32> -> vector<8x16xf32>
    %c0_617 = arith.constant 0 : index
    %c0_618 = arith.constant 0 : index
    %627 = vector.load %arg13[%c0_617, %c0_618] : memref<1x16xf32, #tpu.memory_space<vmem>>, vector<1x16xf32>
    %628 = vector.broadcast %627 : vector<1x16xf32> to vector<8x16xf32>
    %629 = arith.mulf %626, %628 : vector<8x16xf32>
    %c0_619 = arith.constant 0 : index
    %c0_620 = arith.constant 0 : index
    %630 = vector.load %arg14[%c0_619, %c0_620] : memref<1x16xf32, #tpu.memory_space<vmem>>, vector<1x16xf32>
    %631 = vector.broadcast %630 : vector<1x16xf32> to vector<8x16xf32>
    %632 = arith.addf %629, %631 : vector<8x16xf32>
    %cst_621 = arith.constant 0.000000e+00 : f32
    %633 = vector.broadcast %cst_621 : f32 to vector<8x16xf32>
    %634 = arith.maximumf %632, %633 : vector<8x16xf32>
    %c388 = arith.constant 388 : index
    %c0_622 = arith.constant 0 : index
    %635 = vector.load %arg21[%c388, %c0_622] : memref<576x16xf32, #tpu.memory_space<vmem>>, vector<40x16xf32>
    %cst_623 = arith.constant dense<0.000000e+00> : vector<8x16xf32>
    %636 = tpu.matmul %574, %635, %cst_623 {dimension_numbers = #tpu.dot_dimension_numbers<[1], [0], [0], [1], [0, 0, 1, 1], [], []>} : vector<8x40xf32>, vector<40x16xf32>, vector<8x16xf32> -> vector<8x16xf32>
    %c0_624 = arith.constant 0 : index
    %c0_625 = arith.constant 0 : index
    %637 = vector.load %arg13[%c0_624, %c0_625] : memref<1x16xf32, #tpu.memory_space<vmem>>, vector<1x16xf32>
    %638 = vector.broadcast %637 : vector<1x16xf32> to vector<8x16xf32>
    %639 = arith.mulf %636, %638 : vector<8x16xf32>
    %c0_626 = arith.constant 0 : index
    %c0_627 = arith.constant 0 : index
    %640 = vector.load %arg14[%c0_626, %c0_627] : memref<1x16xf32, #tpu.memory_space<vmem>>, vector<1x16xf32>
    %641 = vector.broadcast %640 : vector<1x16xf32> to vector<8x16xf32>
    %642 = arith.addf %639, %641 : vector<8x16xf32>
    %cst_628 = arith.constant 0.000000e+00 : f32
    %643 = vector.broadcast %cst_628 : f32 to vector<8x16xf32>
    %644 = arith.maximumf %642, %643 : vector<8x16xf32>
    %c436 = arith.constant 436 : index
    %c0_629 = arith.constant 0 : index
    %645 = vector.load %arg21[%c436, %c0_629] : memref<576x16xf32, #tpu.memory_space<vmem>>, vector<40x16xf32>
    %cst_630 = arith.constant dense<0.000000e+00> : vector<8x16xf32>
    %646 = tpu.matmul %574, %645, %cst_630 {dimension_numbers = #tpu.dot_dimension_numbers<[1], [0], [0], [1], [0, 0, 1, 1], [], []>} : vector<8x40xf32>, vector<40x16xf32>, vector<8x16xf32> -> vector<8x16xf32>
    %c0_631 = arith.constant 0 : index
    %c0_632 = arith.constant 0 : index
    %647 = vector.load %arg13[%c0_631, %c0_632] : memref<1x16xf32, #tpu.memory_space<vmem>>, vector<1x16xf32>
    %648 = vector.broadcast %647 : vector<1x16xf32> to vector<8x16xf32>
    %649 = arith.mulf %646, %648 : vector<8x16xf32>
    %c0_633 = arith.constant 0 : index
    %c0_634 = arith.constant 0 : index
    %650 = vector.load %arg14[%c0_633, %c0_634] : memref<1x16xf32, #tpu.memory_space<vmem>>, vector<1x16xf32>
    %651 = vector.broadcast %650 : vector<1x16xf32> to vector<8x16xf32>
    %652 = arith.addf %649, %651 : vector<8x16xf32>
    %cst_635 = arith.constant 0.000000e+00 : f32
    %653 = vector.broadcast %cst_635 : f32 to vector<8x16xf32>
    %654 = arith.maximumf %652, %653 : vector<8x16xf32>
    %655 = tpu.concatenate %584, %594, %604, %614, %624, %634, %644, %654 in 0 : vector<8x16xf32>, vector<8x16xf32>, vector<8x16xf32>, vector<8x16xf32>, vector<8x16xf32>, vector<8x16xf32>, vector<8x16xf32>, vector<8x16xf32> -> vector<64x16xf32>
    %c0_636 = arith.constant 0 : index
    %c0_637 = arith.constant 0 : index
    %656 = vector.load %arg15[%c0_636, %c0_637] : memref<16x8xf32, #tpu.memory_space<vmem>>, vector<16x8xf32>
    %cst_638 = arith.constant dense<0.000000e+00> : vector<64x8xf32>
    %657 = tpu.matmul %655, %656, %cst_638 {dimension_numbers = #tpu.dot_dimension_numbers<[1], [0], [0], [1], [0, 0, 1, 1], [], []>} : vector<64x16xf32>, vector<16x8xf32>, vector<64x8xf32> -> vector<64x8xf32>
    %c0_639 = arith.constant 0 : index
    %c0_640 = arith.constant 0 : index
    %658 = vector.load %arg16[%c0_639, %c0_640] : memref<1x8xf32, #tpu.memory_space<vmem>>, vector<1x8xf32>
    %659 = vector.broadcast %658 : vector<1x8xf32> to vector<64x8xf32>
    %660 = arith.addf %657, %659 : vector<64x8xf32>
    %c0_641 = arith.constant 0 : index
    %c0_642 = arith.constant 0 : index
    %c0_643 = arith.constant 0 : index
    %661 = vector.load %arg17[%c0_641, %c0_642, %c0_643] : memref<1x64x8xf32, #tpu.memory_space<vmem>>, vector<1x64x8xf32>
    %662 = vector.shape_cast %661 : vector<1x64x8xf32> to vector<64x8xf32>
    %663 = vector.shape_cast %660 : vector<64x8xf32> to vector<1x64x8xf32>
    tpu.vector_store %arg17[%c0_641, %c0_642, %c0_643], %663 {strides = array<i32>} : memref<1x64x8xf32, #tpu.memory_space<vmem>>, vector<1x64x8xf32>,
    return
  }
  func.func @transform_0(%arg0: i32) -> (i32, i32, i32) {
    %c0_i32 = arith.constant 0 : i32
    %c0_i32_0 = arith.constant 0 : i32
    %c0_i32_1 = arith.constant 0 : i32
    return %arg0, %c0_i32, %c0_i32_0 : i32, i32, i32
  }
  func.func @transform_1(%arg0: i32) -> (i32, i32, i32) {
    %c0_i32 = arith.constant 0 : i32
    %c0_i32_0 = arith.constant 0 : i32
    %c0_i32_1 = arith.constant 0 : i32
    %c0_i32_2 = arith.constant 0 : i32
    return %c0_i32, %c0_i32_0, %c0_i32_1 : i32, i32, i32
  }
  func.func @transform_2(%arg0: i32) -> (i32, i32) {
    %c0_i32 = arith.constant 0 : i32
    %c0_i32_0 = arith.constant 0 : i32
    %c0_i32_1 = arith.constant 0 : i32
    return %c0_i32, %c0_i32_0 : i32, i32
  }
  func.func @transform_3(%arg0: i32) -> (i32, i32) {
    %c0_i32 = arith.constant 0 : i32
    %c0_i32_0 = arith.constant 0 : i32
    %c0_i32_1 = arith.constant 0 : i32
    return %c0_i32, %c0_i32_0 : i32, i32
  }
  func.func @transform_4(%arg0: i32) -> (i32, i32) {
    %c0_i32 = arith.constant 0 : i32
    %c0_i32_0 = arith.constant 0 : i32
    %c0_i32_1 = arith.constant 0 : i32
    return %c0_i32, %c0_i32_0 : i32, i32
  }
  func.func @transform_5(%arg0: i32) -> (i32, i32, i32) {
    %c0_i32 = arith.constant 0 : i32
    %c0_i32_0 = arith.constant 0 : i32
    %c0_i32_1 = arith.constant 0 : i32
    %c0_i32_2 = arith.constant 0 : i32
    return %c0_i32, %c0_i32_0, %c0_i32_1 : i32, i32, i32
  }
  func.func @transform_6(%arg0: i32) -> (i32, i32) {
    %c0_i32 = arith.constant 0 : i32
    %c0_i32_0 = arith.constant 0 : i32
    %c0_i32_1 = arith.constant 0 : i32
    return %c0_i32, %c0_i32_0 : i32, i32
  }
  func.func @transform_7(%arg0: i32) -> (i32, i32) {
    %c0_i32 = arith.constant 0 : i32
    %c0_i32_0 = arith.constant 0 : i32
    %c0_i32_1 = arith.constant 0 : i32
    return %c0_i32, %c0_i32_0 : i32, i32
  }
  func.func @transform_8(%arg0: i32) -> (i32, i32) {
    %c0_i32 = arith.constant 0 : i32
    %c0_i32_0 = arith.constant 0 : i32
    %c0_i32_1 = arith.constant 0 : i32
    return %c0_i32, %c0_i32_0 : i32, i32
  }
  func.func @transform_9(%arg0: i32) -> (i32, i32, i32) {
    %c0_i32 = arith.constant 0 : i32
    %c0_i32_0 = arith.constant 0 : i32
    %c0_i32_1 = arith.constant 0 : i32
    %c0_i32_2 = arith.constant 0 : i32
    return %c0_i32, %c0_i32_0, %c0_i32_1 : i32, i32, i32
  }
  func.func @transform_10(%arg0: i32) -> (i32, i32) {
    %c0_i32 = arith.constant 0 : i32
    %c0_i32_0 = arith.constant 0 : i32
    %c0_i32_1 = arith.constant 0 : i32
    return %c0_i32, %c0_i32_0 : i32, i32
  }
  func.func @transform_11(%arg0: i32) -> (i32, i32) {
    %c0_i32 = arith.constant 0 : i32
    %c0_i32_0 = arith.constant 0 : i32
    %c0_i32_1 = arith.constant 0 : i32
    return %c0_i32, %c0_i32_0 : i32, i32
  }
  func.func @transform_12(%arg0: i32) -> (i32, i32) {
    %c0_i32 = arith.constant 0 : i32
    %c0_i32_0 = arith.constant 0 : i32
    %c0_i32_1 = arith.constant 0 : i32
    return %c0_i32, %c0_i32_0 : i32, i32
  }
  func.func @transform_13(%arg0: i32) -> (i32, i32) {
    %c0_i32 = arith.constant 0 : i32
    %c0_i32_0 = arith.constant 0 : i32
    %c0_i32_1 = arith.constant 0 : i32
    return %c0_i32, %c0_i32_0 : i32, i32
  }
  func.func @transform_14(%arg0: i32) -> (i32, i32) {
    %c0_i32 = arith.constant 0 : i32
    %c0_i32_0 = arith.constant 0 : i32
    %c0_i32_1 = arith.constant 0 : i32
    return %c0_i32, %c0_i32_0 : i32, i32
  }
  func.func @transform_15(%arg0: i32) -> (i32, i32) {
    %c0_i32 = arith.constant 0 : i32
    %c0_i32_0 = arith.constant 0 : i32
    %c0_i32_1 = arith.constant 0 : i32
    return %c0_i32, %c0_i32_0 : i32, i32
  }
  func.func @transform_16(%arg0: i32) -> (i32, i32, i32) {
    %c0_i32 = arith.constant 0 : i32
    %c0_i32_0 = arith.constant 0 : i32
    %c0_i32_1 = arith.constant 0 : i32
    return %arg0, %c0_i32, %c0_i32_0 : i32, i32, i32
  }
}

</mosaic_0001>

<bundles_post_ra>
// kernel: local_encoder_forward.1
= control target key start
LH: loop header
LB: loop body
LE: loop exit
PB: predicated region body
PF: predicated region fallthrough
CT: control target
= control target key end

     0   :  { %s22182_s21 = smov 0   ;;  %s26799_s0 = inlined_call_operand.vmem [shape: bf16[2,576,21], index: 0, kind: input, shape index: {}]   ;;  %s26800_s1 = inlined_call_operand.vmem [shape: bf16[7,21,8], index: 1, kind: input, shape index: {}]   ;;  %s26801_s2 = inlined_call_operand.vmem [shape: f32[1,8], index: 2, kind: input, shape index: {}]   ;;  %s26802_s3 = inlined_call_operand.vmem [shape: f32[1,8], index: 3, kind: input, shape index: {}]   ;;  %s26803_s4 = inlined_call_operand.vmem [shape: f32[1,8], index: 4, kind: input, shape index: {}]   ;;  %s26804_s5 = inlined_call_operand.vmem [shape: bf16[9,8,16], index: 5, kind: input, shape index: {}]   ;;  %s26805_s6 = inlined_call_operand.vmem [shape: f32[1,16], index: 6, kind: input, shape index: {}]   ;;  %s26806_s7 = inlined_call_operand.vmem [shape: f32[1,16], index: 7, kind: input, shape index: {}]   ;;  %s26807_s8 = inlined_call_operand.vmem [shape: f32[1,16], index: 8, kind: input, shape index: {}]   ;;  %s26808_s9 = inlined_call_operand.vmem [shape: bf16[9,16,16], index: 9, kind: input, shape index: {}]   ;;  %s26809_s10 = inlined_call_operand.vmem [shape: f32[1,16], index: 10, kind: input, shape index: {}]   ;;  %s26810_s11 = inlined_call_operand.vmem [shape: bf16[8,16], index: 11, kind: input, shape index: {}]   ;;  %s26811_s12 = inlined_call_operand.vmem [shape: f32[1,16], index: 12, kind: input, shape index: {}]   ;;  %s26812_s13 = inlined_call_operand.vmem [shape: f32[1,16], index: 13, kind: input, shape index: {}]   ;;  %s26813_s14 = inlined_call_operand.vmem [shape: f32[16,8], index: 14, kind: input, shape index: {}]   ;;  %s26814_s15 = inlined_call_operand.vmem [shape: f32[1,8], index: 15, kind: input, shape index: {}]   ;;  %s26815_s16 = inlined_call_operand.vmem [shape: f32[2,64,8], index: 16, kind: output, shape index: {}]  }
   0x1   :  { %26919 = sst [smem:[#allocation45_spill]] %s26799_s0 }
   0x2 LB: > { %s17218_s22 = sadd.s32 4294967295, %s22090_s21   ;;  %p17222_p0 = scmp.ge.s32.totalorder %s22090_s21, 1  ;;  %s22090_s21 = sphi %s22182_s21, %s26_s21  }
   0x3   : > { %p462_p1 = scmp.lt.s32.totalorder %s22090_s21, 3 }
   0x5   : > { %p463_p2 = pnand %p17222_p0, %p462_p1 }
   0x7   : > { %466 = sbr.rel (%p463_p2) target bundleno = 2178 (0x882), region = 84 }
   0xe   : > { %v21807_v0 = vld [vmem:[%s26800_s1 + $0xc] sm:$0xff]   ;;  %vm623_vm0 = vcmask 1041408   ;;  %v22196_v1 = vld [vmem:[%s26800_s1 + $0x18] sm:$0xff]   ;;  %vm624_vm1 = vcmask 1042432   ;;  %v22092_v3 = vmov 65535   ;;  %p512_p3 = scmp.lt.s32.totalorder %s17218_s22, 1 }
   0xf   : > { %19037 = vmatprep.subr.bf16.mxu1 %v21807_v0  ;;  %v21809_v2 = vld [vmem:[%s26800_s1 + $0x14] ss:$0 sps:$4 sm:$0x77]   ;;  %19077 = vmatprep.subr.bf16.mxu0 %v22196_v1  ;;  %v625_v4 = vsel %vm623_vm0, 4294967295, %v22092_v3  ;;  %v21817_v7 = vld [vmem:[%s26800_s1 + $0x24] sm:$0xff]   ;;  %s26920_s29 = sld [smem:[#allocation45_spill]] }
  0x10   : > { %19038 = vmatpush3.bf16.msra.mxu1 %v21807_v0  ;;  %v21810_v5 = vld [vmem:[%s26800_s1 + $0x20] ss:$0 sps:$4 sm:$0x77]   ;;  %19078 = vmatpush3.bf16.msra.mxu0 %v22196_v1  ;;  %v22206_v6 = vsel %vm624_vm1, %v625_v4, 0  ;;  %s27174_s22 = smov (!%p512_p3, %s17218_s22), 1  ;;  %vm598_vm2 = vcmask 171008  }
  0x11   : > { %v628_v8 = vand.u32 %v21809_v2, %v22206_v6  ;;  %v22213_v9 = vand.u32 %v21810_v5, %v22206_v6  ;;  %s21793_s18 = smul.u32 288, %s27174_s22  ;;  %v21831_v10 = vld [vmem:[%s26800_s1] sm:$0xff]   ;;  %v21822_v11 = vld [vmem:[%s26800_s1 + $0x2c] ss:$0 sps:$4 sm:$0x77]   ;;  %v21827_v29 = vld [vmem:[%s26800_s1 + $0x30] sm:$0xff]  }
  0x12   : > { %v21833_v12 = vld [vmem:[%s26800_s1 + $0x8] ss:$0 sps:$4 sm:$0x77]   ;;  %v1177_v24 = vand.u32 %v21822_v11, %v22206_v6  ;;  %v21837_v39 = vld [vmem:[%s26800_s1 + $0x38] ss:$0 sps:$4 sm:$0x77]  }
  0x13   : > { %19039 = vmatprep.subr.bf16.mxu1 %v628_v8  ;;  %19079 = vmatprep.subr.bf16.mxu0 %v22213_v9  ;;  %v775_v20 = vand.u32 %v21833_v12, %v22206_v6  ;;  %v1386_v45 = vand.u32 %v21837_v39, %v22206_v6  ;;  %v21845_v46 = vld [vmem:[%s26800_s1 + $0x3c] sm:$0xff]   ;;  %v21859_v56 = vld [vmem:[%s26800_s1 + $0xc] sm:$0xff]   ;;  %v21854_v61 = vld [vmem:[%s26800_s1 + $0x44] ss:$0 sps:$4 sm:$0x77]   ;;  %vm1950_vm3 = vcmask 64512  }
  0x14   : > { %19040 = vmatpush3.bf16.msra.mxu1 %v628_v8  ;;  %19080 = vmatpush3.bf16.msra.mxu0 %v22213_v9  ;;  %v1595_v2 = vand.u32 %v21854_v61, %v22206_v6  ;;  %v21865_v3 = vld [vmem:[%s26800_s1 + $0x48] sm:$0xff]   ;;  %vm5102_vm4 = vcmask 1043456   ;;  %vm5453_vm5 = vsmask.f32 3328  ;;  %vm5057_vm6 = vcmask 62466   ;;  %s18255_s0 = sshll.u32 %s27174_s22, 6 }
  0x15   : > { %19097 = vmatprep.subr.bf16.mxu0 %v21817_v7  ;;  %s22232_s30 = scalar_lea.vmem %s26920_s29, %s21793_s18  ;;  %19057 = vmatprep.subr.bf16.mxu1 %v21831_v10  ;;  %vm5047_vm7 = vcmask 58368   ;;  %vm5049_vm8 = vcmask 64518   ;;  %vm5245_vm9 = vsmask.f32 4352  ;;  %vm6004_vm10 = vsmask.f32 7424  ;;  %s521_s23 = scalar_lea.vmem %s26815_s16, %s18255_s0 }
  0x16   : > { %v22235_v13 = vld [vmem:[%s22232_s30 + $0x18] sm:$0xf]  ;;  %v22238_v14 = vld [vmem:[%s22232_s30 + $0x1c] sm:$0xf]  ;;  %v22241_v15 = vld [vmem:[%s22232_s30 + $0x20] sm:$0xf] }
  0x17   : > { %v22244_v16 = vld [vmem:[%s22232_s30 + $0x24] sm:$0xf]  ;;  %v17229_v17 = vcombine.low %v22235_v13, %v22238_v14  ;;  %v21816_v21 = vld [vmem:[%s22232_s30 + $0x2c] sm:$0xff]   ;;  %v22255_v22 = vld [vmem:[%s22232_s30 + $0x28] sm:$0xf]  ;;  %v17249_v53 = vcombine.low %v22238_v14, %v22241_v15  ;;  %vm6894_vm12 = vcmask 130048  }
  0x18   : > { %v17230_v18 = vcombine.low %v22241_v15, %v22244_v16  ;;  %v21815_v19 = vld [vmem:[%s22232_s30 + $0x24] sm:$0xff]   ;;  %v22260_v23 = vld [vmem:[%s22232_s30 + $0x2c] sm:$0xf]  ;;  %v21819_v26 = vld [vmem:[%s22232_s30 + $0x34] sm:$0xff]   ;;  %v17250_v57 = vcombine.low %v22244_v16, %v22255_v22  ;;  %vm5650_vm11 = vsmask.f32 256 }
  0x19   : > { %19041 = vmatprep.mubr.msk.bf16.mxu1 %vm598_vm2, %v17229_v17  ;;  %19081 = vmatprep.mubr.msk.bf16.mxu0 %vm598_vm2, %v21815_v19  ;;  %v17231_v25 = vcombine.low %v22255_v22, %v22260_v23  ;;  %v22268_v27 = vld [vmem:[%s22232_s30 + $0x30] sm:$0xf]  ;;  %v22271_v28 = vld [vmem:[%s22232_s30 + $0x34] sm:$0xf]  ;;  %v22279_v30 = vld [vmem:[%s22232_s30 + $0x38] sm:$0xf] }
  0x1a   : > { %19042 = vmatmul.mubr.msk.bf16.vlgmr.msra.gmra.mrb[0].mxu1 %vm598_vm2, %v17230_v18  ;;  %19082 = vmatmul.mubr.msk.bf16.vlgmr.msra.gmra.mrb[0].mxu0 %vm598_vm2, %v21816_v21  ;;  %v22282_v31 = vld [vmem:[%s22232_s30 + $0x3c] sm:$0xf]  ;;  %v17232_v32 = vcombine.low %v22268_v27, %v22271_v28  ;;  %v21824_v35 = vld [vmem:[%s22232_s30 + $0x30] sm:$0xff]   ;;  %v22292_v36 = vld [vmem:[%s22232_s30 + $0x40] sm:$0xf]  ;;  %v17251_v59 = vcombine.low %v22260_v23, %v22268_v27  ;;  %v17252_v62 = vcombine.low %v22271_v28, %v22279_v30  ;;  %vm10535_vm13 = vcmask 128002  }
  0x1b   : > { %19058 = vmatpush3.bf16.msra.mxu1 %v21831_v10  ;;  %19098 = vmatpush3.bf16.msra.mxu0 %v21817_v7  ;;  %v21821_v33 = vld [vmem:[%s22232_s30 + $0x3c] sm:$0xff]   ;;  %v17233_v34 = vcombine.low %v22279_v30, %v22282_v31  ;;  %v22296_v37 = vld [vmem:[%s22232_s30 + $0x44] sm:$0xf]  ;;  %v22301_v38 = vld [vmem:[%s22232_s30 + $0x48] sm:$0xf]  ;;  %v17253_v0 = vcombine.low %v22282_v31, %v22292_v36  ;;  %vm10525_vm14 = vcmask 123904  }
  0x1c   : > { %19059 = vmatprep.subr.bf16.mxu1 %v775_v20  ;;  %19045 = vmatprep.mubr.msk.bf16.mxu1 %vm598_vm2, %v17231_v25  ;;  %v542_v40 = vld [vmem:[%s22232_s30 + $0x4c] sm:$0xf]  ;;  %v17234_v41 = vcombine.low %v22292_v36, %v22296_v37  ;;  %v21826_v42 = vld [vmem:[%s22232_s30 + $0x38] sm:$0xff]   ;;  %v21829_v44 = vld [vmem:[%s22232_s30 + $0x40] sm:$0xff]   ;;  %v17254_v4 = vcombine.low %v22296_v37, %v22301_v38  ;;  %vm10527_vm15 = vcmask 130054   ;;  %vm22095_vm0 = vmmov 0  }
  0x1d   : > { %19085 = vmatprep.mubr.msk.bf16.mxu0 %vm598_vm2, %v21819_v26  ;;  %19099 = vmatprep.subr.bf16.mxu0 %v1177_v24  ;;  %v17235_v43 = vcombine.low %v22301_v38, %v542_v40  ;;  %v21830_v47 = vld [vmem:[%s22232_s30 + $0x50] sm:$0xff]   ;;  %v21832_v48 = vld [vmem:[%s22232_s30 + $0x48] sm:$0xff]   ;;  %v21836_v54 = vld [vmem:[%s22232_s30 + $0x58] sm:$0xff]  }
  0x1e   : > { %v21834_v49 = vld [vmem:[%s22232_s30 + $0xc] sm:$0xff]   ;;  %v525_v51 = vld [vmem:[%s22232_s30 + $0x14] sm:$0xf]  ;;  %v21838_v55 = vld [vmem:[%s22232_s30 + $0x60] sm:$0xff]  }
  0x1f   : > { %19060 = vmatpush3.bf16.msra.mxu1 %v775_v20  ;;  %19100 = vmatpush3.bf16.msra.mxu0 %v1177_v24  ;;  %v21835_v50 = vld [vmem:[%s22232_s30 + $0x50] sm:$0xff]   ;;  %v17248_v52 = vcombine.low %v525_v51, %v22235_v13  ;;  %v21840_v58 = vld [vmem:[%s22232_s30 + $0x68] sm:$0xff]   ;;  %v21842_v60 = vld [vmem:[%s22232_s30 + $0x3c] sm:$0xff]  }
  0x20   : > { %20655 = vmatprep.subr.bf16.mxu1 %v22196_v1  ;;  %19117 = vmatprep.subr.bf16.mxu0 %v21827_v29  ;;  %v21844_v63 = vld [vmem:[%s22232_s30 + $0x44] sm:$0xff]   ;;  %v21849_v5 = vld [vmem:[%s22232_s30 + $0x54] sm:$0xff]   ;;  %v21851_v8 = vld [vmem:[%s22232_s30 + $0x5c] sm:$0xff]  }
  0x21   : > { %v21850_v7 = vld [vmem:[%s22232_s30 + $0x44] sm:$0xff]   ;;  %v21852_v10 = vld [vmem:[%s22232_s30 + $0x4c] sm:$0xff]   ;;  %v21855_v12 = vld [vmem:[%s22232_s30 + $0x54] sm:$0xff]  }
  0x22   : > { %19046 = vmatmul.mubr.msk.bf16.gmra.mrb[4].mxu1 %vm598_vm2, %v17232_v32  ;;  %19086 = vmatmul.mubr.msk.bf16.gmra.mrb[4].mxu0 %vm598_vm2, %v21821_v33  ;;  %v21853_v11 = vld [vmem:[%s22232_s30 + $0x64] sm:$0xff]   ;;  %v21856_v13 = vld [vmem:[%s22232_s30 + $0x6c] sm:$0xff]   ;;  %v22393_v15 = vld [vmem:[%s22232_s30 + $0x58] sm:$0xf] }
  0x23   : > { %19049 = vmatprep.mubr.msk.bf16.mxu1 %vm598_vm2, %v17233_v34  ;;  %19101 = vmatprep.mubr.msk.bf16.mxu0 %vm598_vm2, %v21824_v35  ;;  %v22397_v16 = vld [vmem:[%s22232_s30 + $0x5c] sm:$0xf]  ;;  %v21880_v17 = vld [vmem:[%s26800_s1] sm:$0xff]   ;;  %v21858_v19 = vld [vmem:[%s22232_s30 + $0x74] sm:$0xff]  }
  0x24   : > { %v21857_v18 = vld [vmem:[%s22232_s30 + $0x5c] sm:$0xff]   ;;  %v17376_v20 = vcombine.low %v22393_v15, %v22397_v16  ;;  %v21861_v21 = vld [vmem:[%s22232_s30 + $0x48] sm:$0xff]   ;;  %v22412_v23 = vld [vmem:[%s22232_s30 + $0x64] sm:$0xf] }
  0x25   : > { %v22408_v22 = vld [vmem:[%s22232_s30 + $0x60] sm:$0xf]  ;;  %v22417_v24 = vld [vmem:[%s22232_s30 + $0x68] sm:$0xf]  ;;  %v22421_v25 = vld [vmem:[%s22232_s30 + $0x6c] sm:$0xf] }
  0x26   : > { %v21864_v26 = vld [vmem:[%s22232_s30 + $0x50] sm:$0xff]   ;;  %v17377_v28 = vcombine.low %v22408_v22, %v22412_v23  ;;  %v21881_v30 = vld [vmem:[%s26800_s1 + $0x8] ss:$0 sps:$4 sm:$0x77]   ;;  %v17378_v31 = vcombine.low %v22417_v24, %v22421_v25  ;;  %v22447_v36 = vld [vmem:[%s22232_s30 + $0x78] sm:$0xf]  ;;  %v17396_v61 = vcombine.low %v22397_v16, %v22408_v22 }
  0x27   : > { %v21874_v27 = vld [vmem:[%s26800_s1 + $0x50] ss:$0 sps:$4 sm:$0x77]   ;;  %v22441_v34 = vld [vmem:[%s22232_s30 + $0x74] sm:$0xf]  ;;  %v2283_v35 = vand.u32 %v21881_v30, %v22206_v6  ;;  %v21897_v40 = vld [vmem:[%s26800_s1 + $0x18] sm:$0xff]  }
  0x28   : > { %v22436_v32 = vld [vmem:[%s22232_s30 + $0x70] sm:$0xf]  ;;  %v1804_v33 = vand.u32 %v21874_v27, %v22206_v6  ;;  %v22451_v37 = vld [vmem:[%s22232_s30 + $0x7c] sm:$0xf]  ;;  %v22586_v30 = vld [vmem:[%s22232_s30 + $0xb4] sm:$0xf] }
  0x29   : > { %v21898_v38 = vld [vmem:[%s26800_s1 + $0xc] sm:$0xff]   ;;  %v17379_v39 = vcombine.low %v22436_v32, %v22441_v34  ;;  %v21876_v51 = vld [vmem:[%s22232_s30 + $0x78] sm:$0xff]  }
  0x2a   : > { %19050 = vmatmul.mubr.msk.bf16.gmra.mrb[8].mxu1 %vm598_vm2, %v17234_v41  ;;  %19102 = vmatmul.mubr.msk.bf16.vlgmr.msra.gmra.mrb[0].mxu0 %vm598_vm2, %v21826_v42  ;;  %v21869_v41 = vld [vmem:[%s22232_s30 + $0x60] sm:$0xff]   ;;  %v17380_v42 = vcombine.low %v22447_v36, %v22451_v37  ;;  %v21904_v22 = vld [vmem:[%s22232_s30 + $0x6c] sm:$0xff]  }
  0x2b   : > { %19053 = vmatprep.mubr.msk.bf16.mxu1 %vm598_vm2, %v17235_v43  ;;  %19118 = vmatpush3.bf16.msra.mxu0 %v21827_v29  ;;  %v21867_v29 = vld [vmem:[%s22232_s30 + $0x58] sm:$0xff]   ;;  %v21871_v43 = vld [vmem:[%s22232_s30 + $0x68] sm:$0xff]  }
  0x2c   : > { %19105 = vmatprep.mubr.msk.bf16.mxu0 %vm598_vm2, %v21829_v44  ;;  %19119 = vmatprep.subr.bf16.mxu0 %v1386_v45  ;;  %v22466_v44 = vld [vmem:[%s22232_s30 + $0x80] sm:$0xf] }
  0x2f   : > { %19120 = vmatpush3.bf16.msra.mxu0 %v1386_v45  ;;  %v22470_v45 = vld [vmem:[%s22232_s30 + $0x84] sm:$0xf] }
  0x30   : > { %19137 = vmatprep.subr.bf16.mxu0 %v21845_v46 }
  0x32   : > { %19054 = vmatmul.mubr.msk.bf16.gmra.mrb[12].mxu1 %vm598_vm2, %v21830_v47  ;;  %19106 = vmatmul.mubr.msk.bf16.gmra.mrb[4].mxu0 %vm598_vm2, %v21832_v48  ;;  %v2056_v47 = vld [vmem:[%s22232_s30 + $0x8c] sm:$0xf]  ;;  %v17381_v48 = vcombine.low %v22466_v44, %v22470_v45 }
  0x33   : > { %19061 = vmatprep.mubr.msk.bf16.mxu1 %vm598_vm2, %v21834_v49  ;;  %19109 = vmatprep.mubr.msk.bf16.mxu0 %vm598_vm2, %v21835_v50  ;;  %v21873_v49 = vld [vmem:[%s22232_s30 + $0x70] sm:$0xff]  }
  0x3a   : > { %19062 = vmatmul.mubr.msk.bf16.vlgmr.msra.gmra.mrb[0].mxu1 %vm598_vm2, %v17248_v52  ;;  %19110 = vmatmul.mubr.msk.bf16.gmra.mrb[8].mxu0 %vm598_vm2, %v21836_v54  ;;  %v21878_v52 = vld [vmem:[%s22232_s30 + $0x80] sm:$0xff]   ;;  %v21883_v54 = vld [vmem:[%s22232_s30 + $0x4c] sm:$0xff]  }
  0x3b   : > { %19065 = vmatprep.mubr.msk.bf16.mxu1 %vm598_vm2, %v17249_v53  ;;  %19113 = vmatprep.mubr.msk.bf16.mxu0 %vm598_vm2, %v21838_v55  ;;  %v21879_v53 = vld [vmem:[%s22232_s30 + $0x90] sm:$0xff]  }
  0x3c   : > { %20657 = vmatpush3.bf16.msra.mxu1 %v22196_v1  ;;  %v21847_v1 = vld [vmem:[%s22232_s30 + $0x4c] sm:$0xff]   ;;  %v21882_v55 = vld [vmem:[%s22232_s30 + $0x54] sm:$0xff]  }
  0x3d   : > { %20656 = vmatprep.subr.bf16.mxu1 %v22213_v9 }
  0x40   : > { %20658 = vmatpush3.bf16.msra.mxu1 %v22213_v9  ;;  %v21860_v9 = vld [vmem:[%s26800_s1 + $0x14] ss:$0 sps:$4 sm:$0x77]  }
  0x41   : > { %19177 = vmatprep.subr.bf16.mxu1 %v21859_v56  ;;  %v2136_v14 = vand.u32 %v21860_v9, %v22206_v6  ;;  %v17399_v9 = vcombine.low %v22441_v34, %v22447_v36  ;;  %v21936_v34 = vld [vmem:[%s26800_s1 + $0x30] sm:$0xff]   ;;  %v21938_v36 = vld [vmem:[%s26800_s1 + $0x18] sm:$0xff]  }
  0x42   : > { %19066 = vmatmul.mubr.msk.bf16.gmra.mrb[4].mxu1 %vm598_vm2, %v17250_v57  ;;  %19114 = vmatmul.mubr.msk.bf16.gmra.mrb[12].mxu0 %vm598_vm2, %v21840_v58  ;;  %v21899_v57 = vld [vmem:[%s26800_s1 + $0x20] ss:$0 sps:$4 sm:$0x77]  }
  0x43   : > { %19069 = vmatprep.mubr.msk.bf16.mxu1 %vm598_vm2, %v17251_v59  ;;  %19121 = vmatprep.mubr.msk.bf16.mxu0 %vm598_vm2, %v21842_v60  ;;  %v21884_v59 = vld [vmem:[%s22232_s30 + $0x5c] sm:$0xff]   ;;  %v21900_v60 = vld [vmem:[%s26800_s1 + $0x14] ss:$0 sps:$4 sm:$0x77]  }
  0x4a   : > { %19070 = vmatmul.mubr.msk.bf16.gmra.mrb[8].mxu1 %vm598_vm2, %v17252_v62  ;;  %19122 = vmatmul.mubr.msk.bf16.vlgmr.msra.gmra.mrb[0].mxu0 %vm598_vm2, %v21844_v63  ;;  %v21885_v62 = vld [vmem:[%s22232_s30 + $0x64] sm:$0xff]   ;;  %v2475_v63 = vand.u32 %v21899_v57, %v22206_v6 }
  0x4b   : > { %19073 = vmatprep.mubr.msk.bf16.mxu1 %vm598_vm2, %v17253_v0  ;;  %19138 = vmatpush3.bf16.msra.mxu0 %v21845_v46  ;;  %v22473_v46 = vld [vmem:[%s22232_s30 + $0x88] sm:$0xf]  ;;  %v3638_v0 = vand.u32 %v21900_v60, %v22206_v6 }
  0x4c   : > { %19125 = vmatprep.mubr.msk.bf16.mxu0 %vm598_vm2, %v21847_v1  ;;  %19139 = vmatprep.subr.bf16.mxu0 %v1595_v2  ;;  %v17382_v50 = vcombine.low %v22473_v46, %v2056_v47  ;;  %v21917_v1 = vld [vmem:[%s26800_s1 + $0x24] sm:$0xff]   ;;  %v17401_v16 = vcombine.low %v22470_v45, %v22473_v46  ;;  %v21914_v45 = vld [vmem:[%s22232_s30 + $0x94] sm:$0xff]  }
  0x4f   : > { %19140 = vmatpush3.bf16.msra.mxu0 %v1595_v2  ;;  %v21919_v2 = vld [vmem:[%s26800_s1] sm:$0xff]  }
  0x50   : > { %19157 = vmatprep.subr.bf16.mxu0 %v21865_v3 }
  0x52   : > { %19074 = vmatmul.mubr.msk.bf16.gmra.mrb[12].mxu1 %vm598_vm2, %v17254_v4  ;;  %19126 = vmatmul.mubr.msk.bf16.gmra.mrb[4].mxu0 %vm598_vm2, %v21849_v5  ;;  %v17397_v4 = vcombine.low %v22412_v23, %v22417_v24  ;;  %v17398_v5 = vcombine.low %v22421_v25, %v22436_v32  ;;  %v21920_v23 = vld [vmem:[%s26800_s1 + $0x2c] ss:$0 sps:$4 sm:$0x77]   ;;  %v21921_v24 = vld [vmem:[%s26800_s1 + $0x8] ss:$0 sps:$4 sm:$0x77]  }
  0x53   : > { %19089 = vmatprep.mubr.msk.bf16.mxu1 %vm598_vm2, %v21850_v7  ;;  %19129 = vmatprep.mubr.msk.bf16.mxu0 %vm598_vm2, %v21851_v8  ;;  %v21889_v7 = vld [vmem:[%s22232_s30 + $0x74] sm:$0xff]   ;;  %v21891_v8 = vld [vmem:[%s22232_s30 + $0x7c] sm:$0xff]  }
  0x54   : > { %v21906_v25 = vld [vmem:[%s22232_s30 + $0x74] sm:$0xff]  }
  0x55   : > { %v22592_v32 = vld [vmem:[%s22232_s30 + $0xb8] sm:$0xf] }
  0x5a   : > { %19090 = vmatmul.mubr.msk.bf16.vlgmr.msra.gmra.mrb[8].mxu1 %vm598_vm2, %v21852_v10  ;;  %19130 = vmatmul.mubr.msk.bf16.gmra.mrb[8].mxu0 %vm598_vm2, %v21853_v11  ;;  %v17400_v10 = vcombine.low %v22451_v37, %v22466_v44  ;;  %v21893_v11 = vld [vmem:[%s22232_s30 + $0x84] sm:$0xff]   ;;  %v21912_v44 = vld [vmem:[%s22232_s30 + $0x8c] sm:$0xff]  }
  0x5b   : > { %19093 = vmatprep.mubr.msk.bf16.mxu1 %vm598_vm2, %v21855_v12  ;;  %19133 = vmatprep.mubr.msk.bf16.mxu0 %vm598_vm2, %v21856_v13  ;;  %v22540_v12 = vld [vmem:[%s22232_s30 + $0x98] sm:$0xf]  ;;  %v22544_v13 = vld [vmem:[%s22232_s30 + $0x9c] sm:$0xf]  ;;  %v21910_v37 = vld [vmem:[%s22232_s30 + $0x84] sm:$0xff]  }
  0x5c   : > { %19178 = vmatpush3.bf16.msra.mxu1 %v21859_v56  ;;  %v2039_v56 = vld [vmem:[%s22232_s30 + $0x54] sm:$0xf] }
  0x5d   : > { %19179 = vmatprep.subr.bf16.mxu1 %v2136_v14  ;;  %v17395_v58 = vcombine.low %v2039_v56, %v22393_v15  ;;  %v21901_v15 = vld [vmem:[%s22232_s30 + $0x64] sm:$0xff]  }
  0x5e   : > { %v21925_v56 = vld [vmem:[%s22232_s30 + $0x80] sm:$0xff]  }
  0x60   : > { %19180 = vmatpush3.bf16.msra.mxu1 %v2136_v14  ;;  %v21895_v14 = vld [vmem:[%s22232_s30 + $0x8c] sm:$0xff]  }
  0x61   : > { %19197 = vmatprep.subr.bf16.mxu1 %v21880_v17 }
  0x62   : > { %19094 = vmatmul.mubr.msk.bf16.gmra.mrb[12].mxu1 %vm598_vm2, %v21857_v18  ;;  %19134 = vmatmul.mubr.msk.bf16.gmra.mrb[12].mxu0 %vm598_vm2, %v21858_v19  ;;  %v22554_v18 = vld [vmem:[%s22232_s30 + $0xa0] sm:$0xf]  ;;  %v22559_v19 = vld [vmem:[%s22232_s30 + $0xa4] sm:$0xf] }
  0x63   : > { %19181 = vmatprep.mubr.msk.bf16.mxu1 %vm598_vm2, %v17376_v20  ;;  %19141 = vmatprep.mubr.msk.bf16.mxu0 %vm598_vm2, %v21861_v21  ;;  %v22562_v20 = vld [vmem:[%s22232_s30 + $0xa8] sm:$0xf]  ;;  %v22565_v21 = vld [vmem:[%s22232_s30 + $0xac] sm:$0xf] }
  0x64   : > { %v17525_v27 = vcombine.low %v22562_v20, %v22565_v21 }
  0x6a   : > { %19182 = vmatmul.mubr.msk.bf16.vlgmr.msra.gmra.mrb[16].mxu1 %vm598_vm2, %v17377_v28  ;;  %19142 = vmatmul.mubr.msk.bf16.vlgmr.msra.gmra.mrb[0].mxu0 %vm598_vm2, %v21864_v26  ;;  %v17524_v26 = vcombine.low %v22554_v18, %v22559_v19  ;;  %v2683_v28 = vand.u32 %v21920_v23, %v22206_v6  ;;  %v26817_v23 = vmov 0  }
  0x6b   : > { %19185 = vmatprep.mubr.msk.bf16.mxu1 %vm598_vm2, %v17378_v31  ;;  %19158 = vmatpush3.bf16.msra.mxu0 %v21865_v3  ;;  %v21887_v3 = vld [vmem:[%s22232_s30 + $0x6c] sm:$0xff]   ;;  %v3785_v31 = vand.u32 %v21921_v24, %v22206_v6  ;;  %5045 = vst.msk [vmem:[#allocation3 + $0x20] sm:$0xff] %vm1950_vm3, %v26817_v23  ;;  %5046 = vst.msk [vmem:[#allocation3 + $0x28] sm:$0xff] %vm1950_vm3, %v26817_v23  ;;  %v21948_v24 = vld [vmem:[%s22232_s30 + $0xbc] sm:$0xff]  }
  0x6c   : > { %19145 = vmatprep.mubr.msk.bf16.mxu0 %vm598_vm2, %v21867_v29  ;;  %19159 = vmatprep.subr.bf16.mxu0 %v1804_v33  ;;  %v22583_v29 = vld [vmem:[%s22232_s30 + $0xb0] sm:$0xf]  ;;  %5051 = vst.msk [vmem:[#allocation3 + $0xf0] sm:$0xff] %vm1950_vm3, %v26817_v23  ;;  %5052 = vst.msk [vmem:[#allocation3 + $0xf8] sm:$0xff] %vm1950_vm3, %v26817_v23 }
  0x6d   : > { %19198 = vmatpush3.bf16.msra.mxu1 %v21880_v17  ;;  %v17523_v17 = vcombine.low %v22540_v12, %v22544_v13 }
  0x6e   : > { %19199 = vmatprep.subr.bf16.mxu1 %v2283_v35 }
  0x6f   : > { %19160 = vmatpush3.bf16.msra.mxu0 %v1804_v33  ;;  %v22595_v33 = vld [vmem:[%s22232_s30 + $0xbc] sm:$0xf] }
  0x70   : > { %19317 = vmatprep.subr.bf16.mxu0 %v21898_v38 }
  0x71   : > { %19200 = vmatpush3.bf16.msra.mxu1 %v2283_v35  ;;  %v21908_v35 = vld [vmem:[%s22232_s30 + $0x7c] sm:$0xff]  }
  0x72   : > { %19186 = vmatmul.mubr.msk.bf16.gmra.mrb[20].mxu1 %vm598_vm2, %v17379_v39  ;;  %19217 = vmatprep.subr.bf16.mxu1 %v21897_v40  ;;  %v17527_v39 = vcombine.low %v22592_v32, %v22595_v33 }
  0x73   : > { %19146 = vmatmul.mubr.msk.bf16.gmra.mrb[4].mxu0 %vm598_vm2, %v21869_v41  ;;  %19189 = vmatprep.mubr.msk.bf16.mxu1 %vm598_vm2, %v17380_v42  ;;  %v22615_v41 = vld [vmem:[%s22232_s30 + $0xc4] sm:$0xf]  ;;  %v22620_v42 = vld [vmem:[%s22232_s30 + $0xc8] sm:$0xf] }
  0x74   : > { %19149 = vmatprep.mubr.msk.bf16.mxu0 %vm598_vm2, %v21871_v43  ;;  %v3558_v43 = vld [vmem:[%s22232_s30 + $0xcc] sm:$0xf] }
  0x75   : > { %v17529_v47 = vcombine.low %v22620_v42, %v3558_v43 }
  0x7a   : > { %19190 = vmatmul.mubr.msk.bf16.gmra.mrb[24].mxu1 %vm598_vm2, %v17381_v48  ;;  %v21916_v48 = vld [vmem:[%s22232_s30 + $0x9c] sm:$0xff]  }
  0x7b   : > { %19150 = vmatmul.mubr.msk.bf16.gmra.mrb[8].mxu0 %vm598_vm2, %v21873_v49  ;;  %19193 = vmatprep.mubr.msk.bf16.mxu1 %vm598_vm2, %v17382_v50  ;;  %v21918_v49 = vld [vmem:[%s22232_s30 + $0xd0] sm:$0xff]  }
  0x7c   : > { %19153 = vmatprep.mubr.msk.bf16.mxu0 %vm598_vm2, %v21876_v51  ;;  %v21922_v50 = vld [vmem:[%s22232_s30 + $0x70] sm:$0xff]  }
  0x7d   : > { %v21923_v51 = vld [vmem:[%s22232_s30 + $0x8c] sm:$0xff]  }
  0x82   : > { %19194 = vmatmul.mubr.msk.bf16.gmra.mrb[28].mxu1 %vm598_vm2, %v21879_v53  ;;  %v21939_v53 = vld [vmem:[%s26800_s1 + $0x38] ss:$0 sps:$4 sm:$0x77]  }
  0x83   : > { %19154 = vmatmul.mubr.msk.bf16.gmra.mrb[12].mxu0 %vm598_vm2, %v21878_v52  ;;  %19201 = vmatprep.mubr.msk.bf16.mxu1 %vm598_vm2, %v21883_v54  ;;  %v3541_v52 = vld [vmem:[%s22232_s30 + $0x94] sm:$0xf]  ;;  %v21924_v54 = vld [vmem:[%s22232_s30 + $0x78] sm:$0xff]  }
  0x84   : > { %19161 = vmatprep.mubr.msk.bf16.mxu0 %vm598_vm2, %v21882_v55  ;;  %v21940_v55 = vld [vmem:[%s26800_s1 + $0x20] ss:$0 sps:$4 sm:$0x77]   ;;  %v17542_v57 = vcombine.low %v3541_v52, %v22540_v12  ;;  %v21959_v12 = vld [vmem:[%s26800_s1 + $0x44] ss:$0 sps:$4 sm:$0x77]  }
  0x85   : > { %v3977_v60 = vand.u32 %v21940_v55, %v22206_v6  ;;  %v21970_v52 = vld [vmem:[%s22232_s30 + $0xd0] sm:$0xff]  }
  0x86   : > { %v21971_v55 = vld [vmem:[%s22232_s30 + $0xb0] sm:$0xff]  }
  0x8a   : > { %19202 = vmatmul.mubr.msk.bf16.vlgmr.msra.gmra.mrb[16].mxu1 %vm598_vm2, %v17395_v58  ;;  %v17543_v58 = vcombine.low %v22544_v13, %v22554_v18  ;;  %v21943_v13 = vld [vmem:[%s22232_s30 + $0x84] sm:$0xff]   ;;  %v3099_v18 = vand.u32 %v21959_v12, %v22206_v6 }
  0x8b   : > { %19162 = vmatmul.mubr.msk.bf16.vlgmr.msra.gmra.mrb[0].mxu0 %vm598_vm2, %v21884_v59  ;;  %19205 = vmatprep.mubr.msk.bf16.mxu1 %vm598_vm2, %v17396_v61  ;;  %v2891_v59 = vand.u32 %v21939_v53, %v22206_v6  ;;  %v21956_v61 = vld [vmem:[%s26800_s1 + $0x3c] sm:$0xff]   ;;  %v22007_v12 = vld [vmem:[%s26800_s1 + $0x48] sm:$0xff]  }
  0x8c   : > { %19165 = vmatprep.mubr.msk.bf16.mxu0 %vm598_vm2, %v21885_v62  ;;  %19218 = vmatpush3.bf16.msra.mxu1 %v21897_v40  ;;  %v22612_v40 = vld [vmem:[%s22232_s30 + $0xc0] sm:$0xf]  ;;  %v21927_v62 = vld [vmem:[%s22232_s30 + $0x88] sm:$0xff]  }
  0x8d   : > { %19318 = vmatpush3.bf16.msra.mxu0 %v21898_v38  ;;  %19219 = vmatprep.subr.bf16.mxu1 %v2475_v63  ;;  %v17526_v38 = vcombine.low %v22583_v29, %v22586_v30  ;;  %v17528_v46 = vcombine.low %v22612_v40, %v22615_v41 }
  0x8e   : > { %19319 = vmatprep.subr.bf16.mxu0 %v3638_v0 }
  0x90   : > { %19220 = vmatpush3.bf16.msra.mxu1 %v2475_v63  ;;  %v21958_v63 = vld [vmem:[%s26800_s1 + $0x24] sm:$0xff]  }
  0x91   : > { %19320 = vmatpush3.bf16.msra.mxu0 %v3638_v0  ;;  %19237 = vmatprep.subr.bf16.mxu1 %v21917_v1  ;;  %v17544_v0 = vcombine.low %v22559_v19, %v22562_v20  ;;  %v21976_v20 = vld [vmem:[%s26800_s1 + $0x48] sm:$0xff]  }
  0x92   : > { %19206 = vmatmul.mubr.msk.bf16.gmra.mrb[20].mxu1 %vm598_vm2, %v17397_v4  ;;  %19337 = vmatprep.subr.bf16.mxu0 %v21919_v2  ;;  %v17546_v4 = vcombine.low %v22586_v30, %v22592_v32  ;;  %v21954_v30 = vld [vmem:[%s22232_s30 + $0xd4] sm:$0xff]   ;;  %v21957_v32 = vld [vmem:[%s22232_s30 + $0xdc] sm:$0xff]  }
  0x93   : > { %19166 = vmatmul.mubr.msk.bf16.gmra.mrb[4].mxu0 %vm598_vm2, %v21887_v3  ;;  %19209 = vmatprep.mubr.msk.bf16.mxu1 %vm598_vm2, %v17398_v5  ;;  %v21931_v3 = vld [vmem:[%s22232_s30 + $0x98] sm:$0xff]   ;;  %v21933_v5 = vld [vmem:[%s22232_s30 + $0xa0] sm:$0xff]  }
  0x94   : > { %19169 = vmatprep.mubr.msk.bf16.mxu0 %vm598_vm2, %v21889_v7  ;;  %v17547_v7 = vcombine.low %v22595_v33, %v22612_v40  ;;  %v21961_v33 = vld [vmem:[%s22232_s30 + $0x88] sm:$0xff]   ;;  %v21966_v40 = vld [vmem:[%s22232_s30 + $0xc0] sm:$0xff]  }
  0x9a   : > { %19210 = vmatmul.mubr.msk.bf16.gmra.mrb[24].mxu1 %vm598_vm2, %v17399_v9  ;;  %v17548_v9 = vcombine.low %v22615_v41, %v22620_v42 }
  0x9b   : > { %19170 = vmatmul.mubr.msk.bf16.gmra.mrb[8].mxu0 %vm598_vm2, %v21891_v8  ;;  %19213 = vmatprep.mubr.msk.bf16.mxu1 %vm598_vm2, %v17400_v10  ;;  %v21935_v8 = vld [vmem:[%s22232_s30 + $0xa8] sm:$0xff]   ;;  %v21941_v10 = vld [vmem:[%s22232_s30 + $0x7c] sm:$0xff]  }
  0x9c   : > { %19173 = vmatprep.mubr.msk.bf16.mxu0 %vm598_vm2, %v21893_v11  ;;  %v21942_v11 = vld [vmem:[%s22232_s30 + $0xa4] sm:$0xff]  }
  0xa2   : > { %19214 = vmatmul.mubr.msk.bf16.gmra.mrb[28].mxu1 %vm598_vm2, %v17401_v16  ;;  %v21945_v16 = vld [vmem:[%s22232_s30 + $0x8c] sm:$0xff]  }
  0xa3   : > { %19174 = vmatmul.mubr.msk.bf16.gmra.mrb[12].mxu0 %vm598_vm2, %v21895_v14  ;;  %19221 = vmatprep.mubr.msk.bf16.mxu1 %vm598_vm2, %v21901_v15  ;;  %v21960_v14 = vld [vmem:[%s26800_s1 + $0x2c] ss:$0 sps:$4 sm:$0x77]  }
  0xa4   : > { %19321 = vmatprep.mubr.msk.bf16.mxu0 %vm598_vm2, %v17523_v17  ;;  %v21944_v15 = vld [vmem:[%s22232_s30 + $0xac] sm:$0xff]   ;;  %v21946_v17 = vld [vmem:[%s22232_s30 + $0xb4] sm:$0xff]   ;;  %v4185_v19 = vand.u32 %v21960_v14, %v22206_v6 }
  0xa5   : > { %v21987_v14 = vld [vmem:[%s22232_s30 + $0xac] sm:$0xff]  }
  0xaa   : > { %19222 = vmatmul.mubr.msk.bf16.vlgmr.msra.gmra.mrb[16].mxu1 %vm598_vm2, %v21904_v22  ;;  %v21978_v22 = vld [vmem:[%s26800_s1 + $0x30] sm:$0xff]  }
  0xab   : > { %19322 = vmatmul.mubr.msk.bf16.vlgmr.msra.gmra.mrb[16].mxu0 %vm598_vm2, %v17524_v26  ;;  %19225 = vmatprep.mubr.msk.bf16.mxu1 %vm598_vm2, %v21906_v25  ;;  %v21949_v25 = vld [vmem:[%s22232_s30 + $0x9c] sm:$0xff]   ;;  %v21950_v26 = vld [vmem:[%s22232_s30 + $0xc4] sm:$0xff]  }
  0xac   : > { %19325 = vmatprep.mubr.msk.bf16.mxu0 %vm598_vm2, %v17525_v27  ;;  %19238 = vmatpush3.bf16.msra.mxu1 %v21917_v1  ;;  %v21929_v1 = vld [vmem:[%s22232_s30 + $0x90] sm:$0xff]   ;;  %v21951_v27 = vld [vmem:[%s22232_s30 + $0xa4] sm:$0xff]  }
  0xad   : > { %19338 = vmatpush3.bf16.msra.mxu0 %v21919_v2  ;;  %19239 = vmatprep.subr.bf16.mxu1 %v2683_v28  ;;  %v17545_v2 = vcombine.low %v22565_v21, %v22583_v29  ;;  %v21947_v21 = vld [vmem:[%s22232_s30 + $0x94] sm:$0xff]   ;;  %v21953_v29 = vld [vmem:[%s22232_s30 + $0xac] sm:$0xff]  }
  0xae   : > { %19339 = vmatprep.subr.bf16.mxu0 %v3785_v31 }
  0xb0   : > { %19240 = vmatpush3.bf16.msra.mxu1 %v2683_v28  ;;  %v21952_v28 = vld [vmem:[%s22232_s30 + $0xcc] sm:$0xff]  }
  0xb1   : > { %19340 = vmatpush3.bf16.msra.mxu0 %v3785_v31  ;;  %19257 = vmatprep.subr.bf16.mxu1 %v21936_v34  ;;  %v21955_v31 = vld [vmem:[%s22232_s30 + $0xb4] sm:$0xff]  }
  0xb2   : > { %19226 = vmatmul.mubr.msk.bf16.gmra.mrb[20].mxu1 %vm598_vm2, %v21908_v35  ;;  %19357 = vmatprep.subr.bf16.mxu0 %v21938_v36  ;;  %v21979_v35 = vld [vmem:[%s26800_s1 + $0x50] ss:$0 sps:$4 sm:$0x77]  }
  0xb3   : > { %19326 = vmatmul.mubr.msk.bf16.gmra.mrb[20].mxu0 %vm598_vm2, %v17526_v38  ;;  %19229 = vmatprep.mubr.msk.bf16.mxu1 %vm598_vm2, %v21910_v37  ;;  %v21980_v37 = vld [vmem:[%s26800_s1 + $0x38] ss:$0 sps:$4 sm:$0x77]   ;;  %v3307_v41 = vand.u32 %v21979_v35, %v22206_v6 }
  0xb4   : > { %19329 = vmatprep.mubr.msk.bf16.mxu0 %vm598_vm2, %v17527_v39  ;;  %v21964_v38 = vld [vmem:[%s22232_s30 + $0xb8] sm:$0xff]   ;;  %v4393_v42 = vand.u32 %v21980_v37, %v22206_v6  ;;  %v21993_v37 = vld [vmem:[%s22232_s30 + $0xc4] sm:$0xff]  }
  0xb5   : > { %v21965_v39 = vld [vmem:[%s22232_s30 + $0x98] sm:$0xff]  }
  0xba   : > { %19230 = vmatmul.mubr.msk.bf16.gmra.mrb[24].mxu1 %vm598_vm2, %v21912_v44 }
  0xbb   : > { %19330 = vmatmul.mubr.msk.bf16.gmra.mrb[24].mxu0 %vm598_vm2, %v17528_v46  ;;  %19233 = vmatprep.mubr.msk.bf16.mxu1 %vm598_vm2, %v21914_v45  ;;  %v21967_v45 = vld [vmem:[%s22232_s30 + $0xa0] sm:$0xff]  }
  0xbc   : > { %19333 = vmatprep.mubr.msk.bf16.mxu0 %vm598_vm2, %v17529_v47  ;;  %v21997_v46 = vld [vmem:[%s26800_s1 + $0x3c] sm:$0xff]   ;;  %v17667_v47 = vld [vmem:[%s26804_s5 + $0x4] sm:$0xf] }
  0xc2   : > { %19234 = vmatmul.mubr.msk.bf16.gmra.mrb[28].mxu1 %vm598_vm2, %v21916_v48 }
  0xc3   : > { %19334 = vmatmul.mubr.msk.bf16.gmra.mrb[28].mxu0 %vm598_vm2, %v21918_v49  ;;  %19241 = vmatprep.mubr.msk.bf16.mxu1 %vm598_vm2, %v21922_v50  ;;  %v21968_v49 = vld [vmem:[%s22232_s30 + $0xc8] sm:$0xff]  }
  0xc4   : > { %19341 = vmatprep.mubr.msk.bf16.mxu0 %vm598_vm2, %v21923_v51  ;;  %v21969_v50 = vld [vmem:[%s22232_s30 + $0xa8] sm:$0xff]  }
  0xca   : > { %19242 = vmatmul.mubr.msk.bf16.vlgmr.msra.gmra.mrb[16].mxu1 %vm598_vm2, %v21924_v54 }
  0xcb   : > { %19342 = vmatmul.mubr.msk.bf16.vlgmr.msra.gmra.mrb[16].mxu0 %vm598_vm2, %v17542_v57  ;;  %19245 = vmatprep.mubr.msk.bf16.mxu1 %vm598_vm2, %v21925_v56  ;;  %v21972_v57 = vld [vmem:[%s22232_s30 + $0xd8] sm:$0xff]  }
  0xcc   : > { %19345 = vmatprep.mubr.msk.bf16.mxu0 %vm598_vm2, %v17543_v58  ;;  %19258 = vmatpush3.bf16.msra.mxu1 %v21936_v34  ;;  %v21962_v34 = vld [vmem:[%s22232_s30 + $0xb0] sm:$0xff]   ;;  %v21973_v58 = vld [vmem:[%s22232_s30 + $0xb8] sm:$0xff]  }
  0xcd   : > { %19358 = vmatpush3.bf16.msra.mxu0 %v21938_v36  ;;  %19259 = vmatprep.subr.bf16.mxu1 %v2891_v59  ;;  %v21963_v36 = vld [vmem:[%s22232_s30 + $0x90] sm:$0xff]  }
  0xce   : > { %19359 = vmatprep.subr.bf16.mxu0 %v3977_v60 }
  0xd0   : > { %19260 = vmatpush3.bf16.msra.mxu1 %v2891_v59 }
  0xd1   : > { %19360 = vmatpush3.bf16.msra.mxu0 %v3977_v60  ;;  %19277 = vmatprep.subr.bf16.mxu1 %v21956_v61  ;;  %v21974_v60 = vld [vmem:[%s22232_s30 + $0xe0] sm:$0xff]  }
  0xd2   : > { %19246 = vmatmul.mubr.msk.bf16.gmra.mrb[20].mxu1 %vm598_vm2, %v21927_v62  ;;  %19377 = vmatprep.subr.bf16.mxu0 %v21958_v63  ;;  %v21977_v62 = vld [vmem:[%s22232_s30 + $0xe8] sm:$0xff]  }
  0xd3   : > { %19346 = vmatmul.mubr.msk.bf16.gmra.mrb[20].mxu0 %vm598_vm2, %v17544_v0  ;;  %19249 = vmatprep.mubr.msk.bf16.mxu1 %vm598_vm2, %v21929_v1  ;;  %v21982_v0 = vld [vmem:[%s22232_s30 + $0xbc] sm:$0xff]   ;;  %v21998_v1 = vld [vmem:[%s26800_s1 + $0x44] ss:$0 sps:$4 sm:$0x77]  }
  0xd4   : > { %19349 = vmatprep.mubr.msk.bf16.mxu0 %vm598_vm2, %v17545_v2  ;;  %v21983_v2 = vld [vmem:[%s22232_s30 + $0x9c] sm:$0xff]  }
  0xda   : > { %19250 = vmatmul.mubr.msk.bf16.gmra.mrb[24].mxu1 %vm598_vm2, %v21931_v3  ;;  %v21984_v3 = vld [vmem:[%s22232_s30 + $0xc4] sm:$0xff]  }
  0xdb   : > { %19350 = vmatmul.mubr.msk.bf16.gmra.mrb[24].mxu0 %vm598_vm2, %v17546_v4  ;;  %19253 = vmatprep.mubr.msk.bf16.mxu1 %vm598_vm2, %v21933_v5  ;;  %v21985_v4 = vld [vmem:[%s22232_s30 + $0xa4] sm:$0xff]   ;;  %v21986_v5 = vld [vmem:[%s22232_s30 + $0xcc] sm:$0xff]  }
  0xdc   : > { %19353 = vmatprep.mubr.msk.bf16.mxu0 %vm598_vm2, %v17547_v7  ;;  %v4601_v7 = vand.u32 %v21998_v1, %v22206_v6 }
  0xe2   : > { %19254 = vmatmul.mubr.msk.bf16.gmra.mrb[28].mxu1 %vm598_vm2, %v21935_v8  ;;  %v5146_v8 = vsel %vm5102_vm4, %v17667_v47, 0 }
  0xe3   : > { %19354 = vmatmul.mubr.msk.bf16.gmra.mrb[28].mxu0 %vm598_vm2, %v17548_v9  ;;  %19261 = vmatprep.mubr.msk.bf16.mxu1 %vm598_vm2, %v21941_v10  ;;  %v22823_v9 = vld [vmem:[#allocation3 + $0x28] sm:$0xff]  ;;  %v22828_v10 = vld [vmem:[%s26804_s5] sm:$0xf] }
  0xe4   : > { %19361 = vmatprep.mubr.msk.bf16.mxu0 %vm598_vm2, %v21942_v11 }
  0xea   : > { %19262 = vmatmul.mubr.msk.bf16.vlgmr.msra.gmra.mrb[16].mxu1 %vm598_vm2, %v21943_v13 }
  0xeb   : > { %19362 = vmatmul.mubr.msk.bf16.vlgmr.msra.gmra.mrb[16].mxu0 %vm598_vm2, %v21944_v15  ;;  %19265 = vmatprep.mubr.msk.bf16.mxu1 %vm598_vm2, %v21945_v16  ;;  %v5255_v15 = vshrl.u32 %v22823_v9, 16  ;;  %v5258_v16 = vshll.u32 %v22823_v9, 16 }
  0xec   : > { %19365 = vmatprep.mubr.msk.bf16.mxu0 %vm598_vm2, %v21946_v17  ;;  %19278 = vmatpush3.bf16.msra.mxu1 %v21956_v61  ;;  %v21975_v61 = vld [vmem:[%s22232_s30 + $0xc0] sm:$0xff]  }
  0xed   : > { %19378 = vmatpush3.bf16.msra.mxu0 %v21958_v63  ;;  %19279 = vmatprep.subr.bf16.mxu1 %v3099_v18  ;;  %v21981_v63 = vld [vmem:[%s22232_s30 + $0x94] sm:$0xff]  }
  0xee   : > { %19379 = vmatprep.subr.bf16.mxu0 %v4185_v19 }
  0xf0   : > { %19280 = vmatpush3.bf16.msra.mxu1 %v3099_v18  ;;  %v21988_v18 = vld [vmem:[%s22232_s30 + $0xd4] sm:$0xff]  }
  0xf1   : > { %19380 = vmatpush3.bf16.msra.mxu0 %v4185_v19  ;;  %19297 = vmatprep.subr.bf16.mxu1 %v21976_v20  ;;  %v21989_v19 = vld [vmem:[%s22232_s30 + $0xb4] sm:$0xff]  }
  0xf2   : > { %19266 = vmatmul.mubr.msk.bf16.gmra.mrb[20].mxu1 %vm598_vm2, %v21947_v21  ;;  %19397 = vmatprep.subr.bf16.mxu0 %v21978_v22  ;;  %v21990_v21 = vld [vmem:[%s22232_s30 + $0xdc] sm:$0xff]  }
  0xf3   : > { %19366 = vmatmul.mubr.msk.bf16.gmra.mrb[20].mxu0 %vm598_vm2, %v21948_v24  ;;  %19269 = vmatprep.mubr.msk.bf16.mxu1 %vm598_vm2, %v21949_v25 }
  0xf4   : > { %19369 = vmatprep.mubr.msk.bf16.mxu0 %vm598_vm2, %v21950_v26  ;;  %v5462_v26 = vrot.slane %v5255_v15, 4 }
  0xfa   : > { %19270 = vmatmul.mubr.msk.bf16.gmra.mrb[24].mxu1 %vm598_vm2, %v21951_v27  ;;  %v5463_v27 = vrot.slane %v5258_v16, 5 }
  0xfb   : > { %19370 = vmatmul.mubr.msk.bf16.gmra.mrb[24].mxu0 %vm598_vm2, %v21952_v28  ;;  %19273 = vmatprep.mubr.msk.bf16.mxu1 %vm598_vm2, %v21953_v29 }
  0xfc   : > { %19373 = vmatprep.mubr.msk.bf16.mxu0 %vm598_vm2, %v21954_v30 }
 0x102   : > { %19274 = vmatmul.mubr.msk.bf16.gmra.mrb[28].mxu1 %vm598_vm2, %v21955_v31 }
 0x103   : > { %19374 = vmatmul.mubr.msk.bf16.gmra.mrb[28].mxu0 %vm598_vm2, %v21957_v32  ;;  %19281 = vmatprep.mubr.msk.bf16.mxu1 %vm598_vm2, %v21961_v33  ;;  %v21991_v32 = vld [vmem:[%s22232_s30 + $0xbc] sm:$0xff]  }
 0x104   : > { %19381 = vmatprep.mubr.msk.bf16.mxu0 %vm598_vm2, %v21962_v34  ;;  %v22863_v34 = vor.u32 %v5463_v27, %v5462_v26 }
 0x10a   : > { %19282 = vmatmul.mubr.msk.bf16.vlgmr.msra.gmra.mrb[16].mxu1 %vm598_vm2, %v21963_v36  ;;  %v21992_v36 = vld [vmem:[%s22232_s30 + $0xe4] sm:$0xff]  }
 0x10b   : > { %19382 = vmatmul.mubr.msk.bf16.vlgmr.msra.gmra.mrb[16].mxu0 %vm598_vm2, %v21964_v38  ;;  %19285 = vmatprep.mubr.msk.bf16.mxu1 %vm598_vm2, %v21965_v39  ;;  %v21994_v39 = vld [vmem:[%s22232_s30 + $0xec] sm:$0xff]  }
 0x10c   : > { %19385 = vmatprep.mubr.msk.bf16.mxu0 %vm598_vm2, %v21966_v40  ;;  %19298 = vmatpush3.bf16.msra.mxu1 %v21976_v20 }
 0x10d   : > { %v22764_v43 = vpop.f32.mrb[0].mxu1  ;;  %19398 = vmatpush3.bf16.msra.mxu0 %v21978_v22  ;;  %19299 = vmatprep.subr.bf16.mxu1 %v3307_v41  ;;  %v5090_v22 = vld [vmem:[#allocation3 + $0x20] sm:$0xf0] }
 0x10e   : > { %v22766_v44 = vpop.f32.mrb[1].mxu1  ;;  %19399 = vmatprep.subr.bf16.mxu0 %v4393_v42  ;;  %v5455_v24 = vshrl.u32 %v5090_v22, 16  ;;  %v5458_v25 = vshll.u32 %v5090_v22, 16 }
 0x10f   : > { %v22775_v48 = vpop.f32.mrb[2].mxu1 }
 0x110   : > { %v22779_v51 = vpop.f32.mrb[3].mxu1  ;;  %19300 = vmatpush3.bf16.msra.mxu1 %v3307_v41  ;;  %v5457_v28 = vrot.slane %v5455_v24, 4  ;;  %v5460_v29 = vrot.slane %v5458_v25, 5  ;;  %v5103_v41 = vrot.slane %v5090_v22, 4 }
 0x111   : > { %19400 = vmatpush3.bf16.msra.mxu0 %v4393_v42  ;;  %21763 = vmatprep.subr.msk.bf16.mxu1 %vm5102_vm4, %v17667_v47  ;;  %v5104_v42 = vrot.slane %v22823_v9, 4  ;;  %v21999_v47 = vld [vmem:[%s22232_s30 + $0xc8] sm:$0xff]  }
 0x112   : > { %19286 = vmatmul.mubr.msk.bf16.gmra.mrb[20].mxu1 %vm598_vm2, %v21967_v45  ;;  %19417 = vmatprep.subr.bf16.mxu0 %v21997_v46  ;;  %v5461_v33 = vor.u32 %v5460_v29, %v5457_v28  ;;  %v21995_v45 = vld [vmem:[%s22232_s30 + $0xcc] sm:$0xff]  }
 0x113   : > { %19386 = vmatmul.mubr.msk.bf16.gmra.mrb[20].mxu0 %vm598_vm2, %v21968_v49  ;;  %19289 = vmatprep.mubr.msk.bf16.mxu1 %vm598_vm2, %v21969_v50  ;;  %v5105_v49 = vsel %vm5102_vm4, %v5103_v41, %v5104_v42  ;;  %v22008_v50 = vld [vmem:[%s26800_s1 + $0x50] ss:$0 sps:$4 sm:$0x77]  }
 0x114   : > { %19389 = vmatprep.mubr.msk.bf16.mxu0 %vm598_vm2, %v21970_v52  ;;  %v22874_v40 = vsel %vm5453_vm5, %v5461_v33, %v22863_v34  ;;  %v22000_v52 = vld [vmem:[%s22232_s30 + $0xd0] sm:$0xff]  }
 0x115   : > { %v22787_v53 = vpop.f32.mrb[4].mxu1 }
 0x116   : > { %v22789_v54 = vpop.f32.mrb[5].mxu1 }
 0x117   : > { %v22792_v56 = vpop.f32.mrb[6].mxu1 }
 0x118   : > { %v22796_v59 = vpop.f32.mrb[7].mxu1 }
 0x11a   : > { %19290 = vmatmul.mubr.msk.bf16.gmra.mrb[24].mxu1 %vm598_vm2, %v21971_v55  ;;  %v22001_v55 = vld [vmem:[%s22232_s30 + $0xd8] sm:$0xff]  }
 0x11b   : > { %19390 = vmatmul.mubr.msk.bf16.gmra.mrb[24].mxu0 %vm598_vm2, %v21972_v57  ;;  %19293 = vmatprep.mubr.msk.bf16.mxu1 %vm598_vm2, %v21973_v58  ;;  %v4809_v57 = vand.u32 %v22008_v50, %v22206_v6  ;;  %v22002_v58 = vld [vmem:[%s22232_s30 + $0xe0] sm:$0xff]  }
 0x11c   : > { %19393 = vmatprep.mubr.msk.bf16.mxu0 %vm598_vm2, %v21974_v60  ;;  %v22003_v60 = vld [vmem:[%s22232_s30 + $0xe8] sm:$0xff]  }
 0x122   : > { %19294 = vmatmul.mubr.msk.bf16.gmra.mrb[28].mxu1 %vm598_vm2, %v21975_v61  ;;  %v22004_v61 = vld [vmem:[%s22232_s30 + $0xf0] sm:$0xff]  }
 0x123   : > { %19394 = vmatmul.mubr.msk.bf16.gmra.mrb[28].mxu0 %vm598_vm2, %v21977_v62  ;;  %19301 = vmatprep.mubr.msk.bf16.mxu1 %vm598_vm2, %v21981_v63  ;;  %v22005_v62 = vld [vmem:[%s22232_s30 + $0xf8] sm:$0xff]   ;;  %v22910_v63 = vld [vmem:[%s26801_s2] ss:$0 sm:$0xff] }
 0x124   : > { %19401 = vmatprep.mubr.msk.bf16.mxu0 %vm598_vm2, %v21982_v0 }
 0x12a   : > { %19302 = vmatmul.mubr.msk.bf16.vlgmr.msra.gmra.mrb[16].mxu1 %vm598_vm2, %v21983_v2  ;;  %v22006_v2 = vld [vmem:[%s22232_s30 + $0x100] sm:$0xff]  }
 0x12b   : > { %19402 = vmatmul.mubr.msk.bf16.vlgmr.msra.gmra.mrb[16].mxu0 %vm598_vm2, %v21984_v3  ;;  %19305 = vmatprep.mubr.msk.bf16.mxu1 %vm598_vm2, %v21985_v4  ;;  %v22917_v3 = vld [vmem:[%s26802_s3] ss:$0 sm:$0xff] }
 0x12c   : > { %19405 = vmatprep.mubr.msk.bf16.mxu0 %vm598_vm2, %v21986_v5  ;;  %19418 = vmatpush3.bf16.msra.mxu0 %v21997_v46  ;;  %v21996_v46 = vld [vmem:[%s22232_s30 + $0xf4] sm:$0xff]  }
 0x12d   : > { %v22831_v11 = vpop.f32.mrb[8].mxu1  ;;  %19419 = vmatprep.subr.bf16.mxu0 %v4601_v7  ;;  %19458 = vmatpush3.bf16.msra.mxu1 %v5146_v8 }
 0x12e   : > { %v22836_v13 = vpop.f32.mrb[9].mxu1  ;;  %21764 = vmatprep.subr.msk.bf16.mxu1 %vm5102_vm4, %v22828_v10 }
 0x12f   : > { %v22843_v17 = vpop.f32.mrb[10].mxu1 }
 0x130   : > { %v22847_v20 = vpop.f32.mrb[11].mxu1  ;;  %19420 = vmatpush3.bf16.msra.mxu0 %v4601_v7  ;;  %v22009_v7 = vld [vmem:[%s22232_s30 + $0xd4] sm:$0xff]  }
 0x131   : > { %19437 = vmatprep.subr.bf16.mxu0 %v22007_v12 }
 0x132   : > { %19306 = vmatmul.mubr.msk.bf16.gmra.mrb[20].mxu1 %vm598_vm2, %v21987_v14 }
 0x133   : > { %19406 = vmatmul.mubr.msk.bf16.gmra.mrb[20].mxu0 %vm598_vm2, %v21988_v18  ;;  %19309 = vmatprep.mubr.msk.bf16.mxu1 %vm598_vm2, %v21989_v19 }
 0x134   : > { %19409 = vmatprep.mubr.msk.bf16.mxu0 %vm598_vm2, %v21990_v21 }
 0x135   : > { %v22858_v30 = vpop.f32.mrb[12].mxu1 }
 0x136   : > { %v22860_v31 = vpop.f32.mrb[13].mxu1 }
 0x137   : > { %v22865_v35 = vpop.f32.mrb[14].mxu1 }
 0x138   : > { %v22869_v38 = vpop.f32.mrb[15].mxu1 }
 0x13a   : > { %19310 = vmatmul.mubr.msk.bf16.gmra.mrb[24].mxu1 %vm598_vm2, %v21991_v32 }
 0x13b   : > { %19410 = vmatmul.mubr.msk.bf16.gmra.mrb[24].mxu0 %vm598_vm2, %v21992_v36  ;;  %19313 = vmatprep.mubr.msk.bf16.mxu1 %vm598_vm2, %v21993_v37  ;;  %v22010_v37 = vld [vmem:[%s22232_s30 + $0xdc] sm:$0xff]  }
 0x13c   : > { %19413 = vmatprep.mubr.msk.bf16.mxu0 %vm598_vm2, %v21994_v39 }
 0x142   : > { %19314 = vmatmul.mubr.msk.bf16.gmra.mrb[28].mxu1 %vm598_vm2, %v21995_v45 }
 0x143   : > { %19414 = vmatmul.mubr.msk.bf16.gmra.mrb[28].mxu0 %vm598_vm2, %v21996_v46  ;;  %19459 = vmatprep.mubr.msk.bf16.mxu1 %vm1950_vm3, %v5105_v49  ;;  %v22011_v46 = vld [vmem:[%s22232_s30 + $0xe4] sm:$0xff]  }
 0x144   : > { %19421 = vmatprep.mubr.msk.bf16.mxu0 %vm598_vm2, %v21999_v47 }
 0x14b   : > { %19422 = vmatmul.mubr.msk.bf16.vlgmr.msra.gmra.mrb[16].mxu0 %vm598_vm2, %v22000_v52 }
 0x14c   : > { %19425 = vmatprep.mubr.msk.bf16.mxu0 %vm598_vm2, %v22001_v55  ;;  %19438 = vmatpush3.bf16.msra.mxu0 %v22007_v12 }
 0x14d   : > { %19439 = vmatprep.subr.bf16.mxu0 %v4809_v57 }
 0x150   : > { %19440 = vmatpush3.bf16.msra.mxu0 %v4809_v57 }
 0x153   : > { %19426 = vmatmul.mubr.msk.bf16.gmra.mrb[20].mxu0 %vm598_vm2, %v22002_v58 }
 0x154   : > { %19429 = vmatprep.mubr.msk.bf16.mxu0 %vm598_vm2, %v22003_v60 }
 0x15b   : > { %19430 = vmatmul.mubr.msk.bf16.gmra.mrb[24].mxu0 %vm598_vm2, %v22004_v61 }
 0x15c   : > { %19433 = vmatprep.mubr.msk.bf16.mxu0 %vm598_vm2, %v22005_v62 }
 0x15e   : > { %v19163_v6 = vpop.f32.mrb[0].mxu0 }
 0x15f   : > { %v20659_v0 = vadd.f32 %v19163_v6, %v22764_v43  ;;  %v1840_v1 = vpop.f32.mrb[1].mxu0  ;;  %v22926_v43 = vld [vmem:[%s26803_s4] ss:$0 sm:$0xff] }
 0x160   : > { %v20660_v4 = vadd.f32 %v1840_v1, %v22766_v44  ;;  %v19164_v5 = vpop.f32.mrb[2].mxu0 }
 0x161   : > { %v1928_v8 = vadd.f32 %v20659_v0, %v22910_v63  ;;  %v20661_v12 = vadd.f32 %v19164_v5, %v22775_v48  ;;  %v1843_v14 = vpop.f32.mrb[3].mxu0 }
 0x162   : > { %v1926_v18 = vadd.f32 %v20660_v4, %v22910_v63  ;;  %v20662_v19 = vadd.f32 %v1843_v14, %v22779_v51 }
 0x163   : > { %v1968_v21 = vmul.f32 %v22917_v3, %v1928_v8  ;;  %v1929_v44 = vadd.f32 %v20661_v12, %v22910_v63  ;;  %19434 = vmatmul.mubr.msk.bf16.gmra.mrb[28].mxu0 %vm598_vm2, %v22006_v2 }
 0x164   : > { %v1966_v22 = vmul.f32 %v22917_v3, %v1926_v18  ;;  %v1927_v48 = vadd.f32 %v20662_v19, %v22910_v63  ;;  %19441 = vmatprep.mubr.msk.bf16.mxu0 %vm598_vm2, %v22009_v7  ;;  %v22012_v19 = vld [vmem:[%s22232_s30 + $0xec] sm:$0xff]  }
 0x165   : > { %v1991_v24 = vadd.f32 %v22926_v43, %v1968_v21  ;;  %v1943_v25 = vpack.c.bf16 %v1929_v44, %v1928_v8  ;;  %v1969_v26 = vmul.f32 %v22917_v3, %v1929_v44 }
 0x166   : > { %v1989_v51 = vadd.f32 %v22926_v43, %v1966_v22  ;;  %v1942_v27 = vpack.c.bf16 %v1927_v48, %v1926_v18  ;;  %v1967_v28 = vmul.f32 %v22917_v3, %v1927_v48  ;;  %v19167_v29 = vpop.f32.mrb[4].mxu0  ;;  %v22013_v48 = vld [vmem:[%s22232_s30 + $0xf4] sm:$0xff]  }
 0x167   : > { %1952 = vst.msk [vmem:[#allocation2 + $0x38] sm:$0xff] %vm1950_vm3, %v1943_v25  ;;  %v1992_v32 = vadd.f32 %v22926_v43, %v1969_v26  ;;  %v20663_v33 = vadd.f32 %v19167_v29, %v22787_v53  ;;  %v1856_v36 = vpop.f32.mrb[5].mxu0  ;;  %v2007_v47 = vmax.f32 %v1991_v24, 0.0 }
 0x168   : > { %1951 = vst.msk [vmem:[#allocation2 + $0x30] sm:$0xff] %vm1950_vm3, %v1942_v27  ;;  %v1990_v39 = vadd.f32 %v22926_v43, %v1967_v28  ;;  %v20664_v41 = vadd.f32 %v1856_v36, %v22789_v54  ;;  %v19168_v45 = vpop.f32.mrb[6].mxu0  ;;  %v2005_v57 = vmax.f32 %v1989_v51, 0.0 }
 0x169   : > { %v2008_v49 = vmax.f32 %v1992_v32, 0.0  ;;  %v1932_v50 = vadd.f32 %v20663_v33, %v22910_v63  ;;  %v20665_v52 = vadd.f32 %v19168_v45, %v22792_v56  ;;  %v1859_v55 = vpop.f32.mrb[7].mxu0 }
 0x16a   : > { %v2006_v58 = vmax.f32 %v1990_v39, 0.0  ;;  %v1930_v53 = vadd.f32 %v20664_v41, %v22910_v63  ;;  %v20666_v60 = vadd.f32 %v1859_v55, %v22796_v59 }
 0x16b   : > { %v2022_v61 = vpack.c.bf16 %v2008_v49, %v2007_v47  ;;  %v1972_v62 = vmul.f32 %v22917_v3, %v1932_v50  ;;  %v1933_v54 = vadd.f32 %v20665_v52, %v22910_v63  ;;  %19442 = vmatmul.mubr.msk.bf16.vlgmr.msra.gmra.mrb[16].mxu0 %vm598_vm2, %v22010_v37 }
 0x16c   : > { %v2021_v6 = vpack.c.bf16 %v2006_v58, %v2005_v57  ;;  %v1970_v0 = vmul.f32 %v22917_v3, %v1930_v53  ;;  %v1931_v56 = vadd.f32 %v20666_v60, %v22910_v63  ;;  %19445 = vmatprep.mubr.msk.bf16.mxu0 %vm598_vm2, %v22011_v46 }
 0x16d   : > { %2030 = vst.msk [vmem:[#allocation3 + $0x38] sm:$0xff] %vm1950_vm3, %v2022_v61  ;;  %v1995_v59 = vadd.f32 %v22926_v43, %v1972_v62  ;;  %v1945_v1 = vpack.c.bf16 %v1933_v54, %v1932_v50  ;;  %v1973_v2 = vmul.f32 %v22917_v3, %v1933_v54  ;;  %v22014_v62 = vld [vmem:[%s22232_s30 + $0xfc] sm:$0xff]   ;;  %v5351_v54 = vsel %vm5102_vm4, %v22828_v10, 0 }
 0x16e   : > { %5058 = vst.msk [vmem:[#allocation3 + $0x38] sm:$0x3c] %vm5057_vm6, %v26817_v23  ;;  %v1993_v4 = vadd.f32 %v22926_v43, %v1970_v0  ;;  %v1944_v5 = vpack.c.bf16 %v1931_v56, %v1930_v53  ;;  %v1971_v7 = vmul.f32 %v22917_v3, %v1931_v56  ;;  %v19171_v8 = vpop.f32.mrb[8].mxu0 }
 0x16f   : > { %2029 = vst.msk [vmem:[#allocation3 + $0x30] sm:$0xff] %vm1950_vm3, %v2021_v6  ;;  %1954 = vst.msk [vmem:[#allocation2 + $0x48] sm:$0xff] %vm1950_vm3, %v1945_v1  ;;  %v1996_v12 = vadd.f32 %v22926_v43, %v1973_v2  ;;  %v20667_v14 = vadd.f32 %v19171_v8, %v22831_v11  ;;  %v1872_v18 = vpop.f32.mrb[9].mxu0  ;;  %v2011_v24 = vmax.f32 %v1995_v59, 0.0  ;;  %v22015_v2 = vld [vmem:[%s22232_s30 + $0x104] sm:$0xff]  }
 0x170   : > { %5048 = vst.msk [vmem:[#allocation3 + $0x30] sm:$0x3] %vm5047_vm7, %v26817_v23  ;;  %v1994_v21 = vadd.f32 %v22926_v43, %v1971_v7  ;;  %v20668_v44 = vadd.f32 %v1872_v18, %v22836_v13  ;;  %v19172_v22 = vpop.f32.mrb[10].mxu0  ;;  %v2009_v28 = vmax.f32 %v1993_v4, 0.0  ;;  %v23024_v18 = vld [vmem:[%s26804_s5 + $0x8] sm:$0xf] }
 0x171   : > { %1953 = vst.msk [vmem:[#allocation2 + $0x40] sm:$0xff] %vm1950_vm3, %v1944_v5  ;;  %v2012_v25 = vmax.f32 %v1996_v12, 0.0  ;;  %v1936_v26 = vadd.f32 %v20667_v14, %v22910_v63  ;;  %v20669_v51 = vadd.f32 %v19172_v22, %v22843_v17  ;;  %v1875_v27 = vpop.f32.mrb[11].mxu0 }
 0x172   : > { %v2010_v29 = vmax.f32 %v1994_v21, 0.0  ;;  %v1934_v11 = vadd.f32 %v20668_v44, %v22910_v63  ;;  %v20670_v32 = vadd.f32 %v1875_v27, %v22847_v20 }
 0x173   : > { %v2024_v33 = vpack.c.bf16 %v2012_v25, %v2011_v24  ;;  %v1976_v36 = vmul.f32 %v22917_v3, %v1936_v26  ;;  %v1937_v13 = vadd.f32 %v20669_v51, %v22910_v63  ;;  %19446 = vmatmul.mubr.msk.bf16.gmra.mrb[20].mxu0 %vm598_vm2, %v22012_v19 }
 0x174   : > { %v2023_v37 = vpack.c.bf16 %v2010_v29, %v2009_v28  ;;  %v1974_v39 = vmul.f32 %v22917_v3, %v1934_v11  ;;  %v1935_v17 = vadd.f32 %v20670_v32, %v22910_v63  ;;  %19449 = vmatprep.mubr.msk.bf16.mxu0 %vm598_vm2, %v22013_v48 }
 0x175   : > { %2032 = vst.msk [vmem:[#allocation3 + $0x48] sm:$0xff] %vm1950_vm3, %v2024_v33  ;;  %v1999_v41 = vadd.f32 %v22926_v43, %v1976_v36  ;;  %v1947_v20 = vpack.c.bf16 %v1937_v13, %v1936_v26  ;;  %v1977_v45 = vmul.f32 %v22917_v3, %v1937_v13  ;;  %v22989_v46 = vld [vmem:[#allocation3 + $0x38] sm:$0xff]  ;;  %v22016_v33 = vld [vmem:[%s22232_s30 + $0x10c] sm:$0xff]  }
 0x176   : > { %5060 = vst.msk [vmem:[#allocation3 + $0x48] sm:$0x3] %vm5047_vm7, %v26817_v23  ;;  %v1997_v47 = vadd.f32 %v22926_v43, %v1974_v39  ;;  %v1946_v49 = vpack.c.bf16 %v1935_v17, %v1934_v11  ;;  %v1975_v50 = vmul.f32 %v22917_v3, %v1935_v17  ;;  %v19175_v52 = vpop.f32.mrb[12].mxu0  ;;  %v5108_v57 = vrot.slane %v22989_v46, 4 }
 0x177   : > { %2031 = vst.msk [vmem:[#allocation3 + $0x40] sm:$0xff] %vm1950_vm3, %v2023_v37  ;;  %v22996_v55 = vld [vmem:[#allocation3 + $0x30] sm:$0xff]  ;;  %1956 = vst.msk [vmem:[#allocation2 + $0x58] sm:$0xff] %vm1950_vm3, %v1947_v20  ;;  %v2000_v58 = vadd.f32 %v22926_v43, %v1977_v45  ;;  %v20671_v53 = vadd.f32 %v19175_v52, %v22858_v30  ;;  %v1888_v60 = vpop.f32.mrb[13].mxu0  ;;  %v2015_v6 = vmax.f32 %v1999_v41, 0.0 }
 0x178   : > { %5059 = vst.msk [vmem:[#allocation3 + $0x40] sm:$0xc0] %vm5049_vm8, %v26817_v23  ;;  %v5106_v61 = vrot.slane %v22996_v55, 4  ;;  %v2013_v0 = vmax.f32 %v1997_v47, 0.0  ;;  %v1998_v56 = vadd.f32 %v22926_v43, %v1975_v50  ;;  %v20672_v59 = vadd.f32 %v1888_v60, %v22860_v31  ;;  %v19176_v1 = vpop.f32.mrb[14].mxu0 }
 0x179   : > { %1955 = vst.msk [vmem:[#allocation2 + $0x50] sm:$0xff] %vm1950_vm3, %v1946_v49  ;;  %v2016_v4 = vmax.f32 %v2000_v58, 0.0  ;;  %v1940_v30 = vadd.f32 %v20671_v53, %v22910_v63  ;;  %v20673_v5 = vadd.f32 %v19176_v1, %v22865_v35  ;;  %v1891_v7 = vpop.f32.mrb[15].mxu0  ;;  %v5080_v41 = vld [vmem:[#allocation3 + $0x20] sm:$0xf8] }
 0x17a   : > { %v5107_v10 = vsel %vm5102_vm4, %v5104_v42, %v5106_v61  ;;  %v2014_v8 = vmax.f32 %v1998_v56, 0.0  ;;  %v1938_v12 = vadd.f32 %v20672_v59, %v22910_v63  ;;  %v20674_v14 = vadd.f32 %v1891_v7, %v22869_v38 }
 0x17b   : > { %19460 = vmatmul.mubr.msk.bf16.vlgmr.msra.gmra.mrb[32].mxu1 %vm1950_vm3, %v5107_v10  ;;  %v5109_v31 = vsel %vm5102_vm4, %v5106_v61, %v5108_v57  ;;  %v2026_v35 = vpack.c.bf16 %v2016_v4, %v2015_v6  ;;  %v1980_v19 = vmul.f32 %v22917_v3, %v1940_v30  ;;  %v1941_v21 = vadd.f32 %v20673_v5, %v22910_v63 }
 0x17c   : > { %19450 = vmatmul.mubr.msk.bf16.gmra.mrb[24].mxu0 %vm598_vm2, %v22014_v62  ;;  %19463 = vmatprep.mubr.msk.bf16.mxu1 %vm1950_vm3, %v5109_v31  ;;  %v2025_v42 = vpack.c.bf16 %v2014_v8, %v2013_v0  ;;  %v1978_v38 = vmul.f32 %v22917_v3, %v1938_v12  ;;  %v1939_v44 = vadd.f32 %v20674_v14, %v22910_v63  ;;  %v5247_v50 = vshrl.u32 %v5080_v41, 16 }
 0x17d   : > { %19476 = vmatpush3.bf16.msra.mxu1 %v5351_v54  ;;  %19453 = vmatprep.mubr.msk.bf16.mxu0 %vm598_vm2, %v22015_v2  ;;  %2034 = vst.msk [vmem:[#allocation3 + $0x58] sm:$0xff] %vm1950_vm3, %v2026_v35  ;;  %v2003_v22 = vadd.f32 %v22926_v43, %v1980_v19  ;;  %v1949_v48 = vpack.c.bf16 %v1941_v21, %v1940_v30  ;;  %v23036_v25 = vld [vmem:[#allocation3 + $0x48] sm:$0xff]  ;;  %v5250_v52 = vshll.u32 %v5080_v41, 16  ;;  %v5257_v0 = vrot.slane %v5255_v15, 3 }
 0x17e   : > { %v1981_v24 = vmul.f32 %v22917_v3, %v1941_v21  ;;  %21765 = vmatprep.subr.msk.bf16.mxu1 %vm5102_vm4, %v23024_v18  ;;  %5062 = vst.msk [vmem:[#allocation3 + $0x58] sm:$0xc0] %vm5049_vm8, %v26817_v23  ;;  %v2001_v26 = vadd.f32 %v22926_v43, %v1978_v38  ;;  %v1948_v51 = vpack.c.bf16 %v1939_v44, %v1938_v12  ;;  %v5112_v29 = vrot.slane %v23036_v25, 4 }
 0x17f   : > { %2033 = vst.msk [vmem:[#allocation3 + $0x50] sm:$0xff] %vm1950_vm3, %v2025_v42  ;;  %v1979_v27 = vmul.f32 %v22917_v3, %v1939_v44  ;;  %v23045_v28 = vld [vmem:[#allocation3 + $0x40] sm:$0xff]  ;;  %1958 = vst.msk [vmem:[#allocation2 + $0x68] sm:$0xff] %vm1950_vm3, %v1949_v48  ;;  %v2019_v13 = vmax.f32 %v2003_v22, 0.0  ;;  %v5249_v61 = vrot.slane %v5247_v50, 3  ;;  %v5252_v62 = vrot.slane %v5250_v52, 4 }
 0x180   : > { %5061 = vst.msk [vmem:[#allocation3 + $0x50] sm:$0x3c] %vm5057_vm6, %v26817_v23  ;;  %v2004_v11 = vadd.f32 %v22926_v43, %v1981_v24  ;;  %v5110_v32 = vrot.slane %v23045_v28, 4  ;;  %v2017_v20 = vmax.f32 %v2001_v26, 0.0  ;;  %v5260_v56 = vrot.slane %v5258_v16, 4 }
 0x181   : > { %1957 = vst.msk [vmem:[#allocation2 + $0x60] sm:$0xff] %vm1950_vm3, %v1948_v51  ;;  %v2002_v36 = vadd.f32 %v22926_v43, %v1979_v27  ;;  %v5253_v59 = vor.u32 %v5252_v62, %v5249_v61  ;;  %v23086_v30 = vshrl.u32 %v22996_v55, 16  ;;  %v23089_v5 = vshll.u32 %v22996_v55, 16  ;;  %v17750_v62 = vld [vmem:[%s26804_s5 + $0x4] sm:$0xf] }
 0x182   : > { %v2020_v37 = vmax.f32 %v2004_v11, 0.0  ;;  %v5111_v39 = vsel %vm5102_vm4, %v5108_v57, %v5110_v32  ;;  %v5113_v17 = vsel %vm5102_vm4, %v5110_v32, %v5112_v29  ;;  %v5261_v4 = vor.u32 %v5260_v56, %v5257_v0  ;;  %21772 = vmatprep.subr.msk.bf16.mxu0 %vm5102_vm4, %v17750_v62 }
 0x183   : > { %v2018_v45 = vmax.f32 %v2002_v36, 0.0  ;;  %19464 = vmatmul.mubr.msk.bf16.gmra.mrb[36].mxu1 %vm1950_vm3, %v5111_v39  ;;  %v23096_v7 = vshrl.u32 %v22989_v46, 16  ;;  %v23099_v10 = vshll.u32 %v22989_v46, 16  ;;  %v23107_v31 = vshrl.u32 %v23036_v25, 16 }
 0x184   : > { %v2028_v47 = vpack.c.bf16 %v2020_v37, %v2019_v13  ;;  %19454 = vmatmul.mubr.msk.bf16.gmra.mrb[28].mxu0 %vm598_vm2, %v22016_v33  ;;  %19467 = vmatprep.mubr.msk.bf16.mxu1 %vm1950_vm3, %v5113_v17  ;;  %v5262_v14 = vsel %vm5245_vm9, %v5253_v59, %v5261_v4  ;;  %v5266_v19 = vrot.slane %v23086_v30, 3  ;;  %v5269_v21 = vrot.slane %v23089_v5, 4 }
 0x185   : > { %v2027_v49 = vpack.c.bf16 %v2018_v45, %v2017_v20  ;;  %v23062_v58 = vld [vmem:[#allocation3 + $0x58] sm:$0xff]  ;;  %v5275_v42 = vrot.slane %v23096_v7, 3  ;;  %v5278_v38 = vrot.slane %v23099_v10, 4  ;;  %v23118_v44 = vshrl.u32 %v23045_v28, 16 }
 0x186   : > { %2036 = vst.msk [vmem:[#allocation3 + $0x68] sm:$0xff] %vm1950_vm3, %v2028_v47  ;;  %v5116_v53 = vrot.slane %v23062_v58, 4  ;;  %v23121_v22 = vshll.u32 %v23045_v28, 16  ;;  %v23124_v48 = vshrl.u32 %v23062_v58, 16  ;;  %v26821_v24 = vrot.slane %v23096_v7, 7 }
 0x187   : > { %5064 = vst.msk [vmem:[#allocation3 + $0x68] sm:$0x3c] %vm5057_vm6, %v26817_v23  ;;  %v23067_v57 = vld [vmem:[#allocation3 + $0x50] sm:$0xff]  ;;  %v23128_v26 = vshll.u32 %v23036_v25, 16  ;;  %v26820_v51 = vrot.slane %v23107_v31, 7  ;;  %v5270_v27 = vor.u32 %v5269_v21, %v5266_v19  ;;  %v5279_v11 = vor.u32 %v5278_v38, %v5275_v42 }
 0x188   : > { %2035 = vst.msk [vmem:[#allocation3 + $0x60] sm:$0xff] %vm1950_vm3, %v2027_v49  ;;  %v5114_v60 = vrot.slane %v23067_v57, 4  ;;  %v5284_v33 = vrot.slane %v23118_v44, 3  ;;  %v5287_v36 = vrot.slane %v23121_v22, 4  ;;  %v23144_v13 = vshll.u32 %v23062_v58, 16 }
 0x189   : > { %5063 = vst.msk [vmem:[#allocation3 + $0x60] sm:$0x3] %vm5047_vm7, %v26817_v23  ;;  %v23139_v32 = vor.u32 %v26820_v51, %v23128_v26  ;;  %v26819_v37 = vrot.slane %v23124_v48, 7  ;;  %v5524_v39 = vsel %vm5102_vm4, %v23024_v18, 0  ;;  %v23150_v17 = vshll.u32 %v23067_v57, 16 }
 0x18a   : > { %v5115_v54 = vsel %vm5102_vm4, %v5112_v29, %v5114_v60  ;;  %v5117_v6 = vsel %vm5102_vm4, %v5114_v60, %v5116_v53  ;;  %v23134_v29 = vor.u32 %v26821_v24, %v23099_v10  ;;  %v5271_v41 = vsel %vm5245_vm9, %v5261_v4, %v5270_v27  ;;  %v23158_v47 = vld [vmem:[%s26804_s5 + $0xc] sm:$0xf] }
 0x18b   : > { %19468 = vmatmul.mubr.msk.bf16.gmra.mrb[40].mxu1 %vm1950_vm3, %v5115_v54  ;;  %v5293_v20 = vrot.slane %v23107_v31, 3  ;;  %v5296_v45 = vrot.slane %v23128_v26, 4  ;;  %v23163_v49 = vor.u32 %v26819_v37, %v23144_v13  ;;  %v5280_v18 = vsel %vm5245_vm9, %v5270_v27, %v5279_v11 }
 0x18c   : > { %19471 = vmatprep.mubr.msk.bf16.mxu1 %vm1950_vm3, %v5117_v6  ;;  %v6010_v50 = vrot.slane %v23089_v5, 1  ;;  %v23169_v52 = vor.u32 %v5287_v36, %v5284_v33  ;;  %v6015_v60 = vrot.slane %v23099_v10, 1  ;;  %v6023_v54 = vrot.slane %v23121_v22, 1 }
 0x18d   : > { %v6031_v6 = vrot.slane %v23128_v26, 1  ;;  %v6039_v0 = vrot.slane %v23150_v17, 1  ;;  %v5297_v56 = vor.u32 %v5296_v45, %v5293_v20  ;;  %v6966_v4 = vsel %vm5102_vm4, %v17750_v62, 0 }
 0x18e   : > { %v23081_v1 = vld [vmem:[#allocation3 + $0x68] sm:$0xff]  ;;  %v6011_v61 = vor.u32 %v6010_v50, %v23086_v30  ;;  %v6019_v59 = vor.u32 %v6015_v60, %v23096_v7  ;;  %19620 = vmatpush3.bf16.msra.mxu0 %v6966_v4  ;;  %v6047_v21 = vrot.slane %v23144_v13, 1  ;;  %v5289_v42 = vsel %vm5245_vm9, %v5279_v11, %v23169_v52 }
 0x18f   : > { %v23083_v2 = vld [vmem:[#allocation3 + $0x60] sm:$0xf0]  ;;  %v26816_v9 = vrot.slane %v23081_v1, 4  ;;  %v5305_v36 = vrot.slane %v23150_v17, 4  ;;  %v23221_v11 = vsel %vm5245_vm9, %v23169_v52, %v5297_v56  ;;  %v5311_v45 = vrot.slane %v23124_v48, 3 }
 0x190   : > { %v6924_v15 = vrot.slane %v23083_v2, 4  ;;  %v23093_v16 = vld [vmem:[#allocation3 + $0x60] sm:$0xf]  ;;  %v23196_v19 = vsel %vm6004_vm10, %v6019_v59, %v6023_v54  ;;  %v23216_v20 = vor.u32 %v6047_v21, %v23124_v48  ;;  %v23240_v4 = vshll.u32 %v23081_v1, 16 }
 0x191   : > { %v5118_v8 = vrot.slane %v23093_v16, 4  ;;  %v6628_v37 = vrot.slane %v23107_v31, 4  ;;  %v6629_v51 = vrot.slane %v23128_v26, 5 }
 0x192   : > { %v6926_v12 = vsel %vm5102_vm4, %v6924_v15, %v26816_v9  ;;  %v23187_v15 = vld [vmem:[#allocation3 + $0x60] sm:$0xff]  ;;  %v5467_v9 = vrot.slane %v23089_v5, 5 }
 0x193   : > { %19621 = vmatprep.mubr.msk.bf16.mxu0 %vm1950_vm3, %v6926_v12  ;;  %v5119_v35 = vsel %vm5102_vm4, %v5116_v53, %v5118_v8  ;;  %v23172_v53 = vshrl.u32 %v23067_v57, 16  ;;  %v23190_v8 = vsel %vm6004_vm10, %v6011_v61, %v6015_v60  ;;  %v6027_v12 = vor.u32 %v6023_v54, %v23118_v44 }
 0x194   : > { %19472 = vmatmul.mubr.msk.bf16.gmra.mrb[44].mxu1 %vm1950_vm3, %v5119_v35  ;;  %v23226_v50 = vshll.u32 %v23187_v15, 16  ;;  %v5318_v60 = vshrl.u32 %v23093_v16, 16  ;;  %v5321_v61 = vshll.u32 %v23093_v16, 16  ;;  %v23235_v54 = vshrl.u32 %v23081_v1, 16 }
 0x195   : > { %19477 = vmatprep.mubr.msk.bf16.mxu1 %vm1950_vm3, %v5262_v14  ;;  %v6035_v14 = vor.u32 %v6031_v6, %v23107_v31  ;;  %v6043_v35 = vor.u32 %v6039_v0, %v23172_v53  ;;  %v5302_v38 = vrot.slane %v23172_v53, 3  ;;  %v23203_v27 = vsel %vm6004_vm10, %v6027_v12, %v6031_v6 }
 0x196   : > { %v6274_v59 = vrot.slane %v23226_v50, 4  ;;  %v7272_v12 = vshrl.u32 %v23083_v2, 16  ;;  %v7275_v16 = vshll.u32 %v23083_v2, 16  ;;  %v23257_v2 = vld [vmem:[#allocation3 + $0x58] sm:$0xff] }
 0x197   : > { %v23206_v33 = vsel %vm6004_vm10, %v6035_v14, %v6039_v0  ;;  %v23232_v62 = vor.u32 %v5305_v36, %v5302_v38  ;;  %v5320_v14 = vrot.slane %v5318_v60, 3  ;;  %v7279_v36 = vrot.slane %v23235_v54, 4 }
 0x198   : > { %v7274_v38 = vrot.slane %v7272_v12, 4  ;;  %v7280_v60 = vrot.slane %v23240_v4, 5  ;;  %v23262_v12 = vld [vmem:[#allocation3 + $0x68] sm:$0xff]  ;;  %v26823_v23 = vshrl.u32 %v23257_v2, 16 }
 0x199   : > { %26921 = vst [vmem:[#allocation6_spill] sm:$0xff] %v23232_v62 }
 0x19a   : > { %v6636_v26 = vrot.slane %v26823_v23, 4 }
 0x19c   : > { %19478 = vmatmul.mubr.msk.bf16.vlgmr.msra.gmra.mrb[32].mxu1 %vm1950_vm3, %v5271_v41  ;;  %v23213_v41 = vsel %vm6004_vm10, %v6043_v35, %v6047_v21  ;;  %v5323_v35 = vrot.slane %v5321_v61, 4 }
 0x19d   : > { %19481 = vmatprep.mubr.msk.bf16.mxu1 %vm1950_vm3, %v5280_v18  ;;  %19494 = vmatpush3.bf16.msra.mxu1 %v5524_v39  ;;  %v23210_v39 = vshrl.u32 %v23187_v15, 16  ;;  %v5314_v18 = vrot.slane %v23144_v13, 4 }
 0x19e   : > { %21766 = vmatprep.subr.msk.bf16.mxu1 %vm5102_vm4, %v23158_v47  ;;  %v5324_v61 = vor.u32 %v5323_v35, %v5320_v14  ;;  %v5470_v35 = vrot.slane %v23096_v7, 4 }
 0x19f   : > { %v6271_v6 = vrot.slane %v23210_v39, 3  ;;  %v5315_v0 = vor.u32 %v5314_v18, %v5311_v45  ;;  %v7277_v18 = vrot.slane %v7275_v16, 5  ;;  %v26824_v16 = vshll.u32 %v23257_v2, 16 }
 0x1a1   : > { %v23243_v21 = vor.u32 %v6274_v59, %v6271_v6  ;;  %v5316_v45 = vsel %vm5245_vm9, %v23232_v62, %v5315_v0  ;;  %v7278_v6 = vor.u32 %v7277_v18, %v7274_v38  ;;  %v5466_v59 = vrot.slane %v23086_v30, 4 }
 0x1a2   : > { %v5325_v14 = vsel %vm5245_vm9, %v5315_v0, %v5324_v61  ;;  %v6624_v38 = vrot.slane %v23118_v44, 4  ;;  %v6632_v0 = vrot.slane %v23172_v53, 4  ;;  %v6633_v61 = vrot.slane %v23150_v17, 5 }
 0x1a3   : > { %26922 = vst [vmem:[#allocation7_spill] sm:$0xff] %v23243_v21  ;;  %v6630_v18 = vor.u32 %v6629_v51, %v6628_v37  ;;  %v26925_v37 = vshrl.u32 %v23262_v12, 16 }
 0x1a4   : > { %19482 = vmatmul.mubr.msk.bf16.gmra.mrb[36].mxu1 %vm1950_vm3, %v5289_v42  ;;  %v23248_v42 = vsel %vm5245_vm9, %v5297_v56, %v23232_v62  ;;  %v23259_v56 = vor.u32 %v7280_v60, %v7279_v36  ;;  %v6625_v36 = vrot.slane %v23121_v22, 5  ;;  %v23290_v60 = vld [vmem:[%s26804_s5] sm:$0xf]  ;;  %v5744_v62 = vsel %vm5102_vm4, %v23158_v47, 0 }
 0x1a5   : > { %19485 = vmatprep.mubr.msk.bf16.mxu1 %vm1950_vm3, %v23221_v11  ;;  %21773 = vmatprep.subr.msk.bf16.mxu0 %vm5102_vm4, %v23290_v60  ;;  %v6644_v23 = vrot.slane %v26925_v37, 4  ;;  %v5486_v47 = vrot.slane %v23124_v48, 4 }
 0x1a6   : > { %26923 = vst [vmem:[#allocation8_spill] sm:$0xff] %v23259_v56  ;;  %v23281_v24 = vor.u32 %v6625_v36, %v6624_v38  ;;  %v5468_v38 = vor.u32 %v5467_v9, %v5466_v59  ;;  %v6634_v36 = vor.u32 %v6633_v61, %v6632_v0 }
 0x1a8   : > { %v23309_v9 = vsel %vm5453_vm5, %v6630_v18, %v6634_v36 }
 0x1ac   : > { %19486 = vmatmul.mubr.msk.bf16.gmra.mrb[40].mxu1 %vm1950_vm3, %v23248_v42 }
 0x1ad   : > { %19489 = vmatprep.mubr.msk.bf16.mxu1 %vm1950_vm3, %v5316_v45  ;;  %v23269_v45 = vsel %vm5453_vm5, %v7278_v6, %v23259_v56  ;;  %v5471_v6 = vrot.slane %v23099_v10, 5  ;;  %v6637_v10 = vrot.slane %v26824_v16, 5  ;;  %v23302_v56 = vsel %vm5453_vm5, %v23281_v24, %v6630_v18  ;;  %v5450_v18 = vld [vmem:[#allocation3 + $0x60] sm:$0x1f] }
 0x1ae   : > { %26924 = vst [vmem:[#allocation9_spill] sm:$0xff] %v23269_v45  ;;  %v26926_v45 = vshll.u32 %v23262_v12, 16 }
 0x1af   : > { %v6638_v51 = vor.u32 %v6637_v10, %v6636_v26  ;;  %v5472_v21 = vor.u32 %v5471_v6, %v5470_v35  ;;  %v5469_v10 = vsel %vm5453_vm5, %v22863_v34, %v5468_v38  ;;  %v5491_v6 = vshrl.u32 %v5450_v18, 16 }
 0x1b0   : > { %v6645_v16 = vrot.slane %v26926_v45, 5  ;;  %v17702_v45 = vld [vmem:[%s26804_s5 + $0x10] sm:$0xf] }
 0x1b1   : > { %v23312_v0 = vsel %vm5453_vm5, %v6634_v36, %v6638_v51  ;;  %v5477_v34 = vsel %vm5453_vm5, %v5472_v21, %v23281_v24 }
 0x1b2   : > { %v23314_v61 = vor.u32 %v6645_v16, %v6644_v23  ;;  %v5473_v23 = vsel %vm5453_vm5, %v5468_v38, %v5472_v21  ;;  %v5487_v16 = vrot.slane %v23144_v13, 5 }
 0x1b4   : > { %19490 = vmatmul.mubr.msk.bf16.gmra.mrb[44].mxu1 %vm1950_vm3, %v5325_v14  ;;  %v6640_v14 = vrot.slane %v23210_v39, 4  ;;  %v5488_v38 = vor.u32 %v5487_v16, %v5486_v47  ;;  %v5674_v16 = vrot.slane %v23118_v44, 7  ;;  %v5690_v44 = vrot.slane %v23172_v53, 7 }
 0x1b5   : > { %19495 = vmatprep.mubr.msk.bf16.mxu1 %vm1950_vm3, %v22874_v40  ;;  %v6641_v40 = vrot.slane %v23226_v50, 5 }
 0x1b6   : > { %v5489_v21 = vsel %vm5453_vm5, %v6634_v36, %v5488_v38  ;;  %v5677_v36 = vor.u32 %v5674_v16, %v23121_v22  ;;  %v5693_v22 = vor.u32 %v5690_v44, %v23150_v17  ;;  %v5714_v17 = vrot.slane %v23235_v54, 7 }
 0x1b7   : > { %v6642_v59 = vor.u32 %v6641_v40, %v6640_v14  ;;  %v5494_v14 = vshll.u32 %v5450_v18, 16  ;;  %v5639_v40 = vld [vmem:[#allocation3 + $0x28] sm:$0x80] }
 0x1b8   : > { %v5652_v37 = vshrl.u32 %v5639_v40, 16  ;;  %v5702_v40 = vsel %vm5650_vm11, %v5690_v44, %v23163_v49 }
 0x1b9   : > { %v23319_v26 = vsel %vm5453_vm5, %v6638_v51, %v6642_v59  ;;  %v23328_v35 = vsel %vm5453_vm5, %v6642_v59, %v23314_v61  ;;  %v5496_v51 = vrot.slane %v5494_v14, 5  ;;  %v5658_v59 = vrot.slane %v23086_v30, 7 }
 0x1ba   : > { %v5878_v30 = vsel %vm5102_vm4, %v17702_v45, 0 }
 0x1bb   : > { %v5670_v18 = vsel %vm5650_vm11, %v5658_v59, %v23134_v29  ;;  %v5686_v29 = vsel %vm5650_vm11, %v5674_v16, %v23139_v32  ;;  %v26929_v32 = vrot.slane %v23124_v48, 7 }
 0x1bc   : > { %19496 = vmatmul.mubr.msk.bf16.vlgmr.msra.gmra.mrb[32].mxu1 %vm1950_vm3, %v5469_v10  ;;  %v5654_v10 = vrot.slane %v5652_v37, 7 }
 0x1bd   : > { %19499 = vmatprep.mubr.msk.bf16.mxu1 %vm1950_vm3, %v5473_v23  ;;  %19512 = vmatpush3.bf16.msra.mxu1 %v5744_v62  ;;  %v5493_v62 = vrot.slane %v5491_v6, 4  ;;  %v5661_v23 = vor.u32 %v5658_v59, %v23089_v5  ;;  %v17711_v5 = vld [vmem:[%s26804_s5 + $0x14] sm:$0xf]  ;;  %v26927_v6 = vrot.slane %v23096_v7, 7 }
 0x1be   : > { %21767 = vmatprep.subr.msk.bf16.mxu1 %vm5102_vm4, %v17702_v45  ;;  %v26928_v45 = vrot.slane %v23107_v31, 7  ;;  %v5717_v31 = vor.u32 %v23240_v4, %v5714_v17  ;;  %v6098_v49 = vsel %vm5102_vm4, %v17711_v5, 0 }
 0x1bf   : > { %v5497_v13 = vor.u32 %v5496_v51, %v5493_v62  ;;  %v5662_v47 = vsel %vm5650_vm11, %v5654_v10, %v5661_v23  ;;  %v5678_v14 = vsel %vm5650_vm11, %v26927_v6, %v5677_v36 }
 0x1c0   : > { %v5694_v7 = vsel %vm5650_vm11, %v26928_v45, %v5693_v22 }
 0x1c4   : > { %19500 = vmatmul.mubr.msk.bf16.gmra.mrb[36].mxu1 %vm1950_vm3, %v5477_v34  ;;  %v5498_v34 = vsel %vm5453_vm5, %v5488_v38, %v5497_v13  ;;  %v5706_v38 = vrot.slane %v23210_v39, 7 }
 0x1c5   : > { %19503 = vmatprep.mubr.msk.bf16.mxu1 %vm1950_vm3, %v23302_v56 }
 0x1c6   : > { %v5709_v53 = vor.u32 %v23226_v50, %v5706_v38  ;;  %v5718_v51 = vsel %vm5650_vm11, %v5706_v38, %v5717_v31 }
 0x1c8   : > { %v5710_v62 = vsel %vm5650_vm11, %v26929_v32, %v5709_v53 }
 0x1cc   : > { %19504 = vmatmul.mubr.msk.bf16.gmra.mrb[40].mxu1 %vm1950_vm3, %v23309_v9 }
 0x1cd   : > { %19507 = vmatprep.mubr.msk.bf16.mxu1 %vm1950_vm3, %v5489_v21  ;;  %v23393_v21 = vld [vmem:[%s26804_s5 + $0x18] sm:$0xf] }
 0x1d4   : > { %19508 = vmatmul.mubr.msk.bf16.gmra.mrb[44].mxu1 %vm1950_vm3, %v5498_v34 }
 0x1d5   : > { %19513 = vmatprep.mubr.msk.bf16.mxu1 %vm1950_vm3, %v5662_v47 }
 0x1dc   : > { %19514 = vmatmul.mubr.msk.bf16.vlgmr.msra.gmra.mrb[32].mxu1 %vm1950_vm3, %v5670_v18 }
 0x1dd   : > { %19517 = vmatprep.mubr.msk.bf16.mxu1 %vm1950_vm3, %v5678_v14  ;;  %19530 = vmatpush3.bf16.msra.mxu1 %v5878_v30 }
 0x1de   : > { %21768 = vmatprep.subr.msk.bf16.mxu1 %vm5102_vm4, %v17711_v5 }
 0x1e4   : > { %19518 = vmatmul.mubr.msk.bf16.gmra.mrb[36].mxu1 %vm1950_vm3, %v5686_v29 }
 0x1e5   : > { %19521 = vmatprep.mubr.msk.bf16.mxu1 %vm1950_vm3, %v5694_v7 }
 0x1ec   : > { %19522 = vmatmul.mubr.msk.bf16.gmra.mrb[40].mxu1 %vm1950_vm3, %v5702_v40 }
 0x1ed   : > { %19525 = vmatprep.mubr.msk.bf16.mxu1 %vm1950_vm3, %v5710_v62 }
 0x1f4   : > { %19526 = vmatmul.mubr.msk.bf16.gmra.mrb[44].mxu1 %vm1950_vm3, %v5718_v51 }
 0x1f5   : > { %19531 = vmatprep.mubr.msk.bf16.mxu1 %vm1950_vm3, %v22996_v55 }
 0x1fc   : > { %19532 = vmatmul.mubr.msk.bf16.vlgmr.msra.gmra.mrb[32].mxu1 %vm1950_vm3, %v22989_v46 }
 0x1fd   : > { %19535 = vmatprep.mubr.msk.bf16.mxu1 %vm1950_vm3, %v23045_v28  ;;  %19548 = vmatpush3.bf16.msra.mxu1 %v6098_v49  ;;  %v19303_v48 = vpop.f32.mrb[16].mxu1 }
 0x1fe   : > { %21769 = vmatprep.subr.msk.bf16.mxu1 %vm5102_vm4, %v23393_v21  ;;  %v3431_v55 = vadd.f32 %v19303_v48, %v22910_v63  ;;  %v3343_v37 = vpop.f32.mrb[17].mxu1 }
 0x1ff   : > { %v3429_v59 = vadd.f32 %v22910_v63, %v3343_v37  ;;  %v19304_v13 = vpop.f32.mrb[18].mxu1 }
 0x200   : > { %v3470_v10 = vmul.f32 %v22917_v3, %v3431_v55  ;;  %v3432_v23 = vadd.f32 %v19304_v13, %v22910_v63  ;;  %v3346_v34 = vpop.f32.mrb[19].mxu1 }
 0x201   : > { %v3468_v46 = vmul.f32 %v22917_v3, %v3429_v59  ;;  %v3430_v28 = vadd.f32 %v22910_v63, %v3346_v34 }
 0x202   : > { %v3493_v47 = vadd.f32 %v22926_v43, %v3470_v10  ;;  %v3446_v16 = vpack.c.bf16 %v3432_v23, %v3431_v55  ;;  %v3471_v36 = vmul.f32 %v22917_v3, %v3432_v23 }
 0x203   : > { %v3491_v30 = vadd.f32 %v22926_v43, %v3468_v46  ;;  %v3445_v18 = vpack.c.bf16 %v3430_v28, %v3429_v59  ;;  %v3469_v5 = vmul.f32 %v22917_v3, %v3430_v28  ;;  %v26930_v59 = vmov 0  }
 0x204   : > { %19536 = vmatmul.mubr.msk.bf16.gmra.mrb[36].mxu1 %vm1950_vm3, %v23036_v25  ;;  %3454 = vst.msk [vmem:[#allocation2 + $0x78] sm:$0xff] %vm1950_vm3, %v3446_v16  ;;  %v3494_v6 = vadd.f32 %v22926_v43, %v3471_v36  ;;  %v3509_v22 = vmax.f32 %v3493_v47, 0.0 }
 0x205   : > { %19539 = vmatprep.mubr.msk.bf16.mxu1 %vm1950_vm3, %v23067_v57  ;;  %3453 = vst.msk [vmem:[#allocation2 + $0x70] sm:$0xff] %vm1950_vm3, %v3445_v18  ;;  %v3492_v14 = vadd.f32 %v22926_v43, %v3469_v5  ;;  %v19307_v44 = vpop.f32.mrb[20].mxu1  ;;  %v3507_v7 = vmax.f32 %v3491_v30, 0.0 }
 0x206   : > { %v3510_v29 = vmax.f32 %v3494_v6, 0.0  ;;  %v3435_v25 = vadd.f32 %v19307_v44, %v22910_v63  ;;  %v3359_v45 = vpop.f32.mrb[21].mxu1  ;;  %10523 = vst.msk [vmem:[#allocation4 + $0x20] sm:$0xff] %vm6894_vm12, %v26930_v59  ;;  %10524 = vst.msk [vmem:[#allocation4 + $0x28] sm:$0xff] %vm6894_vm12, %v26930_v59 }
 0x207   : > { %v3508_v38 = vmax.f32 %v3492_v14, 0.0  ;;  %v3433_v53 = vadd.f32 %v22910_v63, %v3359_v45  ;;  %v19308_v40 = vpop.f32.mrb[22].mxu1  ;;  %10529 = vst.msk [vmem:[#allocation4 + $0xf0] sm:$0xff] %vm6894_vm12, %v26930_v59  ;;  %10530 = vst.msk [vmem:[#allocation4 + $0xf8] sm:$0xff] %vm6894_vm12, %v26930_v59 }
 0x208   : > { %v3524_v57 = vpack.c.bf16 %v3510_v29, %v3509_v22  ;;  %v3474_v17 = vmul.f32 %v22917_v3, %v3435_v25  ;;  %v3436_v32 = vadd.f32 %v19308_v40, %v22910_v63  ;;  %v3362_v62 = vpop.f32.mrb[23].mxu1 }
 0x209   : > { %v3523_v31 = vpack.c.bf16 %v3508_v38, %v3507_v7  ;;  %v3472_v51 = vmul.f32 %v22917_v3, %v3433_v53  ;;  %v3434_v49 = vadd.f32 %v22910_v63, %v3362_v62 }
 0x20a   : > { %3532 = vst.msk [vmem:[#allocation3 + $0x78] sm:$0xff] %vm1950_vm3, %v3524_v57  ;;  %v3497_v48 = vadd.f32 %v22926_v43, %v3474_v17  ;;  %v3448_v55 = vpack.c.bf16 %v3436_v32, %v3435_v25  ;;  %v3475_v37 = vmul.f32 %v22917_v3, %v3436_v32 }
 0x20b   : > { %5066 = vst.msk [vmem:[#allocation3 + $0x78] sm:$0x3] %vm5047_vm7, %v26930_v59  ;;  %v3495_v13 = vadd.f32 %v22926_v43, %v3472_v51  ;;  %v3447_v10 = vpack.c.bf16 %v3434_v49, %v3433_v53  ;;  %v3473_v23 = vmul.f32 %v22917_v3, %v3434_v49 }
 0x20c   : > { %19540 = vmatmul.mubr.msk.bf16.gmra.mrb[40].mxu1 %vm1950_vm3, %v23062_v58  ;;  %3531 = vst.msk [vmem:[#allocation3 + $0x70] sm:$0xff] %vm1950_vm3, %v3523_v31  ;;  %3456 = vst.msk [vmem:[#allocation2 + $0x88] sm:$0xff] %vm1950_vm3, %v3448_v55  ;;  %v3498_v58 = vadd.f32 %v22926_v43, %v3475_v37  ;;  %v3513_v28 = vmax.f32 %v3497_v48, 0.0  ;;  %v7170_v48 = vsel %vm5102_vm4, %v23290_v60, 0  ;;  %v22044_v37 = vld [vmem:[%s26801_s2] ss:$0 sm:$0xff] }
 0x20d   : > { %19543 = vmatprep.mubr.msk.bf16.mxu1 %vm1950_vm3, %v23187_v15  ;;  %5065 = vst.msk [vmem:[#allocation3 + $0x70] sm:$0xc0] %vm5049_vm8, %v26930_v59  ;;  %v3496_v34 = vadd.f32 %v22926_v43, %v3473_v23  ;;  %v19311_v46 = vpop.f32.mrb[24].mxu1  ;;  %v3511_v30 = vmax.f32 %v3495_v13, 0.0  ;;  %v26931_v23 = vrot.slane %v23081_v1, 4 }
 0x20e   : > { %3455 = vst.msk [vmem:[#allocation2 + $0x80] sm:$0xff] %vm1950_vm3, %v3447_v10  ;;  %v3514_v47 = vmax.f32 %v3498_v58, 0.0  ;;  %v3439_v16 = vadd.f32 %v19311_v46, %v22910_v63  ;;  %v3375_v36 = vpop.f32.mrb[25].mxu1 }
 0x20f   : > { %v3512_v18 = vmax.f32 %v3496_v34, 0.0  ;;  %v3437_v15 = vadd.f32 %v22910_v63, %v3375_v36  ;;  %v19312_v5 = vpop.f32.mrb[26].mxu1 }
 0x210   : > { %v3526_v6 = vpack.c.bf16 %v3514_v47, %v3513_v28  ;;  %v3478_v14 = vmul.f32 %v22917_v3, %v3439_v16  ;;  %v3440_v44 = vadd.f32 %v19312_v5, %v22910_v63  ;;  %v3378_v22 = vpop.f32.mrb[27].mxu1 }
 0x211   : > { %v3525_v29 = vpack.c.bf16 %v3512_v18, %v3511_v30  ;;  %v3476_v25 = vmul.f32 %v22917_v3, %v3437_v15  ;;  %v3438_v45 = vadd.f32 %v22910_v63, %v3378_v22  ;;  %v22046_v22 = vld [vmem:[%s26803_s4] ss:$0 sm:$0xff] }
 0x212   : > { %3534 = vst.msk [vmem:[#allocation3 + $0x88] sm:$0xff] %vm1950_vm3, %v3526_v6  ;;  %v3501_v7 = vadd.f32 %v22926_v43, %v3478_v14  ;;  %v3450_v38 = vpack.c.bf16 %v3440_v44, %v3439_v16  ;;  %v3479_v53 = vmul.f32 %v22917_v3, %v3440_v44  ;;  %v23454_v40 = vld [vmem:[#allocation3 + $0x78] sm:$0xff] }
 0x213   : > { %5068 = vst.msk [vmem:[#allocation3 + $0x88] sm:$0xc0] %vm5049_vm8, %v26930_v59  ;;  %v3499_v57 = vadd.f32 %v22926_v43, %v3476_v25  ;;  %v3449_v63 = vpack.c.bf16 %v3438_v45, %v3437_v15  ;;  %v3477_v17 = vmul.f32 %v22917_v3, %v3438_v45  ;;  %v6929_v62 = vrot.slane %v23454_v40, 4  ;;  %v23501_v44 = vld [vmem:[%s26804_s5 + $0x1c] sm:$0xf] }
 0x214   : > { %19544 = vmatmul.mubr.msk.bf16.gmra.mrb[44].mxu1 %vm1950_vm3, %v23081_v1  ;;  %3533 = vst.msk [vmem:[#allocation3 + $0x80] sm:$0xff] %vm1950_vm3, %v3525_v29  ;;  %v23463_v32 = vld [vmem:[#allocation3 + $0x70] sm:$0xff]  ;;  %3458 = vst.msk [vmem:[#allocation2 + $0x98] sm:$0xff] %vm1950_vm3, %v3450_v38  ;;  %v3502_v31 = vadd.f32 %v22926_v43, %v3479_v53  ;;  %v3517_v49 = vmax.f32 %v3501_v7, 0.0  ;;  %v22045_v1 = vld [vmem:[%s26802_s3] ss:$0 sm:$0xff] }
 0x215   : > { %19549 = vmatprep.mubr.msk.bf16.mxu1 %vm1950_vm3, %v23190_v8  ;;  %5067 = vst.msk [vmem:[#allocation3 + $0x80] sm:$0x3c] %vm5057_vm6, %v26930_v59  ;;  %v23471_v51 = vrot.slane %v23463_v32, 4  ;;  %v3500_v3 = vadd.f32 %v22926_v43, %v3477_v17  ;;  %v19315_v8 = vpop.f32.mrb[28].mxu1  ;;  %v23489_v43 = vld [vmem:[%s26804_s5 + $0x8] sm:$0xf] }
 0x216   : > { %3457 = vst.msk [vmem:[#allocation2 + $0x90] sm:$0xff] %vm1950_vm3, %v3449_v63  ;;  %v3518_v55 = vmax.f32 %v3502_v31, 0.0  ;;  %v3443_v13 = vadd.f32 %v22044_v37, %v19315_v8  ;;  %v3391_v10 = vpop.f32.mrb[29].mxu1  ;;  %v3515_v60 = vmax.f32 %v3499_v57, 0.0  ;;  %v6329_v15 = vsel %vm5102_vm4, %v23393_v21, 0 }
 0x217   : > { %v6928_v58 = vsel %vm5102_vm4, %v26931_v23, %v23471_v51  ;;  %v6930_v34 = vsel %vm5102_vm4, %v23471_v51, %v6929_v62  ;;  %v3516_v46 = vmax.f32 %v3500_v3, 0.0  ;;  %v3441_v28 = vadd.f32 %v22044_v37, %v3391_v10  ;;  %v19316_v47 = vpop.f32.mrb[30].mxu1 }
 0x218   : > { %19622 = vmatmul.mubr.msk.bf16.vlgmr.msra.gmra.mrb[32].mxu0 %vm1950_vm3, %v6928_v58  ;;  %v3528_v16 = vpack.c.bf16 %v3518_v55, %v3517_v49  ;;  %v3482_v36 = vmul.f32 %v22045_v1, %v3443_v13  ;;  %v3444_v30 = vadd.f32 %v22044_v37, %v19316_v47  ;;  %v3394_v18 = vpop.f32.mrb[31].mxu1  ;;  %v6055_v23 = vrot.slane %v23226_v50, 1 }
 0x219   : > { %19625 = vmatprep.mubr.msk.bf16.mxu0 %vm1950_vm3, %v6930_v34  ;;  %19638 = vmatpush3.bf16.msra.mxu0 %v7170_v48  ;;  %v3527_v5 = vpack.c.bf16 %v3516_v46, %v3515_v60  ;;  %v3480_v6 = vmul.f32 %v22045_v1, %v3441_v28  ;;  %v3442_v14 = vadd.f32 %v22044_v37, %v3394_v18 }
 0x21a   : > { %21774 = vmatprep.subr.msk.bf16.mxu0 %vm5102_vm4, %v23489_v43  ;;  %3536 = vst.msk [vmem:[#allocation3 + $0x98] sm:$0xff] %vm1950_vm3, %v3528_v16  ;;  %v3505_v29 = vadd.f32 %v22046_v22, %v3482_v36  ;;  %v3452_v21 = vpack.c.bf16 %v3444_v30, %v3443_v13  ;;  %v3483_v25 = vmul.f32 %v22045_v1, %v3444_v30  ;;  %v23511_v45 = vld [vmem:[#allocation3 + $0x88] sm:$0xff]  ;;  %v6903_v13 = vld [vmem:[#allocation3 + $0x60] sm:$0xf8]  ;;  %v6001_v36 = vld [vmem:[#allocation3 + $0x70] sm:$0x1] }
 0x21b   : > { %5070 = vst.msk [vmem:[#allocation3 + $0x98] sm:$0x3c] %vm5057_vm6, %v26930_v59  ;;  %v3503_v7 = vadd.f32 %v22046_v22, %v3480_v6  ;;  %v3451_v38 = vpack.c.bf16 %v3442_v14, %v3441_v28  ;;  %v3481_v53 = vmul.f32 %v22045_v1, %v3442_v14  ;;  %v6933_v63 = vrot.slane %v23511_v45, 4  ;;  %v6213_v28 = vld [vmem:[#allocation3 + $0x38] sm:$0xf8] }
 0x21c   : > { %19550 = vmatmul.mubr.msk.bf16.vlgmr.msra.gmra.mrb[32].mxu1 %vm1950_vm3, %v23196_v19  ;;  %3535 = vst.msk [vmem:[#allocation3 + $0x90] sm:$0xff] %vm1950_vm3, %v3527_v5  ;;  %v23518_v57 = vld [vmem:[#allocation3 + $0x80] sm:$0xff]  ;;  %3460 = vst.msk [vmem:[#allocation2 + $0xa8] sm:$0xff] %vm1950_vm3, %v3452_v21  ;;  %v3506_v19 = vadd.f32 %v22046_v22, %v3483_v25  ;;  %v7066_v50 = vshrl.u32 %v6903_v13, 16  ;;  %v7069_v60 = vshll.u32 %v6903_v13, 16  ;;  %v6059_v46 = vor.u32 %v6055_v23, %v23210_v39 }
 0x21d   : > { %19553 = vmatprep.mubr.msk.bf16.mxu1 %vm1950_vm3, %v23203_v27  ;;  %19566 = vmatpush3.bf16.msra.mxu1 %v6329_v15  ;;  %5069 = vst.msk [vmem:[#allocation3 + $0x90] sm:$0x3] %vm5047_vm7, %v26930_v59  ;;  %v6931_v17 = vrot.slane %v23518_v57, 4  ;;  %v3504_v31 = vadd.f32 %v22046_v22, %v3481_v53  ;;  %v3521_v27 = vmax.f32 %v3505_v29, 0.0  ;;  %v3519_v48 = vmax.f32 %v3503_v7, 0.0 }
 0x21e   : > { %21770 = vmatprep.subr.msk.bf16.mxu1 %vm5102_vm4, %v23501_v44  ;;  %3459 = vst.msk [vmem:[#allocation2 + $0xa0] sm:$0xff] %vm1950_vm3, %v3451_v38  ;;  %v3522_v49 = vmax.f32 %v3506_v19, 0.0  ;;  %v7079_v1 = vrot.slane %v23240_v4, 4  ;;  %v7068_v30 = vrot.slane %v7066_v50, 3  ;;  %v7071_v18 = vrot.slane %v7069_v60, 4 }
 0x21f   : > { %v6932_v3 = vsel %vm5102_vm4, %v6929_v62, %v6931_v17  ;;  %v6934_v8 = vsel %vm5102_vm4, %v6931_v17, %v6933_v63  ;;  %v3520_v55 = vmax.f32 %v3504_v31, 0.0  ;;  %v6063_v15 = vrot.slane %v23240_v4, 1 }
 0x220   : > { %19626 = vmatmul.mubr.msk.bf16.gmra.mrb[36].mxu0 %vm1950_vm3, %v6932_v3  ;;  %v3530_v37 = vpack.c.bf16 %v3522_v49, %v3521_v27  ;;  %v6225_v5 = vshrl.u32 %v6213_v28, 16  ;;  %v6228_v39 = vshll.u32 %v6213_v28, 16  ;;  %v6056_v6 = vsel %vm6004_vm10, %v23216_v20, %v6055_v23 }
 0x221   : > { %19629 = vmatprep.mubr.msk.bf16.mxu0 %vm1950_vm3, %v6934_v8  ;;  %v3529_v10 = vpack.c.bf16 %v3520_v55, %v3519_v48  ;;  %v6069_v14 = vshll.u32 %v6001_v36, 16  ;;  %v6064_v22 = vsel %vm6004_vm10, %v6059_v46, %v6063_v15  ;;  %v23564_v25 = vshrl.u32 %v23463_v32, 16 }
 0x222   : > { %3538 = vst.msk [vmem:[#allocation3 + $0xa8] sm:$0xff] %vm1950_vm3, %v3530_v37  ;;  %v23536_v58 = vld [vmem:[#allocation3 + $0x98] sm:$0xff]  ;;  %v23567_v7 = vshll.u32 %v23463_v32, 16  ;;  %v7072_v38 = vor.u32 %v7071_v18, %v7068_v30  ;;  %v23572_v20 = vshrl.u32 %v23454_v40, 16  ;;  %v23575_v53 = vshll.u32 %v23454_v40, 16 }
 0x223   : > { %5072 = vst.msk [vmem:[#allocation3 + $0xa8] sm:$0x3] %vm5047_vm7, %v26930_v59  ;;  %v6937_v34 = vrot.slane %v23536_v58, 4  ;;  %v6230_v19 = vrot.slane %v6228_v39, 4  ;;  %v6071_v31 = vrot.slane %v6069_v14, 1  ;;  %v7085_v27 = vrot.slane %v23564_v25, 3 }
 0x224   : > { %19554 = vmatmul.mubr.msk.bf16.gmra.mrb[36].mxu1 %vm1950_vm3, %v23206_v33  ;;  %3537 = vst.msk [vmem:[#allocation3 + $0xa0] sm:$0xff] %vm1950_vm3, %v3529_v10  ;;  %v23543_v62 = vld [vmem:[#allocation3 + $0x90] sm:$0xff]  ;;  %v7088_v49 = vrot.slane %v23567_v7, 4  ;;  %v6067_v8 = vor.u32 %v6063_v15, %v23235_v54  ;;  %v7094_v48 = vrot.slane %v23572_v20, 3  ;;  %v7097_v40 = vrot.slane %v23575_v53, 4 }
 0x225   : > { %19557 = vmatprep.mubr.msk.bf16.mxu1 %vm1950_vm3, %v23213_v41  ;;  %5071 = vst.msk [vmem:[#allocation3 + $0xa0] sm:$0xc0] %vm5049_vm8, %v26930_v59  ;;  %v6935_v33 = vrot.slane %v23543_v62, 4  ;;  %v7076_v41 = vrot.slane %v23235_v54, 3  ;;  %v23587_v37 = vshrl.u32 %v23511_v45, 16  ;;  %v23591_v10 = vshrl.u32 %v23536_v58, 16 }
 0x226   : > { %v6072_v13 = vsel %vm6004_vm10, %v6067_v8, %v6071_v31  ;;  %v26829_v23 = vrot.slane %v23572_v20, 7  ;;  %v23600_v50 = vshrl.u32 %v23518_v57, 16  ;;  %v23603_v60 = vshll.u32 %v23518_v57, 16  ;;  %v23682_v8 = vld [vmem:[#allocation3 + $0x38] sm:$0xf0] }
 0x227   : > { %v6936_v47 = vsel %vm5102_vm4, %v6933_v63, %v6935_v33  ;;  %v6938_v16 = vsel %vm5102_vm4, %v6935_v33, %v6937_v34  ;;  %v7080_v21 = vor.u32 %v7079_v1, %v7076_v41  ;;  %v6227_v63 = vrot.slane %v6225_v5, 3 }
 0x228   : > { %19630 = vmatmul.mubr.msk.bf16.gmra.mrb[40].mxu0 %vm1950_vm3, %v6936_v47  ;;  %v7098_v33 = vor.u32 %v7097_v40, %v7094_v48  ;;  %v23607_v46 = vshll.u32 %v23511_v45, 16  ;;  %v23612_v28 = vor.u32 %v26829_v23, %v23575_v53  ;;  %v26933_v41 = vshll.u32 %v23257_v2, 16  ;;  %v23687_v40 = vld [vmem:[%s26802_s3] ss:$0 sm:$0xff] }
 0x229   : > { %19633 = vmatprep.mubr.msk.bf16.mxu0 %vm1950_vm3, %v6938_v16  ;;  %v7081_v3 = vsel %vm5245_vm9, %v7072_v38, %v7080_v21  ;;  %v6231_v55 = vor.u32 %v6230_v19, %v6227_v63  ;;  %v26828_v16 = vrot.slane %v23587_v37, 7  ;;  %v23620_v36 = vshll.u32 %v23536_v58, 16  ;;  %v23661_v38 = vld [vmem:[%s26804_s5 + $0x20] sm:$0xf] }
 0x22a   : > { %v6265_v1 = vrot.slane %v26933_v41, 4  ;;  %v7341_v45 = vsel %vm5102_vm4, %v23489_v43, 0  ;;  %v26827_v30 = vrot.slane %v23591_v10, 7  ;;  %v7103_v15 = vrot.slane %v23600_v50, 3 }
 0x22b   : > { %v23561_v29 = vld [vmem:[#allocation3 + $0xa0] sm:$0xf]  ;;  %v6240_v54 = vsel %vm5245_vm9, %v6231_v55, %v23169_v52  ;;  %v26932_v52 = vshrl.u32 %v23257_v2, 16  ;;  %v7106_v5 = vrot.slane %v23603_v60, 4  ;;  %v23632_v2 = vld [vmem:[%s26804_s5 + $0xc] sm:$0xf]  ;;  %v23637_v58 = vor.u32 %v26828_v16, %v23607_v46 }
 0x22c   : > { %19558 = vmatmul.mubr.msk.bf16.gmra.mrb[40].mxu1 %vm1950_vm3, %v6056_v6  ;;  %v6939_v4 = vrot.slane %v23561_v29, 4  ;;  %v7112_v39 = vrot.slane %v23587_v37, 3  ;;  %v7115_v6 = vrot.slane %v23607_v46, 4  ;;  %v23647_v14 = vor.u32 %v26827_v30, %v23620_v36 }
 0x22d   : > { %19561 = vmatprep.mubr.msk.bf16.mxu1 %vm1950_vm3, %v6064_v22  ;;  %v6262_v47 = vrot.slane %v26932_v52, 3  ;;  %v6498_v22 = vsel %vm5102_vm4, %v23501_v44, 0  ;;  %v7107_v63 = vor.u32 %v7106_v5, %v7103_v15  ;;  %v26934_v31 = vshrl.u32 %v23262_v12, 16  ;;  %v26937_v15 = vld [vmem:[#allocation7_spill] sm:$0xff] }
 0x22e   : > { %v6940_v17 = vsel %vm5102_vm4, %v6937_v34, %v6939_v4  ;;  %v23597_v34 = vor.u32 %v7088_v49, %v7085_v27  ;;  %v23656_v4 = vshll.u32 %v23543_v62, 16  ;;  %v7116_v19 = vor.u32 %v7115_v6, %v7112_v39 }
 0x22f   : > { %v6266_v44 = vor.u32 %v6265_v1, %v6262_v47  ;;  %v6280_v27 = vrot.slane %v26934_v31, 3  ;;  %v26935_v49 = vshll.u32 %v23262_v12, 16  ;;  %v7108_v55 = vsel %vm5245_vm9, %v7098_v33, %v7107_v63 }
 0x230   : > { %19634 = vmatmul.mubr.msk.bf16.gmra.mrb[44].mxu0 %vm1950_vm3, %v6940_v17  ;;  %v7090_v18 = vsel %vm5245_vm9, %v7080_v21, %v23597_v34  ;;  %v7099_v43 = vsel %vm5245_vm9, %v23597_v34, %v7098_v33  ;;  %v23653_v21 = vshrl.u32 %v23543_v62, 16  ;;  %v23672_v17 = vld [vmem:[%s26801_s2] ss:$0 sm:$0xff]  ;;  %v7117_v47 = vsel %vm5245_vm9, %v7107_v63, %v7116_v19 }
 0x231   : > { %19639 = vmatprep.mubr.msk.bf16.mxu0 %vm1950_vm3, %v7081_v3  ;;  %v6283_v3 = vrot.slane %v26935_v49, 4  ;;  %v7130_v41 = vrot.slane %v23591_v10, 3  ;;  %v7133_v1 = vrot.slane %v23620_v36, 4  ;;  %v6276_v5 = vsel %vm5245_vm9, %v6266_v44, %v26937_v15  ;;  %v23709_v49 = vld [vmem:[#allocation3 + $0x78] sm:$0xf] }
 0x234   : > { %19562 = vmatmul.mubr.msk.bf16.gmra.mrb[44].mxu1 %vm1950_vm3, %v6072_v13  ;;  %v26936_v13 = vld [vmem:[#allocation6_spill] sm:$0xff] }
 0x235   : > { %19567 = vmatprep.mubr.msk.bf16.mxu1 %vm1950_vm3, %v6240_v54  ;;  %v6267_v12 = vsel %vm5245_vm9, %v26936_v13, %v6266_v44  ;;  %v7137_v44 = vshrl.u32 %v23561_v29, 16 }
 0x238   : > { %19640 = vmatmul.mubr.msk.bf16.vlgmr.msra.gmra.mrb[32].mxu0 %vm1950_vm3, %v7090_v18 }
 0x239   : > { %19643 = vmatprep.mubr.msk.bf16.mxu0 %vm1950_vm3, %v7099_v43  ;;  %19656 = vmatpush3.bf16.msra.mxu0 %v7341_v45  ;;  %v23700_v45 = vld [vmem:[%s26803_s4] ss:$0 sm:$0xff]  ;;  %v6284_v43 = vor.u32 %v6283_v3, %v6280_v27  ;;  %v7140_v27 = vshll.u32 %v23561_v29, 16 }
 0x23a   : > { %21775 = vmatprep.subr.msk.bf16.mxu0 %vm5102_vm4, %v23632_v2 }
 0x23b   : > { %v6285_v29 = vsel %vm5245_vm9, %v26937_v15, %v6284_v43 }
 0x23c   : > { %19568 = vmatmul.mubr.msk.bf16.vlgmr.msra.gmra.mrb[32].mxu1 %vm1950_vm3, %v23221_v11  ;;  %v7121_v11 = vrot.slane %v23653_v21, 3 }
 0x23d   : > { %19571 = vmatprep.mubr.msk.bf16.mxu1 %vm1950_vm3, %v23248_v42  ;;  %19584 = vmatpush3.bf16.msra.mxu1 %v6498_v22  ;;  %v7124_v42 = vrot.slane %v23656_v4, 4 }
 0x23e   : > { %21771 = vmatprep.subr.msk.bf16.mxu1 %vm5102_vm4, %v23661_v38  ;;  %v19443_v48 = vpop.f32.mrb[16].mxu0 }
 0x23f   : > { %v4933_v54 = vadd.f32 %v19443_v48, %v23672_v17  ;;  %v4845_v52 = vpop.f32.mrb[17].mxu0  ;;  %v7125_v31 = vor.u32 %v7124_v42, %v7121_v11  ;;  %v23711_v48 = vld [vmem:[#allocation3 + $0x40] sm:$0xff]  ;;  %v7134_v42 = vor.u32 %v7133_v1, %v7130_v41 }
 0x240   : > { %19644 = vmatmul.mubr.msk.bf16.gmra.mrb[36].mxu0 %vm1950_vm3, %v7108_v55  ;;  %v4931_v33 = vadd.f32 %v23672_v17, %v4845_v52  ;;  %v19444_v18 = vpop.f32.mrb[18].mxu0  ;;  %v6457_v55 = vrot.slane %v23711_v48, 4 }
 0x241   : > { %19647 = vmatprep.mubr.msk.bf16.mxu0 %vm1950_vm3, %v7117_v47  ;;  %v4972_v6 = vmul.f32 %v23687_v40, %v4933_v54  ;;  %v4934_v22 = vadd.f32 %v19444_v18, %v23672_v17  ;;  %v4848_v63 = vpop.f32.mrb[19].mxu0  ;;  %v7135_v15 = vsel %vm5245_vm9, %v7125_v31, %v7134_v42 }
 0x242   : > { %v4970_v13 = vmul.f32 %v23687_v40, %v4931_v33  ;;  %v4932_v52 = vadd.f32 %v23672_v17, %v4848_v63  ;;  %v6296_v63 = vshrl.u32 %v23709_v49, 16 }
 0x243   : > { %v4995_v3 = vadd.f32 %v23700_v45, %v4972_v6  ;;  %v4948_v47 = vpack.c.bf16 %v4934_v22, %v4933_v54  ;;  %v4973_v11 = vmul.f32 %v23687_v40, %v4934_v22  ;;  %v6294_v54 = vsel %vm5245_vm9, %v6284_v43, %v23597_v34 }
 0x244   : > { %19572 = vmatmul.mubr.msk.bf16.gmra.mrb[36].mxu1 %vm1950_vm3, %v6267_v12  ;;  %v4993_v18 = vadd.f32 %v23700_v45, %v4970_v13  ;;  %v4947_v30 = vpack.c.bf16 %v4932_v52, %v4931_v33  ;;  %v4971_v16 = vmul.f32 %v23687_v40, %v4932_v52  ;;  %v7126_v33 = vsel %vm5245_vm9, %v7116_v19, %v7125_v31 }
 0x245   : > { %19575 = vmatprep.mubr.msk.bf16.mxu1 %vm1950_vm3, %v6276_v5  ;;  %4956 = vst.msk [vmem:[#allocation2 + $0xb8] sm:$0xff] %vm1950_vm3, %v4948_v47  ;;  %v4996_v12 = vadd.f32 %v23700_v45, %v4973_v11  ;;  %v6299_v5 = vshll.u32 %v23709_v49, 16  ;;  %v7139_v6 = vrot.slane %v7137_v44, 3  ;;  %v7142_v22 = vrot.slane %v7140_v27, 4 }
 0x246   : > { %4955 = vst.msk [vmem:[#allocation2 + $0xb0] sm:$0xff] %vm1950_vm3, %v4947_v30  ;;  %v4994_v41 = vadd.f32 %v23700_v45, %v4971_v16  ;;  %v19447_v1 = vpop.f32.mrb[20].mxu0  ;;  %v5011_v13 = vmax.f32 %v4995_v3, 0.0  ;;  %v5009_v43 = vmax.f32 %v4993_v18, 0.0  ;;  %v6298_v16 = vrot.slane %v6296_v63, 3 }
 0x247   : > { %v5012_v52 = vmax.f32 %v4996_v12, 0.0  ;;  %v4937_v47 = vadd.f32 %v19447_v1, %v23672_v17  ;;  %v4861_v11 = vpop.f32.mrb[21].mxu0  ;;  %v6301_v12 = vrot.slane %v6299_v5, 4  ;;  %v7143_v18 = vor.u32 %v7142_v22, %v7139_v6  ;;  %v23754_v6 = vld [vmem:[#allocation3 + $0x50] sm:$0xff] }
 0x248   : > { %19648 = vmatmul.mubr.msk.bf16.gmra.mrb[40].mxu0 %vm1950_vm3, %v7126_v33  ;;  %v5010_v23 = vmax.f32 %v4994_v41, 0.0  ;;  %v4935_v30 = vadd.f32 %v23672_v17, %v4861_v11  ;;  %v19448_v39 = vpop.f32.mrb[22].mxu0  ;;  %v6461_v22 = vrot.slane %v23754_v6, 4  ;;  %v26938_v11 = vrot.slane %v23682_v8, 4  ;;  %v22052_v6 = vld [vmem:[#allocation3 + $0x68] sm:$0xff] }
 0x249   : > { %19651 = vmatprep.mubr.msk.bf16.mxu0 %vm1950_vm3, %v7135_v15  ;;  %v5026_v19 = vpack.c.bf16 %v5012_v52, %v5011_v13  ;;  %v4976_v44 = vmul.f32 %v23687_v40, %v4937_v47  ;;  %v4938_v27 = vadd.f32 %v19448_v39, %v23672_v17  ;;  %v4864_v3 = vpop.f32.mrb[23].mxu0  ;;  %v22048_v39 = vld [vmem:[#allocation3 + $0x48] sm:$0xff] }
 0x24a   : > { %v5025_v1 = vpack.c.bf16 %v5010_v23, %v5009_v43  ;;  %v4974_v33 = vmul.f32 %v23687_v40, %v4935_v30  ;;  %v4936_v31 = vadd.f32 %v23672_v17, %v4864_v3  ;;  %v6459_v52 = vrot.slane %v22048_v39, 4 }
 0x24b   : > { %5034 = vst.msk [vmem:[#allocation3 + $0xb8] sm:$0xff] %vm1950_vm3, %v5026_v19  ;;  %v4999_v41 = vadd.f32 %v23700_v45, %v4976_v44  ;;  %v4950_v63 = vpack.c.bf16 %v4938_v27, %v4937_v47  ;;  %v4977_v13 = vmul.f32 %v23687_v40, %v4938_v27  ;;  %v6302_v47 = vor.u32 %v6301_v12, %v6298_v16 }
 0x24c   : > { %19576 = vmatmul.mubr.msk.bf16.gmra.mrb[40].mxu1 %vm1950_vm3, %v6285_v29  ;;  %5074 = vst.msk [vmem:[#allocation3 + $0xb8] sm:$0xc0] %vm5049_vm8, %v26930_v59  ;;  %v4997_v23 = vadd.f32 %v23700_v45, %v4974_v33  ;;  %v4949_v29 = vpack.c.bf16 %v4936_v31, %v4935_v30  ;;  %v4975_v5 = vmul.f32 %v23687_v40, %v4936_v31  ;;  %v7283_v43 = vrot.slane %v23564_v25, 4 }
 0x24d   : > { %19579 = vmatprep.mubr.msk.bf16.mxu1 %vm1950_vm3, %v6294_v54  ;;  %5033 = vst.msk [vmem:[#allocation3 + $0xb0] sm:$0xff] %vm1950_vm3, %v5025_v1  ;;  %4958 = vst.msk [vmem:[#allocation2 + $0xc8] sm:$0xff] %vm1950_vm3, %v4950_v63  ;;  %v5000_v54 = vadd.f32 %v23700_v45, %v4977_v13  ;;  %v6458_v15 = vsel %vm5102_vm4, %v26938_v11, %v6457_v55  ;;  %v7144_v44 = vsel %vm5245_vm9, %v7134_v42, %v7143_v18 }
 0x24e   : > { %5073 = vst.msk [vmem:[#allocation3 + $0xb0] sm:$0x3c] %vm5057_vm6, %v26930_v59  ;;  %v4998_v30 = vadd.f32 %v23700_v45, %v4975_v5  ;;  %v7284_v27 = vrot.slane %v23567_v7, 5  ;;  %v7287_v3 = vrot.slane %v23572_v20, 4  ;;  %v5015_v16 = vmax.f32 %v4999_v41, 0.0  ;;  %v26939_v5 = vld [vmem:[#allocation9_spill] sm:$0xff] }
 0x24f   : > { %4957 = vst.msk [vmem:[#allocation2 + $0xc0] sm:$0xff] %vm1950_vm3, %v4949_v29  ;;  %v19451_v19 = vpop.f32.mrb[24].mxu0  ;;  %v5016_v12 = vmax.f32 %v5000_v54, 0.0  ;;  %v7288_v31 = vrot.slane %v23575_v53, 5  ;;  %v5013_v63 = vmax.f32 %v4997_v23, 0.0  ;;  %v6460_v42 = vsel %vm5102_vm4, %v6457_v55, %v6459_v52 }
 0x250   : > { %v4941_v1 = vadd.f32 %v19451_v19, %v23672_v17  ;;  %v4877_v33 = vpop.f32.mrb[25].mxu0  ;;  %19652 = vmatmul.mubr.msk.bf16.gmra.mrb[44].mxu0 %vm1950_vm3, %v7144_v44  ;;  %v5014_v13 = vmax.f32 %v4998_v30, 0.0  ;;  %v6303_v53 = vsel %vm5245_vm9, %v23597_v34, %v6302_v47  ;;  %v23788_v44 = vor.u32 %v7284_v27, %v7283_v43 }
 0x251   : > { %v4939_v39 = vadd.f32 %v23672_v17, %v4877_v33  ;;  %v19452_v29 = vpop.f32.mrb[26].mxu0  ;;  %19657 = vmatprep.mubr.msk.bf16.mxu0 %vm1950_vm3, %v26939_v5  ;;  %v5028_v18 = vpack.c.bf16 %v5016_v12, %v5015_v16  ;;  %v23794_v12 = vor.u32 %v7288_v31, %v7287_v3  ;;  %v6462_v27 = vsel %vm5102_vm4, %v6459_v52, %v6461_v22  ;;  %v26940_v52 = vld [vmem:[#allocation8_spill] sm:$0xff] }
 0x252   : > { %v4980_v41 = vmul.f32 %v23687_v40, %v4941_v1  ;;  %v4942_v54 = vadd.f32 %v19452_v29, %v23672_v17  ;;  %v4880_v11 = vpop.f32.mrb[27].mxu0  ;;  %v5027_v23 = vpack.c.bf16 %v5014_v13, %v5013_v63  ;;  %v7291_v3 = vrot.slane %v23600_v50, 4  ;;  %v23822_v5 = vld [vmem:[%s26804_s5 + $0x10] sm:$0xf] }
 0x253   : > { %v4978_v30 = vmul.f32 %v23687_v40, %v4939_v39  ;;  %v4940_v19 = vadd.f32 %v23672_v17, %v4880_v11  ;;  %5036 = vst.msk [vmem:[#allocation3 + $0xc8] sm:$0xff] %vm1950_vm3, %v5028_v18  ;;  %v7559_v33 = vsel %vm5102_vm4, %v23632_v2, 0  ;;  %v7286_v13 = vsel %vm5453_vm5, %v26940_v52, %v23788_v44 }
 0x254   : > { %19580 = vmatmul.mubr.msk.bf16.gmra.mrb[44].mxu1 %vm1950_vm3, %v6303_v53  ;;  %v5003_v48 = vadd.f32 %v23700_v45, %v4980_v41  ;;  %v4952_v55 = vpack.c.bf16 %v4942_v54, %v4941_v1  ;;  %v4981_v16 = vmul.f32 %v23687_v40, %v4942_v54  ;;  %5076 = vst.msk [vmem:[#allocation3 + $0xc8] sm:$0x3c] %vm5057_vm6, %v26930_v59  ;;  %v7292_v1 = vrot.slane %v23603_v60, 5 }
 0x255   : > { %19585 = vmatprep.mubr.msk.bf16.mxu1 %vm1950_vm3, %v6458_v15  ;;  %5035 = vst.msk [vmem:[#allocation3 + $0xc0] sm:$0xff] %vm1950_vm3, %v5027_v23  ;;  %v5001_v34 = vadd.f32 %v23700_v45, %v4978_v30  ;;  %v4951_v47 = vpack.c.bf16 %v4940_v19, %v4939_v39  ;;  %v4979_v43 = vmul.f32 %v23687_v40, %v4940_v19  ;;  %v7295_v39 = vrot.slane %v23587_v37, 4 }
 0x256   : > { %5075 = vst.msk [vmem:[#allocation3 + $0xc0] sm:$0x3] %vm5047_vm7, %v26930_v59  ;;  %v5004_v15 = vadd.f32 %v23700_v45, %v4981_v16  ;;  %v7296_v29 = vrot.slane %v23607_v46, 5  ;;  %v5019_v18 = vmax.f32 %v5003_v48, 0.0  ;;  %v7290_v11 = vsel %vm5453_vm5, %v23788_v44, %v23794_v12 }
 0x257   : > { %4960 = vst.msk [vmem:[#allocation2 + $0xd8] sm:$0xff] %vm1950_vm3, %v4952_v55  ;;  %4959 = vst.msk [vmem:[#allocation2 + $0xd0] sm:$0xff] %vm1950_vm3, %v4951_v47  ;;  %v5002_v31 = vadd.f32 %v23700_v45, %v4979_v43  ;;  %v19455_v63 = vpop.f32.mrb[28].mxu0  ;;  %v5017_v53 = vmax.f32 %v5001_v34, 0.0  ;;  %v6686_v19 = vsel %vm5102_vm4, %v23661_v38, 0  ;;  %v7293_v43 = vor.u32 %v7292_v1, %v7291_v3 }
 0x258   : > { %v5020_v2 = vmax.f32 %v5004_v15, 0.0  ;;  %v4945_v41 = vadd.f32 %v19455_v63, %v23672_v17  ;;  %v4893_v54 = vpop.f32.mrb[29].mxu0  ;;  %19658 = vmatmul.mubr.msk.bf16.vlgmr.msra.gmra.mrb[32].mxu0 %vm1950_vm3, %v7286_v13  ;;  %v23840_v34 = vld [vmem:[%s26804_s5 + $0x4] sm:$0xf]  ;;  %v22050_v13 = vld [vmem:[#allocation3 + $0x58] sm:$0xff] }
 0x259   : > { %v5018_v23 = vmax.f32 %v5002_v31, 0.0  ;;  %v4943_v46 = vadd.f32 %v23672_v17, %v4893_v54  ;;  %v19456_v30 = vpop.f32.mrb[30].mxu0  ;;  %19661 = vmatprep.mubr.msk.bf16.mxu0 %vm1950_vm3, %v7290_v11  ;;  %19674 = vmatpush3.bf16.msra.mxu0 %v7559_v33  ;;  %v7297_v33 = vor.u32 %v7296_v29, %v7295_v39  ;;  %v6463_v39 = vrot.slane %v22050_v13, 4  ;;  %v22051_v29 = vld [vmem:[#allocation3 + $0x60] sm:$0xff] }
 0x25a   : > { %v5030_v48 = vpack.c.bf16 %v5020_v2, %v5019_v18  ;;  %v4984_v55 = vmul.f32 %v23687_v40, %v4945_v41  ;;  %v4946_v16 = vadd.f32 %v19456_v30, %v23672_v17  ;;  %v4896_v47 = vpop.f32.mrb[31].mxu0  ;;  %21776 = vmatprep.subr.msk.bf16.mxu0 %vm5102_vm4, %v23822_v5  ;;  %v6465_v18 = vrot.slane %v22051_v29, 4 }
 0x25b   : > { %v5029_v15 = vpack.c.bf16 %v5018_v23, %v5017_v53  ;;  %v4982_v31 = vmul.f32 %v23687_v40, %v4943_v46  ;;  %v4944_v38 = vadd.f32 %v23672_v17, %v4896_v47  ;;  %v7299_v2 = vrot.slane %v23653_v21, 4 }
 0x25c   : > { %19586 = vmatmul.mubr.msk.bf16.vlgmr.msra.gmra.mrb[32].mxu1 %vm1950_vm3, %v6460_v42  ;;  %5038 = vst.msk [vmem:[#allocation3 + $0xd8] sm:$0xff] %vm1950_vm3, %v5030_v48  ;;  %v5007_v3 = vadd.f32 %v23700_v45, %v4984_v55  ;;  %v4954_v1 = vpack.c.bf16 %v4946_v16, %v4945_v41  ;;  %v4985_v63 = vmul.f32 %v23687_v40, %v4946_v16  ;;  %v7300_v54 = vrot.slane %v23656_v4, 5 }
 0x25d   : > { %19589 = vmatprep.mubr.msk.bf16.mxu1 %vm1950_vm3, %v6462_v27  ;;  %19602 = vmatpush3.bf16.msra.mxu1 %v6686_v19  ;;  %5078 = vst.msk [vmem:[#allocation3 + $0xd8] sm:$0x3] %vm5047_vm7, %v26930_v59  ;;  %v5005_v17 = vadd.f32 %v23700_v45, %v4982_v31  ;;  %v4953_v52 = vpack.c.bf16 %v4944_v38, %v4943_v46  ;;  %v7303_v11 = vrot.slane %v23591_v10, 4  ;;  %v7304_v30 = vrot.slane %v23620_v36, 5  ;;  %v7269_v19 = vld [vmem:[#allocation3 + $0xa0] sm:$0x1f] }
 0x25e   : > { %5037 = vst.msk [vmem:[#allocation3 + $0xd0] sm:$0xff] %vm1950_vm3, %v5029_v15  ;;  %v4983_v42 = vmul.f32 %v23687_v40, %v4944_v38  ;;  %21781 = vmatprep.subr.msk.bf16.mxu1 %vm5102_vm4, %v23840_v34  ;;  %4962 = vst.msk [vmem:[#allocation2 + $0xe8] sm:$0xff] %vm1950_vm3, %v4954_v1  ;;  %v5008_v27 = vadd.f32 %v23700_v45, %v4985_v63  ;;  %v7294_v41 = vsel %vm5453_vm5, %v23794_v12, %v7293_v43  ;;  %v7456_v63 = vld [vmem:[#allocation3 + $0x68] sm:$0x80] }
 0x25f   : > { %5077 = vst.msk [vmem:[#allocation3 + $0xd0] sm:$0xc0] %vm5049_vm8, %v26930_v59  ;;  %v5023_v53 = vmax.f32 %v5007_v3, 0.0  ;;  %v7298_v46 = vsel %vm5453_vm5, %v7293_v43, %v7297_v33  ;;  %v5021_v48 = vmax.f32 %v5005_v17, 0.0  ;;  %v6464_v12 = vsel %vm5102_vm4, %v6461_v22, %v6463_v39 }
 0x260   : > { %4961 = vst.msk [vmem:[#allocation2 + $0xe0] sm:$0xff] %vm1950_vm3, %v4953_v52  ;;  %v5006_v40 = vadd.f32 %v23700_v45, %v4983_v42  ;;  %v5024_v23 = vmax.f32 %v5008_v27, 0.0  ;;  %19662 = vmatmul.mubr.msk.bf16.gmra.mrb[36].mxu0 %vm1950_vm3, %v7294_v41  ;;  %v6466_v16 = vsel %vm5102_vm4, %v6463_v39, %v6465_v18  ;;  %v7301_v15 = vor.u32 %v7300_v54, %v7299_v2 }
 0x261   : > { %19665 = vmatprep.mubr.msk.bf16.mxu0 %vm1950_vm3, %v7298_v46  ;;  %v7308_v31 = vshrl.u32 %v7269_v19, 16  ;;  %v7311_v43 = vshll.u32 %v7269_v19, 16  ;;  %v7305_v36 = vor.u32 %v7304_v30, %v7303_v11  ;;  %v6467_v22 = vrot.slane %v22052_v6, 4  ;;  %v23916_v30 = vld [vmem:[%s26804_s5 + $0x14] sm:$0xf] }
 0x262   : > { %v5022_v55 = vmax.f32 %v5006_v40, 0.0  ;;  %v5032_v45 = vpack.c.bf16 %v5024_v23, %v5023_v53  ;;  %v7302_v38 = vsel %vm5453_vm5, %v7297_v33, %v7301_v15  ;;  %v7473_v52 = vrot.slane %v23564_v25, 7 }
 0x263   : > { %v7310_v3 = vrot.slane %v7308_v31, 4  ;;  %v7313_v1 = vrot.slane %v7311_v43, 5  ;;  %v7306_v17 = vsel %vm5453_vm5, %v7301_v15, %v7305_v36  ;;  %v6617_v42 = vshrl.u32 %v23682_v8, 16  ;;  %v6613_v15 = vld [vmem:[#allocation3 + $0x78] sm:$0x1f]  ;;  %v23973_v43 = vld [vmem:[#allocation3 + $0x80] sm:$0xff] }
 0x264   : > { %v5031_v47 = vpack.c.bf16 %v5022_v55, %v5021_v48  ;;  %19590 = vmatmul.mubr.msk.bf16.gmra.mrb[36].mxu1 %vm1950_vm3, %v6464_v12  ;;  %5040 = vst.msk [vmem:[#allocation3 + $0xe8] sm:$0xff] %vm1950_vm3, %v5032_v45  ;;  %v6620_v27 = vshll.u32 %v23682_v8, 16  ;;  %v6468_v13 = vsel %vm5102_vm4, %v6465_v18, %v6467_v22  ;;  %v7467_v39 = vshrl.u32 %v7456_v63, 16  ;;  %v23947_v48 = vld [vmem:[#allocation3 + $0xc8] sm:$0xff] }
 0x265   : > { %19593 = vmatprep.mubr.msk.bf16.mxu1 %vm1950_vm3, %v6466_v16  ;;  %5050 = vst.msk [vmem:[#allocation3 + $0xe8] sm:$0xc0] %vm5049_vm8, %v26930_v59  ;;  %v6470_v33 = vsel %vm5102_vm4, %v6467_v22, %v23471_v51  ;;  %v7314_v29 = vor.u32 %v7313_v1, %v7310_v3  ;;  %v7476_v2 = vor.u32 %v7473_v52, %v23567_v7  ;;  %v6619_v25 = vrot.slane %v6617_v42, 4  ;;  %v23955_v12 = vld [vmem:[#allocation3 + $0xa8] sm:$0xff]  ;;  %v23957_v16 = vld [vmem:[#allocation3 + $0xd8] sm:$0xff] }
 0x266   : > { %5039 = vst.msk [vmem:[#allocation3 + $0xe0] sm:$0xff] %vm1950_vm3, %v5031_v47  ;;  %v6622_v40 = vrot.slane %v6620_v27, 5  ;;  %v7469_v41 = vrot.slane %v7467_v39, 7  ;;  %v6471_v54 = vrot.slane %v23709_v49, 4  ;;  %v7489_v11 = vrot.slane %v23600_v50, 7  ;;  %26944 = vst [vmem:[#allocation9_spill] sm:$0xff] %v23947_v48 }
 0x267   : > { %5079 = vst.msk [vmem:[#allocation3 + $0xe0] sm:$0x3c] %vm5057_vm6, %v26930_v59  ;;  %v7315_v8 = vsel %vm5453_vm5, %v7305_v36, %v7314_v29  ;;  %v7692_v46 = vsel %vm5102_vm4, %v23822_v5, 0  ;;  %v7485_v50 = vsel %vm5650_vm11, %v7473_v52, %v23612_v28  ;;  %v7505_v19 = vrot.slane %v23653_v21, 7  ;;  %v23933_v5 = vld [vmem:[%s26804_s5] sm:$0xf] }
 0x268   : > { %19666 = vmatmul.mubr.msk.bf16.gmra.mrb[40].mxu0 %vm1950_vm3, %v7302_v38  ;;  %v7477_v18 = vsel %vm5650_vm11, %v7469_v41, %v7476_v2  ;;  %v6623_v53 = vor.u32 %v6622_v40, %v6619_v25  ;;  %v6472_v23 = vsel %vm5102_vm4, %v23471_v51, %v6471_v54  ;;  %v7492_v49 = vor.u32 %v7489_v11, %v23603_v60  ;;  %v23923_v60 = vld [vmem:[#allocation3 + $0xa0] sm:$0xff]  ;;  %v23940_v21 = vld [vmem:[#allocation3 + $0xb8] sm:$0xff]  ;;  %v23991_v1 = vld [vmem:[#allocation3 + $0x88] sm:$0xff] }
 0x269   : > { %19669 = vmatprep.mubr.msk.bf16.mxu0 %vm1950_vm3, %v7306_v17  ;;  %v26941_v51 = vrot.slane %v23572_v20, 7  ;;  %26942 = vst [vmem:[#allocation6_spill] sm:$0xff] %v23923_v60  ;;  %v8774_v28 = vsel %vm5102_vm4, %v23840_v34, 0  ;;  %v23938_v20 = vshrl.u32 %v23923_v60, 16  ;;  %26943 = vst [vmem:[#allocation7_spill] sm:$0xff] %v23940_v21  ;;  %v7508_v34 = vor.u32 %v7505_v19, %v23656_v4  ;;  %v24001_v52 = vld [vmem:[#allocation3 + $0x90] sm:$0xff] }
 0x26a   : > { %v6627_v7 = vsel %vm5453_vm5, %v6623_v53, %v23281_v24  ;;  %v23950_v55 = vshrl.u32 %v23940_v21, 16  ;;  %v23965_v47 = vshll.u32 %v23923_v60, 16  ;;  %v23971_v31 = vshrl.u32 %v23955_v12, 16 }
 0x26b   : > { %v7493_v24 = vsel %vm5650_vm11, %v26941_v51, %v7492_v49  ;;  %v7521_v45 = vrot.slane %v23938_v20, 7  ;;  %v23976_v36 = vshll.u32 %v23940_v21, 16  ;;  %v7517_v38 = vsel %vm5650_vm11, %v7505_v19, %v23647_v14  ;;  %v24060_v51 = vld [vmem:[#allocation3 + $0xa0] sm:$0xf0] }
 0x26c   : > { %19594 = vmatmul.mubr.msk.bf16.gmra.mrb[40].mxu1 %vm1950_vm3, %v6468_v13  ;;  %v26832_v6 = vrot.slane %v23950_v55, 7  ;;  %v6653_v3 = vshrl.u32 %v6613_v15, 16  ;;  %v6656_v17 = vshll.u32 %v6613_v15, 16  ;;  %v24004_v42 = vshll.u32 %v23947_v48, 16  ;;  %v24011_v13 = vld [vmem:[#allocation3 + $0x98] sm:$0xff] }
 0x26d   : > { %19597 = vmatprep.mubr.msk.bf16.mxu1 %vm1950_vm3, %v6470_v33  ;;  %v7524_v22 = vor.u32 %v23965_v47, %v7521_v45  ;;  %v7529_v14 = vrot.slane %v23971_v31, 7  ;;  %v24009_v27 = vshll.u32 %v23955_v12, 16  ;;  %26947 = vst [vmem:[#allocation10_spill] sm:$0xff] %v24011_v13  ;;  %v24014_v39 = vshll.u32 %v23957_v16, 16 }
 0x26e   : > { %v23996_v63 = vor.u32 %v26832_v6, %v23976_v36  ;;  %v26948_v29 = vrot.slane %v23591_v10, 7  ;;  %v24021_v25 = vshll.u32 %v23973_v43, 16  ;;  %v24024_v40 = vshrl.u32 %v23991_v1, 16 }
 0x26f   : > { %v6655_v54 = vrot.slane %v6653_v3, 4  ;;  %v24036_v10 = vshrl.u32 %v24001_v52, 16  ;;  %v24045_v53 = vshll.u32 %v24001_v52, 16  ;;  %v24052_v49 = vshll.u32 %v24011_v13, 16 }
 0x270   : > { %19670 = vmatmul.mubr.msk.bf16.gmra.mrb[44].mxu0 %vm1950_vm3, %v7315_v8  ;;  %26946 = vst [vmem:[#allocation8_spill] sm:$0xff] %v23996_v63  ;;  %v7525_v2 = vsel %vm5650_vm11, %v26948_v29, %v7524_v22  ;;  %v24033_v8 = vshll.u32 %v23991_v1, 16  ;;  %v8434_v19 = vrot.slane %v24021_v25, 5  ;;  %v8732_v22 = vrot.slane %v24060_v51, 4 }
 0x271   : > { %19675 = vmatprep.mubr.msk.bf16.mxu0 %vm1950_vm3, %v7477_v18  ;;  %v24084_v29 = vrot.slane %v23955_v12, 4 }
 0x273   : > { %26954 = vst [vmem:[#allocation16_spill] sm:$0xff] %v24084_v29 }
 0x274   : > { %19598 = vmatmul.mubr.msk.bf16.gmra.mrb[44].mxu1 %vm1950_vm3, %v6472_v23  ;;  %v24048_v23 = vshrl.u32 %v24011_v13, 16 }
 0x275   : > { %19603 = vmatprep.mubr.msk.bf16.mxu1 %vm1950_vm3, %v6627_v7 }
 0x276   : > { %v8445_v15 = vrot.slane %v24048_v23, 4 }
 0x278   : > { %19676 = vmatmul.mubr.msk.bf16.vlgmr.msra.gmra.mrb[32].mxu0 %vm1950_vm3, %v7485_v50  ;;  %v7532_v50 = vor.u32 %v24009_v27, %v7529_v14 }
 0x279   : > { %19679 = vmatprep.mubr.msk.bf16.mxu0 %vm1950_vm3, %v7493_v24  ;;  %19692 = vmatpush3.bf16.msra.mxu0 %v7692_v46  ;;  %v6651_v46 = vsel %vm5453_vm5, %v23314_v61, %v23788_v44  ;;  %v24062_v24 = vld [vmem:[#allocation3 + $0xb0] sm:$0xff] }
 0x27a   : > { %21777 = vmatprep.subr.msk.bf16.mxu0 %vm5102_vm4, %v23916_v30  ;;  %26951 = vst [vmem:[#allocation13_spill] sm:$0xff] %v24062_v24  ;;  %v7533_v14 = vsel %vm5650_vm11, %v7521_v45, %v7532_v50 }
 0x27c   : > { %19604 = vmatmul.mubr.msk.bf16.vlgmr.msra.gmra.mrb[32].mxu1 %vm1950_vm3, %v23302_v56  ;;  %v7501_v56 = vsel %vm5650_vm11, %v7489_v11, %v23637_v58  ;;  %v23968_v58 = vshrl.u32 %v23947_v48, 16  ;;  %v6658_v11 = vrot.slane %v6656_v17, 5  ;;  %v8446_v17 = vrot.slane %v24052_v49, 5 }
 0x27d   : > { %19607 = vmatprep.mubr.msk.bf16.mxu1 %vm1950_vm3, %v23309_v9  ;;  %19782 = vmatpush3.bf16.msra.mxu1 %v8774_v28  ;;  %v26945_v9 = vrot.slane %v23587_v37, 7  ;;  %v23979_v37 = vshrl.u32 %v23957_v16, 16  ;;  %v8437_v28 = vrot.slane %v24024_v40, 4 }
 0x27e   : > { %21782 = vmatprep.subr.msk.bf16.mxu1 %vm5102_vm4, %v23933_v5 }
 0x27f   : > { %v7509_v4 = vsel %vm5650_vm11, %v26945_v9, %v7508_v34  ;;  %v26830_v33 = vrot.slane %v23979_v37, 7  ;;  %v24067_v34 = vld [vmem:[#allocation3 + $0xc0] sm:$0xff]  ;;  %v6659_v9 = vor.u32 %v6658_v11, %v6655_v54 }
 0x280   : > { %19680 = vmatmul.mubr.msk.bf16.gmra.mrb[36].mxu0 %vm1950_vm3, %v7501_v56  ;;  %26952 = vst [vmem:[#allocation14_spill] sm:$0xff] %v24067_v34  ;;  %v8441_v56 = vrot.slane %v24036_v10, 4  ;;  %v24089_v54 = vshll.u32 %v24067_v34, 16 }
 0x281   : > { %19683 = vmatprep.mubr.msk.bf16.mxu0 %vm1950_vm3, %v7509_v4  ;;  %v24041_v18 = vor.u32 %v26830_v33, %v24014_v39  ;;  %v8442_v4 = vrot.slane %v24045_v53, 5  ;;  %v6660_v45 = vsel %vm5453_vm5, %v23788_v44, %v6659_v9  ;;  %v9635_v44 = vrot.slane %v23976_v36, 1 }
 0x282   : > { %v9643_v9 = vrot.slane %v24089_v54, 1 }
 0x283   : > { %26950 = vst [vmem:[#allocation12_spill] sm:$0xff] %v24041_v18  ;;  %v8443_v11 = vor.u32 %v8442_v4, %v8441_v56  ;;  %v24123_v4 = vshrl.u32 %v24067_v34, 16 }
 0x284   : > { %19608 = vmatmul.mubr.msk.bf16.gmra.mrb[36].mxu1 %vm1950_vm3, %v23312_v0  ;;  %v23999_v0 = vshrl.u32 %v23973_v43, 16 }
 0x285   : > { %19611 = vmatprep.mubr.msk.bf16.mxu1 %vm1950_vm3, %v23319_v26  ;;  %v26831_v26 = vrot.slane %v23968_v58, 7 }
 0x286   : > { %v8433_v7 = vrot.slane %v23999_v0, 4 }
 0x287   : > { %v24029_v41 = vor.u32 %v26831_v26, %v24004_v42  ;;  %v8737_v26 = vrot.slane %v23940_v21, 4 }
 0x288   : > { %19684 = vmatmul.mubr.msk.bf16.gmra.mrb[40].mxu0 %vm1950_vm3, %v7517_v38  ;;  %v24071_v61 = vor.u32 %v8434_v19, %v8433_v7  ;;  %v24077_v38 = vshll.u32 %v24062_v24, 16  ;;  %v24106_v19 = vshrl.u32 %v24062_v24, 16 }
 0x289   : > { %26949 = vst [vmem:[#allocation11_spill] sm:$0xff] %v24029_v41  ;;  %19687 = vmatprep.mubr.msk.bf16.mxu0 %vm1950_vm3, %v7525_v2  ;;  %v24086_v2 = vld [vmem:[#allocation3 + $0xd0] sm:$0xff]  ;;  %v24269_v41 = vld [vmem:[#allocation3 + $0xe0] sm:$0xf] }
 0x28a   : > { %26953 = vst [vmem:[#allocation15_spill] sm:$0xff] %v24071_v61  ;;  %26955 = vst [vmem:[#allocation17_spill] sm:$0xff] %v24086_v2  ;;  %v9630_v56 = vrot.slane %v24077_v38, 1 }
 0x28c   : > { %19612 = vmatmul.mubr.msk.bf16.gmra.mrb[40].mxu1 %vm1950_vm3, %v23328_v35  ;;  %v8438_v35 = vrot.slane %v24033_v8, 5 }
 0x28d   : > { %19615 = vmatprep.mubr.msk.bf16.mxu1 %vm1950_vm3, %v6651_v46  ;;  %v24096_v46 = vor.u32 %v8446_v17, %v8445_v15  ;;  %v9631_v15 = vor.u32 %v9630_v56, %v24106_v19  ;;  %v24128_v17 = vrot.slane %v24062_v24, 4 }
 0x28e   : > { %v8439_v3 = vor.u32 %v8438_v35, %v8437_v28  ;;  %v24109_v28 = vshll.u32 %v24086_v2, 16 }
 0x28f   : > { %26957 = vst [vmem:[#allocation19_spill] sm:$0xff] %v24096_v46  ;;  %v24113_v35 = vsel %vm5453_vm5, %v8443_v11, %v24096_v46  ;;  %26960 = vst [vmem:[#allocation22_spill] sm:$0xff] %v24128_v17  ;;  %v9667_v46 = vrot.slane %v24014_v39, 1 }
 0x290   : > { %19688 = vmatmul.mubr.msk.bf16.gmra.mrb[44].mxu0 %vm1950_vm3, %v7533_v14  ;;  %v24094_v7 = vsel %vm5453_vm5, %v24071_v61, %v8439_v3  ;;  %v24103_v50 = vsel %vm5453_vm5, %v8439_v3, %v8443_v11  ;;  %26959 = vst [vmem:[#allocation21_spill] sm:$0xff] %v24113_v35  ;;  %v9651_v3 = vrot.slane %v24004_v42, 1  ;;  %v7910_v14 = vsel %vm5102_vm4, %v23916_v30, 0  ;;  %v24146_v30 = vld [vmem:[%s26804_s5 + $0x18] sm:$0xf] }
 0x291   : > { %26956 = vst [vmem:[#allocation18_spill] sm:$0xff] %v24094_v7  ;;  %19693 = vmatprep.mubr.msk.bf16.mxu0 %vm1950_vm3, %v23463_v32  ;;  %26958 = vst [vmem:[#allocation20_spill] sm:$0xff] %v24103_v50  ;;  %v8734_v32 = vsel %vm5102_vm4, %v8732_v22, %v24084_v29  ;;  %v24133_v22 = vshrl.u32 %v24086_v2, 16  ;;  %v9639_v11 = vor.u32 %v9635_v44, %v23950_v55  ;;  %v9659_v33 = vrot.slane %v24109_v28, 1 }
 0x292   : > { %v9655_v56 = vor.u32 %v9651_v3, %v23968_v58 }
 0x293   : > { %v24149_v6 = vsel %vm6004_vm10, %v9639_v11, %v9643_v9  ;;  %v9663_v35 = vor.u32 %v9659_v33, %v24133_v22  ;;  %v24164_v11 = vld [vmem:[#allocation3 + $0xe0] sm:$0xff] }
 0x294   : > { %19616 = vmatmul.mubr.msk.bf16.gmra.mrb[44].mxu1 %vm1950_vm3, %v6660_v45  ;;  %v24137_v45 = vsel %vm6004_vm10, %v9631_v15, %v9635_v44  ;;  %26962 = vst [vmem:[#allocation24_spill] sm:$0xff] %v24149_v6  ;;  %v22053_v44 = vld [vmem:[#allocation3 + $0x78] sm:$0xff]  ;;  %26965 = vst [vmem:[#allocation27_spill] sm:$0xff] %v24164_v11  ;;  %v24167_v6 = vor.u32 %v9667_v46, %v23979_v37 }
 0x295   : > { %19783 = vmatprep.mubr.msk.bf16.mxu1 %vm1950_vm3, %v8734_v32  ;;  %26961 = vst [vmem:[#allocation23_spill] sm:$0xff] %v24137_v45  ;;  %v9647_v32 = vor.u32 %v9643_v9, %v24123_v4  ;;  %v24157_v45 = vsel %vm6004_vm10, %v9655_v56, %v9659_v33  ;;  %v8978_v9 = vsel %vm5102_vm4, %v23933_v5, 0  ;;  %v24181_v5 = vld [vmem:[#allocation3 + $0xe8] sm:$0xff]  ;;  %v24184_v33 = vsel %vm6004_vm10, %v9663_v35, %v9667_v46 }
 0x296   : > { %26964 = vst [vmem:[#allocation26_spill] sm:$0xff] %v24157_v45  ;;  %26966 = vst [vmem:[#allocation28_spill] sm:$0xff] %v24167_v6  ;;  %v24192_v56 = vshrl.u32 %v24164_v11, 16  ;;  %v8711_v45 = vld [vmem:[#allocation3 + $0xa0] sm:$0xf8]  ;;  %v24200_v46 = vshrl.u32 %v24181_v5, 16 }
 0x297   : > { %v24154_v15 = vsel %vm6004_vm10, %v9647_v32, %v9651_v3  ;;  %v24172_v3 = vsel %vm5102_vm4, %v24084_v29, %v24128_v17  ;;  %v7807_v32 = vld [vmem:[#allocation3 + $0x70] sm:$0xff]  ;;  %26968 = vst [vmem:[#allocation30_spill] sm:$0xff] %v24181_v5  ;;  %26969 = vst [vmem:[#allocation31_spill] sm:$0xff] %v24184_v33  ;;  %v8739_v35 = vrot.slane %v24067_v34, 4  ;;  %v24204_v33 = vshll.u32 %v24181_v5, 16  ;;  %v24238_v29 = vld [vmem:[#allocation3 + $0xd8] sm:$0xff] }
 0x298   : > { %19694 = vmatmul.mubr.msk.bf16.vlgmr.msra.gmra.mrb[32].mxu0 %vm1950_vm3, %v22053_v44  ;;  %26963 = vst [vmem:[#allocation25_spill] sm:$0xff] %v24154_v15  ;;  %26967 = vst [vmem:[#allocation29_spill] sm:$0xff] %v24172_v3  ;;  %v24195_v44 = vshll.u32 %v24164_v11, 16  ;;  %v7820_v6 = vshll.u32 %v7807_v32, 16  ;;  %v24208_v15 = vld [vmem:[#allocation3 + $0x78] sm:$0xff]  ;;  %v8874_v11 = vshrl.u32 %v8711_v45, 16 }
 0x299   : > { %19697 = vmatprep.mubr.msk.bf16.mxu0 %vm1950_vm3, %v23518_v57  ;;  %19710 = vmatpush3.bf16.msra.mxu0 %v7910_v14  ;;  %v24179_v57 = vld [vmem:[%s26804_s5 + $0x8] sm:$0xf]  ;;  %v8738_v14 = vsel %vm5102_vm4, %v24128_v17, %v8737_v26  ;;  %v9890_v21 = vrot.slane %v24192_v56, 3  ;;  %v8877_v34 = vshll.u32 %v8711_v45, 16  ;;  %v9899_v5 = vrot.slane %v24200_v46, 3  ;;  %26974 = vst [vmem:[#allocation36_spill] sm:$0xff] %v24238_v29 }
 0x29a   : > { %21778 = vmatprep.subr.msk.bf16.mxu0 %vm5102_vm4, %v24146_v30  ;;  %v9893_v50 = vrot.slane %v24195_v44, 4  ;;  %v7822_v7 = vrot.slane %v7820_v6, 1  ;;  %v8740_v24 = vsel %vm5102_vm4, %v8737_v26, %v8739_v35  ;;  %v7818_v17 = vshrl.u32 %v7807_v32, 16  ;;  %v24228_v26 = vld [vmem:[#allocation3 + $0xc8] sm:$0xff] }
 0x29b   : > { %v7825_v18 = vshll.u32 %v24208_v15, 16  ;;  %v8884_v6 = vrot.slane %v23971_v31, 3  ;;  %26972 = vst [vmem:[#allocation34_spill] sm:$0xff] %v24228_v26  ;;  %v24235_v32 = vrot.slane %v8877_v34, 4 }
 0x29c   : > { %19784 = vmatmul.mubr.msk.bf16.vlgmr.msra.gmra.mrb[48].mxu1 %vm1950_vm3, %v24172_v3  ;;  %v24222_v3 = vld [vmem:[#allocation3 + $0xc0] sm:$0xff]  ;;  %v7823_v45 = vor.u32 %v7822_v7, %v7818_v17 }
 0x29d   : > { %19787 = vmatprep.mubr.msk.bf16.mxu1 %vm1950_vm3, %v8738_v14  ;;  %19800 = vmatpush3.bf16.msra.mxu1 %v8978_v9  ;;  %v8741_v9 = vrot.slane %v23947_v48, 4  ;;  %v22054_v14 = vld [vmem:[#allocation3 + $0x88] sm:$0xff]  ;;  %v24216_v48 = vor.u32 %v9893_v50, %v9890_v21  ;;  %26971 = vst [vmem:[#allocation33_spill] sm:$0xff] %v24222_v3  ;;  %v24230_v21 = vld [vmem:[#allocation3 + $0xd0] sm:$0xff] }
 0x29e   : > { %21783 = vmatprep.subr.msk.bf16.mxu1 %vm5102_vm4, %v24179_v57 }
 0x29f   : > { %26970 = vst [vmem:[#allocation32_spill] sm:$0xff] %v24216_v48  ;;  %v8742_v61 = vsel %vm5102_vm4, %v8739_v35, %v8741_v9  ;;  %v8887_v35 = vrot.slane %v24009_v27, 4 }
 0x2a0   : > { %19698 = vmatmul.mubr.msk.bf16.gmra.mrb[36].mxu0 %vm1950_vm3, %v22054_v14  ;;  %v9902_v14 = vrot.slane %v24204_v33, 4 }
 0x2a1   : > { %19701 = vmatprep.mubr.msk.bf16.mxu0 %vm1950_vm3, %v23543_v62  ;;  %v24225_v62 = vrot.slane %v8874_v11, 3  ;;  %v24266_v34 = vor.u32 %v8887_v35, %v8884_v6  ;;  %v26980_v35 = vshrl.u32 %v24230_v21, 16 }
 0x2a2   : > { %v24232_v50 = vor.u32 %v9902_v14, %v9899_v5  ;;  %v24248_v14 = vrot.slane %v7825_v18, 1 }
 0x2a3   : > { %v8880_v17 = vor.u32 %v24235_v32, %v24225_v62  ;;  %v26978_v62 = vshrl.u32 %v24228_v26, 16  ;;  %v26979_v32 = vshll.u32 %v24228_v26, 16 }
 0x2a4   : > { %19788 = vmatmul.mubr.msk.bf16.gmra.mrb[52].mxu1 %vm1950_vm3, %v8740_v24  ;;  %26973 = vst [vmem:[#allocation35_spill] sm:$0xff] %v24232_v50  ;;  %v8743_v24 = vrot.slane %v24086_v2, 4  ;;  %v24246_v5 = vsel %vm5245_vm9, %v24216_v48, %v24232_v50  ;;  %v24253_v2 = vld [vmem:[#allocation3 + $0xf0] sm:$0xff]  ;;  %v7828_v7 = vsel %vm6004_vm10, %v7823_v45, %v24248_v14  ;;  %v26976_v50 = vshrl.u32 %v24222_v3, 16 }
 0x2a5   : > { %19791 = vmatprep.mubr.msk.bf16.mxu1 %vm1950_vm3, %v8742_v61  ;;  %v8745_v61 = vrot.slane %v23957_v16, 4  ;;  %26975 = vst [vmem:[#allocation37_spill] sm:$0xff] %v24246_v5  ;;  %v22055_v16 = vld [vmem:[#allocation3 + $0x98] sm:$0xff]  ;;  %v26977_v48 = vshll.u32 %v24222_v3, 16  ;;  %v10245_v6 = vrot.slane %v26978_v62, 4  ;;  %v26983_v45 = vshll.u32 %v24238_v29, 16 }
 0x2a6   : > { %v8744_v18 = vsel %vm5102_vm4, %v8741_v9, %v8743_v24  ;;  %v10241_v5 = vrot.slane %v26976_v50, 4  ;;  %v26981_v50 = vshll.u32 %v24230_v21, 16  ;;  %v8747_v62 = vrot.slane %v24269_v41, 4 }
 0x2a7   : > { %v10242_v9 = vrot.slane %v26977_v48, 5  ;;  %v10254_v13 = vrot.slane %v26983_v45, 5 }
 0x2a8   : > { %19702 = vmatmul.mubr.msk.bf16.gmra.mrb[40].mxu0 %vm1950_vm3, %v22055_v16  ;;  %v8746_v16 = vsel %vm5102_vm4, %v8743_v24, %v8745_v61  ;;  %v10246_v24 = vrot.slane %v26979_v32, 5  ;;  %v10250_v48 = vrot.slane %v26981_v50, 5  ;;  %v10257_v32 = vrot.slane %v24192_v56, 4 }
 0x2a9   : > { %19705 = vmatprep.mubr.msk.bf16.mxu0 %vm1950_vm3, %v23923_v60  ;;  %v10249_v60 = vrot.slane %v26980_v35, 4  ;;  %v24285_v11 = vor.u32 %v10242_v9, %v10241_v5  ;;  %v10258_v35 = vrot.slane %v24195_v44, 5  ;;  %v10261_v5 = vrot.slane %v24200_v46, 4 }
 0x2aa   : > { %v10247_v26 = vor.u32 %v10246_v24, %v10245_v6  ;;  %v10262_v9 = vrot.slane %v24204_v33, 5  ;;  %v7835_v50 = vrot.slane %v24021_v25, 1  ;;  %v26988_v24 = vshll.u32 %v24253_v2, 16 }
 0x2ab   : > { %v10251_v63 = vor.u32 %v10250_v48, %v10249_v60  ;;  %v10259_v45 = vor.u32 %v10258_v35, %v10257_v32  ;;  %v8893_v32 = vrot.slane %v24106_v19, 3 }
 0x2ac   : > { %19792 = vmatmul.mubr.msk.bf16.gmra.mrb[56].mxu1 %vm1950_vm3, %v8744_v18  ;;  %v26982_v18 = vshrl.u32 %v24238_v29, 16  ;;  %v26985_v29 = vshrl.u32 %v24253_v2, 16  ;;  %v10266_v48 = vrot.slane %v26988_v24, 5 }
 0x2ad   : > { %19795 = vmatprep.mubr.msk.bf16.mxu1 %vm1950_vm3, %v8746_v16  ;;  %v24308_v60 = vsel %vm5453_vm5, %v10247_v26, %v10251_v63 }
 0x2ae   : > { %v10253_v3 = vrot.slane %v26982_v18, 4  ;;  %v24301_v18 = vsel %vm5453_vm5, %v24285_v11, %v10247_v26  ;;  %v10265_v6 = vrot.slane %v26985_v29, 4  ;;  %26986 = vst [vmem:[#allocation39_spill] sm:$0xff] %v24308_v60  ;;  %v8748_v29 = vsel %vm5102_vm4, %v8745_v61, %v8747_v62 }
 0x2af   : > { %26984 = vst [vmem:[#allocation38_spill] sm:$0xff] %v24301_v18  ;;  %v7839_v61 = vor.u32 %v23999_v0, %v7835_v50  ;;  %v9080_v18 = vshrl.u32 %v24060_v51, 16 }
 0x2b0   : > { %v10255_v16 = vor.u32 %v10254_v13, %v10253_v3  ;;  %19706 = vmatmul.mubr.msk.bf16.gmra.mrb[44].mxu0 %vm1950_vm3, %v23955_v12  ;;  %v10263_v3 = vor.u32 %v10262_v9, %v10261_v5  ;;  %v8896_v12 = vrot.slane %v24077_v38, 4  ;;  %v7829_v5 = vshrl.u32 %v24208_v15, 16 }
 0x2b1   : > { %19711 = vmatprep.mubr.msk.bf16.mxu0 %vm1950_vm3, %v7828_v7  ;;  %v8889_v7 = vsel %vm5245_vm9, %v8880_v17, %v24266_v34  ;;  %v8902_v9 = vrot.slane %v23950_v55, 3  ;;  %v7843_v15 = vrot.slane %v24033_v8, 1  ;;  %v8140_v17 = vsel %vm5102_vm4, %v24146_v30, 0 }
 0x2b2   : > { %v24311_v13 = vsel %vm5453_vm5, %v10251_v63, %v10255_v16  ;;  %v24318_v35 = vsel %vm5453_vm5, %v10255_v16, %v10259_v45  ;;  %v24323_v26 = vsel %vm5453_vm5, %v10259_v45, %v10263_v3  ;;  %v24325_v63 = vor.u32 %v10266_v48, %v10265_v6 }
 0x2b3   : > { %26987 = vst [vmem:[#allocation40_spill] sm:$0xff] %v24311_v13  ;;  %26989 = vst [vmem:[#allocation41_spill] sm:$0xff] %v24318_v35  ;;  %v8905_v16 = vrot.slane %v23976_v36, 4  ;;  %v7831_v45 = vor.u32 %v7829_v5, %v24248_v14  ;;  %v24341_v6 = vor.u32 %v8896_v12, %v8893_v32  ;;  %v7851_v14 = vrot.slane %v24045_v53, 1  ;;  %v24369_v5 = vld [vmem:[%s26804_s5 + $0xc] sm:$0xf] }
 0x2b4   : > { %26990 = vst [vmem:[#allocation42_spill] sm:$0xff] %v24323_v26  ;;  %26991 = vst [vmem:[#allocation43_spill] sm:$0xff] %v24325_v63  ;;  %19796 = vmatmul.mubr.msk.bf16.gmra.mrb[60].mxu1 %vm1950_vm3, %v8748_v29  ;;  %v24337_v62 = vsel %vm5453_vm5, %v10263_v3, %v24325_v63  ;;  %v24349_v29 = vld [vmem:[%s26804_s5 + $0x1c] sm:$0xf]  ;;  %v7844_v3 = vsel %vm6004_vm10, %v7839_v61, %v7843_v15  ;;  %v9149_v30 = vsel %vm5102_vm4, %v24179_v57, 0  ;;  %v8911_v32 = vrot.slane %v24123_v4, 3 }
 0x2b5   : > { %19801 = vmatprep.mubr.msk.bf16.mxu1 %vm1950_vm3, %v8889_v7  ;;  %26992 = vst [vmem:[#allocation44_spill] sm:$0xff] %v24337_v62  ;;  %v7836_v24 = vsel %vm6004_vm10, %v7831_v45, %v7835_v50  ;;  %v8906_v48 = vor.u32 %v8905_v16, %v8902_v9  ;;  %v24360_v50 = vsel %vm5245_vm9, %v24266_v34, %v24341_v6  ;;  %v8914_v12 = vrot.slane %v24089_v54, 4  ;;  %v7815_v26 = vld [vmem:[#allocation3 + $0xb0] sm:$0x1]  ;;  %v8025_v35 = vld [vmem:[#allocation3 + $0x78] sm:$0xf8] }
 0x2b6   : > { %v8920_v7 = vrot.slane %v23968_v58, 3  ;;  %v8923_v9 = vrot.slane %v24004_v42, 4  ;;  %v7855_v16 = vor.u32 %v24036_v10, %v7851_v14  ;;  %v7847_v61 = vor.u32 %v24024_v40, %v7843_v15 }
 0x2b7   : > { %v8907_v57 = vsel %vm5245_vm9, %v24341_v6, %v8906_v48  ;;  %v7859_v45 = vrot.slane %v24052_v49, 1  ;;  %v8929_v15 = vrot.slane %v24133_v22, 3  ;;  %v8932_v62 = vrot.slane %v24109_v28, 4 }
 0x2b8   : > { %19712 = vmatmul.mubr.msk.bf16.vlgmr.msra.gmra.mrb[32].mxu0 %vm1950_vm3, %v7836_v24  ;;  %v7852_v24 = vsel %vm6004_vm10, %v7847_v61, %v7851_v14 }
 0x2b9   : > { %19715 = vmatprep.mubr.msk.bf16.mxu0 %vm1950_vm3, %v7844_v3  ;;  %19728 = vmatpush3.bf16.msra.mxu0 %v8140_v17  ;;  %v8915_v17 = vor.u32 %v8914_v12, %v8911_v32  ;;  %v8924_v3 = vor.u32 %v8923_v9, %v8920_v7  ;;  %v7860_v63 = vsel %vm6004_vm10, %v7855_v16, %v7859_v45  ;;  %v8938_v32 = vrot.slane %v23979_v37, 3 }
 0x2ba   : > { %21779 = vmatprep.subr.msk.bf16.mxu0 %vm5102_vm4, %v24349_v29  ;;  %v8941_v12 = vrot.slane %v24014_v39, 4  ;;  %v7875_v7 = vrot.slane %v24009_v27, 1  ;;  %v7881_v9 = vshll.u32 %v7815_v26, 16  ;;  %v8036_v16 = vshrl.u32 %v8025_v35, 16 }
 0x2bb   : > { %v8925_v14 = vsel %vm5245_vm9, %v8915_v17, %v8924_v3  ;;  %v8933_v61 = vor.u32 %v8932_v62, %v8929_v15  ;;  %v8046_v26 = vrot.slane %v23999_v0, 3  ;;  %v8049_v62 = vrot.slane %v24021_v25, 4 }
 0x2bc   : > { %19802 = vmatmul.mubr.msk.bf16.vlgmr.msra.gmra.mrb[48].mxu1 %vm1950_vm3, %v24360_v50  ;;  %v8942_v60 = vor.u32 %v8941_v12, %v8938_v32  ;;  %v8038_v15 = vrot.slane %v8036_v16, 3  ;;  %v9088_v0 = vrot.slane %v24009_v27, 5  ;;  %v7879_v25 = vor.u32 %v7875_v7, %v23971_v31 }
 0x2bd   : > { %19805 = vmatprep.mubr.msk.bf16.mxu1 %vm1950_vm3, %v8907_v57  ;;  %19818 = vmatpush3.bf16.msra.mxu1 %v9149_v30  ;;  %v7867_v57 = vrot.slane %v23965_v47, 1  ;;  %v8916_v30 = vsel %vm5245_vm9, %v8906_v48, %v8915_v17  ;;  %v7863_v48 = vor.u32 %v24048_v23, %v7859_v45  ;;  %v8948_v17 = vshll.u32 %v24269_v41, 16 }
 0x2be   : > { %21784 = vmatprep.subr.msk.bf16.mxu1 %vm5102_vm4, %v24369_v5 }
 0x2bf   : > { %v7868_v13 = vsel %vm6004_vm10, %v7863_v48, %v7867_v57  ;;  %v8950_v48 = vrot.slane %v8948_v17, 4  ;;  %v8055_v17 = vrot.slane %v24024_v40, 3 }
 0x2c0   : > { %19716 = vmatmul.mubr.msk.bf16.gmra.mrb[36].mxu0 %vm1950_vm3, %v7852_v24  ;;  %v8039_v24 = vshll.u32 %v8025_v35, 16  ;;  %v7883_v35 = vrot.slane %v7881_v9, 1  ;;  %v8050_v9 = vor.u32 %v8049_v62, %v8046_v26  ;;  %v9092_v26 = vrot.slane %v24077_v38, 5 }
 0x2c1   : > { %19719 = vmatprep.mubr.msk.bf16.mxu0 %vm1950_vm3, %v7860_v63  ;;  %v7871_v63 = vor.u32 %v7867_v57, %v23938_v20  ;;  %v8934_v57 = vsel %vm5245_vm9, %v8924_v3, %v8933_v61  ;;  %v9095_v62 = vrot.slane %v23950_v55, 4 }
 0x2c2   : > { %v8041_v32 = vrot.slane %v8039_v24, 4  ;;  %v7884_v16 = vsel %vm6004_vm10, %v7879_v25, %v7883_v35  ;;  %v9103_v25 = vrot.slane %v23968_v58, 4 }
 0x2c3   : > { %v7876_v45 = vsel %vm6004_vm10, %v7871_v63, %v7875_v7 }
 0x2c4   : > { %19806 = vmatmul.mubr.msk.bf16.gmra.mrb[52].mxu1 %vm1950_vm3, %v8916_v30  ;;  %v8945_v30 = vshrl.u32 %v24269_v41, 16  ;;  %v9087_v41 = vrot.slane %v23971_v31, 4  ;;  %v8067_v31 = vrot.slane %v24045_v53, 4 }
 0x2c5   : > { %19809 = vmatprep.mubr.msk.bf16.mxu1 %vm1950_vm3, %v8925_v14  ;;  %v9083_v14 = vshll.u32 %v24060_v51, 16  ;;  %v8943_v51 = vsel %vm5245_vm9, %v8933_v61, %v8942_v60  ;;  %v8058_v61 = vrot.slane %v24033_v8, 4 }
 0x2c6   : > { %v8947_v12 = vrot.slane %v8945_v30, 3  ;;  %v24417_v30 = vor.u32 %v9088_v0, %v9087_v41 }
 0x2c7   : > { %v9085_v63 = vrot.slane %v9083_v14, 5  ;;  %v9091_v14 = vrot.slane %v24106_v19, 4  ;;  %v8059_v8 = vor.u32 %v8058_v61, %v8055_v17 }
 0x2c8   : > { %19720 = vmatmul.mubr.msk.bf16.gmra.mrb[40].mxu0 %vm1950_vm3, %v7868_v13  ;;  %v9082_v13 = vrot.slane %v9080_v18, 4  ;;  %v8951_v3 = vor.u32 %v8950_v48, %v8947_v12  ;;  %v8064_v18 = vrot.slane %v24036_v10, 3  ;;  %v9096_v10 = vrot.slane %v23976_v36, 5  ;;  %v24445_v12 = vld [vmem:[%s26804_s5 + $0x20] sm:$0xf] }
 0x2c9   : > { %19723 = vmatprep.mubr.msk.bf16.mxu0 %vm1950_vm3, %v7876_v45  ;;  %v8042_v45 = vor.u32 %v8041_v32, %v8038_v15  ;;  %v24435_v35 = vor.u32 %v9092_v26, %v9091_v14  ;;  %v8060_v15 = vsel %vm5245_vm9, %v8050_v9, %v8059_v8  ;;  %v8076_v32 = vrot.slane %v24052_v49, 4  ;;  %v9077_v26 = vld [vmem:[#allocation3 + $0xe0] sm:$0x1f] }
 0x2ca   : > { %v9086_v24 = vor.u32 %v9085_v63, %v9082_v13  ;;  %v8952_v7 = vsel %vm5245_vm9, %v8942_v60, %v8951_v3  ;;  %v8068_v53 = vor.u32 %v8067_v31, %v8064_v18  ;;  %v8308_v60 = vsel %vm5102_vm4, %v24349_v29, 0  ;;  %v24466_v63 = vld [vmem:[%s26804_s5 + $0x10] sm:$0xf]  ;;  %v24492_v18 = vld [vmem:[#allocation3 + $0xb8] sm:$0xf] }
 0x2cb   : > { %v8051_v27 = vsel %vm5245_vm9, %v8042_v45, %v8050_v9  ;;  %v9097_v41 = vor.u32 %v9096_v10, %v9095_v62  ;;  %v8082_v48 = vrot.slane %v23938_v20, 3  ;;  %v8085_v29 = vrot.slane %v23965_v47, 4 }
 0x2cc   : > { %19810 = vmatmul.mubr.msk.bf16.gmra.mrb[56].mxu1 %vm1950_vm3, %v8934_v57  ;;  %v9090_v40 = vsel %vm5453_vm5, %v9086_v24, %v24417_v30  ;;  %v8073_v57 = vrot.slane %v24048_v23, 3  ;;  %v8069_v36 = vsel %vm5245_vm9, %v8059_v8, %v8068_v53  ;;  %v9367_v23 = vsel %vm5102_vm4, %v24369_v5, 0 }
 0x2cd   : > { %19813 = vmatprep.mubr.msk.bf16.mxu1 %vm1950_vm3, %v8943_v51  ;;  %v24457_v49 = vsel %vm5453_vm5, %v24417_v30, %v24435_v35  ;;  %v9099_v51 = vrot.slane %v24123_v4, 4  ;;  %v9100_v13 = vrot.slane %v24089_v54, 5  ;;  %v9098_v5 = vsel %vm5453_vm5, %v24435_v35, %v9097_v41 }
 0x2ce   : > { %v8077_v0 = vor.u32 %v8076_v32, %v8073_v57  ;;  %v9104_v9 = vrot.slane %v24004_v42, 5  ;;  %v9107_v42 = vrot.slane %v24133_v22, 4  ;;  %v9112_v14 = vrot.slane %v24014_v39, 5 }
 0x2cf   : > { %v9101_v45 = vor.u32 %v9100_v13, %v9099_v51  ;;  %v8110_v8 = vshll.u32 %v24492_v18, 16  ;;  %v9116_v10 = vshrl.u32 %v9077_v26, 16  ;;  %v8267_v51 = vrot.slane %v23973_v43, 4 }
 0x2d0   : > { %19724 = vmatmul.mubr.msk.bf16.gmra.mrb[44].mxu0 %vm1950_vm3, %v7884_v16  ;;  %v8086_v16 = vor.u32 %v8085_v29, %v8082_v48  ;;  %v8078_v3 = vsel %vm5245_vm9, %v8068_v53, %v8077_v0  ;;  %v9105_v24 = vor.u32 %v9104_v9, %v9103_v25  ;;  %v9119_v53 = vshll.u32 %v9077_v26, 16  ;;  %v9264_v48 = vld [vmem:[#allocation3 + $0xa8] sm:$0x80] }
 0x2d1   : > { %19729 = vmatprep.mubr.msk.bf16.mxu0 %vm1950_vm3, %v8051_v27  ;;  %v9102_v61 = vsel %vm5453_vm5, %v9097_v41, %v9101_v45  ;;  %v9108_v27 = vrot.slane %v24109_v28, 5  ;;  %v8112_v41 = vrot.slane %v8110_v8, 4  ;;  %v9118_v32 = vrot.slane %v9116_v10, 4  ;;  %v26997_v10 = vld [vmem:[#allocation11_spill] sm:$0xff] }
 0x2d2   : > { %v8087_v17 = vsel %vm5245_vm9, %v8077_v0, %v8086_v16  ;;  %v9106_v31 = vsel %vm5453_vm5, %v9101_v45, %v9105_v24  ;;  %v9313_v26 = vrot.slane %v24133_v22, 7 }
 0x2d3   : > { %v9109_v62 = vor.u32 %v9108_v27, %v9107_v42  ;;  %v17877_v27 = vld [vmem:[%s26804_s5 + $0x14] sm:$0xf] }
 0x2d4   : > { %19814 = vmatmul.mubr.msk.bf16.gmra.mrb[60].mxu1 %vm1950_vm3, %v8952_v7  ;;  %v9111_v7 = vrot.slane %v23979_v37, 4 }
 0x2d5   : > { %19819 = vmatprep.mubr.msk.bf16.mxu1 %vm1950_vm3, %v9090_v40  ;;  %v8107_v40 = vshrl.u32 %v24492_v18, 16  ;;  %v9110_v57 = vsel %vm5453_vm5, %v9105_v24, %v9109_v62  ;;  %v9297_v24 = vrot.slane %v24123_v4, 7  ;;  %v26993_v4 = vld [vmem:[#allocation8_spill] sm:$0xff] }
 0x2d7   : > { %v8109_v39 = vrot.slane %v8107_v40, 3  ;;  %v9300_v42 = vor.u32 %v9297_v24, %v24089_v54  ;;  %v26994_v54 = vrot.slane %v23950_v55, 7  ;;  %v9309_v22 = vsel %vm5650_vm11, %v9297_v24, %v26997_v10 }
 0x2d8   : > { %19730 = vmatmul.mubr.msk.bf16.vlgmr.msra.gmra.mrb[32].mxu0 %vm1950_vm3, %v8060_v15  ;;  %v9113_v15 = vor.u32 %v9112_v14, %v9111_v7  ;;  %v26995_v7 = vld [vmem:[#allocation10_spill] sm:$0xff]  ;;  %v8450_v24 = vrot.slane %v23965_v47, 5 }
 0x2d9   : > { %19733 = vmatprep.mubr.msk.bf16.mxu0 %vm1950_vm3, %v8069_v36  ;;  %19746 = vmatpush3.bf16.msra.mxu0 %v8308_v60  ;;  %v8096_v60 = vsel %vm5245_vm9, %v8086_v16, %v24266_v34  ;;  %v9121_v36 = vrot.slane %v9119_v53, 5  ;;  %v9281_v34 = vrot.slane %v24106_v19, 7  ;;  %v8113_v13 = vor.u32 %v8112_v41, %v8109_v39  ;;  %v26999_v41 = vld [vmem:[#allocation16_spill] sm:$0xff]  ;;  %v10567_v47 = vld [vmem:[#allocation4 + $0x20] sm:$0xf8] }
 0x2da   : > { %21780 = vmatprep.subr.msk.bf16.mxu0 %vm5102_vm4, %v24445_v12  ;;  %v9114_v29 = vsel %vm5453_vm5, %v9109_v62, %v9113_v15  ;;  %v8273_v14 = vrot.slane %v26995_v7, 4  ;;  %v9316_v62 = vor.u32 %v9313_v26, %v24109_v28  ;;  %v26998_v53 = vrot.slane %v23968_v58, 7 }
 0x2db   : > { %v9122_v0 = vor.u32 %v9121_v36, %v9118_v32  ;;  %v8114_v25 = vsel %vm5245_vm9, %v24341_v6, %v8113_v13  ;;  %v9284_v9 = vor.u32 %v9281_v34, %v24077_v38  ;;  %v8271_v38 = vrot.slane %v24001_v52, 4  ;;  %v27000_v36 = vld [vmem:[#allocation29_spill] sm:$0xff] }
 0x2dc   : > { %19820 = vmatmul.mubr.msk.bf16.vlgmr.msra.gmra.mrb[48].mxu1 %vm1950_vm3, %v24457_v49  ;;  %v8495_v6 = vsel %vm5102_vm4, %v24445_v12, 0  ;;  %v9500_v52 = vsel %vm5102_vm4, %v24466_v63, 0  ;;  %v9293_v12 = vsel %vm5650_vm11, %v9281_v34, %v26993_v4  ;;  %v27011_v4 = vld [vmem:[#allocation19_spill] sm:$0xff] }
 0x2dd   : > { %19823 = vmatprep.mubr.msk.bf16.mxu1 %vm1950_vm3, %v9098_v5  ;;  %19836 = vmatpush3.bf16.msra.mxu1 %v9367_v23  ;;  %v8255_v23 = vld [vmem:[#allocation3 + $0x78] sm:$0xf0]  ;;  %v9123_v45 = vsel %vm5453_vm5, %v9113_v15, %v9122_v0  ;;  %v8274_v8 = vsel %vm5102_vm4, %v8271_v38, %v8273_v14  ;;  %v9329_v15 = vrot.slane %v24192_v56, 7 }
 0x2de   : > { %21785 = vmatprep.subr.msk.bf16.mxu1 %vm5102_vm4, %v24466_v63  ;;  %v8266_v5 = vrot.slane %v8255_v23, 4  ;;  %v26996_v63 = vld [vmem:[#allocation6_spill] sm:$0xff]  ;;  %v8426_v28 = vshrl.u32 %v8255_v23, 16  ;;  %v8429_v39 = vshll.u32 %v8255_v23, 16  ;;  %v27002_v23 = vrot.slane %v23979_v37, 7 }
 0x2df   : > { %v8275_v40 = vrot.slane %v26996_v63, 4  ;;  %v9332_v32 = vor.u32 %v24195_v44, %v9329_v15  ;;  %v27013_v63 = vld [vmem:[#allocation17_spill] sm:$0xff] }
 0x2e0   : > { %19734 = vmatmul.mubr.msk.bf16.gmra.mrb[36].mxu0 %vm1950_vm3, %v8078_v3  ;;  %v8268_v16 = vsel %vm5102_vm4, %v8266_v5, %v8267_v51  ;;  %v8269_v3 = vrot.slane %v23991_v1, 4  ;;  %v8431_v34 = vrot.slane %v8429_v39, 5 }
 0x2e1   : > { %19737 = vmatprep.mubr.msk.bf16.mxu0 %vm1950_vm3, %v8087_v17  ;;  %v22017_v17 = vld [vmem:[%s26808_s9] sm:$0xff]   ;;  %v8276_v55 = vsel %vm5102_vm4, %v8273_v14, %v8275_v40  ;;  %v9333_v13 = vsel %vm5650_vm11, %v27002_v23, %v9332_v32  ;;  %v9675_v23 = vrot.slane %v24195_v44, 1  ;;  %v27022_v44 = vld [vmem:[#allocation33_spill] sm:$0xff] }
 0x2e2   : > { %v8272_v1 = vsel %vm5102_vm4, %v8269_v3, %v8271_v38  ;;  %v27007_v38 = vld [vmem:[#allocation20_spill] sm:$0xff] }
 0x2e4   : > { %19824 = vmatmul.mubr.msk.bf16.gmra.mrb[52].mxu1 %vm1950_vm3, %v9102_v61  ;;  %v8270_v61 = vsel %vm5102_vm4, %v8267_v51, %v8269_v3  ;;  %v9337_v51 = vrot.slane %v24200_v46, 7  ;;  %v8449_v3 = vrot.slane %v23938_v20, 4 }
 0x2e5   : > { %19827 = vmatprep.mubr.msk.bf16.mxu1 %vm1950_vm3, %v9106_v31  ;;  %v9301_v31 = vsel %vm5650_vm11, %v26994_v54, %v9300_v42  ;;  %v27008_v42 = vld [vmem:[#allocation7_spill] sm:$0xff]  ;;  %v10579_v54 = vshrl.u32 %v10567_v47, 16 }
 0x2e6   : > { %v9340_v0 = vor.u32 %v24204_v33, %v9337_v51  ;;  %v8451_v20 = vor.u32 %v8450_v24, %v8449_v3  ;;  %v27019_v51 = vld [vmem:[#allocation26_spill] sm:$0xff]  ;;  %v27023_v3 = vshrl.u32 %v27022_v44, 16 }
 0x2e8   : > { %19738 = vmatmul.mubr.msk.bf16.gmra.mrb[40].mxu0 %vm1950_vm3, %v8096_v60  ;;  %v9317_v60 = vsel %vm5650_vm11, %v26998_v53, %v9316_v62  ;;  %v9341_v37 = vsel %vm5650_vm11, %v9329_v15, %v9340_v0  ;;  %v10581_v62 = vrot.slane %v10579_v54, 3  ;;  %v8456_v53 = vsel %vm5453_vm5, %v8451_v20, %v24417_v30 }
 0x2e9   : > { %19741 = vmatprep.mubr.msk.bf16.mxu0 %vm1950_vm3, %v24360_v50  ;;  %v9275_v50 = vshrl.u32 %v9264_v48, 16  ;;  %v27001_v48 = vld [vmem:[#allocation12_spill] sm:$0xff]  ;;  %v9679_v0 = vor.u32 %v9675_v23, %v24192_v56  ;;  %v9854_v24 = vrot.slane %v27023_v3, 3 }
 0x2ea   : > { %v9325_v58 = vsel %vm5650_vm11, %v9313_v26, %v27001_v48  ;;  %v27012_v26 = vld [vmem:[#allocation9_spill] sm:$0xff]  ;;  %v27016_v48 = vld [vmem:[#allocation23_spill] sm:$0xff] }
 0x2eb   : > { %v9277_v19 = vrot.slane %v9275_v50, 7  ;;  %v8281_v50 = vrot.slane %v24492_v18, 4  ;;  %v24593_v18 = vld [vmem:[%s26810_s11] sm:$0xf] }
 0x2ec   : > { %19828 = vmatmul.mubr.msk.bf16.gmra.mrb[56].mxu1 %vm1950_vm3, %v9110_v57  ;;  %v8278_v57 = vsel %vm5102_vm4, %v8275_v40, %v26999_v41  ;;  %v22056_v41 = vld [vmem:[#allocation3 + $0xd8] sm:$0xff] }
 0x2ed   : > { %19831 = vmatprep.mubr.msk.bf16.mxu1 %vm1950_vm3, %v9114_v29  ;;  %v9285_v43 = vsel %vm5650_vm11, %v9277_v19, %v9284_v9  ;;  %v8428_v29 = vrot.slane %v8426_v28, 4 }
 0x2ef   : > { %v8432_v5 = vor.u32 %v8431_v34, %v8428_v29  ;;  %v24653_v29 = vld [vmem:[%s26804_s5 + $0x1c] sm:$0xf]  ;;  %v27017_v34 = vld [vmem:[#allocation24_spill] sm:$0xff] }
 0x2f0   : > { %19742 = vmatmul.mubr.msk.bf16.gmra.mrb[44].mxu0 %vm1950_vm3, %v8114_v25  ;;  %v27003_v25 = vld [vmem:[#allocation22_spill] sm:$0xff] }
 0x2f1   : > { %19747 = vmatprep.mubr.msk.bf16.mxu0 %vm1950_vm3, %v8268_v16  ;;  %v8282_v9 = vsel %vm5102_vm4, %v27003_v25, %v8281_v50  ;;  %v27004_v16 = vld [vmem:[#allocation15_spill] sm:$0xff]  ;;  %v9623_v50 = vld [vmem:[#allocation3 + $0xf0] sm:$0x1]  ;;  %v9683_v25 = vrot.slane %v24204_v33, 1  ;;  %v24680_v33 = vld [vmem:[%s26805_s6] ss:$0 sm:$0xff] }
 0x2f2   : > { %v8436_v19 = vsel %vm5453_vm5, %v8432_v5, %v27004_v16  ;;  %v9833_v5 = vld [vmem:[#allocation3 + $0xb8] sm:$0xf8] }
 0x2f3   : > { %v9844_v16 = vshrl.u32 %v9833_v5, 16  ;;  %v9687_v56 = vor.u32 %v9683_v25, %v24200_v46  ;;  %v24696_v46 = vld [vmem:[%s26807_s8] ss:$0 sm:$0xff] }
 0x2f4   : > { %19832 = vmatmul.mubr.msk.bf16.gmra.mrb[60].mxu1 %vm1950_vm3, %v9123_v45  ;;  %v27005_v45 = vld [vmem:[#allocation13_spill] sm:$0xff] }
 0x2f5   : > { %19837 = vmatprep.mubr.msk.bf16.mxu1 %vm1950_vm3, %v9285_v43  ;;  %v27006_v43 = vld [vmem:[#allocation18_spill] sm:$0xff] }
 0x2f8   : > { %19748 = vmatmul.mubr.msk.bf16.vlgmr.msra.gmra.mrb[32].mxu0 %vm1950_vm3, %v8270_v61  ;;  %v17886_v61 = vld [vmem:[%s26804_s5 + $0x18] sm:$0xf] }
 0x2f9   : > { %19751 = vmatprep.mubr.msk.bf16.mxu0 %vm1950_vm3, %v8272_v1  ;;  %19764 = vmatpush3.bf16.msra.mxu0 %v8495_v6  ;;  %v9718_v6 = vsel %vm5102_vm4, %v17877_v27, 0  ;;  %v27009_v1 = vld [vmem:[#allocation14_spill] sm:$0xff] }
 0x2fa   : > { %19943 = vmatprep.subr.bf16.mxu0 %v22017_v17 }
 0x2fc   : > { %19838 = vmatmul.mubr.msk.bf16.vlgmr.msra.gmra.mrb[48].mxu1 %vm1950_vm3, %v9293_v12  ;;  %v8452_v12 = vsel %vm5453_vm5, %v27011_v4, %v8451_v20 }
 0x2fd   : > { %19841 = vmatprep.mubr.msk.bf16.mxu1 %vm1950_vm3, %v9301_v31  ;;  %19854 = vmatpush3.bf16.msra.mxu1 %v9500_v52  ;;  %v24612_v52 = vld [vmem:[#allocation4 + $0x28] sm:$0xff]  ;;  %v10582_v31 = vshll.u32 %v10567_v47, 16  ;;  %v24686_v47 = vld [vmem:[%s26806_s7] ss:$0 sm:$0xff] }
 0x2fe   : > { %21786 = vmatprep.subr.msk.bf16.mxu1 %vm5102_vm4, %v17877_v27  ;;  %v8423_v27 = vld [vmem:[#allocation3 + $0xb8] sm:$0x1f]  ;;  %v26860_v7 = vshrl.u32 %v24612_v52, 16  ;;  %v26859_v14 = vshll.u32 %v24612_v52, 16 }
 0x2ff   : > { %v8462_v40 = vshrl.u32 %v8423_v27, 16 }
 0x300   : > { %19752 = vmatmul.mubr.msk.bf16.gmra.mrb[36].mxu0 %vm1950_vm3, %v8274_v8  ;;  %v8465_v8 = vshll.u32 %v8423_v27, 16  ;;  %v10589_v10 = vrot.slane %v26860_v7, 3 }
 0x301   : > { %19755 = vmatprep.mubr.msk.bf16.mxu0 %vm1950_vm3, %v8276_v55  ;;  %v10584_v55 = vrot.slane %v10582_v31, 4 }
 0x302   : > { %v8467_v15 = vrot.slane %v8465_v8, 5 }
 0x303   : > { %v10585_v28 = vor.u32 %v10584_v55, %v10581_v62 }
 0x304   : > { %19842 = vmatmul.mubr.msk.bf16.gmra.mrb[52].mxu1 %vm1950_vm3, %v9309_v22  ;;  %v10592_v22 = vrot.slane %v26859_v14, 4 }
 0x305   : > { %19845 = vmatprep.mubr.msk.bf16.mxu1 %vm1950_vm3, %v9317_v60  ;;  %v8464_v60 = vrot.slane %v8462_v40, 4 }
 0x306   : > { %v24634_v39 = vor.u32 %v10592_v22, %v10589_v10  ;;  %v27028_v10 = vshrl.u32 %v24230_v21, 16 }
 0x307   : > { %v8468_v32 = vor.u32 %v8467_v15, %v8464_v60 }
 0x308   : > { %19756 = vmatmul.mubr.msk.bf16.gmra.mrb[40].mxu0 %vm1950_vm3, %v8278_v57  ;;  %v27014_v57 = vld [vmem:[#allocation27_spill] sm:$0xff]  ;;  %v10594_v30 = vsel %vm5245_vm9, %v10585_v28, %v24634_v39  ;;  %v9872_v22 = vrot.slane %v27028_v10, 3  ;;  %v27029_v28 = vshll.u32 %v24230_v21, 16 }
 0x309   : > { %19759 = vmatprep.mubr.msk.bf16.mxu0 %vm1950_vm3, %v27000_v36  ;;  %v8469_v36 = vsel %vm5453_vm5, %v24435_v35, %v8468_v32  ;;  %v27018_v35 = vld [vmem:[#allocation25_spill] sm:$0xff] }
 0x30c   : > { %19846 = vmatmul.mubr.msk.bf16.gmra.mrb[56].mxu1 %vm1950_vm3, %v9325_v58  ;;  %v9948_v58 = vsel %vm5102_vm4, %v17886_v61, 0 }
 0x30d   : > { %19849 = vmatprep.mubr.msk.bf16.mxu1 %vm1950_vm3, %v9333_v13  ;;  %v27020_v13 = vld [vmem:[#allocation31_spill] sm:$0xff] }
 0x310   : > { %19760 = vmatmul.mubr.msk.bf16.gmra.mrb[44].mxu0 %vm1950_vm3, %v8282_v9  ;;  %v9689_v9 = vshll.u32 %v9623_v50, 16 }
 0x311   : > { %19765 = vmatprep.mubr.msk.bf16.mxu0 %vm1950_vm3, %v8436_v19  ;;  %v9847_v19 = vshll.u32 %v9833_v5, 16 }
 0x314   : > { %19850 = vmatmul.mubr.msk.bf16.gmra.mrb[60].mxu1 %vm1950_vm3, %v9341_v37  ;;  %v27021_v37 = vld [vmem:[#allocation28_spill] sm:$0xff] }
 0x315   : > { %19855 = vmatprep.mubr.msk.bf16.mxu1 %vm1950_vm3, %v27005_v45  ;;  %v9676_v45 = vsel %vm6004_vm10, %v27021_v37, %v9675_v23 }
 0x318   : > { %19766 = vmatmul.mubr.msk.bf16.vlgmr.msra.gmra.mrb[32].mxu0 %vm1950_vm3, %v27006_v43  ;;  %v9684_v43 = vsel %vm6004_vm10, %v9679_v0, %v9683_v25 }
 0x319   : > { %19769 = vmatprep.mubr.msk.bf16.mxu0 %vm1950_vm3, %v27007_v38  ;;  %19944 = vmatpush3.bf16.msra.mxu0 %v22017_v17  ;;  %v27010_v17 = vld [vmem:[#allocation21_spill] sm:$0xff]  ;;  %v27024_v38 = vshll.u32 %v27022_v44, 16 }
 0x31a   : > { %21790 = vmatprep.subr.msk.bf16.mxu0 %vm5102_vm4, %v24593_v18 }
 0x31c   : > { %19856 = vmatmul.mubr.msk.bf16.vlgmr.msra.gmra.mrb[48].mxu1 %vm1950_vm3, %v27008_v42  ;;  %v9846_v42 = vrot.slane %v9844_v16, 3 }
 0x31d   : > { %19859 = vmatprep.mubr.msk.bf16.mxu1 %vm1950_vm3, %v27009_v1  ;;  %19872 = vmatpush3.bf16.msra.mxu1 %v9718_v6  ;;  %v9857_v6 = vrot.slane %v27024_v38, 4  ;;  %v9849_v1 = vrot.slane %v9847_v19, 4  ;;  %v27033_v19 = vshrl.u32 %v24253_v2, 16 }
 0x31e   : > { %21787 = vmatprep.subr.msk.bf16.mxu1 %vm5102_vm4, %v17886_v61  ;;  %v9691_v61 = vrot.slane %v9689_v9, 1 }
 0x31f   : > { %v9850_v55 = vor.u32 %v9849_v1, %v9846_v42  ;;  %v9908_v37 = vrot.slane %v27033_v19, 3 }
 0x320   : > { %19770 = vmatmul.mubr.msk.bf16.gmra.mrb[36].mxu0 %vm1950_vm3, %v27010_v17  ;;  %v27025_v17 = vld [vmem:[#allocation34_spill] sm:$0xff]  ;;  %v9692_v62 = vsel %vm6004_vm10, %v9687_v56, %v9691_v61 }
 0x321   : > { %19773 = vmatprep.mubr.msk.bf16.mxu0 %vm1950_vm3, %v8452_v12  ;;  %v27026_v4 = vshrl.u32 %v27025_v17, 16  ;;  %v27027_v27 = vshll.u32 %v27025_v17, 16 }
 0x323   : > { %v9863_v12 = vrot.slane %v27026_v4, 3  ;;  %v9866_v54 = vrot.slane %v27027_v27, 4 }
 0x324   : > { %19860 = vmatmul.mubr.msk.bf16.gmra.mrb[52].mxu1 %vm1950_vm3, %v27012_v26 }
 0x325   : > { %19863 = vmatprep.mubr.msk.bf16.mxu1 %vm1950_vm3, %v27013_v63  ;;  %v9858_v63 = vor.u32 %v9857_v6, %v9854_v24  ;;  %v27034_v24 = vshll.u32 %v24253_v2, 16 }
 0x327   : > { %v9859_v21 = vsel %vm5245_vm9, %v9850_v55, %v9858_v63  ;;  %v9911_v38 = vrot.slane %v27034_v24, 4  ;;  %v24752_v55 = vld [vmem:[#allocation3 + $0xf8] sm:$0xf] }
 0x328   : > { %19774 = vmatmul.mubr.msk.bf16.gmra.mrb[40].mxu0 %vm1950_vm3, %v8456_v53 }
 0x329   : > { %19777 = vmatprep.mubr.msk.bf16.mxu0 %vm1950_vm3, %v24457_v49  ;;  %v27015_v49 = vld [vmem:[#allocation30_spill] sm:$0xff] }
 0x32c   : > { %19864 = vmatmul.mubr.msk.bf16.gmra.mrb[56].mxu1 %vm1950_vm3, %v22056_v41  ;;  %v9875_v41 = vrot.slane %v27029_v28, 4 }
 0x32d   : > { %19867 = vmatprep.mubr.msk.bf16.mxu1 %vm1950_vm3, %v27014_v57  ;;  %v27030_v57 = vld [vmem:[#allocation36_spill] sm:$0xff] }
 0x32e   : > { %v27031_v32 = vshrl.u32 %v27030_v57, 16  ;;  %v9876_v5 = vor.u32 %v9875_v41, %v9872_v22 }
 0x330   : > { %19778 = vmatmul.mubr.msk.bf16.gmra.mrb[44].mxu0 %vm1950_vm3, %v8469_v36 }
 0x331   : > { %19945 = vmatprep.mubr.msk.bf16.mxu0 %vm6894_vm12, %v10594_v30  ;;  %v9881_v30 = vrot.slane %v27031_v32, 3 }
 0x334   : > { %19868 = vmatmul.mubr.msk.bf16.gmra.mrb[60].mxu1 %vm1950_vm3, %v27015_v49 }
 0x335   : > { %19873 = vmatprep.mubr.msk.bf16.mxu1 %vm1950_vm3, %v27016_v48  ;;  %v9867_v48 = vor.u32 %v9866_v54, %v9863_v12  ;;  %v10116_v12 = vsel %vm5102_vm4, %v24653_v29, 0 }
 0x337   : > { %v9868_v9 = vsel %vm5245_vm9, %v9858_v63, %v9867_v48 }
 0x33c   : > { %19874 = vmatmul.mubr.msk.bf16.vlgmr.msra.gmra.mrb[48].mxu1 %vm1950_vm3, %v27017_v34 }
 0x33d   : > { %19877 = vmatprep.mubr.msk.bf16.mxu1 %vm1950_vm3, %v27018_v35  ;;  %19890 = vmatpush3.bf16.msra.mxu1 %v9948_v58  ;;  %v27032_v58 = vshll.u32 %v27030_v57, 16 }
 0x33e   : > { %21788 = vmatprep.subr.msk.bf16.mxu1 %vm5102_vm4, %v24653_v29  ;;  %v9877_v29 = vsel %vm5245_vm9, %v9867_v48, %v9876_v5 }
 0x33f   : > { %v9884_v34 = vrot.slane %v27032_v58, 4 }
 0x341   : > { %v9885_v16 = vor.u32 %v9884_v34, %v9881_v30 }
 0x344   : > { %19878 = vmatmul.mubr.msk.bf16.gmra.mrb[52].mxu1 %vm1950_vm3, %v27019_v51 }
 0x345   : > { %19881 = vmatprep.mubr.msk.bf16.mxu1 %vm1950_vm3, %v27020_v13 }
 0x34c   : > { %19882 = vmatmul.mubr.msk.bf16.gmra.mrb[56].mxu1 %vm1950_vm3, %v9676_v45 }
 0x34d   : > { %19885 = vmatprep.mubr.msk.bf16.mxu1 %vm1950_vm3, %v9684_v43 }
 0x34f   : > { %v19605_v20 = vpop.f32.mrb[32].mxu1 }
 0x350   : > { %v6810_v31 = vadd.f32 %v19605_v20, %v24680_v33  ;;  %v6722_v26 = vpop.f32.mrb[33].mxu1 }
 0x351   : > { %v6808_v40 = vadd.f32 %v24680_v33, %v6722_v26  ;;  %v19606_v8 = vpop.f32.mrb[34].mxu1 }
 0x352   : > { %v6833_v53 = vmul.f32 %v24686_v47, %v6810_v31  ;;  %v6811_v60 = vadd.f32 %v19606_v8, %v24680_v33  ;;  %v6725_v15 = vpop.f32.mrb[35].mxu1  ;;  %v24737_v31 = vld [vmem:[%s26804_s5 + $0x20] sm:$0xf] }
 0x353   : > { %v6831_v36 = vmul.f32 %v24686_v47, %v6808_v40  ;;  %v6809_v49 = vadd.f32 %v24680_v33, %v6725_v15  ;;  %v27035_v15 = vld [vmem:[#allocation32_spill] sm:$0xff] }
 0x354   : > { %v6856_v35 = vadd.f32 %v24696_v46, %v6833_v53  ;;  %v6834_v51 = vmul.f32 %v24686_v47, %v6811_v60  ;;  %19886 = vmatmul.mubr.msk.bf16.gmra.mrb[60].mxu1 %vm1950_vm3, %v9692_v62  ;;  %v24750_v62 = vor.u32 %v9911_v38, %v9908_v37  ;;  %v9886_v60 = vsel %vm5245_vm9, %v9876_v5, %v9885_v16 }
 0x355   : > { %v6854_v23 = vadd.f32 %v24696_v46, %v6831_v36  ;;  %v6832_v13 = vmul.f32 %v24686_v47, %v6809_v49  ;;  %19891 = vmatprep.mubr.msk.bf16.mxu1 %vm1950_vm3, %v9859_v21  ;;  %v9895_v28 = vsel %vm5245_vm9, %v9885_v16, %v27035_v15  ;;  %v9915_v36 = vshrl.u32 %v24752_v55, 16 }
 0x356   : > { %v6857_v50 = vadd.f32 %v24696_v46, %v6834_v51  ;;  %v6872_v45 = vmax.f32 %v6856_v35, 0.0  ;;  %v27036_v35 = vld [vmem:[#allocation35_spill] sm:$0xff]  ;;  %v9918_v5 = vshll.u32 %v24752_v55, 16 }
 0x357   : > { %v6855_v0 = vadd.f32 %v24696_v46, %v6832_v13  ;;  %v19609_v25 = vpop.f32.mrb[36].mxu1  ;;  %v6870_v6 = vmax.f32 %v6854_v23, 0.0  ;;  %v24769_v51 = vsel %vm5245_vm9, %v27036_v35, %v24750_v62  ;;  %v27037_v35 = vld [vmem:[#allocation37_spill] sm:$0xff] }
 0x358   : > { %v6873_v43 = vmax.f32 %v6857_v50, 0.0  ;;  %v6814_v44 = vadd.f32 %v19609_v25, %v24680_v33  ;;  %v6738_v3 = vpop.f32.mrb[37].mxu1 }
 0x359   : > { %v6871_v56 = vmax.f32 %v6855_v0, 0.0  ;;  %v6812_v61 = vadd.f32 %v24680_v33, %v6738_v3  ;;  %v19610_v42 = vpop.f32.mrb[38].mxu1 }
 0x35a   : > { %v6887_v1 = vpack.c.bf16 %v6873_v43, %v6872_v45  ;;  %v6837_v20 = vmul.f32 %v24686_v47, %v6814_v44  ;;  %v6815_v17 = vadd.f32 %v19610_v42, %v24680_v33  ;;  %v6741_v4 = vpop.f32.mrb[39].mxu1  ;;  %v10810_v45 = vsel %vm5102_vm4, %v24593_v18, 0 }
 0x35b   : > { %v6886_v27 = vpack.c.bf16 %v6871_v56, %v6870_v6  ;;  %v6835_v2 = vmul.f32 %v24686_v47, %v6812_v61  ;;  %v6813_v54 = vadd.f32 %v24680_v33, %v6741_v4  ;;  %v24784_v43 = vrot.slane %v9915_v36, 3 }
 0x35c   : > { %6896 = vst.msk [vmem:[#allocation4 + $0x38] sm:$0xff] %vm6894_vm12, %v6887_v1  ;;  %v6860_v26 = vadd.f32 %v24696_v46, %v6837_v20  ;;  %v6838_v63 = vmul.f32 %v24686_v47, %v6815_v17  ;;  %19892 = vmatmul.mubr.msk.bf16.vlgmr.msra.gmra.mrb[48].mxu1 %vm1950_vm3, %v9868_v9  ;;  %v24809_v42 = vrot.slane %v9918_v5, 4 }
 0x35d   : > { %10536 = vst.msk [vmem:[#allocation4 + $0x38] sm:$0x3c] %vm10535_vm13, %v26930_v59  ;;  %v6858_v40 = vadd.f32 %v24696_v46, %v6835_v2  ;;  %v6836_v8 = vmul.f32 %v24686_v47, %v6813_v54  ;;  %19895 = vmatprep.mubr.msk.bf16.mxu1 %vm1950_vm3, %v9877_v29  ;;  %19908 = vmatpush3.bf16.msra.mxu1 %v10116_v12 }
 0x35e   : > { %6895 = vst.msk [vmem:[#allocation4 + $0x30] sm:$0xff] %vm6894_vm12, %v6886_v27  ;;  %v6861_v10 = vadd.f32 %v24696_v46, %v6838_v63  ;;  %21789 = vmatprep.subr.msk.bf16.mxu1 %vm5102_vm4, %v24737_v31  ;;  %v6876_v41 = vmax.f32 %v6860_v26, 0.0  ;;  %v9921_v36 = vor.u32 %v24809_v42, %v24784_v43 }
 0x35f   : > { %10526 = vst.msk [vmem:[#allocation4 + $0x30] sm:$0x3] %vm10525_vm14, %v26930_v59  ;;  %v6859_v22 = vadd.f32 %v24696_v46, %v6836_v8  ;;  %v19613_v53 = vpop.f32.mrb[40].mxu1  ;;  %v6874_v49 = vmax.f32 %v6858_v40, 0.0 }
 0x360   : > { %v6877_v57 = vmax.f32 %v6861_v10, 0.0  ;;  %v6818_v32 = vadd.f32 %v19613_v53, %v24680_v33  ;;  %v6754_v30 = vpop.f32.mrb[41].mxu1 }
 0x361   : > { %v6875_v48 = vmax.f32 %v6859_v22, 0.0  ;;  %v6816_v58 = vadd.f32 %v24680_v33, %v6754_v30  ;;  %v19614_v34 = vpop.f32.mrb[42].mxu1 }
 0x362   : > { %v6889_v21 = vpack.c.bf16 %v6877_v57, %v6876_v41  ;;  %v6841_v23 = vmul.f32 %v24686_v47, %v6818_v32  ;;  %v6819_v13 = vadd.f32 %v19614_v34, %v24680_v33  ;;  %v6757_v50 = vpop.f32.mrb[43].mxu1 }
 0x363   : > { %v6888_v0 = vpack.c.bf16 %v6875_v48, %v6874_v49  ;;  %v6839_v25 = vmul.f32 %v24686_v47, %v6816_v58  ;;  %v6817_v9 = vadd.f32 %v24680_v33, %v6757_v50  ;;  %v24824_v49 = vld [vmem:[#allocation3 + $0xb8] sm:$0xf0]  ;;  %v24829_v48 = vld [vmem:[%s26808_s9 + $0x8] sm:$0xff]  }
 0x364   : > { %6898 = vst.msk [vmem:[#allocation4 + $0x48] sm:$0xff] %vm6894_vm12, %v6889_v21  ;;  %v6864_v16 = vadd.f32 %v24696_v46, %v6841_v23  ;;  %v6842_v19 = vmul.f32 %v24686_v47, %v6819_v13  ;;  %19896 = vmatmul.mubr.msk.bf16.gmra.mrb[52].mxu1 %vm1950_vm3, %v9886_v60  ;;  %v24780_v37 = vld [vmem:[#allocation4 + $0x38] sm:$0xff] }
 0x365   : > { %10538 = vst.msk [vmem:[#allocation4 + $0x48] sm:$0x3] %vm10525_vm14, %v26930_v59  ;;  %v6862_v44 = vadd.f32 %v24696_v46, %v6839_v25  ;;  %v6840_v3 = vmul.f32 %v24686_v47, %v6817_v9  ;;  %19899 = vmatprep.mubr.msk.bf16.mxu1 %vm1950_vm3, %v9895_v28  ;;  %v24795_v38 = vshrl.u32 %v24780_v37, 16  ;;  %v24798_v18 = vshll.u32 %v24780_v37, 16 }
 0x366   : > { %6897 = vst.msk [vmem:[#allocation4 + $0x40] sm:$0xff] %vm6894_vm12, %v6888_v0  ;;  %v24792_v24 = vld [vmem:[#allocation4 + $0x30] sm:$0xff]  ;;  %v6865_v6 = vadd.f32 %v24696_v46, %v6842_v19  ;;  %v6880_v1 = vmax.f32 %v6864_v16, 0.0 }
 0x367   : > { %10537 = vst.msk [vmem:[#allocation4 + $0x40] sm:$0xc0] %vm10527_vm15, %v26930_v59  ;;  %v24804_v56 = vshrl.u32 %v24792_v24, 16  ;;  %v24807_v61 = vshll.u32 %v24792_v24, 16  ;;  %v6863_v20 = vadd.f32 %v24696_v46, %v6840_v3  ;;  %v19617_v17 = vpop.f32.mrb[44].mxu1  ;;  %v10607_v4 = vrot.slane %v24795_v38, 3 }
 0x368   : > { %v10610_v12 = vrot.slane %v24798_v18, 4  ;;  %v6881_v27 = vmax.f32 %v6865_v6, 0.0  ;;  %v6822_v2 = vadd.f32 %v19617_v17, %v24680_v33  ;;  %v6770_v54 = vpop.f32.mrb[45].mxu1  ;;  %v6878_v29 = vmax.f32 %v6862_v44, 0.0  ;;  %v22057_v44 = vld [vmem:[#allocation3 + $0xc0] sm:$0xff] }
 0x369   : > { %v10598_v26 = vrot.slane %v24804_v56, 3  ;;  %v10601_v63 = vrot.slane %v24807_v61, 4  ;;  %v6879_v40 = vmax.f32 %v6863_v20, 0.0  ;;  %v6820_v8 = vadd.f32 %v24680_v33, %v6770_v54  ;;  %v19618_v10 = vpop.f32.mrb[46].mxu1 }
 0x36a   : > { %v10611_v22 = vor.u32 %v10610_v12, %v10607_v4  ;;  %v6891_v53 = vpack.c.bf16 %v6881_v27, %v6880_v1  ;;  %v6845_v60 = vmul.f32 %v24686_v47, %v6822_v2  ;;  %v6823_v15 = vadd.f32 %v19618_v10, %v24680_v33  ;;  %v6773_v28 = vpop.f32.mrb[47].mxu1 }
 0x36b   : > { %v10602_v41 = vor.u32 %v10601_v63, %v10598_v26  ;;  %v6890_v57 = vpack.c.bf16 %v6879_v40, %v6878_v29  ;;  %v6843_v32 = vmul.f32 %v24686_v47, %v6820_v8  ;;  %v6821_v30 = vadd.f32 %v24680_v33, %v6773_v28 }
 0x36c   : > { %6900 = vst.msk [vmem:[#allocation4 + $0x58] sm:$0xff] %vm6894_vm12, %v6891_v53  ;;  %v6868_v58 = vadd.f32 %v24696_v46, %v6845_v60  ;;  %v6846_v34 = vmul.f32 %v24686_v47, %v6823_v15  ;;  %19900 = vmatmul.mubr.msk.bf16.gmra.mrb[56].mxu1 %vm1950_vm3, %v27037_v35  ;;  %v24839_v13 = vld [vmem:[#allocation4 + $0x48] sm:$0xff]  ;;  %v10075_v3 = vrot.slane %v22057_v44, 4  ;;  %v9922_v27 = vsel %vm5245_vm9, %v24750_v62, %v9921_v36  ;;  %v22059_v35 = vld [vmem:[#allocation3 + $0xd0] sm:$0xff] }
 0x36d   : > { %v10603_v21 = vsel %vm5245_vm9, %v24634_v39, %v10602_v41  ;;  %v10612_v23 = vsel %vm5245_vm9, %v10602_v41, %v10611_v22  ;;  %10540 = vst.msk [vmem:[#allocation4 + $0x58] sm:$0xc0] %vm10527_vm15, %v26930_v59  ;;  %v6866_v50 = vadd.f32 %v24696_v46, %v6843_v32  ;;  %v6844_v5 = vmul.f32 %v24686_v47, %v6821_v30  ;;  %v22058_v32 = vld [vmem:[#allocation3 + $0xc8] sm:$0xff] }
 0x36e   : > { %6899 = vst.msk [vmem:[#allocation4 + $0x50] sm:$0xff] %vm6894_vm12, %v6890_v57  ;;  %19903 = vmatprep.mubr.msk.bf16.mxu1 %vm1950_vm3, %v24769_v51  ;;  %19946 = vmatmul.mubr.msk.bf16.vlgmr.msra.gmra.mrb[48].mxu0 %vm6894_vm12, %v10603_v21  ;;  %v24849_v0 = vld [vmem:[#allocation4 + $0x40] sm:$0xff]  ;;  %v24852_v39 = vshrl.u32 %v24839_v13, 16  ;;  %v24855_v25 = vshll.u32 %v24839_v13, 16  ;;  %v6869_v9 = vadd.f32 %v24696_v46, %v6846_v34  ;;  %v10074_v51 = vrot.slane %v24824_v49, 4 }
 0x36f   : > { %10539 = vst.msk [vmem:[#allocation4 + $0x50] sm:$0x3c] %vm10535_vm13, %v26930_v59  ;;  %19949 = vmatprep.mubr.msk.bf16.mxu0 %vm6894_vm12, %v10612_v23  ;;  %19962 = vmatpush3.bf16.msra.mxu0 %v10810_v45  ;;  %v24863_v16 = vshrl.u32 %v24849_v0, 16  ;;  %v24866_v19 = vshll.u32 %v24849_v0, 16  ;;  %v6867_v43 = vadd.f32 %v24696_v46, %v6844_v5  ;;  %v6884_v1 = vmax.f32 %v6868_v58, 0.0 }
 0x370   : > { %v10625_v6 = vrot.slane %v24852_v39, 3  ;;  %v10628_v42 = vrot.slane %v24855_v25, 4  ;;  %19979 = vmatprep.subr.bf16.mxu0 %v24829_v48  ;;  %v6885_v45 = vmax.f32 %v6869_v9, 0.0  ;;  %v6882_v4 = vmax.f32 %v6866_v50, 0.0 }
 0x371   : > { %v10616_v20 = vrot.slane %v24863_v16, 3  ;;  %v10619_v17 = vrot.slane %v24866_v19, 4  ;;  %v6883_v12 = vmax.f32 %v6867_v43, 0.0  ;;  %v11098_v63 = vrot.slane %v24804_v56, 4 }
 0x372   : > { %v10629_v2 = vor.u32 %v10628_v42, %v10625_v6  ;;  %v6893_v54 = vpack.c.bf16 %v6885_v45, %v6884_v1  ;;  %v10076_v40 = vsel %vm5102_vm4, %v10074_v51, %v10075_v3  ;;  %v11099_v8 = vrot.slane %v24807_v61, 5 }
 0x373   : > { %v10620_v26 = vor.u32 %v10619_v17, %v10616_v20  ;;  %v6892_v29 = vpack.c.bf16 %v6883_v12, %v6882_v4  ;;  %v11102_v62 = vrot.slane %v24795_v38, 4  ;;  %v11103_v15 = vrot.slane %v24798_v18, 5 }
 0x374   : > { %6902 = vst.msk [vmem:[#allocation4 + $0x68] sm:$0xff] %vm6894_vm12, %v6893_v54  ;;  %19904 = vmatmul.mubr.msk.bf16.gmra.mrb[60].mxu1 %vm1950_vm3, %v9922_v27  ;;  %v24883_v60 = vld [vmem:[#allocation4 + $0x58] sm:$0xff]  ;;  %v24900_v57 = vor.u32 %v11099_v8, %v11098_v63  ;;  %v10077_v30 = vrot.slane %v22058_v32, 4  ;;  %v10079_v21 = vrot.slane %v22059_v35, 4  ;;  %v11106_v5 = vrot.slane %v24863_v16, 4 }
 0x375   : > { %v10621_v10 = vsel %vm5245_vm9, %v10611_v22, %v10620_v26  ;;  %v10630_v53 = vsel %vm5245_vm9, %v10620_v26, %v10629_v2  ;;  %10542 = vst.msk [vmem:[#allocation4 + $0x68] sm:$0x3c] %vm10535_vm13, %v26930_v59  ;;  %19909 = vmatprep.mubr.msk.bf16.mxu1 %vm1950_vm3, %v10076_v40  ;;  %v24895_v22 = vshrl.u32 %v24883_v60, 16  ;;  %v24898_v41 = vshll.u32 %v24883_v60, 16 }
 0x376   : > { %6901 = vst.msk [vmem:[#allocation4 + $0x60] sm:$0xff] %vm6894_vm12, %v6892_v29  ;;  %19950 = vmatmul.mubr.msk.bf16.gmra.mrb[52].mxu0 %vm6894_vm12, %v10621_v10  ;;  %v24892_v28 = vld [vmem:[#allocation4 + $0x50] sm:$0xff]  ;;  %v11104_v34 = vor.u32 %v11103_v15, %v11102_v62  ;;  %v11107_v6 = vrot.slane %v24866_v19, 5  ;;  %v11110_v42 = vrot.slane %v24852_v39, 4  ;;  %v11111_v45 = vrot.slane %v24855_v25, 5  ;;  %v22060_v15 = vld [vmem:[#allocation3 + $0xd8] sm:$0xff] }
 0x377   : > { %10541 = vst.msk [vmem:[#allocation4 + $0x60] sm:$0x3] %vm10525_vm14, %v26930_v59  ;;  %19953 = vmatprep.mubr.msk.bf16.mxu0 %vm6894_vm12, %v10630_v53  ;;  %v24906_v36 = vshrl.u32 %v24892_v28, 16  ;;  %v24909_v58 = vshll.u32 %v24892_v28, 16  ;;  %v10643_v23 = vrot.slane %v24895_v22, 3  ;;  %v10646_v50 = vrot.slane %v24898_v41, 4 }
 0x378   : > { %v24918_v44 = vsel %vm5453_vm5, %v24900_v57, %v11104_v34  ;;  %v10078_v4 = vsel %vm5102_vm4, %v10075_v3, %v10077_v30  ;;  %v10080_v12 = vsel %vm5102_vm4, %v10077_v30, %v10079_v21  ;;  %v10303_v27 = vsel %vm5102_vm4, %v24737_v31, 0  ;;  %v22061_v30 = vld [vmem:[#allocation3 + $0xe0] sm:$0xff] }
 0x379   : > { %v10634_v9 = vrot.slane %v24906_v36, 3  ;;  %v10637_v51 = vrot.slane %v24909_v58, 4  ;;  %v10647_v43 = vor.u32 %v10646_v50, %v10643_v23  ;;  %v11114_v20 = vrot.slane %v24906_v36, 4 }
 0x37a   : > { %v11115_v17 = vrot.slane %v24909_v58, 5  ;;  %v11108_v54 = vor.u32 %v11107_v6, %v11106_v5  ;;  %v11112_v29 = vor.u32 %v11111_v45, %v11110_v42  ;;  %v11118_v3 = vrot.slane %v24895_v22, 4  ;;  %v22062_v42 = vld [vmem:[#allocation3 + $0xe8] sm:$0xff] }
 0x37b   : > { %v10638_v1 = vor.u32 %v10637_v51, %v10634_v9  ;;  %v11119_v10 = vrot.slane %v24898_v41, 5  ;;  %v11293_v62 = vrot.slane %v24804_v56, 7  ;;  %v10081_v32 = vrot.slane %v22060_v15, 4 }
 0x37c   : > { %19910 = vmatmul.mubr.msk.bf16.vlgmr.msra.gmra.mrb[48].mxu1 %vm1950_vm3, %v10078_v4  ;;  %v11116_v40 = vor.u32 %v11115_v17, %v11114_v20  ;;  %v24942_v53 = vsel %vm5453_vm5, %v11104_v34, %v11108_v54  ;;  %v10083_v35 = vrot.slane %v22061_v30, 4  ;;  %v24946_v5 = vsel %vm5453_vm5, %v11108_v54, %v11112_v29  ;;  %v24948_v9 = vld [vmem:[#allocation4 + $0x68] sm:$0xff]  ;;  %v22063_v54 = vld [vmem:[#allocation3 + $0xf0] sm:$0xff] }
 0x37d   : > { %v10639_v26 = vsel %vm5245_vm9, %v10629_v2, %v10638_v1  ;;  %v10648_v63 = vsel %vm5245_vm9, %v10638_v1, %v10647_v43  ;;  %19913 = vmatprep.mubr.msk.bf16.mxu1 %vm1950_vm3, %v10080_v12  ;;  %19926 = vmatpush3.bf16.msra.mxu1 %v10303_v27  ;;  %v24953_v6 = vor.u32 %v11119_v10, %v11118_v3  ;;  %v10085_v1 = vrot.slane %v22062_v42, 4 }
 0x37e   : > { %19954 = vmatmul.mubr.msk.bf16.gmra.mrb[56].mxu0 %vm6894_vm12, %v10639_v26  ;;  %v24934_v8 = vld [vmem:[#allocation4 + $0x60] sm:$0xf]  ;;  %v24951_v51 = vsel %vm5453_vm5, %v11112_v29, %v11116_v40  ;;  %v24956_v56 = vor.u32 %v11293_v62, %v24807_v61  ;;  %v10082_v45 = vsel %vm5102_vm4, %v10079_v21, %v10081_v32  ;;  %v11301_v17 = vrot.slane %v24795_v38, 7  ;;  %v10558_v21 = vld [vmem:[#allocation2 + $0x30] sm:$0xff] }
 0x37f   : > { %19957 = vmatprep.mubr.msk.bf16.mxu0 %vm6894_vm12, %v10648_v63  ;;  %v10650_v31 = vshrl.u32 %v24934_v8, 16  ;;  %v10653_v2 = vshll.u32 %v24934_v8, 16  ;;  %v24961_v20 = vsel %vm5453_vm5, %v11116_v40, %v24953_v6  ;;  %v11309_v4 = vrot.slane %v24863_v16, 7  ;;  %v24988_v30 = vld [vmem:[#allocation4 + $0x60] sm:$0xff] }
 0x380   : > { %v10084_v12 = vsel %vm5102_vm4, %v10081_v32, %v10083_v35  ;;  %v10087_v26 = vrot.slane %v22063_v54, 4  ;;  %v24969_v61 = vshrl.u32 %v24948_v9, 16  ;;  %v11304_v63 = vor.u32 %v11301_v17, %v24798_v18 }
 0x381   : > { %v10652_v23 = vrot.slane %v10650_v31, 3  ;;  %v10655_v50 = vrot.slane %v10653_v2, 4  ;;  %v11312_v29 = vor.u32 %v11309_v4, %v24866_v19  ;;  %v11317_v40 = vrot.slane %v24852_v39, 7 }
 0x382   : > { %v11325_v3 = vrot.slane %v24906_v36, 7  ;;  %v26858_v10 = vrot.slane %v24895_v22, 7  ;;  %v24981_v31 = vsel %vm5650_vm11, %v11293_v62, %v11304_v63  ;;  %v11349_v62 = vrot.slane %v24969_v61, 7 }
 0x383   : > { %v10656_v34 = vor.u32 %v10655_v50, %v10652_v23  ;;  %v24984_v2 = vsel %vm5650_vm11, %v11301_v17, %v11312_v29  ;;  %v11320_v15 = vor.u32 %v11317_v40, %v24855_v25  ;;  %v10237_v23 = vshll.u32 %v24824_v49, 16  ;;  %v10559_v29 = vld [vmem:[#allocation2 + $0x38] sm:$0xff] }
 0x384   : > { %19914 = vmatmul.mubr.msk.bf16.gmra.mrb[52].mxu1 %vm1950_vm3, %v10082_v45  ;;  %v11328_v32 = vor.u32 %v11325_v3, %v24909_v58  ;;  %v24992_v50 = vshll.u32 %v24948_v9, 16  ;;  %v10086_v42 = vsel %vm5102_vm4, %v10083_v35, %v10085_v1  ;;  %v10088_v45 = vsel %vm5102_vm4, %v10085_v1, %v10087_v26  ;;  %v25019_v1 = vld [vmem:[%s26808_s9 + $0x10] sm:$0xff]  }
 0x385   : > { %v10657_v27 = vsel %vm5245_vm9, %v10647_v43, %v10656_v34  ;;  %19917 = vmatprep.mubr.msk.bf16.mxu1 %vm1950_vm3, %v10084_v12  ;;  %v10234_v43 = vshrl.u32 %v24824_v49, 16  ;;  %v11336_v34 = vor.u32 %v26858_v10, %v24898_v41  ;;  %v25001_v17 = vsel %vm5650_vm11, %v11309_v4, %v11320_v15  ;;  %v10231_v10 = vld [vmem:[#allocation3 + $0xf8] sm:$0x1f] }
 0x386   : > { %19958 = vmatmul.mubr.msk.bf16.gmra.mrb[60].mxu0 %vm6894_vm12, %v10657_v27  ;;  %v25004_v12 = vsel %vm5650_vm11, %v11317_v40, %v11328_v32  ;;  %v25010_v27 = vshll.u32 %v24988_v30, 16  ;;  %v25013_v54 = vor.u32 %v24992_v50, %v11349_v62  ;;  %v11665_v4 = vrot.slane %v24866_v19, 1 }
 0x387   : > { %19963 = vmatprep.mubr.msk.bf16.mxu0 %vm1950_vm3, %v10558_v21  ;;  %v25007_v49 = vsel %vm5650_vm11, %v11325_v3, %v11336_v34  ;;  %v26857_v21 = vrot.slane %v24798_v18, 1  ;;  %v10236_v35 = vrot.slane %v10234_v43, 4  ;;  %v11673_v63 = vrot.slane %v24855_v25, 1  ;;  %v10560_v43 = vld [vmem:[#allocation2 + $0x40] sm:$0xff] }
 0x388   : > { %v10089_v40 = vrot.slane %v24752_v55, 4  ;;  %v10239_v3 = vrot.slane %v10237_v23, 5  ;;  %v11681_v15 = vrot.slane %v24909_v58, 1  ;;  %v25029_v32 = vshrl.u32 %v24988_v30, 16 }
 0x389   : > { %v11661_v25 = vor.u32 %v26857_v21, %v24795_v38  ;;  %v11669_v19 = vor.u32 %v11665_v4, %v24863_v16  ;;  %v11689_v34 = vrot.slane %v24898_v41, 1  ;;  %v11677_v55 = vor.u32 %v11673_v63, %v24852_v39 }
 0x38a   : > { %v11685_v58 = vor.u32 %v11681_v15, %v24906_v36  ;;  %v26856_v23 = vrot.slane %v25010_v27, 1  ;;  %v11705_v62 = vrot.slane %v24992_v50, 1  ;;  %v10923_v21 = vrot.slane %v24612_v52, 4 }
 0x38b   : > { %v25044_v38 = vsel %vm6004_vm10, %v11661_v25, %v11665_v4  ;;  %v25047_v16 = vsel %vm6004_vm10, %v11669_v19, %v11673_v63  ;;  %v25050_v41 = vor.u32 %v11689_v34, %v24895_v22  ;;  %v10240_v4 = vor.u32 %v10239_v3, %v10236_v35  ;;  %v22022_v63 = vld [vmem:[%s26808_s9] sm:$0xff]  }
 0x38c   : > { %19918 = vmatmul.mubr.msk.bf16.gmra.mrb[56].mxu1 %vm1950_vm3, %v10086_v42  ;;  %v25056_v39 = vsel %vm6004_vm10, %v11685_v58, %v11689_v34  ;;  %v11701_v36 = vor.u32 %v26856_v23, %v25029_v32  ;;  %v10090_v42 = vsel %vm5102_vm4, %v10087_v26, %v10089_v40  ;;  %20123 = vmatprep.subr.bf16.mxu1 %v22022_v63  ;;  %v10562_v26 = vld [vmem:[#allocation2 + $0x50] sm:$0xff]  ;;  %v11917_v35 = vrot.slane %v25029_v32, 3  ;;  %v25080_v25 = vld [vmem:[#allocation4 + $0x40] sm:$0xff]  ;;  %v25085_v34 = vld [vmem:[#allocation4 + $0x48] sm:$0xff] }
 0x38d   : > { %19921 = vmatprep.mubr.msk.bf16.mxu1 %vm1950_vm3, %v10088_v45  ;;  %27038 = vst [vmem:[#allocation8_spill] sm:$0xff] %v25050_v41  ;;  %v25063_v45 = vor.u32 %v24969_v61, %v11705_v62  ;;  %v11920_v40 = vrot.slane %v25010_v27, 4  ;;  %v13031_v3 = vrot.slane %v24969_v61, 4  ;;  %27041 = vst [vmem:[#allocation11_spill] sm:$0xff] %v25080_v25  ;;  %v27045_v58 = vld [vmem:[#allocation38_spill] sm:$0xff] }
 0x38e   : > { %19964 = vmatmul.mubr.msk.bf16.vlgmr.msra.gmra.mrb[48].mxu0 %vm1950_vm3, %v10559_v29  ;;  %v25069_v29 = vsel %vm6004_vm10, %v11701_v36, %v11705_v62  ;;  %27043 = vst [vmem:[#allocation29_spill] sm:$0xff] %v25085_v34  ;;  %v10563_v62 = vld [vmem:[#allocation2 + $0x58] sm:$0xff]  ;;  %v25091_v36 = vld [vmem:[#allocation4 + $0x20] sm:$0xf0] }
 0x38f   : > { %19967 = vmatprep.mubr.msk.bf16.mxu0 %vm1950_vm3, %v10560_v43  ;;  %19980 = vmatpush3.bf16.msra.mxu0 %v24829_v48  ;;  %v25053_v48 = vsel %vm6004_vm10, %v11677_v55, %v11681_v15  ;;  %27039 = vst [vmem:[#allocation10_spill] sm:$0xff] %v25063_v45  ;;  %27040 = vst [vmem:[#allocation6_spill] sm:$0xff] %v25069_v29  ;;  %v10244_v15 = vsel %vm5453_vm5, %v10240_v4, %v24285_v11  ;;  %v10561_v43 = vld [vmem:[#allocation2 + $0x48] sm:$0xff]  ;;  %v13032_v11 = vrot.slane %v24992_v50, 5  ;;  %v25087_v55 = vld [vmem:[#allocation4 + $0x50] sm:$0xff] }
 0x390   : > { %19997 = vmatprep.subr.bf16.mxu0 %v25019_v1  ;;  %v25082_v19 = vor.u32 %v11920_v40, %v11917_v35  ;;  %27044 = vst [vmem:[#allocation12_spill] sm:$0xff] %v25087_v55  ;;  %v26863_v35 = vshll.u32 %v25080_v25, 16  ;;  %v26864_v40 = vshrl.u32 %v25085_v34, 16 }
 0x391   : > { %v25095_v4 = vor.u32 %v13032_v11, %v13031_v3  ;;  %v26870_v3 = vshrl.u32 %v25087_v55, 16  ;;  %v26871_v11 = vshll.u32 %v25087_v55, 16  ;;  %v27050_v55 = vld [vmem:[#allocation41_spill] sm:$0xff] }
 0x392   : > { %27042 = vst [vmem:[#allocation16_spill] sm:$0xff] %v25082_v19  ;;  %v12282_v14 = vrot.slane %v26864_v40, 4  ;;  %v27049_v40 = vld [vmem:[#allocation40_spill] sm:$0xff] }
 0x393   : > { %v12287_v23 = vrot.slane %v26871_v11, 5  ;;  %v12295_v11 = vrot.slane %v25010_v27, 5 }
 0x394   : > { %19922 = vmatmul.mubr.msk.bf16.gmra.mrb[60].mxu1 %vm1950_vm3, %v10090_v42  ;;  %v25093_v42 = vld [vmem:[#allocation4 + $0x58] sm:$0xff] }
 0x395   : > { %19927 = vmatprep.mubr.msk.bf16.mxu1 %vm1950_vm3, %v10244_v15  ;;  %v27046_v15 = vld [vmem:[#allocation39_spill] sm:$0xff]  ;;  %v27048_v29 = vshll.u32 %v25093_v42, 16 }
 0x396   : > { %19968 = vmatmul.mubr.msk.bf16.gmra.mrb[52].mxu0 %vm1950_vm3, %v10561_v43  ;;  %v10564_v43 = vld [vmem:[#allocation2 + $0x60] sm:$0xff] }
 0x397   : > { %19971 = vmatprep.mubr.msk.bf16.mxu0 %vm1950_vm3, %v10562_v26  ;;  %v26862_v26 = vshrl.u32 %v25080_v25, 16  ;;  %v12291_v41 = vrot.slane %v27048_v29, 5 }
 0x39c   : > { %19928 = vmatmul.mubr.msk.bf16.vlgmr.msra.gmra.mrb[48].mxu1 %vm1950_vm3, %v27045_v58  ;;  %v26865_v58 = vshll.u32 %v25085_v34, 16 }
 0x39d   : > { %19931 = vmatprep.mubr.msk.bf16.mxu1 %vm1950_vm3, %v27046_v15  ;;  %20124 = vmatpush3.bf16.msra.mxu1 %v22022_v63  ;;  %v10922_v15 = vrot.slane %v25091_v36, 4  ;;  %v12279_v63 = vrot.slane %v26863_v35, 5 }
 0x39e   : > { %19972 = vmatmul.mubr.msk.bf16.gmra.mrb[56].mxu0 %vm1950_vm3, %v10563_v62  ;;  %v12283_v7 = vrot.slane %v26865_v58, 5  ;;  %v12286_v62 = vrot.slane %v26870_v3, 4  ;;  %v10565_v58 = vld [vmem:[#allocation2 + $0x68] sm:$0xff]  ;;  %v12294_v3 = vrot.slane %v25029_v32, 4 }
 0x39f   : > { %19975 = vmatprep.mubr.msk.bf16.mxu0 %vm1950_vm3, %v10564_v43  ;;  %v12278_v43 = vrot.slane %v26862_v26, 4  ;;  %v10924_v19 = vsel %vm5102_vm4, %v10922_v15, %v10923_v21  ;;  %v27047_v26 = vshrl.u32 %v25093_v42, 16  ;;  %v10270_v15 = vshrl.u32 %v10231_v10, 16 }
 0x3a0   : > { %v12284_v34 = vor.u32 %v12283_v7, %v12282_v14  ;;  %v12288_v25 = vor.u32 %v12287_v23, %v12286_v62  ;;  %v25141_v7 = vld [vmem:[%s26810_s11] sm:$0xf]  ;;  %v12296_v29 = vor.u32 %v12295_v11, %v12294_v3 }
 0x3a1   : > { %v25124_v45 = vor.u32 %v12279_v63, %v12278_v43  ;;  %v12290_v35 = vrot.slane %v27047_v26, 4  ;;  %v10273_v26 = vshll.u32 %v10231_v10, 16  ;;  %v12506_v43 = vld [vmem:[#allocation4 + $0x60] sm:$0xf8]  ;;  %21791 = vmatprep.subr.msk.bf16.mxu1 %vm5102_vm4, %v25141_v7 }
 0x3a2   : > { %v25148_v23 = vsel %vm5453_vm5, %v12284_v34, %v12288_v25  ;;  %v27053_v62 = vld [vmem:[#allocation42_spill] sm:$0xff] }
 0x3a3   : > { %v12292_v63 = vor.u32 %v12291_v41, %v12290_v35  ;;  %v25145_v14 = vsel %vm5453_vm5, %v25124_v45, %v12284_v34  ;;  %v12518_v41 = vshrl.u32 %v12506_v43, 16  ;;  %v10927_v34 = vrot.slane %v24780_v37, 4 }
 0x3a4   : > { %19932 = vmatmul.mubr.msk.bf16.gmra.mrb[52].mxu1 %vm1950_vm3, %v27049_v40  ;;  %v25161_v40 = vsel %vm5453_vm5, %v12296_v29, %v25095_v4  ;;  %v10275_v3 = vrot.slane %v10273_v26, 5  ;;  %v10929_v26 = vrot.slane %v24849_v0, 4 }
 0x3a5   : > { %19935 = vmatprep.mubr.msk.bf16.mxu1 %vm1950_vm3, %v27050_v55  ;;  %v10925_v55 = vrot.slane %v24792_v24, 4  ;;  %v25154_v10 = vsel %vm5453_vm5, %v12288_v25, %v12292_v63  ;;  %v25157_v35 = vsel %vm5453_vm5, %v12292_v63, %v12296_v29  ;;  %27052 = vst [vmem:[#allocation15_spill] sm:$0xff] %v25161_v40  ;;  %v22020_v25 = vld [vmem:[%s26808_s9 + $0x18] sm:$0xff]   ;;  %v12531_v29 = vrot.slane %v24992_v50, 4  ;;  %v27054_v40 = vld [vmem:[#allocation44_spill] sm:$0xff] }
 0x3a6   : > { %19976 = vmatmul.mubr.msk.bf16.gmra.mrb[60].mxu0 %vm1950_vm3, %v10565_v58  ;;  %27051 = vst [vmem:[#allocation22_spill] sm:$0xff] %v25157_v35  ;;  %v10272_v58 = vrot.slane %v10270_v15, 4  ;;  %v12528_v35 = vrot.slane %v24969_v61, 3  ;;  %v27055_v61 = vld [vmem:[#allocation43_spill] sm:$0xff] }
 0x3a7   : > { %19981 = vmatprep.mubr.msk.bf16.mxu0 %vm6894_vm12, %v10924_v19  ;;  %v12521_v19 = vshll.u32 %v12506_v43, 16  ;;  %v10926_v11 = vsel %vm5102_vm4, %v10923_v21, %v10925_v55  ;;  %v12520_v43 = vrot.slane %v12518_v41, 3  ;;  %v10928_v21 = vsel %vm5102_vm4, %v10925_v55, %v10927_v34 }
 0x3a8   : > { %v10276_v15 = vor.u32 %v10275_v3, %v10272_v58  ;;  %v10930_v55 = vsel %vm5102_vm4, %v10927_v34, %v10929_v26  ;;  %v11090_v3 = vshll.u32 %v25091_v36, 16 }
 0x3a9   : > { %v12523_v63 = vrot.slane %v12521_v19, 4  ;;  %v25179_v19 = vor.u32 %v12531_v29, %v12528_v35  ;;  %v11087_v35 = vshrl.u32 %v25091_v36, 16 }
 0x3aa   : > { %v10277_v50 = vsel %vm5453_vm5, %v27055_v61, %v10276_v15  ;;  %v10937_v61 = vrot.slane %v24934_v8, 4  ;;  %v11082_v8 = vld [vmem:[#allocation4 + $0x60] sm:$0x1f] }
 0x3ab   : > { %v12524_v41 = vor.u32 %v12523_v63, %v12520_v43  ;;  %v11089_v34 = vrot.slane %v11087_v35, 4  ;;  %v11092_v43 = vrot.slane %v11090_v3, 5  ;;  %v11126_v35 = vshll.u32 %v11082_v8, 16  ;;  %v11274_v3 = vld [vmem:[#allocation4 + $0x28] sm:$0x80] }
 0x3ac   : > { %19936 = vmatmul.mubr.msk.bf16.gmra.mrb[56].mxu1 %vm1950_vm3, %v27053_v62  ;;  %v10935_v62 = vrot.slane %v24883_v60, 4 }
 0x3ad   : > { %19939 = vmatprep.mubr.msk.bf16.mxu1 %vm1950_vm3, %v27054_v40  ;;  %v10931_v40 = vrot.slane %v24839_v13, 4  ;;  %v12533_v58 = vsel %vm5245_vm9, %v12524_v41, %v25179_v19  ;;  %v11093_v36 = vor.u32 %v11092_v43, %v11089_v34 }
 0x3ae   : > { %19982 = vmatmul.mubr.msk.bf16.vlgmr.msra.gmra.mrb[48].mxu0 %vm6894_vm12, %v10926_v11  ;;  %v10933_v11 = vrot.slane %v24892_v28, 4 }
 0x3af   : > { %19985 = vmatprep.mubr.msk.bf16.mxu0 %vm6894_vm12, %v10928_v21  ;;  %19998 = vmatpush3.bf16.msra.mxu0 %v25019_v1  ;;  %v10932_v1 = vsel %vm5102_vm4, %v10929_v26, %v10931_v40  ;;  %v27056_v21 = vshrl.u32 %v24612_v52, 16  ;;  %v27057_v26 = vshll.u32 %v24612_v52, 16 }
 0x3b0   : > { %20015 = vmatprep.subr.bf16.mxu0 %v22020_v25  ;;  %v10934_v63 = vsel %vm5102_vm4, %v10931_v40, %v10933_v11  ;;  %v10936_v29 = vsel %vm5102_vm4, %v10933_v11, %v10935_v62  ;;  %v10938_v40 = vsel %vm5102_vm4, %v10935_v62, %v10937_v61  ;;  %v11128_v62 = vrot.slane %v11126_v35, 5 }
 0x3b1   : > { %v11094_v15 = vrot.slane %v27056_v21, 4  ;;  %v11095_v41 = vrot.slane %v27057_v26, 5 }
 0x3b4   : > { %19940 = vmatmul.mubr.msk.bf16.gmra.mrb[60].mxu1 %vm1950_vm3, %v10277_v50  ;;  %v11096_v50 = vor.u32 %v11095_v41, %v11094_v15 }
 0x3b5   : > { %20125 = vmatprep.mubr.msk.bf16.mxu1 %vm6894_vm12, %v12533_v58  ;;  %v22021_v58 = vld [vmem:[%s26808_s9 + $0x20] sm:$0xff]  }
 0x3b6   : > { %19986 = vmatmul.mubr.msk.bf16.gmra.mrb[52].mxu0 %vm6894_vm12, %v10930_v55  ;;  %v11097_v55 = vsel %vm5453_vm5, %v11093_v36, %v11096_v50  ;;  %v11101_v52 = vsel %vm5453_vm5, %v11096_v50, %v24900_v57  ;;  %v11287_v57 = vshrl.u32 %v11274_v3, 16 }
 0x3b7   : > { %19989 = vmatprep.mubr.msk.bf16.mxu0 %vm6894_vm12, %v10932_v1  ;;  %v11123_v1 = vshrl.u32 %v11082_v8, 16 }
 0x3b9   : > { %v11125_v11 = vrot.slane %v11123_v1, 4  ;;  %v11341_v1 = vrot.slane %v25029_v32, 7 }
 0x3be   : > { %19990 = vmatmul.mubr.msk.bf16.gmra.mrb[56].mxu0 %vm6894_vm12, %v10934_v63 }
 0x3bf   : > { %19993 = vmatprep.mubr.msk.bf16.mxu0 %vm6894_vm12, %v10936_v29 }
 0x3c6   : > { %19994 = vmatmul.mubr.msk.bf16.gmra.mrb[60].mxu0 %vm6894_vm12, %v10938_v40 }
 0x3c7   : > { %19999 = vmatprep.mubr.msk.bf16.mxu0 %vm6894_vm12, %v11097_v55 }
 0x3ce   : > { %20000 = vmatmul.mubr.msk.bf16.vlgmr.msra.gmra.mrb[48].mxu0 %vm6894_vm12, %v11101_v52 }
 0x3cf   : > { %20003 = vmatprep.mubr.msk.bf16.mxu0 %vm6894_vm12, %v24918_v44  ;;  %20016 = vmatpush3.bf16.msra.mxu0 %v22020_v25  ;;  %v11129_v44 = vor.u32 %v11128_v62, %v11125_v11  ;;  %v11289_v25 = vrot.slane %v11287_v57, 7 }
 0x3d0   : > { %20033 = vmatprep.subr.bf16.mxu0 %v22021_v58 }
 0x3d6   : > { %20004 = vmatmul.mubr.msk.bf16.gmra.mrb[52].mxu0 %vm6894_vm12, %v24942_v53  ;;  %v11130_v53 = vsel %vm5453_vm5, %v24953_v6, %v11129_v44 }
 0x3d7   : > { %20007 = vmatprep.mubr.msk.bf16.mxu0 %vm6894_vm12, %v24946_v5  ;;  %v11297_v5 = vsel %vm5650_vm11, %v11289_v25, %v24956_v56 }
 0x3de   : > { %20008 = vmatmul.mubr.msk.bf16.gmra.mrb[56].mxu0 %vm6894_vm12, %v24951_v51  ;;  %v25234_v51 = vld [vmem:[%s26808_s9 + $0x28] sm:$0xff]  }
 0x3df   : > { %20011 = vmatprep.mubr.msk.bf16.mxu0 %vm6894_vm12, %v24961_v20 }
 0x3e6   : > { %20012 = vmatmul.mubr.msk.bf16.gmra.mrb[60].mxu0 %vm6894_vm12, %v11130_v53 }
 0x3e7   : > { %20017 = vmatprep.mubr.msk.bf16.mxu0 %vm6894_vm12, %v11297_v5 }
 0x3eb   : > { %v19767_v34 = vpop.f32.mrb[32].mxu0 }
 0x3ec   : > { %v8619_v20 = vadd.f32 %v19767_v34, %v24680_v33  ;;  %v8531_v43 = vpop.f32.mrb[33].mxu0 }
 0x3ed   : > { %v8617_v6 = vadd.f32 %v24680_v33, %v8531_v43  ;;  %v19768_v56 = vpop.f32.mrb[34].mxu0 }
 0x3ee   : > { %20018 = vmatmul.mubr.msk.bf16.vlgmr.msra.gmra.mrb[48].mxu0 %vm6894_vm12, %v24981_v31  ;;  %v8642_v63 = vmul.f32 %v24686_v47, %v8619_v20  ;;  %v8620_v29 = vadd.f32 %v19768_v56, %v24680_v33  ;;  %v8534_v21 = vpop.f32.mrb[35].mxu0 }
 0x3ef   : > { %20021 = vmatprep.mubr.msk.bf16.mxu0 %vm6894_vm12, %v24984_v2  ;;  %20034 = vmatpush3.bf16.msra.mxu0 %v22021_v58  ;;  %v8640_v15 = vmul.f32 %v24686_v47, %v8617_v6  ;;  %v8618_v26 = vadd.f32 %v24680_v33, %v8534_v21 }
 0x3f0   : > { %20051 = vmatprep.subr.bf16.mxu0 %v25234_v51  ;;  %v8665_v31 = vadd.f32 %v24696_v46, %v8642_v63  ;;  %v8643_v41 = vmul.f32 %v24686_v47, %v8620_v29 }
 0x3f1   : > { %v8663_v36 = vadd.f32 %v24696_v46, %v8640_v15  ;;  %v8641_v2 = vmul.f32 %v24686_v47, %v8618_v26  ;;  %v22064_v15 = vld [vmem:[%s26805_s6] ss:$0 sm:$0xff] }
 0x3f2   : > { %v8666_v61 = vadd.f32 %v24696_v46, %v8643_v41  ;;  %v8681_v40 = vmax.f32 %v8665_v31, 0.0 }
 0x3f3   : > { %v8664_v50 = vadd.f32 %v24696_v46, %v8641_v2  ;;  %v19771_v55 = vpop.f32.mrb[36].mxu0  ;;  %v8679_v35 = vmax.f32 %v8663_v36, 0.0 }
 0x3f4   : > { %v8682_v58 = vmax.f32 %v8666_v61, 0.0  ;;  %v8623_v52 = vadd.f32 %v19771_v55, %v24680_v33  ;;  %v8547_v8 = vpop.f32.mrb[37].mxu0  ;;  %v22065_v55 = vld [vmem:[%s26806_s7] ss:$0 sm:$0xff] }
 0x3f5   : > { %v8680_v3 = vmax.f32 %v8664_v50, 0.0  ;;  %v8621_v11 = vadd.f32 %v24680_v33, %v8547_v8  ;;  %v19772_v62 = vpop.f32.mrb[38].mxu0 }
 0x3f6   : > { %20022 = vmatmul.mubr.msk.bf16.gmra.mrb[52].mxu0 %vm6894_vm12, %v25001_v17  ;;  %v8696_v57 = vpack.c.bf16 %v8682_v58, %v8681_v40  ;;  %v8646_v44 = vmul.f32 %v24686_v47, %v8623_v52  ;;  %v8624_v25 = vadd.f32 %v19772_v62, %v24680_v33  ;;  %v8550_v53 = vpop.f32.mrb[39].mxu0 }
 0x3f7   : > { %20025 = vmatprep.mubr.msk.bf16.mxu0 %vm6894_vm12, %v25004_v12  ;;  %v8695_v5 = vpack.c.bf16 %v8680_v3, %v8679_v35  ;;  %v8644_v17 = vmul.f32 %v24686_v47, %v8621_v11  ;;  %v8622_v34 = vadd.f32 %v24680_v33, %v8550_v53  ;;  %v11344_v12 = vor.u32 %v25010_v27, %v11341_v1 }
 0x3f8   : > { %8704 = vst.msk [vmem:[#allocation4 + $0x78] sm:$0xff] %vm6894_vm12, %v8696_v57  ;;  %v8669_v32 = vadd.f32 %v24696_v46, %v8646_v44  ;;  %v8647_v20 = vmul.f32 %v24686_v47, %v8624_v25 }
 0x3f9   : > { %10544 = vst.msk [vmem:[#allocation4 + $0x78] sm:$0x3] %vm10525_vm14, %v26930_v59  ;;  %v8667_v43 = vadd.f32 %v24696_v46, %v8644_v17  ;;  %v8645_v6 = vmul.f32 %v24686_v47, %v8622_v34  ;;  %v27058_v47 = vrot.slane %v24895_v22, 7  ;;  %v25293_v22 = vld [vmem:[%s26807_s8] ss:$0 sm:$0xff]  ;;  %v11353_v34 = vsel %vm5650_vm11, %v11341_v1, %v25013_v54 }
 0x3fa   : > { %8703 = vst.msk [vmem:[#allocation4 + $0x70] sm:$0xff] %vm6894_vm12, %v8695_v5  ;;  %v8670_v33 = vadd.f32 %v24696_v46, %v8647_v20  ;;  %v8685_v29 = vmax.f32 %v8669_v32, 0.0 }
 0x3fb   : > { %10543 = vst.msk [vmem:[#allocation4 + $0x70] sm:$0xc0] %vm10527_vm15, %v26930_v59  ;;  %v8668_v56 = vadd.f32 %v24696_v46, %v8645_v6  ;;  %v19775_v63 = vpop.f32.mrb[40].mxu0  ;;  %v11345_v41 = vsel %vm5650_vm11, %v27058_v47, %v11344_v12  ;;  %v8683_v36 = vmax.f32 %v8667_v43, 0.0 }
 0x3fc   : > { %v8686_v21 = vmax.f32 %v8670_v33, 0.0  ;;  %v8627_v26 = vadd.f32 %v22064_v15, %v19775_v63  ;;  %v8563_v31 = vpop.f32.mrb[41].mxu0 }
 0x3fd   : > { %v8684_v2 = vmax.f32 %v8668_v56, 0.0  ;;  %v8625_v61 = vadd.f32 %v22064_v15, %v8563_v31  ;;  %v19776_v46 = vpop.f32.mrb[42].mxu0 }
 0x3fe   : > { %20026 = vmatmul.mubr.msk.bf16.gmra.mrb[56].mxu0 %vm6894_vm12, %v25007_v49  ;;  %v8698_v50 = vpack.c.bf16 %v8686_v21, %v8685_v29  ;;  %v8650_v40 = vmul.f32 %v22065_v55, %v8627_v26  ;;  %v8628_v58 = vadd.f32 %v22064_v15, %v19776_v46  ;;  %v8566_v52 = vpop.f32.mrb[43].mxu0 }
 0x3ff   : > { %20029 = vmatprep.mubr.msk.bf16.mxu0 %vm6894_vm12, %v11345_v41  ;;  %v8697_v49 = vpack.c.bf16 %v8684_v2, %v8683_v36  ;;  %v8648_v8 = vmul.f32 %v22065_v55, %v8625_v61  ;;  %v8626_v35 = vadd.f32 %v22064_v15, %v8566_v52 }
 0x400   : > { %8706 = vst.msk [vmem:[#allocation4 + $0x88] sm:$0xff] %vm6894_vm12, %v8698_v50  ;;  %v8673_v3 = vadd.f32 %v25293_v22, %v8650_v40  ;;  %v8651_v11 = vmul.f32 %v22065_v55, %v8628_v58  ;;  %v25296_v62 = vld [vmem:[#allocation4 + $0x78] sm:$0xff] }
 0x401   : > { %10546 = vst.msk [vmem:[#allocation4 + $0x88] sm:$0xc0] %vm10527_vm15, %v26930_v59  ;;  %v8671_v57 = vadd.f32 %v25293_v22, %v8648_v8  ;;  %v8649_v44 = vmul.f32 %v22065_v55, %v8626_v35  ;;  %v25305_v53 = vshrl.u32 %v25296_v62, 16  ;;  %v25308_v5 = vshll.u32 %v25296_v62, 16  ;;  %v25336_v35 = vld [vmem:[%s26808_s9 + $0x8] sm:$0xff]  }
 0x402   : > { %8705 = vst.msk [vmem:[#allocation4 + $0x80] sm:$0xff] %vm6894_vm12, %v8697_v49  ;;  %v25302_v25 = vld [vmem:[#allocation4 + $0x70] sm:$0xff]  ;;  %v8674_v17 = vadd.f32 %v25293_v22, %v8651_v11  ;;  %v8689_v12 = vmax.f32 %v8673_v3, 0.0  ;;  %v12749_v8 = vsel %vm5102_vm4, %v25141_v7, 0 }
 0x403   : > { %10545 = vst.msk [vmem:[#allocation4 + $0x80] sm:$0x3c] %vm10535_vm13, %v26930_v59  ;;  %v25316_v32 = vshrl.u32 %v25302_v25, 16  ;;  %v25319_v20 = vshll.u32 %v25302_v25, 16  ;;  %v8672_v43 = vadd.f32 %v25293_v22, %v8649_v44  ;;  %v19779_v6 = vpop.f32.mrb[44].mxu0  ;;  %v12546_v33 = vrot.slane %v25305_v53, 3 }
 0x404   : > { %v12549_v56 = vrot.slane %v25308_v5, 4  ;;  %v8690_v63 = vmax.f32 %v8674_v17, 0.0  ;;  %v8631_v29 = vadd.f32 %v22064_v15, %v19779_v6  ;;  %v8579_v21 = vpop.f32.mrb[45].mxu0  ;;  %v8687_v26 = vmax.f32 %v8671_v57, 0.0 }
 0x405   : > { %v12537_v54 = vrot.slane %v25316_v32, 3  ;;  %v12540_v1 = vrot.slane %v25319_v20, 4  ;;  %v8688_v31 = vmax.f32 %v8672_v43, 0.0  ;;  %v8629_v47 = vadd.f32 %v22064_v15, %v8579_v21  ;;  %v19780_v41 = vpop.f32.mrb[46].mxu0 }
 0x406   : > { %20030 = vmatmul.mubr.msk.bf16.gmra.mrb[60].mxu0 %vm6894_vm12, %v11353_v34  ;;  %v12550_v36 = vor.u32 %v12549_v56, %v12546_v33  ;;  %v8700_v2 = vpack.c.bf16 %v8690_v63, %v8689_v12  ;;  %v8654_v61 = vmul.f32 %v22065_v55, %v8631_v29  ;;  %v8632_v46 = vadd.f32 %v22064_v15, %v19780_v41  ;;  %v8582_v50 = vpop.f32.mrb[47].mxu0  ;;  %v25376_v33 = vld [vmem:[%s26808_s9 + $0x30] sm:$0xff]  }
 0x407   : > { %20035 = vmatprep.mubr.msk.bf16.mxu0 %vm6894_vm12, %v24792_v24  ;;  %v25329_v40 = vor.u32 %v12540_v1, %v12537_v54  ;;  %v8699_v58 = vpack.c.bf16 %v8688_v31, %v8687_v26  ;;  %v8652_v52 = vmul.f32 %v22065_v55, %v8629_v47  ;;  %v8630_v49 = vadd.f32 %v22064_v15, %v8582_v50 }
 0x408   : > { %8708 = vst.msk [vmem:[#allocation4 + $0x98] sm:$0xff] %vm6894_vm12, %v8700_v2  ;;  %v8677_v24 = vadd.f32 %v25293_v22, %v8654_v61  ;;  %v8655_v3 = vmul.f32 %v22065_v55, %v8632_v46  ;;  %v25347_v57 = vld [vmem:[#allocation4 + $0x88] sm:$0xff] }
 0x409   : > { %v25343_v11 = vsel %vm5245_vm9, %v25179_v19, %v25329_v40  ;;  %v12551_v15 = vsel %vm5245_vm9, %v25329_v40, %v12550_v36  ;;  %10548 = vst.msk [vmem:[#allocation4 + $0x98] sm:$0x3c] %vm10535_vm13, %v26930_v59  ;;  %v8675_v7 = vadd.f32 %v25293_v22, %v8652_v52  ;;  %v8653_v44 = vmul.f32 %v22065_v55, %v8630_v49 }
 0x40a   : > { %8707 = vst.msk [vmem:[#allocation4 + $0x90] sm:$0xff] %vm6894_vm12, %v8699_v58  ;;  %20126 = vmatmul.mubr.msk.bf16.vlgmr.msra.gmra.mrb[64].mxu1 %vm6894_vm12, %v25343_v11  ;;  %v25355_v17 = vld [vmem:[#allocation4 + $0x80] sm:$0xff]  ;;  %v25358_v34 = vshrl.u32 %v25347_v57, 16  ;;  %v25361_v12 = vshll.u32 %v25347_v57, 16  ;;  %v8678_v43 = vadd.f32 %v25293_v22, %v8655_v3  ;;  %v8693_v21 = vmax.f32 %v8677_v24, 0.0 }
 0x40b   : > { %10547 = vst.msk [vmem:[#allocation4 + $0x90] sm:$0x3] %vm10525_vm14, %v26930_v59  ;;  %20129 = vmatprep.mubr.msk.bf16.mxu1 %vm6894_vm12, %v12551_v15  ;;  %v25368_v55 = vshrl.u32 %v25355_v17, 16  ;;  %v25371_v6 = vshll.u32 %v25355_v17, 16  ;;  %20142 = vmatpush3.bf16.msra.mxu1 %v12749_v8  ;;  %v8676_v56 = vadd.f32 %v25293_v22, %v8653_v44  ;;  %v8691_v31 = vmax.f32 %v8675_v7, 0.0  ;;  %v11635_v44 = vld [vmem:[#allocation4 + $0x30] sm:$0xff] }
 0x40c   : > { %v12564_v63 = vrot.slane %v25358_v34, 3  ;;  %v12567_v29 = vrot.slane %v25361_v12, 4  ;;  %20159 = vmatprep.subr.bf16.mxu1 %v25336_v35  ;;  %v8694_v54 = vmax.f32 %v8678_v43, 0.0  ;;  %v13035_v24 = vrot.slane %v25316_v32, 4 }
 0x40d   : > { %v12555_v1 = vrot.slane %v25368_v55, 3  ;;  %v12558_v26 = vrot.slane %v25371_v6, 4  ;;  %v8692_v47 = vmax.f32 %v8676_v56, 0.0  ;;  %v13036_v3 = vrot.slane %v25319_v20, 5 }
 0x40e   : > { %20036 = vmatmul.mubr.msk.bf16.vlgmr.msra.gmra.mrb[48].mxu0 %vm6894_vm12, %v24780_v37  ;;  %v12568_v22 = vor.u32 %v12567_v29, %v12564_v63  ;;  %v8702_v41 = vpack.c.bf16 %v8694_v54, %v8693_v21  ;;  %v13039_v63 = vrot.slane %v25305_v53, 4  ;;  %v13040_v21 = vrot.slane %v25308_v5, 5 }
 0x40f   : > { %20039 = vmatprep.mubr.msk.bf16.mxu0 %vm6894_vm12, %v24849_v0  ;;  %20052 = vmatpush3.bf16.msra.mxu0 %v25234_v51  ;;  %v12559_v2 = vor.u32 %v12558_v26, %v12555_v1  ;;  %v8701_v61 = vpack.c.bf16 %v8692_v47, %v8691_v31  ;;  %v25426_v56 = vor.u32 %v13036_v3, %v13035_v24  ;;  %v13043_v54 = vrot.slane %v25368_v55, 4 }
 0x410   : > { %20069 = vmatprep.subr.bf16.mxu0 %v25376_v33  ;;  %8710 = vst.msk [vmem:[#allocation4 + $0xa8] sm:$0xff] %vm6894_vm12, %v8702_v41  ;;  %v25393_v50 = vld [vmem:[#allocation4 + $0x98] sm:$0xff]  ;;  %v11650_v1 = vshll.u32 %v11635_v44, 16  ;;  %v13048_v31 = vrot.slane %v25361_v12, 5 }
 0x411   : > { %v12560_v37 = vsel %vm5245_vm9, %v12550_v36, %v12559_v2  ;;  %v12569_v46 = vsel %vm5245_vm9, %v12559_v2, %v12568_v22  ;;  %10550 = vst.msk [vmem:[#allocation4 + $0xa8] sm:$0x3] %vm10525_vm14, %v26930_v59  ;;  %v25402_v51 = vshrl.u32 %v25393_v50, 16  ;;  %v25405_v58 = vshll.u32 %v25393_v50, 16  ;;  %27060 = vst [vmem:[#allocation18_spill] sm:$0xff] %v25426_v56 }
 0x412   : > { %8709 = vst.msk [vmem:[#allocation4 + $0xa0] sm:$0xff] %vm6894_vm12, %v8701_v61  ;;  %20130 = vmatmul.mubr.msk.bf16.gmra.mrb[68].mxu1 %vm6894_vm12, %v12560_v37  ;;  %v25399_v0 = vld [vmem:[#allocation4 + $0x90] sm:$0xff]  ;;  %v25435_v26 = vsel %vm5453_vm5, %v25095_v4, %v25426_v56  ;;  %v13041_v61 = vor.u32 %v13040_v21, %v13039_v63 }
 0x413   : > { %27059 = vst [vmem:[#allocation13_spill] sm:$0xff] %v25402_v51  ;;  %10549 = vst.msk [vmem:[#allocation4 + $0xa0] sm:$0xc0] %vm10527_vm15, %v26930_v59  ;;  %20133 = vmatprep.mubr.msk.bf16.mxu1 %vm6894_vm12, %v12569_v46  ;;  %v25411_v36 = vshrl.u32 %v25399_v0, 16  ;;  %v25414_v52 = vshll.u32 %v25399_v0, 16  ;;  %v12582_v49 = vrot.slane %v25402_v51, 3 }
 0x414   : > { %v12585_v8 = vrot.slane %v25405_v58, 4 }
 0x415   : > { %v12573_v15 = vrot.slane %v25411_v36, 3  ;;  %v12576_v7 = vrot.slane %v25414_v52, 4  ;;  %v13051_v3 = vrot.slane %v25411_v36, 4  ;;  %v13052_v63 = vrot.slane %v25414_v52, 5 }
 0x416   : > { %20040 = vmatmul.mubr.msk.bf16.gmra.mrb[52].mxu0 %vm6894_vm12, %v24839_v13  ;;  %v12586_v43 = vor.u32 %v12585_v8, %v12582_v49  ;;  %v13044_v13 = vrot.slane %v25371_v6, 5  ;;  %v25449_v8 = vsel %vm5453_vm5, %v25426_v56, %v13041_v61  ;;  %v12504_v56 = vld [vmem:[#allocation2 + $0xa8] sm:$0xff] }
 0x417   : > { %20043 = vmatprep.mubr.msk.bf16.mxu0 %vm6894_vm12, %v24892_v28  ;;  %v12577_v29 = vor.u32 %v12576_v7, %v12573_v15  ;;  %v13047_v28 = vrot.slane %v25358_v34, 4 }
 0x418   : > { %v13045_v37 = vor.u32 %v13044_v13, %v13043_v54  ;;  %v13055_v54 = vrot.slane %v25402_v51, 4  ;;  %v13056_v13 = vrot.slane %v25405_v58, 5 }
 0x419   : > { %v12578_v47 = vsel %vm5245_vm9, %v12568_v22, %v12577_v29  ;;  %v12587_v41 = vsel %vm5245_vm9, %v12577_v29, %v12586_v43  ;;  %v25441_v2 = vld [vmem:[#allocation4 + $0xa0] sm:$0xf]  ;;  %v13049_v24 = vor.u32 %v13048_v31, %v13047_v28  ;;  %v11652_v29 = vrot.slane %v11650_v1, 1 }
 0x41a   : > { %20134 = vmatmul.mubr.msk.bf16.gmra.mrb[72].mxu1 %vm6894_vm12, %v12578_v47  ;;  %v12589_v46 = vshrl.u32 %v25441_v2, 16  ;;  %v12592_v49 = vshll.u32 %v25441_v2, 16  ;;  %v25452_v22 = vsel %vm5453_vm5, %v13041_v61, %v13045_v37  ;;  %v13053_v31 = vor.u32 %v13052_v63, %v13051_v3 }
 0x41b   : > { %20137 = vmatprep.mubr.msk.bf16.mxu1 %vm6894_vm12, %v12587_v41  ;;  %v25459_v21 = vsel %vm5453_vm5, %v13045_v37, %v13049_v24  ;;  %v13229_v47 = vrot.slane %v25316_v32, 7  ;;  %v11648_v41 = vshrl.u32 %v11635_v44, 16  ;;  %v25466_v61 = vor.u32 %v13056_v13, %v13055_v54  ;;  %v25525_v54 = vld [vmem:[%s26808_s9 + $0x38] sm:$0xff]   ;;  %v12500_v13 = vld [vmem:[#allocation2 + $0x88] sm:$0xff] }
 0x41c   : > { %v12591_v15 = vrot.slane %v12589_v46, 3  ;;  %v12594_v7 = vrot.slane %v12592_v49, 4  ;;  %v25471_v37 = vsel %vm5453_vm5, %v13049_v24, %v13053_v31  ;;  %v13245_v44 = vrot.slane %v25368_v55, 7 }
 0x41d   : > { %v25474_v46 = vor.u32 %v13229_v47, %v25319_v20  ;;  %v11653_v49 = vor.u32 %v11652_v29, %v11648_v41  ;;  %v13261_v24 = vrot.slane %v25411_v36, 7  ;;  %v12498_v29 = vld [vmem:[#allocation2 + $0x78] sm:$0xff] }
 0x41e   : > { %20044 = vmatmul.mubr.msk.bf16.gmra.mrb[56].mxu0 %vm6894_vm12, %v24883_v60  ;;  %v12595_v28 = vor.u32 %v12594_v7, %v12591_v15  ;;  %v13237_v60 = vrot.slane %v25305_v53, 7  ;;  %v12497_v53 = vld [vmem:[#allocation2 + $0x70] sm:$0xff]  ;;  %v13248_v3 = vor.u32 %v13245_v44, %v25371_v6  ;;  %v26874_v15 = vrot.slane %v25402_v51, 7 }
 0x41f   : > { %20047 = vmatprep.mubr.msk.bf16.mxu0 %vm6894_vm12, %v24988_v30  ;;  %v25478_v30 = vsel %vm5453_vm5, %v13053_v31, %v25466_v61  ;;  %v13264_v55 = vor.u32 %v13261_v24, %v25414_v52  ;;  %v13219_v31 = vld [vmem:[#allocation4 + $0xa8] sm:$0xff] }
 0x420   : > { %v12596_v1 = vsel %vm5245_vm9, %v12586_v43, %v12595_v28  ;;  %v13240_v32 = vor.u32 %v13237_v60, %v25308_v5  ;;  %v13253_v43 = vrot.slane %v25358_v34, 7  ;;  %v27061_v34 = vrot.slane %v24798_v18, 1  ;;  %v25517_v18 = vld [vmem:[%s26808_s9 + $0x10] sm:$0xff]   ;;  %v25535_v28 = vld [vmem:[#allocation4 + $0xa0] sm:$0xff] }
 0x421   : > { %v25499_v7 = vsel %vm5650_vm11, %v13237_v60, %v13248_v3  ;;  %v13272_v6 = vor.u32 %v26874_v15, %v25405_v58  ;;  %v12499_v58 = vld [vmem:[#allocation2 + $0x80] sm:$0xff]  ;;  %27063 = vst [vmem:[#allocation7_spill] sm:$0xff] %v25535_v28  ;;  %v25550_v41 = vshll.u32 %v13219_v31, 16 }
 0x422   : > { %20138 = vmatmul.mubr.msk.bf16.gmra.mrb[76].mxu1 %vm6894_vm12, %v12596_v1  ;;  %v25487_v20 = vsel %vm5650_vm11, %v13229_v47, %v13240_v32  ;;  %v13256_v5 = vor.u32 %v13253_v43, %v25361_v12  ;;  %v11658_v36 = vsel %vm6004_vm10, %v11653_v49, %v27061_v34  ;;  %v25509_v52 = vsel %vm5650_vm11, %v13253_v43, %v13264_v55  ;;  %v25552_v60 = vld [vmem:[#allocation4 + $0x60] sm:$0xf0]  ;;  %v11643_v1 = vld [vmem:[#allocation4 + $0x70] sm:$0x1]  ;;  %v12502_v49 = vld [vmem:[#allocation2 + $0x98] sm:$0xff] }
 0x423   : > { %20143 = vmatprep.mubr.msk.bf16.mxu1 %vm1950_vm3, %v12497_v53  ;;  %v25512_v63 = vsel %vm5650_vm11, %v13261_v24, %v13272_v6  ;;  %v25548_v47 = vshrl.u32 %v13219_v31, 16  ;;  %27064 = vst [vmem:[#allocation14_spill] sm:$0xff] %v25550_v41  ;;  %v12503_v43 = vld [vmem:[#allocation2 + $0xa0] sm:$0xff]  ;;  %v25559_v24 = vrot.slane %v24948_v9, 4  ;;  %v11711_v55 = vshll.u32 %v11643_v1, 16  ;;  %v27065_v34 = vld [vmem:[#allocation11_spill] sm:$0xff] }
 0x424   : > { %v25506_v12 = vsel %vm5650_vm11, %v13245_v44, %v13256_v5  ;;  %27062 = vst [vmem:[#allocation20_spill] sm:$0xff] %v25512_v63  ;;  %v13862_v5 = vrot.slane %v25550_v41, 4  ;;  %v27069_v31 = vrot.slane %v25010_v27, 1 }
 0x425   : > { %v13859_v3 = vrot.slane %v25548_v47, 3 }
 0x426   : > { %20048 = vmatmul.mubr.msk.bf16.gmra.mrb[60].mxu0 %vm6894_vm12, %v24948_v9  ;;  %v27070_v9 = vld [vmem:[#allocation8_spill] sm:$0xff] }
 0x427   : > { %20053 = vmatprep.mubr.msk.bf16.mxu0 %vm6894_vm12, %v11658_v36  ;;  %v27066_v36 = vshrl.u32 %v27065_v34, 16  ;;  %v25574_v15 = vor.u32 %v13862_v5, %v13859_v3 }
 0x429   : > { %v11881_v6 = vrot.slane %v27066_v36, 3  ;;  %v14962_v36 = vrot.slane %v25548_v47, 4 }
 0x42a   : > { %20144 = vmatmul.mubr.msk.bf16.vlgmr.msra.gmra.mrb[64].mxu1 %vm1950_vm3, %v12498_v29  ;;  %v27067_v29 = vshll.u32 %v27065_v34, 16  ;;  %v27071_v34 = vld [vmem:[#allocation6_spill] sm:$0xff] }
 0x42b   : > { %20147 = vmatprep.mubr.msk.bf16.mxu1 %vm1950_vm3, %v12499_v58  ;;  %20160 = vmatpush3.bf16.msra.mxu1 %v25336_v35  ;;  %v12501_v35 = vld [vmem:[#allocation2 + $0x90] sm:$0xff] }
 0x42c   : > { %20177 = vmatprep.subr.bf16.mxu1 %v25517_v18  ;;  %v11884_v58 = vrot.slane %v27067_v29, 4 }
 0x42e   : > { %20054 = vmatmul.mubr.msk.bf16.vlgmr.msra.gmra.mrb[48].mxu0 %vm6894_vm12, %v25044_v38  ;;  %v25541_v38 = vshrl.u32 %v25535_v28, 16  ;;  %v11885_v5 = vor.u32 %v11884_v58, %v11881_v6 }
 0x42f   : > { %20057 = vmatprep.mubr.msk.bf16.mxu0 %vm6894_vm12, %v25047_v16  ;;  %20070 = vmatpush3.bf16.msra.mxu0 %v25376_v33  ;;  %v25544_v16 = vshll.u32 %v25535_v28, 16  ;;  %v11858_v33 = vld [vmem:[#allocation4 + $0x38] sm:$0xf8]  ;;  %v13574_v28 = vld [vmem:[#allocation4 + $0x90] sm:$0xff] }
 0x430   : > { %20087 = vmatprep.subr.bf16.mxu0 %v25525_v54  ;;  %v11871_v32 = vshrl.u32 %v11858_v33, 16  ;;  %v13850_v44 = vrot.slane %v25541_v38, 3 }
 0x431   : > { %v13853_v53 = vrot.slane %v25544_v16, 4 }
 0x432   : > { %20148 = vmatmul.mubr.msk.bf16.gmra.mrb[68].mxu1 %vm1950_vm3, %v12500_v13  ;;  %v13572_v13 = vld [vmem:[#allocation4 + $0x80] sm:$0xff]  ;;  %v11873_v1 = vrot.slane %v11871_v32, 3  ;;  %v14963_v32 = vrot.slane %v25550_v41, 5 }
 0x433   : > { %20151 = vmatprep.mubr.msk.bf16.mxu1 %vm1950_vm3, %v12501_v35  ;;  %v25568_v35 = vor.u32 %v13853_v53, %v13850_v44  ;;  %v25582_v27 = vshrl.u32 %v13572_v13, 16  ;;  %v13575_v53 = vld [vmem:[#allocation4 + $0x98] sm:$0xff]  ;;  %v25590_v29 = vshll.u32 %v13572_v13, 16  ;;  %v27081_v13 = vld [vmem:[#allocation12_spill] sm:$0xff] }
 0x434   : > { %v25604_v41 = vshll.u32 %v13575_v53, 16 }
 0x435   : > { %27068 = vst [vmem:[#allocation21_spill] sm:$0xff] %v25568_v35  ;;  %27072 = vst [vmem:[#allocation19_spill] sm:$0xff] %v25582_v27  ;;  %v25587_v3 = vsel %vm5245_vm9, %v25568_v35, %v25574_v15  ;;  %v27078_v35 = vld [vmem:[#allocation29_spill] sm:$0xff] }
 0x436   : > { %20058 = vmatmul.mubr.msk.bf16.gmra.mrb[52].mxu0 %vm6894_vm12, %v25053_v48  ;;  %v11874_v48 = vshll.u32 %v11858_v33, 16  ;;  %v11698_v33 = vsel %vm6004_vm10, %v27070_v9, %v27069_v31  ;;  %27073 = vst [vmem:[#allocation9_spill] sm:$0xff] %v25587_v3  ;;  %v27079_v3 = vshrl.u32 %v27078_v35, 16  ;;  %v27080_v6 = vshll.u32 %v27078_v35, 16 }
 0x437   : > { %20061 = vmatprep.mubr.msk.bf16.mxu0 %vm6894_vm12, %v25056_v39  ;;  %v12860_v39 = vrot.slane %v25552_v60, 4 }
 0x438   : > { %v11890_v51 = vrot.slane %v27079_v3, 3  ;;  %v11893_v58 = vrot.slane %v27080_v6, 4  ;;  %v25623_v6 = vrot.slane %v25302_v25, 4 }
 0x439   : > { %v12862_v44 = vsel %vm5102_vm4, %v12860_v39, %v25559_v24  ;;  %v25598_v39 = vshrl.u32 %v13574_v28, 16 }
 0x43a   : > { %20152 = vmatmul.mubr.msk.bf16.gmra.mrb[72].mxu1 %vm1950_vm3, %v12502_v49  ;;  %v13573_v49 = vld [vmem:[#allocation4 + $0x88] sm:$0xff] }
 0x43b   : > { %20155 = vmatprep.mubr.msk.bf16.mxu1 %vm1950_vm3, %v12503_v43  ;;  %v11876_v43 = vrot.slane %v11874_v48, 4  ;;  %v11713_v48 = vrot.slane %v11711_v55, 1  ;;  %v25592_v31 = vshrl.u32 %v13573_v49, 16  ;;  %v25594_v9 = vshll.u32 %v13573_v49, 16  ;;  %27077 = vst [vmem:[#allocation23_spill] sm:$0xff] %v25598_v39 }
 0x43c   : > { %v25606_v55 = vshrl.u32 %v13575_v53, 16  ;;  %v27082_v49 = vshrl.u32 %v27081_v13, 16 }
 0x43d   : > { %27074 = vst [vmem:[#allocation17_spill] sm:$0xff] %v25592_v31  ;;  %27075 = vst [vmem:[#allocation27_spill] sm:$0xff] %v25594_v9  ;;  %v11877_v63 = vor.u32 %v11876_v43, %v11873_v1  ;;  %v14209_v1 = vrot.slane %v25582_v27, 4  ;;  %v27084_v43 = vld [vmem:[#allocation10_spill] sm:$0xff]  ;;  %v14213_v35 = vrot.slane %v25592_v31, 4 }
 0x43e   : > { %20062 = vmatmul.mubr.msk.bf16.gmra.mrb[56].mxu0 %vm6894_vm12, %v11698_v33  ;;  %v25596_v33 = vshll.u32 %v13574_v28, 16  ;;  %v11899_v28 = vrot.slane %v27082_v49, 3  ;;  %v11714_v3 = vsel %vm6004_vm10, %v27084_v43, %v11713_v48  ;;  %v14214_v49 = vrot.slane %v25594_v9, 5 }
 0x43f   : > { %20065 = vmatprep.mubr.msk.bf16.mxu0 %vm6894_vm12, %v27071_v34  ;;  %v25600_v34 = vor.u32 %v14963_v32, %v14962_v36  ;;  %v27083_v36 = vshll.u32 %v27081_v13, 16  ;;  %v11886_v53 = vsel %vm5245_vm9, %v11877_v63, %v11885_v5  ;;  %v14217_v13 = vrot.slane %v25598_v39, 4 }
 0x440   : > { %27076 = vst [vmem:[#allocation30_spill] sm:$0xff] %v25596_v33  ;;  %v14221_v63 = vrot.slane %v25606_v55, 4  ;;  %v14222_v43 = vrot.slane %v25604_v41, 5  ;;  %v14215_v25 = vor.u32 %v14214_v49, %v14213_v35  ;;  %v14225_v9 = vrot.slane %v25541_v38, 4 }
 0x441   : > { %v11902_v32 = vrot.slane %v27083_v36, 4  ;;  %v14218_v36 = vrot.slane %v25596_v33, 5  ;;  %v14226_v39 = vrot.slane %v25544_v16, 5  ;;  %v11894_v33 = vor.u32 %v11893_v58, %v11890_v51 }
 0x442   : > { %20156 = vmatmul.mubr.msk.bf16.gmra.mrb[76].mxu1 %vm1950_vm3, %v12504_v56  ;;  %v14210_v56 = vrot.slane %v25590_v29, 5  ;;  %v14223_v27 = vor.u32 %v14222_v43, %v14221_v63 }
 0x443   : > { %20161 = vmatprep.mubr.msk.bf16.mxu1 %vm6894_vm12, %v12862_v44  ;;  %v12865_v44 = vrot.slane %v25296_v62, 4  ;;  %v14219_v31 = vor.u32 %v14218_v36, %v14217_v13  ;;  %v25640_v62 = vld [vmem:[%s26808_s9 + $0x18] sm:$0xff]   ;;  %v11903_v35 = vor.u32 %v11902_v32, %v11899_v28  ;;  %v27086_v28 = vshrl.u32 %v25093_v42, 16 }
 0x444   : > { %v25630_v48 = vor.u32 %v14210_v56, %v14209_v1  ;;  %v25652_v56 = vsel %vm5102_vm4, %v25559_v24, %v25623_v6  ;;  %v12867_v36 = vrot.slane %v25355_v17, 4  ;;  %v27088_v17 = vld [vmem:[#allocation16_spill] sm:$0xff] }
 0x445   : > { %v25655_v51 = vsel %vm5453_vm5, %v14219_v31, %v14223_v27  ;;  %v12866_v58 = vsel %vm5102_vm4, %v25623_v6, %v12865_v44  ;;  %v11908_v32 = vrot.slane %v27086_v28, 3 }
 0x446   : > { %20066 = vmatmul.mubr.msk.bf16.gmra.mrb[60].mxu0 %vm6894_vm12, %v11714_v3  ;;  %v25644_v1 = vsel %vm5453_vm5, %v25630_v48, %v14215_v25  ;;  %v25647_v3 = vsel %vm5453_vm5, %v14215_v25, %v14219_v31  ;;  %v25697_v25 = vld [vmem:[#allocation4 + $0x78] sm:$0xf] }
 0x447   : > { %20071 = vmatprep.mubr.msk.bf16.mxu0 %vm6894_vm12, %v11886_v53  ;;  %v14227_v53 = vor.u32 %v14226_v39, %v14225_v9  ;;  %v25669_v9 = vld [vmem:[%s26808_s9 + $0x40] sm:$0xff]   ;;  %v11895_v39 = vsel %vm5245_vm9, %v11885_v5, %v11894_v33  ;;  %v12869_v5 = vrot.slane %v25347_v57, 4  ;;  %v12871_v57 = vrot.slane %v25399_v0, 4 }
 0x449   : > { %v25662_v49 = vsel %vm5453_vm5, %v14223_v27, %v14227_v53  ;;  %v25673_v31 = vsel %vm5453_vm5, %v14227_v53, %v25600_v34  ;;  %v27087_v27 = vshll.u32 %v25093_v42, 16  ;;  %v12868_v42 = vsel %vm5102_vm4, %v12865_v44, %v12867_v36 }
 0x44a   : > { %20162 = vmatmul.mubr.msk.bf16.vlgmr.msra.gmra.mrb[64].mxu1 %vm6894_vm12, %v25652_v56  ;;  %27085 = vst [vmem:[#allocation24_spill] sm:$0xff] %v25673_v31  ;;  %v12870_v43 = vsel %vm5102_vm4, %v12867_v36, %v12869_v5  ;;  %v12873_v44 = vrot.slane %v25393_v50, 4  ;;  %v13024_v53 = vshrl.u32 %v25552_v60, 16  ;;  %v12872_v28 = vsel %vm5102_vm4, %v12869_v5, %v12871_v57 }
 0x44b   : > { %20165 = vmatprep.mubr.msk.bf16.mxu1 %vm6894_vm12, %v12866_v58  ;;  %20178 = vmatpush3.bf16.msra.mxu1 %v25517_v18  ;;  %v11911_v13 = vrot.slane %v27087_v27, 4  ;;  %v11904_v18 = vsel %vm5245_vm9, %v11894_v33, %v11903_v35  ;;  %v13027_v58 = vshll.u32 %v25552_v60, 16  ;;  %v11931_v50 = vsel %vm5245_vm9, %v27088_v17, %v25179_v19 }
 0x44c   : > { %20195 = vmatprep.subr.bf16.mxu1 %v25640_v62  ;;  %v12874_v0 = vsel %vm5102_vm4, %v12871_v57, %v12873_v44 }
 0x44d   : > { %v11912_v63 = vor.u32 %v11911_v13, %v11908_v32  ;;  %v13026_v32 = vrot.slane %v13024_v53, 4  ;;  %v13029_v27 = vrot.slane %v13027_v58, 5 }
 0x44e   : > { %20072 = vmatmul.mubr.msk.bf16.vlgmr.msra.gmra.mrb[48].mxu0 %vm6894_vm12, %v11895_v39  ;;  %v11942_v39 = vshrl.u32 %v25697_v25, 16 }
 0x44f   : > { %20075 = vmatprep.mubr.msk.bf16.mxu0 %vm6894_vm12, %v11904_v18  ;;  %20088 = vmatpush3.bf16.msra.mxu0 %v25525_v54  ;;  %v11913_v33 = vsel %vm5245_vm9, %v11903_v35, %v11912_v63  ;;  %v11922_v54 = vsel %vm5245_vm9, %v11912_v63, %v27088_v17  ;;  %v11945_v35 = vshll.u32 %v25697_v25, 16  ;;  %v12875_v18 = vrot.slane %v25441_v2, 4  ;;  %v25716_v63 = vld [vmem:[#allocation4 + $0x38] sm:$0xf0] }
 0x450   : > { %20105 = vmatprep.subr.bf16.mxu0 %v25669_v9  ;;  %v11944_v13 = vrot.slane %v11942_v39, 3  ;;  %v13030_v36 = vor.u32 %v13029_v27, %v13026_v32  ;;  %v12106_v2 = vrot.slane %v25716_v63, 4  ;;  %v22070_v32 = vld [vmem:[#allocation4 + $0x58] sm:$0xff] }
 0x451   : > { %v11947_v60 = vrot.slane %v11945_v35, 4  ;;  %v25751_v35 = vld [vmem:[%s26805_s6] ss:$0 sm:$0xff]  ;;  %v12113_v27 = vrot.slane %v22070_v32, 4 }
 0x452   : > { %20166 = vmatmul.mubr.msk.bf16.gmra.mrb[68].mxu1 %vm6894_vm12, %v12868_v42  ;;  %v12876_v42 = vsel %vm5102_vm4, %v12873_v44, %v12875_v18  ;;  %v13034_v19 = vsel %vm5453_vm5, %v13030_v36, %v25095_v4  ;;  %v25732_v44 = vld [vmem:[%s26808_s9 + $0x20] sm:$0xff]   ;;  %v22069_v4 = vld [vmem:[#allocation4 + $0x50] sm:$0xff] }
 0x453   : > { %20169 = vmatprep.mubr.msk.bf16.mxu1 %vm6894_vm12, %v12870_v43  ;;  %v11948_v5 = vor.u32 %v11947_v60, %v11944_v13  ;;  %v22067_v43 = vld [vmem:[#allocation4 + $0x40] sm:$0xff]  ;;  %v12111_v53 = vrot.slane %v22069_v4, 4 }
 0x454   : > { %v22071_v60 = vld [vmem:[#allocation4 + $0x60] sm:$0xff] }
 0x455   : > { %v12115_v18 = vrot.slane %v22071_v60, 4  ;;  %v13020_v36 = vld [vmem:[#allocation4 + $0xa0] sm:$0x1f] }
 0x456   : > { %20076 = vmatmul.mubr.msk.bf16.gmra.mrb[52].mxu0 %vm6894_vm12, %v11913_v33  ;;  %v12107_v33 = vrot.slane %v22067_v43, 4 }
 0x457   : > { %20079 = vmatprep.mubr.msk.bf16.mxu0 %vm6894_vm12, %v11922_v54  ;;  %v22068_v54 = vld [vmem:[#allocation4 + $0x48] sm:$0xff] }
 0x458   : > { %v12108_v17 = vsel %vm5102_vm4, %v12106_v2, %v12107_v33  ;;  %v12109_v57 = vrot.slane %v22068_v54, 4  ;;  %v13060_v54 = vshrl.u32 %v13020_v36, 16 }
 0x45a   : > { %20170 = vmatmul.mubr.msk.bf16.gmra.mrb[72].mxu1 %vm6894_vm12, %v12872_v28  ;;  %v12110_v58 = vsel %vm5102_vm4, %v12107_v33, %v12109_v57  ;;  %v12112_v39 = vsel %vm5102_vm4, %v12109_v57, %v12111_v53  ;;  %v13211_v57 = vld [vmem:[#allocation4 + $0x68] sm:$0x80]  ;;  %v13062_v60 = vrot.slane %v13060_v54, 4 }
 0x45b   : > { %20173 = vmatprep.mubr.msk.bf16.mxu1 %vm6894_vm12, %v12874_v0 }
 0x45e   : > { %20080 = vmatmul.mubr.msk.bf16.gmra.mrb[56].mxu0 %vm6894_vm12, %v11931_v50  ;;  %v25765_v50 = vld [vmem:[%s26807_s8] ss:$0 sm:$0xff] }
 0x45f   : > { %20083 = vmatprep.mubr.msk.bf16.mxu0 %vm6894_vm12, %v25343_v11  ;;  %v11949_v11 = vsel %vm5245_vm9, %v25329_v40, %v11948_v5  ;;  %v25742_v40 = vld [vmem:[%s26808_s9] sm:$0xff]  }
 0x462   : > { %20174 = vmatmul.mubr.msk.bf16.gmra.mrb[76].mxu1 %vm6894_vm12, %v12876_v42 }
 0x463   : > { %20179 = vmatprep.mubr.msk.bf16.mxu1 %vm6894_vm12, %v13034_v19 }
 0x466   : > { %20084 = vmatmul.mubr.msk.bf16.gmra.mrb[60].mxu0 %vm6894_vm12, %v11949_v11 }
 0x467   : > { %20089 = vmatprep.mubr.msk.bf16.mxu0 %vm6894_vm12, %v12108_v17  ;;  %v12114_v17 = vsel %vm5102_vm4, %v12111_v53, %v12113_v27 }
 0x46a   : > { %20180 = vmatmul.mubr.msk.bf16.vlgmr.msra.gmra.mrb[64].mxu1 %vm6894_vm12, %v25435_v26 }
 0x46b   : > { %20183 = vmatprep.mubr.msk.bf16.mxu1 %vm6894_vm12, %v25449_v8  ;;  %20196 = vmatpush3.bf16.msra.mxu1 %v25640_v62  ;;  %v25758_v62 = vld [vmem:[%s26806_s7] ss:$0 sm:$0xff] }
 0x46c   : > { %20213 = vmatprep.subr.bf16.mxu1 %v25732_v44 }
 0x46e   : > { %20090 = vmatmul.mubr.msk.bf16.vlgmr.msra.gmra.mrb[48].mxu0 %vm6894_vm12, %v12110_v58 }
 0x46f   : > { %20093 = vmatprep.mubr.msk.bf16.mxu0 %vm6894_vm12, %v12112_v39  ;;  %20106 = vmatpush3.bf16.msra.mxu0 %v25669_v9  ;;  %v19929_v8 = vpop.f32.mrb[48].mxu1  ;;  %v13063_v39 = vshll.u32 %v13020_v36, 16 }
 0x470   : > { %20303 = vmatprep.subr.bf16.mxu0 %v25742_v40  ;;  %v10427_v28 = vadd.f32 %v19929_v8, %v25751_v35  ;;  %v10339_v0 = vpop.f32.mrb[49].mxu1 }
 0x471   : > { %v10425_v9 = vadd.f32 %v25751_v35, %v10339_v0  ;;  %v19930_v13 = vpop.f32.mrb[50].mxu1  ;;  %v13223_v0 = vshrl.u32 %v13211_v57, 16  ;;  %v13065_v36 = vrot.slane %v13063_v39, 5 }
 0x472   : > { %v10450_v5 = vmul.f32 %v25758_v62, %v10427_v28  ;;  %v10428_v42 = vadd.f32 %v19930_v13, %v25751_v35  ;;  %v10342_v43 = vpop.f32.mrb[51].mxu1  ;;  %20184 = vmatmul.mubr.msk.bf16.gmra.mrb[68].mxu1 %vm6894_vm12, %v25452_v22  ;;  %v12116_v22 = vsel %vm5102_vm4, %v12113_v27, %v12115_v18 }
 0x473   : > { %v10448_v33 = vmul.f32 %v25758_v62, %v10425_v9  ;;  %v10426_v19 = vadd.f32 %v25751_v35, %v10342_v43  ;;  %20187 = vmatprep.mubr.msk.bf16.mxu1 %vm6894_vm12, %v25459_v21 }
 0x474   : > { %v10473_v2 = vadd.f32 %v25765_v50, %v10450_v5  ;;  %v10451_v11 = vmul.f32 %v25758_v62, %v10428_v42 }
 0x475   : > { %v10471_v4 = vadd.f32 %v25765_v50, %v10448_v33  ;;  %v10449_v58 = vmul.f32 %v25758_v62, %v10426_v19 }
 0x476   : > { %20094 = vmatmul.mubr.msk.bf16.gmra.mrb[52].mxu0 %vm6894_vm12, %v12114_v17  ;;  %v10474_v8 = vadd.f32 %v25765_v50, %v10451_v11  ;;  %v10489_v53 = vmax.f32 %v10473_v2, 0.0  ;;  %v12271_v2 = vshrl.u32 %v25716_v63, 16 }
 0x477   : > { %20097 = vmatprep.mubr.msk.bf16.mxu0 %vm6894_vm12, %v12116_v22  ;;  %v10472_v21 = vadd.f32 %v25765_v50, %v10449_v58  ;;  %v19933_v28 = vpop.f32.mrb[52].mxu1  ;;  %v10487_v5 = vmax.f32 %v10471_v4, 0.0  ;;  %v12274_v58 = vshll.u32 %v25716_v63, 16  ;;  %v13066_v63 = vor.u32 %v13065_v36, %v13062_v60 }
 0x478   : > { %v10490_v32 = vmax.f32 %v10474_v8, 0.0  ;;  %v10431_v9 = vadd.f32 %v19933_v28, %v25751_v35  ;;  %v10355_v13 = vpop.f32.mrb[53].mxu1  ;;  %v13225_v28 = vrot.slane %v13223_v0, 7  ;;  %v12121_v60 = vrot.slane %v25697_v25, 4 }
 0x479   : > { %v10488_v42 = vmax.f32 %v10472_v21, 0.0  ;;  %v10429_v43 = vadd.f32 %v25751_v35, %v10355_v13  ;;  %v19934_v27 = vpop.f32.mrb[54].mxu1 }
 0x47a   : > { %v10504_v33 = vpack.c.bf16 %v10490_v32, %v10489_v53  ;;  %v10454_v19 = vmul.f32 %v25758_v62, %v10431_v9  ;;  %v10432_v11 = vadd.f32 %v19934_v27, %v25751_v35  ;;  %v10358_v17 = vpop.f32.mrb[55].mxu1  ;;  %20188 = vmatmul.mubr.msk.bf16.gmra.mrb[72].mxu1 %vm6894_vm12, %v25471_v37  ;;  %v12118_v37 = vsel %vm5102_vm4, %v12115_v18, %v25559_v24 }
 0x47b   : > { %v10503_v57 = vpack.c.bf16 %v10488_v42, %v10487_v5  ;;  %v10452_v54 = vmul.f32 %v25758_v62, %v10429_v43  ;;  %v10430_v4 = vadd.f32 %v25751_v35, %v10358_v17  ;;  %20191 = vmatprep.mubr.msk.bf16.mxu1 %vm6894_vm12, %v25478_v30  ;;  %v12273_v53 = vrot.slane %v12271_v2, 4 }
 0x47c   : > { %10512 = vst.msk [vmem:[#allocation4 + $0xb8] sm:$0xff] %vm6894_vm12, %v10504_v33  ;;  %v10477_v22 = vadd.f32 %v25765_v50, %v10454_v19  ;;  %v10455_v39 = vmul.f32 %v25758_v62, %v10432_v11  ;;  %v12276_v32 = vrot.slane %v12274_v58, 5  ;;  %v13233_v2 = vsel %vm5650_vm11, %v13225_v28, %v25474_v46 }
 0x47d   : > { %10552 = vst.msk [vmem:[#allocation4 + $0xb8] sm:$0xc0] %vm10527_vm15, %v26930_v59  ;;  %v10475_v8 = vadd.f32 %v25765_v50, %v10452_v54  ;;  %v10453_v30 = vmul.f32 %v25758_v62, %v10430_v4 }
 0x47e   : > { %10511 = vst.msk [vmem:[#allocation4 + $0xb0] sm:$0xff] %vm6894_vm12, %v10503_v57  ;;  %20098 = vmatmul.mubr.msk.bf16.gmra.mrb[56].mxu0 %vm6894_vm12, %v12118_v37  ;;  %v10478_v21 = vadd.f32 %v25765_v50, %v10455_v39  ;;  %v10493_v9 = vmax.f32 %v10477_v22, 0.0  ;;  %v12277_v4 = vor.u32 %v12276_v32, %v12273_v53  ;;  %v12122_v22 = vsel %vm5102_vm4, %v25623_v6, %v12121_v60  ;;  %v25858_v32 = vld [vmem:[%s26808_s9 + $0x28] sm:$0xff]  }
 0x47f   : > { %10551 = vst.msk [vmem:[#allocation4 + $0xb0] sm:$0x3c] %vm10535_vm13, %v26930_v59  ;;  %20101 = vmatprep.mubr.msk.bf16.mxu0 %vm6894_vm12, %v25652_v56  ;;  %v10476_v24 = vadd.f32 %v25765_v50, %v10453_v30  ;;  %v19937_v18 = vpop.f32.mrb[56].mxu1  ;;  %v10491_v43 = vmax.f32 %v10475_v8, 0.0  ;;  %v13067_v56 = vsel %vm5453_vm5, %v25466_v61, %v13066_v63 }
 0x480   : > { %v10494_v13 = vmax.f32 %v10478_v21, 0.0  ;;  %v10435_v5 = vadd.f32 %v19937_v18, %v25751_v35  ;;  %v10371_v42 = vpop.f32.mrb[57].mxu1  ;;  %v12281_v37 = vsel %vm5453_vm5, %v12277_v4, %v25124_v45 }
 0x481   : > { %v10492_v27 = vmax.f32 %v10476_v24, 0.0  ;;  %v10433_v36 = vadd.f32 %v25751_v35, %v10371_v42  ;;  %v19938_v33 = vpop.f32.mrb[58].mxu1 }
 0x482   : > { %v10506_v19 = vpack.c.bf16 %v10494_v13, %v10493_v9  ;;  %v10458_v0 = vmul.f32 %v25758_v62, %v10435_v5  ;;  %v10436_v11 = vadd.f32 %v19938_v33, %v25751_v35  ;;  %v10374_v17 = vpop.f32.mrb[59].mxu1  ;;  %20192 = vmatmul.mubr.msk.bf16.gmra.mrb[76].mxu1 %vm6894_vm12, %v13067_v56 }
 0x483   : > { %v10505_v25 = vpack.c.bf16 %v10492_v27, %v10491_v43  ;;  %v10456_v57 = vmul.f32 %v25758_v62, %v10433_v36  ;;  %v10434_v54 = vadd.f32 %v25751_v35, %v10374_v17  ;;  %20197 = vmatprep.mubr.msk.bf16.mxu1 %vm6894_vm12, %v13233_v2  ;;  %v25878_v2 = vld [vmem:[%s26810_s11] sm:$0xf] }
 0x484   : > { %10514 = vst.msk [vmem:[#allocation4 + $0xc8] sm:$0xff] %vm6894_vm12, %v10506_v19  ;;  %v10481_v61 = vadd.f32 %v25765_v50, %v10458_v0  ;;  %v10459_v58 = vmul.f32 %v25758_v62, %v10436_v11 }
 0x485   : > { %10554 = vst.msk [vmem:[#allocation4 + $0xc8] sm:$0x3c] %vm10535_vm13, %v26930_v59  ;;  %v10479_v46 = vadd.f32 %v25765_v50, %v10456_v57  ;;  %v10457_v39 = vmul.f32 %v25758_v62, %v10434_v54  ;;  %v12266_v57 = vld [vmem:[#allocation4 + $0x78] sm:$0x1f] }
 0x486   : > { %10513 = vst.msk [vmem:[#allocation4 + $0xc0] sm:$0xff] %vm6894_vm12, %v10505_v25  ;;  %20102 = vmatmul.mubr.msk.bf16.gmra.mrb[60].mxu0 %vm6894_vm12, %v12122_v22  ;;  %v25841_v8 = vld [vmem:[#allocation4 + $0xb0] sm:$0xff]  ;;  %v10482_v6 = vadd.f32 %v25765_v50, %v10459_v58  ;;  %v10497_v18 = vmax.f32 %v10481_v61, 0.0  ;;  %v13277_v25 = vrot.slane %v25541_v38, 7  ;;  %v12307_v22 = vshrl.u32 %v12266_v57, 16 }
 0x487   : > { %10553 = vst.msk [vmem:[#allocation4 + $0xc0] sm:$0x3] %vm10525_vm14, %v26930_v59  ;;  %20107 = vmatprep.mubr.msk.bf16.mxu0 %vm6894_vm12, %v12281_v37  ;;  %v25848_v30 = vshrl.u32 %v25841_v8, 16  ;;  %v10480_v63 = vadd.f32 %v25765_v50, %v10457_v39  ;;  %v19941_v21 = vpop.f32.mrb[60].mxu1  ;;  %v25852_v24 = vshll.u32 %v25841_v8, 16  ;;  %v10495_v9 = vmax.f32 %v10479_v46, 0.0 }
 0x488   : > { %v10498_v45 = vmax.f32 %v10482_v6, 0.0  ;;  %v10439_v28 = vadd.f32 %v19941_v21, %v25751_v35  ;;  %v10387_v53 = vpop.f32.mrb[61].mxu1  ;;  %v14437_v46 = vld [vmem:[#allocation4 + $0xa0] sm:$0xf8] }
 0x489   : > { %v10496_v13 = vmax.f32 %v10480_v63, 0.0  ;;  %v10437_v5 = vadd.f32 %v25751_v35, %v10387_v53  ;;  %v19942_v42 = vpop.f32.mrb[62].mxu1  ;;  %v14468_v33 = vrot.slane %v25848_v30, 3  ;;  %v14471_v11 = vrot.slane %v25852_v24, 4 }
 0x48a   : > { %v10508_v60 = vpack.c.bf16 %v10498_v45, %v10497_v18  ;;  %v10462_v43 = vmul.f32 %v25758_v62, %v10439_v28  ;;  %v10440_v27 = vadd.f32 %v19942_v42, %v25751_v35  ;;  %v10390_v36 = vpop.f32.mrb[63].mxu1  ;;  %20198 = vmatmul.mubr.msk.bf16.vlgmr.msra.gmra.mrb[64].mxu1 %vm6894_vm12, %v25487_v20  ;;  %v12310_v63 = vshll.u32 %v12266_v57, 16 }
 0x48b   : > { %v10507_v56 = vpack.c.bf16 %v10496_v13, %v10495_v9  ;;  %v10460_v19 = vmul.f32 %v25758_v62, %v10437_v5  ;;  %v10438_v0 = vadd.f32 %v25751_v35, %v10390_v36  ;;  %20201 = vmatprep.mubr.msk.bf16.mxu1 %vm6894_vm12, %v25499_v7  ;;  %20214 = vmatpush3.bf16.msra.mxu1 %v25732_v44  ;;  %v14449_v21 = vshrl.u32 %v14437_v46, 16  ;;  %v27089_v9 = vld [vmem:[#allocation22_spill] sm:$0xff]  ;;  %v27090_v13 = vld [vmem:[#allocation13_spill] sm:$0xff] }
 0x48c   : > { %10516 = vst.msk [vmem:[#allocation4 + $0xd8] sm:$0xff] %vm6894_vm12, %v10508_v60  ;;  %v10485_v17 = vadd.f32 %v25765_v50, %v10462_v43  ;;  %v10463_v20 = vmul.f32 %v25758_v62, %v10440_v27  ;;  %20231 = vmatprep.subr.bf16.mxu1 %v25858_v32  ;;  %v25896_v4 = vor.u32 %v14471_v11, %v14468_v33  ;;  %v25918_v18 = vld [vmem:[#allocation4 + $0xc8] sm:$0xff]  ;;  %v14452_v45 = vshll.u32 %v14437_v46, 16 }
 0x48d   : > { %10556 = vst.msk [vmem:[#allocation4 + $0xd8] sm:$0x3] %vm10525_vm14, %v26930_v59  ;;  %v10483_v7 = vadd.f32 %v25765_v50, %v10460_v19  ;;  %v10461_v44 = vmul.f32 %v25758_v62, %v10438_v0  ;;  %v27091_v5 = vrot.slane %v27090_v13, 7  ;;  %v25952_v36 = vshll.u32 %v25918_v18, 16 }
 0x48e   : > { %10515 = vst.msk [vmem:[#allocation4 + $0xd0] sm:$0xff] %vm6894_vm12, %v10507_v56  ;;  %20108 = vmatmul.mubr.msk.bf16.vlgmr.msra.gmra.mrb[48].mxu0 %vm6894_vm12, %v25145_v14  ;;  %v10486_v35 = vadd.f32 %v25765_v50, %v10463_v20  ;;  %v10501_v14 = vmax.f32 %v10485_v17, 0.0  ;;  %v25909_v37 = vld [vmem:[#allocation4 + $0xc0] sm:$0xff]  ;;  %v25914_v6 = vsel %vm5245_vm9, %v25574_v15, %v25896_v4  ;;  %v14966_v33 = vrot.slane %v25848_v30, 4 }
 0x48f   : > { %10555 = vst.msk [vmem:[#allocation4 + $0xd0] sm:$0xc0] %vm10527_vm15, %v26930_v59  ;;  %20111 = vmatprep.mubr.msk.bf16.mxu0 %vm6894_vm12, %v25148_v23  ;;  %20304 = vmatpush3.bf16.msra.mxu0 %v25742_v40  ;;  %v10484_v54 = vadd.f32 %v25765_v50, %v10461_v44  ;;  %v10499_v61 = vmax.f32 %v10483_v7, 0.0  ;;  %v13280_v23 = vor.u32 %v25544_v16, %v13277_v25  ;;  %v25905_v40 = vld [vmem:[#allocation4 + $0xb8] sm:$0xff]  ;;  %v25944_v43 = vshll.u32 %v25909_v37, 16 }
 0x490   : > { %21792 = vmatprep.subr.msk.bf16.mxu0 %vm5102_vm4, %v25878_v2  ;;  %v10502_v62 = vmax.f32 %v10486_v35, 0.0  ;;  %v25926_v28 = vshrl.u32 %v25905_v40, 16  ;;  %v25938_v60 = vshll.u32 %v25905_v40, 16  ;;  %v14967_v56 = vrot.slane %v25852_v24, 5  ;;  %v27094_v35 = vld [vmem:[#allocation20_spill] sm:$0xff] }
 0x491   : > { %v10500_v58 = vmax.f32 %v10484_v54, 0.0  ;;  %v13281_v42 = vsel %vm5650_vm11, %v27091_v5, %v13280_v23  ;;  %v12312_v19 = vrot.slane %v12310_v63, 5  ;;  %v14451_v0 = vrot.slane %v14449_v21, 3  ;;  %v27097_v21 = vld [vmem:[#allocation15_spill] sm:$0xff] }
 0x492   : > { %v10510_v39 = vpack.c.bf16 %v10502_v62, %v10501_v14  ;;  %20202 = vmatmul.mubr.msk.bf16.gmra.mrb[68].mxu1 %vm6894_vm12, %v25506_v12  ;;  %v13285_v12 = vrot.slane %v25548_v47, 7  ;;  %v25965_v7 = vor.u32 %v14967_v56, %v14966_v33  ;;  %v14970_v44 = vrot.slane %v25926_v28, 4 }
 0x493   : > { %v10509_v50 = vpack.c.bf16 %v10500_v58, %v10499_v61  ;;  %20205 = vmatprep.mubr.msk.bf16.mxu1 %vm6894_vm12, %v25509_v52  ;;  %v12309_v52 = vrot.slane %v12307_v22, 4  ;;  %v14454_v57 = vrot.slane %v14452_v45, 4  ;;  %v14971_v54 = vrot.slane %v25938_v60, 5 }
 0x494   : > { %10518 = vst.msk [vmem:[#allocation4 + $0xe8] sm:$0xff] %vm6894_vm12, %v10510_v39  ;;  %v25928_v53 = vld [vmem:[#allocation4 + $0xd8] sm:$0xff]  ;;  %27093 = vst [vmem:[#allocation26_spill] sm:$0xff] %v25965_v7  ;;  %v14975_v62 = vrot.slane %v25944_v43, 5  ;;  %v25980_v58 = vsel %vm5453_vm5, %v25600_v34, %v25965_v7  ;;  %v14979_v46 = vrot.slane %v25952_v36, 5  ;;  %v27096_v39 = vld [vmem:[#allocation14_spill] sm:$0xff] }
 0x495   : > { %10528 = vst.msk [vmem:[#allocation4 + $0xe8] sm:$0xc0] %vm10527_vm15, %v26930_v59  ;;  %v25957_v11 = vshrl.u32 %v25928_v53, 16  ;;  %v25975_v61 = vshll.u32 %v25928_v53, 16  ;;  %v13288_v23 = vor.u32 %v27096_v39, %v13285_v12  ;;  %v14455_v33 = vor.u32 %v14454_v57, %v14451_v0  ;;  %v22072_v57 = vld [vmem:[#allocation4 + $0x70] sm:$0xff] }
 0x496   : > { %10517 = vst.msk [vmem:[#allocation4 + $0xe0] sm:$0xff] %vm6894_vm12, %v10509_v50  ;;  %20112 = vmatmul.mubr.msk.bf16.gmra.mrb[52].mxu0 %vm6894_vm12, %v25154_v10  ;;  %v25941_v10 = vshrl.u32 %v25909_v37, 16  ;;  %v25946_v27 = vld [vmem:[#allocation4 + $0xd0] sm:$0xff]  ;;  %v14972_v50 = vor.u32 %v14971_v54, %v14970_v44  ;;  %v15168_v0 = vrot.slane %v25926_v28, 7  ;;  %vm16380_vm14 = vcmask 326656  }
 0x497   : > { %10557 = vst.msk [vmem:[#allocation4 + $0xe0] sm:$0x3c] %vm10535_vm13, %v26930_v59  ;;  %20115 = vmatprep.mubr.msk.bf16.mxu0 %vm6894_vm12, %v27089_v9  ;;  %v25949_v59 = vshrl.u32 %v25918_v18, 16  ;;  %27092 = vst [vmem:[#allocation25_spill] sm:$0xff] %v25957_v11  ;;  %v25960_v17 = vshrl.u32 %v25946_v27, 16  ;;  %v25963_v20 = vshll.u32 %v25946_v27, 16 }
 0x498   : > { %v14974_v14 = vrot.slane %v25941_v10, 4  ;;  %27095 = vst [vmem:[#allocation31_spill] sm:$0xff] %v25975_v61  ;;  %v14986_v5 = vrot.slane %v25957_v11, 4  ;;  %v25994_v12 = vsel %vm5453_vm5, %v25965_v7, %v14972_v50  ;;  %v14987_v54 = vrot.slane %v25975_v61, 5  ;;  %v13570_v7 = vld [vmem:[#allocation4 + $0x70] sm:$0xff] }
 0x499   : > { %v14978_v22 = vrot.slane %v25949_v59, 4  ;;  %v14982_v9 = vrot.slane %v25960_v17, 4  ;;  %v14983_v13 = vrot.slane %v25963_v20, 5 }
 0x49a   : > { %20206 = vmatmul.mubr.msk.bf16.gmra.mrb[72].mxu1 %vm6894_vm12, %v27094_v35  ;;  %v14976_v63 = vor.u32 %v14975_v62, %v14974_v14  ;;  %v13289_v14 = vsel %vm5650_vm11, %v13277_v25, %v13288_v23  ;;  %v27098_v62 = vld [vmem:[#allocation18_spill] sm:$0xff]  ;;  %v14464_v25 = vsel %vm5245_vm9, %v14455_v33, %v25574_v15  ;;  %v15176_v23 = vrot.slane %v25941_v10, 7 }
 0x49b   : > { %20209 = vmatprep.mubr.msk.bf16.mxu1 %vm6894_vm12, %v13281_v42  ;;  %v14980_v45 = vor.u32 %v14979_v46, %v14978_v22  ;;  %v12313_v42 = vor.u32 %v12312_v19, %v12309_v52  ;;  %v14984_v35 = vor.u32 %v14983_v13, %v14982_v9  ;;  %v26009_v52 = vor.u32 %v14987_v54, %v14986_v5 }
 0x49c   : > { %v25997_v56 = vsel %vm5453_vm5, %v14972_v50, %v14976_v63  ;;  %v15160_v19 = vrot.slane %v25848_v30, 7  ;;  %v14477_v50 = vrot.slane %v25926_v28, 3  ;;  %v14480_v9 = vrot.slane %v25938_v60, 4 }
 0x49d   : > { %v26000_v44 = vsel %vm5453_vm5, %v14976_v63, %v14980_v45  ;;  %v12314_v22 = vsel %vm5453_vm5, %v27098_v62, %v12313_v42  ;;  %v26021_v46 = vsel %vm5453_vm5, %v14984_v35, %v26009_v52  ;;  %v15179_v15 = vor.u32 %v15176_v23, %v25944_v43 }
 0x49e   : > { %20116 = vmatmul.mubr.msk.bf16.gmra.mrb[56].mxu0 %vm6894_vm12, %v27097_v21  ;;  %v26026_v63 = vor.u32 %v15160_v19, %v25852_v24  ;;  %v15171_v21 = vor.u32 %v15168_v0, %v25938_v60  ;;  %v15192_v13 = vrot.slane %v25960_v17, 7  ;;  %v26891_v33 = vrot.slane %v25957_v11, 7 }
 0x49f   : > { %20119 = vmatprep.mubr.msk.bf16.mxu0 %vm6894_vm12, %v25435_v26  ;;  %v26007_v26 = vsel %vm5453_vm5, %v14980_v45, %v14984_v35  ;;  %v15184_v45 = vrot.slane %v25949_v59, 7  ;;  %v26041_v35 = vsel %vm5650_vm11, %v15168_v0, %v15179_v15  ;;  %v14481_v62 = vor.u32 %v14480_v9, %v14477_v50  ;;  %v22073_v0 = vld [vmem:[#allocation4 + $0x78] sm:$0xff]  ;;  %v22074_v15 = vld [vmem:[#allocation4 + $0x80] sm:$0xff] }
 0x4a0   : > { %v26036_v5 = vsel %vm5650_vm11, %v15160_v19, %v15171_v21  ;;  %v15195_v54 = vor.u32 %v15192_v13, %v25963_v20  ;;  %v15203_v19 = vor.u32 %v26891_v33, %v25975_v61  ;;  %v14489_v50 = vrot.slane %v25944_v43, 4 }
 0x4a1   : > { %v15187_v42 = vor.u32 %v15184_v45, %v25952_v36  ;;  %v15530_v9 = vrot.slane %v25944_v43, 1 }
 0x4a2   : > { %20210 = vmatmul.mubr.msk.bf16.gmra.mrb[76].mxu1 %vm6894_vm12, %v13289_v14  ;;  %v26047_v14 = vld [vmem:[%s26808_s9 + $0x30] sm:$0xff]   ;;  %v26062_v21 = vsel %vm5650_vm11, %v15192_v13, %v15203_v19  ;;  %v15538_v13 = vrot.slane %v25952_v36, 1  ;;  %v14495_v19 = vrot.slane %v25949_v59, 3 }
 0x4a3   : > { %20215 = vmatprep.mubr.msk.bf16.mxu1 %vm6894_vm12, %v22072_v57  ;;  %v26050_v57 = vsel %vm5650_vm11, %v15176_v23, %v15187_v42  ;;  %27099 = vst [vmem:[#allocation28_spill] sm:$0xff] %v26062_v21  ;;  %v15517_v23 = vrot.slane %v25852_v24, 1  ;;  %v14486_v42 = vrot.slane %v25941_v10, 3  ;;  %v15534_v43 = vor.u32 %v15530_v9, %v25941_v10  ;;  %v27109_v21 = vld [vmem:[#allocation7_spill] sm:$0xff] }
 0x4a5   : > { %v15518_v24 = vor.u32 %v15517_v23, %v25848_v30  ;;  %v15542_v23 = vor.u32 %v15538_v13, %v25949_v59 }
 0x4a6   : > { %20120 = vmatmul.mubr.msk.bf16.gmra.mrb[60].mxu0 %vm6894_vm12, %v12314_v22  ;;  %v26056_v22 = vsel %vm5650_vm11, %v15184_v45, %v15195_v54  ;;  %v26072_v45 = vld [vmem:[%s26808_s9 + $0x8] sm:$0xff]   ;;  %v15546_v54 = vrot.slane %v25963_v20, 1 }
 0x4a7   : > { %20305 = vmatprep.mubr.msk.bf16.mxu0 %vm6894_vm12, %v14464_v25  ;;  %v14680_v25 = vsel %vm5102_vm4, %v25878_v2, 0  ;;  %v15522_v2 = vrot.slane %v25938_v60, 1  ;;  %v14498_v60 = vrot.slane %v25952_v36, 4  ;;  %v26893_v36 = vrot.slane %v25975_v61, 1 }
 0x4a8   : > { %v15550_v33 = vor.u32 %v15546_v54, %v25960_v17 }
 0x4a9   : > { %v26089_v30 = vsel %vm6004_vm10, %v15518_v24, %v15522_v2  ;;  %v14499_v10 = vor.u32 %v14498_v60, %v14495_v19  ;;  %v26105_v24 = vld [vmem:[#allocation4 + $0xe0] sm:$0xff]  ;;  %v14504_v19 = vrot.slane %v25960_v17, 3  ;;  %v14507_v60 = vrot.slane %v25963_v20, 4 }
 0x4aa   : > { %20216 = vmatmul.mubr.msk.bf16.vlgmr.msra.gmra.mrb[64].mxu1 %vm6894_vm12, %v22073_v0  ;;  %v15526_v0 = vor.u32 %v15522_v2, %v25926_v28  ;;  %27100 = vst [vmem:[#allocation33_spill] sm:$0xff] %v26089_v30  ;;  %v14490_v28 = vor.u32 %v14489_v50, %v14486_v42  ;;  %v26103_v2 = vsel %vm6004_vm10, %v15542_v23, %v15546_v54  ;;  %27104 = vst [vmem:[#allocation35_spill] sm:$0xff] %v26105_v24  ;;  %v26114_v50 = vld [vmem:[#allocation4 + $0xe0] sm:$0xf] }
 0x4ab   : > { %20219 = vmatprep.mubr.msk.bf16.mxu1 %vm6894_vm12, %v22074_v15  ;;  %20232 = vmatpush3.bf16.msra.mxu1 %v25858_v32  ;;  %v14482_v32 = vsel %vm5245_vm9, %v25896_v4, %v14481_v62  ;;  %27103 = vst [vmem:[#allocation32_spill] sm:$0xff] %v26103_v2  ;;  %v26110_v59 = vsel %vm6004_vm10, %v15550_v33, %v26893_v36  ;;  %v13584_v42 = vshll.u32 %v13570_v7, 16  ;;  %v26122_v33 = vshrl.u32 %v26105_v24, 16 }
 0x4ac   : > { %20249 = vmatprep.subr.bf16.mxu1 %v26047_v14  ;;  %v26095_v15 = vsel %vm6004_vm10, %v15526_v0, %v15530_v9  ;;  %27105 = vst [vmem:[#allocation37_spill] sm:$0xff] %v26110_v59  ;;  %v22075_v9 = vld [vmem:[#allocation4 + $0x88] sm:$0xff]  ;;  %v14491_v54 = vsel %vm5245_vm9, %v14481_v62, %v14490_v28  ;;  %v14500_v0 = vsel %vm5245_vm9, %v14490_v28, %v14499_v10  ;;  %v14516_v23 = vrot.slane %v25975_v61, 4  ;;  %v13571_v62 = vld [vmem:[#allocation4 + $0x78] sm:$0xff] }
 0x4ad   : > { %27101 = vst [vmem:[#allocation34_spill] sm:$0xff] %v26095_v15  ;;  %v14520_v17 = vshrl.u32 %v26114_v50, 16  ;;  %v14523_v20 = vshll.u32 %v26114_v50, 16  ;;  %v14508_v28 = vor.u32 %v14507_v60, %v14504_v19  ;;  %v15781_v36 = vrot.slane %v26122_v33, 3  ;;  %v26147_v60 = vld [vmem:[#allocation4 + $0xc0] sm:$0xff] }
 0x4ae   : > { %20306 = vmatmul.mubr.msk.bf16.vlgmr.msra.gmra.mrb[64].mxu0 %vm6894_vm12, %v25914_v6  ;;  %v13586_v59 = vrot.slane %v13584_v42, 1  ;;  %v13589_v2 = vshll.u32 %v13571_v62, 16  ;;  %v13582_v19 = vshrl.u32 %v13570_v7, 16  ;;  %27110 = vst [vmem:[#allocation41_spill] sm:$0xff] %v26147_v60 }
 0x4af   : > { %20309 = vmatprep.mubr.msk.bf16.mxu0 %vm6894_vm12, %v14482_v32  ;;  %20322 = vmatpush3.bf16.msra.mxu0 %v14680_v25  ;;  %v26100_v25 = vsel %vm6004_vm10, %v15534_v43, %v15538_v13  ;;  %v22076_v32 = vld [vmem:[#allocation4 + $0x90] sm:$0xff]  ;;  %v26116_v13 = vld [vmem:[#allocation4 + $0xe8] sm:$0xff]  ;;  %v14513_v43 = vrot.slane %v25957_v11, 3  ;;  %v14522_v15 = vrot.slane %v14520_v17, 3  ;;  %v14525_v30 = vrot.slane %v14523_v20, 4 }
 0x4b0   : > { %20339 = vmatprep.subr.bf16.mxu0 %v26072_v45  ;;  %27102 = vst [vmem:[#allocation36_spill] sm:$0xff] %v26100_v25  ;;  %27106 = vst [vmem:[#allocation38_spill] sm:$0xff] %v26116_v13  ;;  %v14509_v42 = vsel %vm5245_vm9, %v14499_v10, %v14508_v28  ;;  %v13591_v31 = vrot.slane %v13589_v2, 1  ;;  %v13593_v10 = vshrl.u32 %v13571_v62, 16 }
 0x4b1   : > { %v14517_v61 = vor.u32 %v14516_v23, %v14513_v43  ;;  %v26152_v23 = vld [vmem:[#allocation4 + $0xc8] sm:$0xff]  ;;  %v14526_v7 = vor.u32 %v14525_v30, %v14522_v15  ;;  %v26175_v15 = vld [vmem:[#allocation4 + $0xf0] sm:$0xff]  ;;  %v27117_v30 = vshll.u32 %v26147_v60, 16 }
 0x4b2   : > { %20220 = vmatmul.mubr.msk.bf16.gmra.mrb[68].mxu1 %vm6894_vm12, %v22075_v9  ;;  %v26129_v9 = vshll.u32 %v26105_v24, 16  ;;  %27112 = vst [vmem:[#allocation44_spill] sm:$0xff] %v26152_v23 }
 0x4b3   : > { %20223 = vmatprep.mubr.msk.bf16.mxu1 %vm6894_vm12, %v22076_v32  ;;  %v26135_v32 = vshrl.u32 %v26116_v13, 16  ;;  %v14518_v20 = vsel %vm5245_vm9, %v14508_v28, %v14517_v61  ;;  %v14527_v2 = vsel %vm5245_vm9, %v14517_v61, %v14526_v7 }
 0x4b4   : > { %27107 = vst [vmem:[#allocation39_spill] sm:$0xff] %v26129_v9  ;;  %v15784_v25 = vrot.slane %v26129_v9, 4 }
 0x4b5   : > { %v15790_v24 = vrot.slane %v26135_v32, 3 }
 0x4b6   : > { %20310 = vmatmul.mubr.msk.bf16.gmra.mrb[68].mxu0 %vm6894_vm12, %v14491_v54  ;;  %v26138_v54 = vshll.u32 %v26116_v13, 16  ;;  %v26149_v43 = vor.u32 %v15784_v25, %v15781_v36  ;;  %v26154_v13 = vld [vmem:[#allocation4 + $0xd0] sm:$0xff]  ;;  %v26902_v36 = vshrl.u32 %v26147_v60, 16  ;;  %v26179_v25 = vld [vmem:[#allocation4 + $0xa8] sm:$0xff]  ;;  %v16156_v60 = vrot.slane %v26122_v33, 4 }
 0x4b7   : > { %20313 = vmatprep.mubr.msk.bf16.mxu0 %vm6894_vm12, %v14500_v0  ;;  %v22077_v0 = vld [vmem:[#allocation4 + $0x98] sm:$0xff]  ;;  %27113 = vst [vmem:[#allocation43_spill] sm:$0xff] %v26154_v13 }
 0x4b8   : > { %27108 = vst [vmem:[#allocation40_spill] sm:$0xff] %v26138_v54  ;;  %v15793_v11 = vrot.slane %v26138_v54, 4  ;;  %27111 = vst [vmem:[#allocation42_spill] sm:$0xff] %v26149_v43  ;;  %v16140_v28 = vrot.slane %v26902_v36, 4  ;;  %v27121_v36 = vshll.u32 %v26154_v13, 16 }
 0x4ba   : > { %20224 = vmatmul.mubr.msk.bf16.gmra.mrb[72].mxu1 %vm6894_vm12, %v22077_v0  ;;  %v26156_v17 = vor.u32 %v15793_v11, %v15790_v24  ;;  %v13587_v0 = vor.u32 %v13586_v59, %v13582_v19  ;;  %v26904_v24 = vshrl.u32 %v26152_v23, 16  ;;  %v13595_v19 = vor.u32 %v13593_v10, %v13591_v31  ;;  %v14428_v10 = vld [vmem:[#allocation2 + $0xb0] sm:$0xff] }
 0x4bb   : > { %20227 = vmatprep.mubr.msk.bf16.mxu1 %vm6894_vm12, %v27109_v21  ;;  %v26160_v21 = vld [vmem:[#allocation4 + $0xd8] sm:$0xff]  ;;  %v16141_v59 = vrot.slane %v27117_v30, 5  ;;  %v16149_v30 = vrot.slane %v27121_v36, 5  ;;  %v16160_v36 = vrot.slane %v26135_v32, 4 }
 0x4bc   : > { %27114 = vst [vmem:[#allocation11_spill] sm:$0xff] %v26156_v17  ;;  %27115 = vst [vmem:[#allocation8_spill] sm:$0xff] %v26160_v21  ;;  %v26168_v11 = vsel %vm5245_vm9, %v26149_v43, %v26156_v17  ;;  %v13592_v62 = vsel %vm6004_vm10, %v13587_v0, %v13591_v31  ;;  %v27118_v17 = vshll.u32 %v26152_v23, 16  ;;  %v27119_v31 = vshrl.u32 %v26154_v13, 16  ;;  %v27127_v13 = vld [vmem:[#allocation27_spill] sm:$0xff] }
 0x4bd   : > { %27116 = vst [vmem:[#allocation6_spill] sm:$0xff] %v26168_v11  ;;  %v26198_v7 = vor.u32 %v16141_v59, %v16140_v28  ;;  %v27123_v23 = vshll.u32 %v26160_v21, 16  ;;  %v27124_v59 = vld [vmem:[#allocation19_spill] sm:$0xff] }
 0x4be   : > { %20314 = vmatmul.mubr.msk.bf16.gmra.mrb[72].mxu0 %vm6894_vm12, %v14509_v42  ;;  %v13599_v42 = vrot.slane %v25590_v29, 1  ;;  %v16145_v11 = vrot.slane %v27118_v17, 5  ;;  %v16148_v0 = vrot.slane %v27119_v31, 4  ;;  %v16157_v31 = vrot.slane %v26129_v9, 5 }
 0x4bf   : > { %20317 = vmatprep.mubr.msk.bf16.mxu0 %vm6894_vm12, %v14518_v20  ;;  %v16144_v20 = vrot.slane %v26904_v24, 4  ;;  %27120 = vst [vmem:[#allocation29_spill] sm:$0xff] %v26198_v7  ;;  %v16153_v17 = vrot.slane %v27123_v23, 5  ;;  %v27126_v23 = vshrl.u32 %v26175_v15, 16  ;;  %v13607_v9 = vrot.slane %v27127_v13, 1 }
 0x4c0   : > { %v13603_v28 = vor.u32 %v27124_v59, %v13599_v42  ;;  %v16150_v61 = vor.u32 %v16149_v30, %v16148_v0 }
 0x4c1   : > { %v16146_v24 = vor.u32 %v16145_v11, %v16144_v20  ;;  %v16158_v20 = vor.u32 %v16157_v31, %v16156_v60 }
 0x4c2   : > { %20228 = vmatmul.mubr.msk.bf16.gmra.mrb[76].mxu1 %vm6894_vm12, %v26179_v25  ;;  %v13608_v31 = vsel %vm6004_vm10, %v13603_v28, %v13607_v9 }
 0x4c3   : > { %20233 = vmatprep.mubr.msk.bf16.mxu1 %vm6894_vm12, %v13592_v62  ;;  %v27122_v62 = vshrl.u32 %v26160_v21, 16  ;;  %v16164_v21 = vrot.slane %v27126_v23, 4  ;;  %v26226_v0 = vsel %vm5453_vm5, %v16146_v24, %v16150_v61  ;;  %v27129_v23 = vld [vmem:[#allocation30_spill] sm:$0xff] }
 0x4c5   : > { %v16152_v43 = vrot.slane %v27122_v62, 4  ;;  %v16161_v62 = vrot.slane %v26138_v54, 5  ;;  %v27128_v54 = vshll.u32 %v26175_v15, 16 }
 0x4c6   : > { %20318 = vmatmul.mubr.msk.bf16.gmra.mrb[76].mxu0 %vm6894_vm12, %v14527_v2  ;;  %v26215_v2 = vsel %vm5453_vm5, %v26198_v7, %v16146_v24 }
 0x4c7   : > { %20323 = vmatprep.mubr.msk.bf16.mxu0 %vm1950_vm3, %v14428_v10  ;;  %27125 = vst [vmem:[#allocation12_spill] sm:$0xff] %v26215_v2  ;;  %v16154_v11 = vor.u32 %v16153_v17, %v16152_v43  ;;  %v26223_v10 = vld [vmem:[%s26808_s9 + $0x38] sm:$0xff]   ;;  %v16162_v30 = vor.u32 %v16161_v62, %v16160_v36  ;;  %v16165_v7 = vrot.slane %v27128_v54, 5  ;;  %v13600_v43 = vsel %vm6004_vm10, %v13595_v19, %v13599_v42  ;;  %v26250_v54 = vld [vmem:[%s26808_s9 + $0x10] sm:$0xff]  }
 0x4c8   : > { %v13615_v2 = vrot.slane %v27129_v23, 1  ;;  %v14429_v19 = vld [vmem:[#allocation2 + $0xb8] sm:$0xff]  ;;  %v13623_v62 = vrot.slane %v25604_v41, 1 }
 0x4c9   : > { %v26232_v60 = vsel %vm5453_vm5, %v16150_v61, %v16154_v11  ;;  %v26235_v17 = vsel %vm5453_vm5, %v16154_v11, %v16158_v20  ;;  %v26241_v24 = vsel %vm5453_vm5, %v16158_v20, %v16162_v30  ;;  %v26243_v36 = vor.u32 %v16165_v7, %v16164_v21  ;;  %v14430_v21 = vld [vmem:[#allocation2 + $0xc0] sm:$0xff]  ;;  %v27133_v7 = vld [vmem:[#allocation17_spill] sm:$0xff] }
 0x4ca   : > { %20234 = vmatmul.mubr.msk.bf16.vlgmr.msra.gmra.mrb[64].mxu1 %vm6894_vm12, %v13600_v43  ;;  %v13611_v28 = vor.u32 %v27133_v7, %v13607_v9  ;;  %v14431_v43 = vld [vmem:[#allocation2 + $0xc8] sm:$0xff] }
 0x4cb   : > { %27130 = vst [vmem:[#allocation10_spill] sm:$0xff] %v26243_v36  ;;  %20237 = vmatprep.mubr.msk.bf16.mxu1 %vm6894_vm12, %v13608_v31  ;;  %20250 = vmatpush3.bf16.msra.mxu1 %v26047_v14  ;;  %v26255_v42 = vsel %vm5453_vm5, %v16162_v30, %v26243_v36  ;;  %v27132_v14 = vld [vmem:[#allocation23_spill] sm:$0xff]  ;;  %v13631_v30 = vrot.slane %v25544_v16, 1  ;;  %v13792_v31 = vld [vmem:[#allocation4 + $0x78] sm:$0xf8] }
 0x4cc   : > { %20267 = vmatprep.subr.bf16.mxu1 %v26223_v10  ;;  %27131 = vst [vmem:[#allocation16_spill] sm:$0xff] %v26255_v42  ;;  %v13619_v61 = vor.u32 %v27132_v14, %v13615_v2  ;;  %v13616_v11 = vsel %vm6004_vm10, %v13611_v28, %v13615_v2  ;;  %v13627_v2 = vor.u32 %v25606_v55, %v13623_v62  ;;  %v13804_v28 = vshrl.u32 %v13792_v31, 16  ;;  %v26281_v42 = vld [vmem:[#allocation4 + $0xa0] sm:$0xf0] }
 0x4cd   : > { %v13635_v9 = vor.u32 %v13631_v30, %v25541_v38  ;;  %v14433_v38 = vld [vmem:[#allocation2 + $0xd8] sm:$0xff] }
 0x4ce   : > { %20324 = vmatmul.mubr.msk.bf16.vlgmr.msra.gmra.mrb[64].mxu0 %vm1950_vm3, %v14429_v19  ;;  %v13624_v20 = vsel %vm6004_vm10, %v13619_v61, %v13623_v62  ;;  %v13578_v19 = vld [vmem:[#allocation4 + $0xb0] sm:$0x1]  ;;  %v13807_v61 = vshll.u32 %v13792_v31, 16  ;;  %v13632_v16 = vsel %vm6004_vm10, %v13627_v2, %v13631_v30  ;;  %v13806_v36 = vrot.slane %v13804_v28, 3 }
 0x4cf   : > { %20327 = vmatprep.mubr.msk.bf16.mxu0 %vm1950_vm3, %v14430_v21  ;;  %20340 = vmatpush3.bf16.msra.mxu0 %v26072_v45  ;;  %v14432_v45 = vld [vmem:[#allocation2 + $0xd0] sm:$0xff]  ;;  %v13639_v21 = vrot.slane %v27096_v39, 1  ;;  %v14434_v39 = vld [vmem:[#allocation2 + $0xe0] sm:$0xff]  ;;  %v26288_v2 = vrot.slane %v26179_v25, 4  ;;  %v13823_v28 = vrot.slane %v27133_v7, 3  ;;  %v26302_v7 = vrot.slane %v25841_v8, 4 }
 0x4d0   : > { %20357 = vmatprep.subr.bf16.mxu0 %v26250_v54  ;;  %v13809_v62 = vrot.slane %v13807_v61, 4  ;;  %v13826_v61 = vrot.slane %v27127_v13, 4 }
 0x4d2   : > { %20238 = vmatmul.mubr.msk.bf16.gmra.mrb[68].mxu1 %vm6894_vm12, %v13616_v11  ;;  %v13645_v11 = vshll.u32 %v13578_v19, 16  ;;  %v13810_v19 = vor.u32 %v13809_v62, %v13806_v36  ;;  %v14435_v36 = vld [vmem:[#allocation2 + $0xe8] sm:$0xff]  ;;  %v26320_v62 = vld [vmem:[%s26808_s9 + $0x18] sm:$0xff]  }
 0x4d3   : > { %20241 = vmatprep.mubr.msk.bf16.mxu1 %vm6894_vm12, %v13624_v20  ;;  %v13640_v20 = vsel %vm6004_vm10, %v13635_v9, %v13639_v21  ;;  %v13643_v9 = vor.u32 %v13639_v21, %v25548_v47  ;;  %v13835_v47 = vrot.slane %v27129_v23, 4  ;;  %v13827_v21 = vor.u32 %v13826_v61, %v13823_v28 }
 0x4d4   : > { %v13647_v31 = vrot.slane %v13645_v11, 1  ;;  %v13832_v11 = vrot.slane %v27132_v14, 3  ;;  %v26307_v14 = vld [vmem:[%s26808_s9 + $0x40] sm:$0xff]  }
 0x4d6   : > { %20328 = vmatmul.mubr.msk.bf16.gmra.mrb[68].mxu0 %vm1950_vm3, %v14431_v43  ;;  %v13814_v43 = vrot.slane %v27124_v59, 3  ;;  %v14791_v59 = vrot.slane %v26281_v42, 4  ;;  %v13836_v13 = vor.u32 %v13835_v47, %v13832_v11  ;;  %v14804_v11 = vrot.slane %v25928_v53, 4 }
 0x4d7   : > { %20331 = vmatprep.mubr.msk.bf16.mxu0 %vm1950_vm3, %v14432_v45  ;;  %v13817_v45 = vrot.slane %v25590_v29, 4  ;;  %v13648_v29 = vsel %vm6004_vm10, %v13643_v9, %v13647_v31  ;;  %v27134_v9 = vld [vmem:[#allocation21_spill] sm:$0xff]  ;;  %v14955_v47 = vshrl.u32 %v26281_v42, 16 }
 0x4d8   : > { %v14793_v25 = vsel %vm5102_vm4, %v14791_v59, %v26288_v2 }
 0x4d9   : > { %v13818_v30 = vor.u32 %v13817_v45, %v13814_v43  ;;  %v13841_v43 = vrot.slane %v25606_v55, 3  ;;  %v13844_v45 = vrot.slane %v25604_v41, 4 }
 0x4da   : > { %20242 = vmatmul.mubr.msk.bf16.gmra.mrb[72].mxu1 %vm6894_vm12, %v13632_v16 }
 0x4db   : > { %20245 = vmatprep.mubr.msk.bf16.mxu1 %vm6894_vm12, %v13640_v20  ;;  %v13819_v16 = vsel %vm5245_vm9, %v13810_v19, %v13818_v30  ;;  %v13828_v23 = vsel %vm5245_vm9, %v13818_v30, %v13827_v21  ;;  %v14796_v20 = vrot.slane %v25905_v40, 4  ;;  %v13845_v55 = vor.u32 %v13844_v45, %v13841_v43  ;;  %v14026_v43 = vld [vmem:[#allocation4 + $0x78] sm:$0xf0] }
 0x4dc   : > { %v14800_v30 = vrot.slane %v25918_v18, 4  ;;  %v14957_v45 = vrot.slane %v14955_v47, 4  ;;  %v22082_v47 = vld [vmem:[#allocation4 + $0x98] sm:$0xff] }
 0x4dd   : > { %v14797_v41 = vsel %vm5102_vm4, %v26302_v7, %v14796_v20  ;;  %v13846_v31 = vsel %vm5245_vm9, %v13836_v13, %v13845_v55  ;;  %v13855_v19 = vsel %vm5245_vm9, %v13845_v55, %v27134_v9 }
 0x4de   : > { %20332 = vmatmul.mubr.msk.bf16.gmra.mrb[72].mxu0 %vm1950_vm3, %v14433_v38  ;;  %v13837_v38 = vsel %vm5245_vm9, %v13827_v21, %v13836_v13 }
 0x4df   : > { %20335 = vmatprep.mubr.msk.bf16.mxu0 %vm1950_vm3, %v14434_v39  ;;  %v26325_v39 = vsel %vm5102_vm4, %v26288_v2, %v26302_v7 }
 0x4e2   : > { %20246 = vmatmul.mubr.msk.bf16.gmra.mrb[76].mxu1 %vm6894_vm12, %v13648_v29  ;;  %v26343_v29 = vld [vmem:[#allocation4 + $0xb8] sm:$0xf] }
 0x4e3   : > { %20251 = vmatprep.mubr.msk.bf16.mxu1 %vm6894_vm12, %v13819_v16  ;;  %v13875_v28 = vshrl.u32 %v26343_v29, 16  ;;  %v13878_v61 = vshll.u32 %v26343_v29, 16  ;;  %v14802_v16 = vrot.slane %v25946_v27, 4 }
 0x4e5   : > { %v13877_v21 = vrot.slane %v13875_v28, 3  ;;  %v13880_v13 = vrot.slane %v13878_v61, 4 }
 0x4e6   : > { %20336 = vmatmul.mubr.msk.bf16.gmra.mrb[76].mxu0 %vm1950_vm3, %v14435_v36  ;;  %v14958_v36 = vshll.u32 %v26281_v42, 16  ;;  %v22079_v42 = vld [vmem:[#allocation4 + $0x80] sm:$0xff] }
 0x4e7   : > { %20341 = vmatprep.mubr.msk.bf16.mxu0 %vm6894_vm12, %v14793_v25  ;;  %v27135_v25 = vld [vmem:[#allocation9_spill] sm:$0xff]  ;;  %v13881_v55 = vor.u32 %v13880_v13, %v13877_v21 }
 0x4ea   : > { %20252 = vmatmul.mubr.msk.bf16.vlgmr.msra.gmra.mrb[64].mxu1 %vm6894_vm12, %v13828_v23  ;;  %v14803_v23 = vsel %vm5102_vm4, %v14800_v30, %v14802_v16 }
 0x4eb   : > { %20255 = vmatprep.mubr.msk.bf16.mxu1 %vm6894_vm12, %v13837_v38  ;;  %20268 = vmatpush3.bf16.msra.mxu1 %v26223_v10  ;;  %v14798_v10 = vrot.slane %v25909_v37, 4  ;;  %v14960_v38 = vrot.slane %v14958_v36, 5  ;;  %v14045_v36 = vrot.slane %v22082_v47, 4 }
 0x4ec   : > { %20285 = vmatprep.subr.bf16.mxu1 %v26307_v14 }
 0x4ed   : > { %v14799_v59 = vsel %vm5102_vm4, %v14796_v20, %v14798_v10  ;;  %v14805_v20 = vsel %vm5102_vm4, %v14802_v16, %v14804_v11  ;;  %v14961_v9 = vor.u32 %v14960_v38, %v14957_v45 }
 0x4ee   : > { %20342 = vmatmul.mubr.msk.bf16.vlgmr.msra.gmra.mrb[64].mxu0 %vm6894_vm12, %v26325_v39 }
 0x4ef   : > { %20345 = vmatprep.mubr.msk.bf16.mxu0 %vm6894_vm12, %v14797_v41  ;;  %20358 = vmatpush3.bf16.msra.mxu0 %v26250_v54  ;;  %v14801_v54 = vsel %vm5102_vm4, %v14798_v10, %v14800_v30  ;;  %v14039_v41 = vrot.slane %v22079_v42, 4  ;;  %v14038_v10 = vrot.slane %v14026_v43, 4 }
 0x4f0   : > { %20375 = vmatprep.subr.bf16.mxu0 %v26320_v62 }
 0x4f1   : > { %v14040_v30 = vsel %vm5102_vm4, %v14038_v10, %v14039_v41  ;;  %v15142_v10 = vld [vmem:[#allocation4 + $0xa8] sm:$0x80] }
 0x4f2   : > { %20256 = vmatmul.mubr.msk.bf16.gmra.mrb[68].mxu1 %vm6894_vm12, %v13846_v31  ;;  %v14806_v31 = vrot.slane %v26114_v50, 4  ;;  %v22081_v50 = vld [vmem:[#allocation4 + $0x90] sm:$0xff] }
 0x4f3   : > { %20259 = vmatprep.mubr.msk.bf16.mxu1 %vm6894_vm12, %v13855_v19 }
 0x4f4   : > { %v14807_v19 = vsel %vm5102_vm4, %v14804_v11, %v14806_v31  ;;  %v22094_v11 = vmov 0.0|0.0  }
 0x4f6   : > { %20346 = vmatmul.mubr.msk.bf16.gmra.mrb[68].mxu0 %vm6894_vm12, %v14799_v59  ;;  %v14965_v59 = vsel %vm5453_vm5, %v14961_v9, %v25600_v34  ;;  %v22039_v34 = vld [vmem:[%s26808_s9 + $0x20] sm:$0xff]  }
 0x4f7   : > { %20349 = vmatprep.mubr.msk.bf16.mxu0 %vm6894_vm12, %v14801_v54  ;;  %v22080_v54 = vld [vmem:[#allocation4 + $0x88] sm:$0xff] }
 0x4f8   : > { %v14041_v28 = vrot.slane %v22080_v54, 4  ;;  %v27141_v54 = vld [vmem:[#allocation40_spill] sm:$0xff] }
 0x4fa   : > { %20260 = vmatmul.mubr.msk.bf16.gmra.mrb[72].mxu1 %vm6894_vm12, %v27135_v25  ;;  %v14042_v61 = vsel %vm5102_vm4, %v14039_v41, %v14041_v28  ;;  %v22083_v25 = vld [vmem:[#allocation4 + $0xa0] sm:$0xff] }
 0x4fb   : > { %20263 = vmatprep.mubr.msk.bf16.mxu1 %vm6894_vm12, %v25914_v6  ;;  %v13882_v6 = vsel %vm5245_vm9, %v25896_v4, %v13881_v55  ;;  %v14043_v4 = vrot.slane %v22081_v50, 4  ;;  %v14047_v21 = vrot.slane %v22083_v25, 4  ;;  %v27142_v50 = vld [vmem:[#allocation26_spill] sm:$0xff] }
 0x4fd   : > { %v14044_v16 = vsel %vm5102_vm4, %v14041_v28, %v14043_v4  ;;  %v14048_v13 = vsel %vm5102_vm4, %v14045_v36, %v14047_v21  ;;  %v14050_v38 = vsel %vm5102_vm4, %v14047_v21, %v26288_v2 }
 0x4fe   : > { %20350 = vmatmul.mubr.msk.bf16.gmra.mrb[72].mxu0 %vm6894_vm12, %v14803_v23  ;;  %v14951_v23 = vld [vmem:[#allocation4 + $0xe0] sm:$0x1f] }
 0x4ff   : > { %20353 = vmatprep.mubr.msk.bf16.mxu0 %vm6894_vm12, %v14805_v20  ;;  %v14991_v20 = vshrl.u32 %v14951_v23, 16  ;;  %v14994_v45 = vshll.u32 %v14951_v23, 16  ;;  %v27144_v23 = vld [vmem:[#allocation38_spill] sm:$0xff] }
 0x501   : > { %v14993_v55 = vrot.slane %v14991_v20, 4 }
 0x502   : > { %20264 = vmatmul.mubr.msk.bf16.gmra.mrb[76].mxu1 %vm6894_vm12, %v13882_v6 }
 0x503   : > { %20269 = vmatprep.mubr.msk.bf16.mxu1 %vm6894_vm12, %v14040_v30  ;;  %v27139_v30 = vld [vmem:[#allocation25_spill] sm:$0xff] }
 0x506   : > { %20354 = vmatmul.mubr.msk.bf16.gmra.mrb[76].mxu0 %vm6894_vm12, %v14807_v19  ;;  %v27140_v19 = vrot.slane %v27139_v30, 7 }
 0x507   : > { %20359 = vmatprep.mubr.msk.bf16.mxu0 %vm6894_vm12, %v14965_v59 }
 0x50a   : > { %20270 = vmatmul.mubr.msk.bf16.vlgmr.msra.gmra.mrb[64].mxu1 %vm6894_vm12, %v14042_v61 }
 0x50b   : > { %20273 = vmatprep.mubr.msk.bf16.mxu1 %vm6894_vm12, %v14044_v16  ;;  %20286 = vmatpush3.bf16.msra.mxu1 %v26307_v14  ;;  %v14046_v14 = vsel %vm5102_vm4, %v14043_v4, %v14045_v36  ;;  %v22041_v16 = vld [vmem:[%s26808_s9 + $0x30] sm:$0xff]  }
 0x50c   : > { %20603 = vmatprep.subr.bf16.mxu1 %v22094_v11 }
 0x50e   : > { %20360 = vmatmul.mubr.msk.bf16.vlgmr.msra.gmra.mrb[64].mxu0 %vm6894_vm12, %v25980_v58 }
 0x50f   : > { %20363 = vmatprep.mubr.msk.bf16.mxu0 %vm6894_vm12, %v25994_v12  ;;  %20376 = vmatpush3.bf16.msra.mxu0 %v26320_v62  ;;  %v14202_v12 = vshrl.u32 %v14026_v43, 16  ;;  %v14205_v62 = vshll.u32 %v14026_v43, 16  ;;  %v15154_v43 = vshrl.u32 %v15142_v10, 16 }
 0x510   : > { %20393 = vmatprep.subr.bf16.mxu0 %v22039_v34 }
 0x511   : > { %v14204_v42 = vrot.slane %v14202_v12, 4  ;;  %v14207_v41 = vrot.slane %v14205_v62, 5  ;;  %v15156_v9 = vrot.slane %v15154_v43, 7  ;;  %v27145_v12 = vld [vmem:[#allocation33_spill] sm:$0xff] }
 0x512   : > { %20274 = vmatmul.mubr.msk.bf16.gmra.mrb[68].mxu1 %vm6894_vm12, %v14046_v14  ;;  %v26498_v43 = vld [vmem:[%s26808_s9 + $0x38] sm:$0xff]  }
 0x513   : > { %20277 = vmatprep.mubr.msk.bf16.mxu1 %vm6894_vm12, %v14048_v13  ;;  %v14208_v2 = vor.u32 %v14207_v41, %v14204_v42 }
 0x516   : > { %20364 = vmatmul.mubr.msk.bf16.gmra.mrb[68].mxu0 %vm6894_vm12, %v25997_v56  ;;  %v14996_v56 = vrot.slane %v14994_v45, 5 }
 0x517   : > { %20367 = vmatprep.mubr.msk.bf16.mxu0 %vm6894_vm12, %v26000_v44  ;;  %v14053_v44 = vrot.slane %v26343_v29, 4  ;;  %v15216_v29 = vrot.slane %v26135_v32, 7 }
 0x518   : > { %v14997_v31 = vor.u32 %v14996_v56, %v14993_v55 }
 0x519   : > { %v14054_v6 = vsel %vm5102_vm4, %v26302_v7, %v14053_v44  ;;  %v27137_v7 = vld [vmem:[#allocation24_spill] sm:$0xff]  ;;  %v15219_v28 = vor.u32 %v27141_v54, %v15216_v29 }
 0x51a   : > { %20278 = vmatmul.mubr.msk.bf16.gmra.mrb[72].mxu1 %vm6894_vm12, %v14050_v38 }
 0x51b   : > { %20281 = vmatprep.mubr.msk.bf16.mxu1 %vm6894_vm12, %v26325_v39  ;;  %v14212_v39 = vsel %vm5453_vm5, %v14208_v2, %v25630_v48  ;;  %v22040_v48 = vld [vmem:[%s26808_s9 + $0x28] sm:$0xff]  }
 0x51e   : > { %20368 = vmatmul.mubr.msk.bf16.gmra.mrb[72].mxu0 %vm6894_vm12, %v26007_v26  ;;  %v14998_v26 = vsel %vm5453_vm5, %v26009_v52, %v14997_v31  ;;  %v27146_v31 = vld [vmem:[#allocation34_spill] sm:$0xff] }
 0x51f   : > { %20371 = vmatprep.mubr.msk.bf16.mxu0 %vm6894_vm12, %v26021_v46  ;;  %v15164_v46 = vsel %vm5650_vm11, %v15156_v9, %v26026_v63  ;;  %v27147_v9 = vld [vmem:[#allocation36_spill] sm:$0xff] }
 0x522   : > { %20282 = vmatmul.mubr.msk.bf16.gmra.mrb[76].mxu1 %vm6894_vm12, %v14054_v6 }
 0x523   : > { %20287 = vmatprep.mubr.msk.bf16.mxu1 %vm6894_vm12, %v14212_v39 }
 0x526   : > { %20372 = vmatmul.mubr.msk.bf16.gmra.mrb[76].mxu0 %vm6894_vm12, %v14998_v26 }
 0x527   : > { %20377 = vmatprep.mubr.msk.bf16.mxu0 %vm6894_vm12, %v15164_v46 }
 0x52a   : > { %20288 = vmatmul.mubr.msk.bf16.vlgmr.msra.gmra.mrb[64].mxu1 %vm6894_vm12, %v25644_v1  ;;  %v14198_v1 = vld [vmem:[#allocation4 + $0xb8] sm:$0x1f] }
 0x52b   : > { %20291 = vmatprep.mubr.msk.bf16.mxu1 %vm6894_vm12, %v25647_v3  ;;  %v15208_v3 = vrot.slane %v26122_v33, 7  ;;  %v14238_v52 = vshrl.u32 %v14198_v1, 16  ;;  %v14241_v63 = vshll.u32 %v14198_v1, 16 }
 0x52d   : > { %v15220_v61 = vsel %vm5650_vm11, %v15208_v3, %v15219_v28 }
 0x52e   : > { %20378 = vmatmul.mubr.msk.bf16.vlgmr.msra.gmra.mrb[64].mxu0 %vm6894_vm12, %v26036_v5  ;;  %v27136_v5 = vld [vmem:[#allocation39_spill] sm:$0xff] }
 0x52f   : > { %20381 = vmatprep.mubr.msk.bf16.mxu0 %vm6894_vm12, %v26041_v35  ;;  %20394 = vmatpush3.bf16.msra.mxu0 %v22039_v34  ;;  %v15211_v35 = vor.u32 %v27136_v5, %v15208_v3  ;;  %v16359_v34 = vlaneseq }
 0x530   : > { %20411 = vmatprep.subr.bf16.mxu0 %v22040_v48 }
 0x531   : > { %v16360_v47 = vshrl.u32 %v16359_v34, 7  ;;  %v16362_v20 = vand.u32 127, %v16359_v34 }
 0x532   : > { %20292 = vmatmul.mubr.msk.bf16.gmra.mrb[68].mxu1 %vm6894_vm12, %v25655_v51  ;;  %v14240_v51 = vrot.slane %v14238_v52, 4 }
 0x533   : > { %20295 = vmatprep.mubr.msk.bf16.mxu1 %vm6894_vm12, %v25662_v49  ;;  %v14243_v49 = vrot.slane %v14241_v63, 5  ;;  %v16363_v13 = vmul.u32 2, %v16360_v47 }
 0x535   : > { %v14244_v59 = vor.u32 %v14243_v49, %v14240_v51  ;;  %v16365_v45 = vadd.s32 1, %v16363_v13  ;;  %v16368_v56 = vadd.s32 24, %v16363_v13  ;;  %vm16364_vm1 = vcmp.eq.s32.totalorder %v16362_v20, %v16363_v13 }
 0x536   : > { %20382 = vmatmul.mubr.msk.bf16.gmra.mrb[68].mxu0 %vm6894_vm12, %v26050_v57  ;;  %v27138_v57 = vld [vmem:[#allocation28_spill] sm:$0xff] }
 0x537   : > { %20385 = vmatprep.mubr.msk.bf16.mxu0 %vm6894_vm12, %v26056_v22  ;;  %v15212_v22 = vsel %vm5650_vm11, %v27140_v19, %v15211_v35  ;;  %v14245_v4 = vsel %vm5453_vm5, %v27142_v50, %v14244_v59  ;;  %vm16366_vm2 = vcmp.eq.s32.totalorder %v16362_v20, %v16365_v45  ;;  %v16371_v46 = vadd.s32 1, %v16368_v56  ;;  %v27148_v19 = vld [vmem:[#allocation32_spill] sm:$0xff]  ;;  %v27149_v59 = vld [vmem:[#allocation37_spill] sm:$0xff] }
 0x538   : > { %vm16367_vm6 = vmor %vm16364_vm1, %vm16366_vm2  ;;  %vm16369_vm7 = vcmp.eq.s32.totalorder %v16362_v20, %v16368_v56 }
 0x539   : > { %vm16370_vm8 = vmor %vm16367_vm6, %vm16369_vm7  ;;  %vm16372_vm11 = vcmp.eq.s32.totalorder %v16362_v20, %v16371_v46 }
 0x53a   : > { %20296 = vmatmul.mubr.msk.bf16.gmra.mrb[72].mxu1 %vm6894_vm12, %v27137_v7  ;;  %vm16373_vm13 = vmor %vm16370_vm8, %vm16372_vm11 }
 0x53b   : > { %20299 = vmatprep.mubr.msk.bf16.mxu1 %vm6894_vm12, %v25980_v58  ;;  %v22096_v58 = vmov 0.0  }
 0x53c   : > { %v26525_v50 = vsel %vm16373_vm13, 0.25, %v22096_v58 }
 0x53e   : > { %20386 = vmatmul.mubr.msk.bf16.gmra.mrb[72].mxu0 %vm6894_vm12, %v27138_v57 }
 0x53f   : > { %20389 = vmatprep.mubr.msk.bf16.mxu0 %vm6894_vm12, %v15212_v22  ;;  %v15562_v22 = vrot.slane %v27136_v5, 1 }
 0x541   : > { %v15566_v5 = vor.u32 %v15562_v22, %v26122_v33 }
 0x542   : > { %20300 = vmatmul.mubr.msk.bf16.gmra.mrb[76].mxu1 %vm6894_vm12, %v14245_v4  ;;  %v15723_v4 = vld [vmem:[#allocation4 + $0xb8] sm:$0xf8] }
 0x543   : > { %20493 = vmatprep.mubr.msk.f32.mxu1 %vm22095_vm0, %v22096_v58 }
 0x546   : > { %20390 = vmatmul.mubr.msk.bf16.gmra.mrb[76].mxu0 %vm6894_vm12, %v15220_v61 }
 0x547   : > { %20395 = vmatprep.mubr.msk.bf16.mxu0 %vm6894_vm12, %v25841_v8  ;;  %v27143_v8 = vld [vmem:[#allocation35_spill] sm:$0xff] }
 0x54e   : > { %20396 = vmatmul.mubr.msk.bf16.vlgmr.msra.gmra.mrb[64].mxu0 %vm6894_vm12, %v25905_v40  ;;  %v26477_v40 = vld [vmem:[%s26809_s10] ss:$0 sm:$0xff] }
 0x54f   : > { %20399 = vmatprep.mubr.msk.bf16.mxu0 %vm6894_vm12, %v25909_v37  ;;  %20412 = vmatpush3.bf16.msra.mxu0 %v22040_v48 }
 0x550   : > { %20429 = vmatprep.subr.bf16.mxu0 %v22041_v16 }
 0x556   : > { %20400 = vmatmul.mubr.msk.bf16.gmra.mrb[68].mxu0 %vm6894_vm12, %v25918_v18 }
 0x557   : > { %20403 = vmatprep.mubr.msk.bf16.mxu0 %vm6894_vm12, %v25946_v27 }
 0x55e   : > { %20404 = vmatmul.mubr.msk.bf16.gmra.mrb[72].mxu0 %vm6894_vm12, %v25928_v53 }
 0x55f   : > { %20407 = vmatprep.mubr.msk.bf16.mxu0 %vm6894_vm12, %v27143_v8 }
 0x561   : > { %v20109_v37 = vpop.f32.mrb[48].mxu0 }
 0x562   : > { %v12467_v36 = vadd.f32 %v20109_v37, %v26477_v40  ;;  %v12379_v18 = vpop.f32.mrb[49].mxu0  ;;  %v15509_v37 = vld [vmem:[#allocation4 + $0xf0] sm:$0x1] }
 0x563   : > { %v12465_v25 = vadd.f32 %v26477_v40, %v12379_v18  ;;  %v20110_v27 = vpop.f32.mrb[50].mxu0  ;;  %v27150_v18 = vld [vmem:[#allocation31_spill] sm:$0xff] }
 0x564   : > { %12483 = vst.msk [vmem:[#allocation5 + $0x70] sm:$0xff] %vm6894_vm12, %v12467_v36  ;;  %v12468_v53 = vadd.f32 %v20110_v27, %v26477_v40  ;;  %v12382_v21 = vpop.f32.mrb[51].mxu0 }
 0x565   : > { %12481 = vst.msk [vmem:[#allocation5 + $0x60] sm:$0xff] %vm6894_vm12, %v12465_v25  ;;  %v12466_v14 = vadd.f32 %v26477_v40, %v12382_v21  ;;  %v27151_v25 = vrot.slane %v27150_v18, 1 }
 0x566   : > { %12484 = vst.msk [vmem:[#allocation5 + $0x78] sm:$0xff] %vm6894_vm12, %v12468_v53  ;;  %20408 = vmatmul.mubr.msk.bf16.gmra.mrb[76].mxu0 %vm6894_vm12, %v27144_v23 }
 0x567   : > { %12482 = vst.msk [vmem:[#allocation5 + $0x68] sm:$0xff] %vm6894_vm12, %v12466_v14  ;;  %20413 = vmatprep.mubr.msk.bf16.mxu0 %vm6894_vm12, %v27145_v12  ;;  %v15558_v27 = vor.u32 %v27151_v25, %v27139_v30  ;;  %v15570_v14 = vrot.slane %v27141_v54, 1  ;;  %v15735_v12 = vshrl.u32 %v15723_v4, 16 }
 0x569   : > { %v20113_v62 = vpop.f32.mrb[52].mxu0  ;;  %v15563_v20 = vsel %vm6004_vm10, %v15558_v27, %v15562_v22  ;;  %v15571_v54 = vsel %vm6004_vm10, %v15566_v5, %v15570_v14 }
 0x56a   : > { %v12471_v38 = vadd.f32 %v20113_v62, %v26477_v40  ;;  %v12395_v42 = vpop.f32.mrb[53].mxu0  ;;  %v15738_v62 = vshll.u32 %v15723_v4, 16 }
 0x56b   : > { %v12469_v41 = vadd.f32 %v26477_v40, %v12395_v42  ;;  %v20114_v55 = vpop.f32.mrb[54].mxu0 }
 0x56c   : > { %12487 = vst.msk [vmem:[#allocation5 + $0x90] sm:$0xff] %vm6894_vm12, %v12471_v38  ;;  %v12472_v10 = vadd.f32 %v20114_v55, %v26477_v40  ;;  %v12398_v44 = vpop.f32.mrb[55].mxu0  ;;  %v15576_v38 = vshll.u32 %v15509_v37, 16  ;;  %v27152_v55 = vld [vmem:[#allocation41_spill] sm:$0xff]  ;;  %v27161_v37 = vld [vmem:[#allocation8_spill] sm:$0xff] }
 0x56d   : > { %12485 = vst.msk [vmem:[#allocation5 + $0x80] sm:$0xff] %vm6894_vm12, %v12469_v41  ;;  %v12470_v2 = vadd.f32 %v26477_v40, %v12398_v44  ;;  %v16377_v51 = vld [vmem:[#allocation5 + $0x74] sm:$0xff]  ;;  %v27153_v56 = vshrl.u32 %v27152_v55, 16  ;;  %v27154_v44 = vshll.u32 %v27152_v55, 16  ;;  %v27163_v18 = vshll.u32 %v27161_v37, 16 }
 0x56e   : > { %12488 = vst.msk [vmem:[#allocation5 + $0x98] sm:$0xff] %vm6894_vm12, %v12472_v10  ;;  %20414 = vmatmul.mubr.msk.bf16.vlgmr.msra.gmra.mrb[64].mxu0 %vm6894_vm12, %v27146_v31  ;;  %v16375_v6 = vld [vmem:[#allocation5 + $0x64] sm:$0xff]  ;;  %v16376_v39 = vld [vmem:[#allocation5 + $0x6c] sm:$0xff]  ;;  %v15737_v31 = vrot.slane %v15735_v12, 3  ;;  %v27165_v12 = vshrl.u32 %v26175_v15, 16 }
 0x56f   : > { %12486 = vst.msk [vmem:[#allocation5 + $0x88] sm:$0xff] %vm6894_vm12, %v12470_v2  ;;  %20417 = vmatprep.mubr.msk.bf16.mxu0 %vm6894_vm12, %v27147_v9  ;;  %20430 = vmatpush3.bf16.msra.mxu0 %v22041_v16  ;;  %v20604_v26 = vpack.c.bf16 %v16376_v39, %v16375_v6  ;;  %v15745_v10 = vrot.slane %v27153_v56, 3  ;;  %v15748_v2 = vrot.slane %v27154_v44, 4  ;;  %v15740_v6 = vrot.slane %v15738_v62, 4  ;;  %v27168_v56 = vld [vmem:[#allocation11_spill] sm:$0xff] }
 0x570   : > { %20447 = vmatprep.subr.bf16.mxu0 %v26498_v43  ;;  %v15574_v9 = vor.u32 %v15570_v14, %v26135_v32  ;;  %v15775_v25 = vrot.slane %v27163_v18, 4  ;;  %v15799_v62 = vrot.slane %v27165_v12, 3 }
 0x571   : > { %v20117_v48 = vpop.f32.mrb[56].mxu0  ;;  %20605 = vmatpush3.bf16.msra.mxu1 %v20604_v26  ;;  %v15578_v26 = vrot.slane %v15576_v38, 1  ;;  %v15749_v46 = vor.u32 %v15748_v2, %v15745_v10  ;;  %v15957_v2 = vld [vmem:[#allocation4 + $0xb8] sm:$0xf0] }
 0x572   : > { %v12475_v1 = vadd.f32 %v20117_v48, %v26477_v40  ;;  %v12411_v3 = vpop.f32.mrb[57].mxu0  ;;  %20606 = vmatprep.subr.bf16.mxu1 %v22094_v11  ;;  %v15741_v48 = vor.u32 %v15740_v6, %v15737_v31  ;;  %v15970_v31 = vrot.slane %v27152_v55, 4  ;;  %v15976_v55 = vrot.slane %v27161_v37, 4 }
 0x573   : > { %v12473_v52 = vadd.f32 %v26477_v40, %v12411_v3  ;;  %v20118_v63 = vpop.f32.mrb[58].mxu0  ;;  %v27155_v3 = vld [vmem:[#allocation44_spill] sm:$0xff] }
 0x574   : > { %12491 = vst.msk [vmem:[#allocation5 + $0xb0] sm:$0xff] %vm6894_vm12, %v12475_v1  ;;  %v12476_v35 = vadd.f32 %v20118_v63, %v26477_v40  ;;  %v12414_v7 = vpop.f32.mrb[59].mxu0  ;;  %v16378_v49 = vld [vmem:[#allocation5 + $0x7c] sm:$0xff]  ;;  %v15579_v1 = vsel %vm6004_vm10, %v15574_v9, %v15578_v26  ;;  %v15972_v26 = vrot.slane %v27155_v3, 4 }
 0x575   : > { %12489 = vst.msk [vmem:[#allocation5 + $0xa0] sm:$0xff] %vm6894_vm12, %v12473_v52  ;;  %v12474_v29 = vadd.f32 %v26477_v40, %v12414_v7  ;;  %v20607_v57 = vpack.c.bf16 %v16378_v49, %v16377_v51  ;;  %v16471_v33 = vld [vmem:[#allocation5 + $0x94] sm:$0xff]  ;;  %v27156_v52 = vshrl.u32 %v27155_v3, 16  ;;  %v15750_v51 = vsel %vm5245_vm9, %v15741_v48, %v15749_v46 }
 0x576   : > { %12492 = vst.msk [vmem:[#allocation5 + $0xb8] sm:$0xff] %vm6894_vm12, %v12476_v35  ;;  %20418 = vmatmul.mubr.msk.bf16.gmra.mrb[68].mxu0 %vm6894_vm12, %v27148_v19  ;;  %v16379_v34 = vld [vmem:[#allocation5 + $0x84] sm:$0xff]  ;;  %v27157_v35 = vshll.u32 %v27155_v3, 16  ;;  %v15973_v48 = vsel %vm5102_vm4, %v15970_v31, %v15972_v26 }
 0x577   : > { %12490 = vst.msk [vmem:[#allocation5 + $0xa8] sm:$0xff] %vm6894_vm12, %v12474_v29  ;;  %20421 = vmatprep.mubr.msk.bf16.mxu0 %vm6894_vm12, %v27149_v59  ;;  %20608 = vmatpush3.bf16.msra.mxu1 %v20607_v57  ;;  %v15754_v63 = vrot.slane %v27156_v52, 3  ;;  %v27158_v57 = vld [vmem:[#allocation43_spill] sm:$0xff]  ;;  %v15978_v52 = vrot.slane %v27143_v8, 4 }
 0x578   : > { %20491 = vmatprep.subr.mxu1 %v22096_v58  ;;  %v15757_v7 = vrot.slane %v27157_v35, 4  ;;  %v27159_v19 = vshrl.u32 %v27158_v57, 16  ;;  %v27160_v59 = vshll.u32 %v27158_v57, 16  ;;  %v15980_v35 = vrot.slane %v27144_v23, 4  ;;  %v27169_v23 = vld [vmem:[#allocation29_spill] sm:$0xff] }
 0x579   : > { %v20121_v28 = vpop.f32.mrb[60].mxu0  ;;  %v15979_v3 = vsel %vm5102_vm4, %v15976_v55, %v15978_v52 }
 0x57a   : > { %v12479_v61 = vadd.f32 %v20121_v28, %v26477_v40  ;;  %v12427_v16 = vpop.f32.mrb[61].mxu0  ;;  %v15763_v22 = vrot.slane %v27159_v19, 3  ;;  %v15766_v28 = vrot.slane %v27160_v59, 4 }
 0x57b   : > { %v12477_v47 = vadd.f32 %v26477_v40, %v12427_v16  ;;  %v20122_v36 = vpop.f32.mrb[62].mxu0  ;;  %20492 = vmatpush3.msra.mxu1 %v16379_v34  ;;  %v22043_v34 = vld [vmem:[%s26808_s9 + $0x40] sm:$0xff]  }
 0x57c   : > { %12495 = vst.msk [vmem:[#allocation5 + $0xd0] sm:$0xff] %vm6894_vm12, %v12479_v61  ;;  %v12480_v53 = vadd.f32 %v20122_v36, %v26477_v40  ;;  %v12430_v21 = vpop.f32.mrb[63].mxu0  ;;  %20609 = vmatprep.subr.bf16.mxu1 %v22094_v11  ;;  %20494 = vmatmul.mubr.msk.f32.vlgmr.msra.gmra.mrb[80].mxu1 %vm16380_vm14, %v26525_v50  ;;  %v16472_v13 = vld [vmem:[#allocation5 + $0x9c] sm:$0xff]  ;;  %v15758_v61 = vor.u32 %v15757_v7, %v15754_v63  ;;  %v15982_v7 = vrot.slane %v26175_v15, 4 }
 0x57d   : > { %12493 = vst.msk [vmem:[#allocation5 + $0xc0] sm:$0xff] %vm6894_vm12, %v12477_v47  ;;  %v12478_v30 = vadd.f32 %v26477_v40, %v12430_v21  ;;  %v20610_v45 = vpack.c.bf16 %v16472_v13, %v16471_v33  ;;  %20506 = vmatprep.mubr.msk.f32.mxu1 %vm22095_vm0, %v22096_v58  ;;  %v16475_v49 = vld [vmem:[#allocation5 + $0xb4] sm:$0xff]  ;;  %v15767_v16 = vor.u32 %v15766_v28, %v15763_v22  ;;  %v27162_v47 = vshrl.u32 %v27161_v37, 16  ;;  %v27164_v33 = vld [vmem:[#allocation42_spill] sm:$0xff] }
 0x57e   : > { %12496 = vst.msk [vmem:[#allocation5 + $0xd8] sm:$0xff] %vm6894_vm12, %v12480_v53  ;;  %20422 = vmatmul.mubr.msk.bf16.gmra.mrb[72].mxu0 %vm6894_vm12, %v15563_v20  ;;  %v16473_v42 = vld [vmem:[#allocation5 + $0xa4] sm:$0xff]  ;;  %v16474_v41 = vld [vmem:[#allocation5 + $0xac] sm:$0xff]  ;;  %v15759_v5 = vsel %vm5245_vm9, %v15749_v46, %v15758_v61  ;;  %v15731_v21 = vld [vmem:[#allocation4 + $0xf8] sm:$0xf]  ;;  %v15974_v46 = vrot.slane %v27158_v57, 4  ;;  %v15983_v8 = vsel %vm5102_vm4, %v15980_v35, %v15982_v7 }
 0x57f   : > { %12494 = vst.msk [vmem:[#allocation5 + $0xc8] sm:$0xff] %vm6894_vm12, %v12478_v30  ;;  %20425 = vmatprep.mubr.msk.bf16.mxu0 %vm6894_vm12, %v15571_v54  ;;  %20611 = vmatpush3.bf16.msra.mxu1 %v20610_v45  ;;  %v20613_v39 = vpack.c.bf16 %v16474_v41, %v16473_v42  ;;  %v15772_v36 = vrot.slane %v27162_v47, 3  ;;  %v15768_v27 = vsel %vm5245_vm9, %v15758_v61, %v15767_v16  ;;  %v27166_v30 = vshll.u32 %v26175_v15, 16  ;;  %v27167_v41 = vld [vmem:[#allocation6_spill] sm:$0xff]  ;;  %v27170_v28 = vld [vmem:[#allocation12_spill] sm:$0xff] }
 0x580   : > { %20612 = vmatprep.subr.bf16.mxu1 %v22094_v11  ;;  %v15806_v45 = vshrl.u32 %v15731_v21, 16  ;;  %v15977_v63 = vsel %vm5102_vm4, %v15974_v46, %v15976_v55  ;;  %v27171_v37 = vld [vmem:[#allocation16_spill] sm:$0xff] }
 0x581   : > { %v15776_v53 = vor.u32 %v15775_v25, %v15772_v36  ;;  %v15802_v20 = vrot.slane %v27166_v30, 4  ;;  %v27172_v36 = vld [vmem:[#allocation10_spill] sm:$0xff] }
 0x582   : > { %v15808_v54 = vrot.slane %v15806_v45, 3 }
 0x583   : > { %20614 = vmatpush3.bf16.msra.mxu1 %v20613_v39  ;;  %v15777_v14 = vsel %vm5245_vm9, %v15767_v16, %v15776_v53  ;;  %v15786_v13 = vsel %vm5245_vm9, %v15776_v53, %v27164_v33  ;;  %v15803_v38 = vor.u32 %v15802_v20, %v15799_v62  ;;  %v15969_v39 = vrot.slane %v15957_v2, 4 }
 0x584   : > { %20504 = vmatprep.subr.mxu1 %v22096_v58 }
 0x585   : > { %v15804_v10 = vsel %vm5245_vm9, %v27168_v56, %v15803_v38  ;;  %v15971_v9 = vsel %vm5102_vm4, %v15969_v39, %v15970_v31  ;;  %v16551_v45 = vld [vmem:[#allocation5 + $0xd4] sm:$0xff] }
 0x586   : > { %20426 = vmatmul.mubr.msk.bf16.gmra.mrb[76].mxu0 %vm6894_vm12, %v15579_v1  ;;  %v16549_v32 = vld [vmem:[#allocation5 + $0xc4] sm:$0xff]  ;;  %v16550_v29 = vld [vmem:[#allocation5 + $0xcc] sm:$0xff]  ;;  %v15975_v1 = vsel %vm5102_vm4, %v15972_v26, %v15974_v46 }
 0x587   : > { %20431 = vmatprep.mubr.msk.bf16.mxu0 %vm6894_vm12, %v15750_v51  ;;  %20505 = vmatpush3.msra.mxu1 %v16475_v49  ;;  %v20616_v4 = vpack.c.bf16 %v16550_v29, %v16549_v32  ;;  %v16133_v51 = vshrl.u32 %v15957_v2, 16  ;;  %v16136_v49 = vshll.u32 %v15957_v2, 16  ;;  %v15981_v32 = vsel %vm5102_vm4, %v15978_v52, %v15980_v35 }
 0x588   : > { %20615 = vmatprep.subr.bf16.mxu1 %v22094_v11  ;;  %20507 = vmatmul.mubr.msk.f32.vlgmr.msra.gmra.mrb[82].mxu1 %vm16380_vm14, %v26525_v50  ;;  %v15984_v29 = vrot.slane %v15731_v21, 4 }
 0x589   : > { %20617 = vmatpush3.bf16.msra.mxu1 %v20616_v4  ;;  %20519 = vmatprep.mubr.msk.f32.mxu1 %vm22095_vm0, %v22096_v58  ;;  %v16135_v57 = vrot.slane %v16133_v51, 4  ;;  %v16138_v19 = vrot.slane %v16136_v49, 5  ;;  %v16129_v4 = vld [vmem:[#allocation4 + $0xf8] sm:$0x1f] }
 0x58a   : > { %20618 = vmatprep.subr.bf16.mxu1 %v22094_v11  ;;  %v15985_v22 = vsel %vm5102_vm4, %v15982_v7, %v15984_v29  ;;  %v16169_v61 = vshrl.u32 %v16129_v4, 16  ;;  %v16172_v16 = vshll.u32 %v16129_v4, 16 }
 0x58b   : > { %v16139_v59 = vor.u32 %v16138_v19, %v16135_v57 }
 0x58d   : > { %v16143_v15 = vsel %vm5453_vm5, %v16139_v59, %v27169_v23 }
 0x58e   : > { %20432 = vmatmul.mubr.msk.bf16.vlgmr.msra.gmra.mrb[64].mxu0 %vm6894_vm12, %v15759_v5  ;;  %v16174_v5 = vrot.slane %v16172_v16, 5 }
 0x58f   : > { %20435 = vmatprep.mubr.msk.bf16.mxu0 %vm6894_vm12, %v15768_v27  ;;  %20448 = vmatpush3.bf16.msra.mxu0 %v26498_v43  ;;  %v15809_v43 = vshll.u32 %v15731_v21, 16 }
 0x590   : > { %20465 = vmatprep.subr.bf16.mxu0 %v22043_v34 }
 0x591   : > { %v15811_v42 = vrot.slane %v15809_v43, 4 }
 0x593   : > { %v15812_v44 = vor.u32 %v15811_v42, %v15808_v54 }
 0x595   : > { %v15813_v6 = vsel %vm5245_vm9, %v15803_v38, %v15812_v44 }
 0x596   : > { %20436 = vmatmul.mubr.msk.bf16.gmra.mrb[68].mxu0 %vm6894_vm12, %v15777_v14 }
 0x597   : > { %20439 = vmatprep.mubr.msk.bf16.mxu0 %vm6894_vm12, %v15786_v13 }
 0x59e   : > { %20440 = vmatmul.mubr.msk.bf16.gmra.mrb[72].mxu0 %vm6894_vm12, %v27167_v41 }
 0x59f   : > { %20443 = vmatprep.mubr.msk.bf16.mxu0 %vm6894_vm12, %v15804_v10 }
 0x5a6   : > { %20444 = vmatmul.mubr.msk.bf16.gmra.mrb[76].mxu0 %vm6894_vm12, %v15813_v6 }
 0x5a7   : > { %20449 = vmatprep.mubr.msk.bf16.mxu0 %vm6894_vm12, %v15971_v9 }
 0x5ae   : > { %20450 = vmatmul.mubr.msk.bf16.vlgmr.msra.gmra.mrb[64].mxu0 %vm6894_vm12, %v15973_v48 }
 0x5af   : > { %20453 = vmatprep.mubr.msk.bf16.mxu0 %vm6894_vm12, %v15975_v1  ;;  %20466 = vmatpush3.bf16.msra.mxu0 %v22043_v34  ;;  %v16171_v34 = vrot.slane %v16169_v61, 4 }
 0x5b1   : > { %v16175_v47 = vor.u32 %v16174_v5, %v16171_v34 }
 0x5b6   : > { %20454 = vmatmul.mubr.msk.bf16.gmra.mrb[68].mxu0 %vm6894_vm12, %v15977_v63 }
 0x5b7   : > { %20457 = vmatprep.mubr.msk.bf16.mxu0 %vm6894_vm12, %v15979_v3 }
 0x5be   : > { %20458 = vmatmul.mubr.msk.bf16.gmra.mrb[72].mxu0 %vm6894_vm12, %v15981_v32 }
 0x5bf   : > { %20461 = vmatprep.mubr.msk.bf16.mxu0 %vm6894_vm12, %v15983_v8 }
 0x5c6   : > { %20462 = vmatmul.mubr.msk.bf16.gmra.mrb[76].mxu0 %vm6894_vm12, %v15985_v22 }
 0x5c7   : > { %20467 = vmatprep.mubr.msk.bf16.mxu0 %vm6894_vm12, %v16143_v15 }
 0x5ce   : > { %20468 = vmatmul.mubr.msk.bf16.vlgmr.msra.gmra.mrb[64].mxu0 %vm6894_vm12, %v27170_v28 }
 0x5cf   : > { %20471 = vmatprep.mubr.msk.bf16.mxu0 %vm6894_vm12, %v26226_v0  ;;  %v16176_v0 = vsel %vm5453_vm5, %v27172_v36, %v16175_v47 }
 0x5d6   : > { %20472 = vmatmul.mubr.msk.bf16.gmra.mrb[68].mxu0 %vm6894_vm12, %v26232_v60 }
 0x5d7   : > { %20475 = vmatprep.mubr.msk.bf16.mxu0 %vm6894_vm12, %v26235_v17 }
 0x5de   : > { %20476 = vmatmul.mubr.msk.bf16.gmra.mrb[72].mxu0 %vm6894_vm12, %v26241_v24 }
 0x5df   : > { %20479 = vmatprep.mubr.msk.bf16.mxu0 %vm6894_vm12, %v27171_v37 }
 0x5e6   : > { %20480 = vmatmul.mubr.msk.bf16.gmra.mrb[76].mxu0 %vm6894_vm12, %v16176_v0 }
 0x5fd   : > { %v20289_v60 = vpop.f32.mrb[64].mxu1 }
 0x5fe   : > { %v14398_v18 = vadd.f32 %v20289_v60, %v26477_v40  ;;  %v14310_v17 = vpop.f32.mrb[65].mxu1 }
 0x5ff   : > { %v14396_v25 = vadd.f32 %v26477_v40, %v14310_v17  ;;  %v20290_v27 = vpop.f32.mrb[66].mxu1 }
 0x600   : > { %14414 = vst.msk [vmem:[#allocation5 + $0xf0] sm:$0xff] %vm6894_vm12, %v14398_v18  ;;  %v14399_v24 = vadd.f32 %v20290_v27, %v26477_v40  ;;  %v14313_v53 = vpop.f32.mrb[67].mxu1 }
 0x601   : > { %14412 = vst.msk [vmem:[#allocation5 + $0xe0] sm:$0xff] %vm6894_vm12, %v14396_v25  ;;  %v14397_v21 = vadd.f32 %v26477_v40, %v14313_v53 }
 0x602   : > { %14415 = vst.msk [vmem:[#allocation5 + $0xf8] sm:$0xff] %vm6894_vm12, %v14399_v24 }
 0x603   : > { %14413 = vst.msk [vmem:[#allocation5 + $0xe8] sm:$0xff] %vm6894_vm12, %v14397_v21 }
 0x605   : > { %v20293_v14 = vpop.f32.mrb[68].mxu1 }
 0x606   : > { %v14402_v33 = vadd.f32 %v20293_v14, %v26477_v40  ;;  %v14326_v13 = vpop.f32.mrb[69].mxu1 }
 0x607   : > { %v14400_v12 = vadd.f32 %v26477_v40, %v14326_v13  ;;  %v20294_v62 = vpop.f32.mrb[70].mxu1 }
 0x608   : > { %14418 = vst.msk [vmem:[#allocation5 + $0x110] sm:$0xff] %vm6894_vm12, %v14402_v33  ;;  %v14403_v30 = vadd.f32 %v20294_v62, %v26477_v40  ;;  %v14329_v20 = vpop.f32.mrb[71].mxu1  ;;  %v16552_v43 = vld [vmem:[#allocation5 + $0xdc] sm:$0xff] }
 0x609   : > { %14416 = vst.msk [vmem:[#allocation5 + $0x100] sm:$0xff] %vm6894_vm12, %v14400_v12  ;;  %v14401_v38 = vadd.f32 %v26477_v40, %v14329_v20  ;;  %v20619_v54 = vpack.c.bf16 %v16552_v43, %v16551_v45  ;;  %v16627_v39 = vld [vmem:[#allocation5 + $0xf4] sm:$0xff] }
 0x60a   : > { %14419 = vst.msk [vmem:[#allocation5 + $0x118] sm:$0xff] %vm6894_vm12, %v14403_v30  ;;  %v16553_v10 = vld [vmem:[#allocation5 + $0xe4] sm:$0xff] }
 0x60b   : > { %14417 = vst.msk [vmem:[#allocation5 + $0x108] sm:$0xff] %vm6894_vm12, %v14401_v38  ;;  %20620 = vmatpush3.bf16.msra.mxu1 %v20619_v54 }
 0x60c   : > { %20517 = vmatprep.subr.mxu1 %v22096_v58 }
 0x60d   : > { %v20297_v42 = vpop.f32.mrb[72].mxu1 }
 0x60e   : > { %v14406_v41 = vadd.f32 %v20297_v42, %v26477_v40  ;;  %v14342_v56 = vpop.f32.mrb[73].mxu1 }
 0x60f   : > { %v14404_v44 = vadd.f32 %v26477_v40, %v14342_v56  ;;  %v20298_v2 = vpop.f32.mrb[74].mxu1  ;;  %20518 = vmatpush3.msra.mxu1 %v16553_v10 }
 0x610   : > { %14422 = vst.msk [vmem:[#allocation5 + $0x130] sm:$0xff] %vm6894_vm12, %v14406_v41  ;;  %v14407_v31 = vadd.f32 %v20298_v2, %v26477_v40  ;;  %v14345_v6 = vpop.f32.mrb[75].mxu1  ;;  %20621 = vmatprep.subr.bf16.mxu1 %v22094_v11  ;;  %20520 = vmatmul.mubr.msk.f32.vlgmr.msra.gmra.mrb[84].mxu1 %vm16380_vm14, %v26525_v50  ;;  %v16628_v9 = vld [vmem:[#allocation5 + $0xfc] sm:$0xff] }
 0x611   : > { %14420 = vst.msk [vmem:[#allocation5 + $0x120] sm:$0xff] %vm6894_vm12, %v14404_v44  ;;  %v14405_v26 = vadd.f32 %v26477_v40, %v14345_v6  ;;  %v20622_v46 = vpack.c.bf16 %v16628_v9, %v16627_v39  ;;  %20532 = vmatprep.mubr.msk.f32.mxu1 %vm22095_vm0, %v22096_v58  ;;  %v16631_v8 = vld [vmem:[#allocation5 + $0x114] sm:$0xff] }
 0x612   : > { %14423 = vst.msk [vmem:[#allocation5 + $0x138] sm:$0xff] %vm6894_vm12, %v14407_v31  ;;  %v16629_v48 = vld [vmem:[#allocation5 + $0x104] sm:$0xff]  ;;  %v16630_v1 = vld [vmem:[#allocation5 + $0x10c] sm:$0xff] }
 0x613   : > { %14421 = vst.msk [vmem:[#allocation5 + $0x128] sm:$0xff] %vm6894_vm12, %v14405_v26  ;;  %20623 = vmatpush3.bf16.msra.mxu1 %v20622_v46  ;;  %v20625_v52 = vpack.c.bf16 %v16630_v1, %v16629_v48 }
 0x614   : > { %20624 = vmatprep.subr.bf16.mxu1 %v22094_v11 }
 0x615   : > { %v20301_v55 = vpop.f32.mrb[76].mxu1 }
 0x616   : > { %v14410_v63 = vadd.f32 %v20301_v55, %v26477_v40  ;;  %v14358_v3 = vpop.f32.mrb[77].mxu1 }
 0x617   : > { %v14408_v35 = vadd.f32 %v26477_v40, %v14358_v3  ;;  %v20302_v7 = vpop.f32.mrb[78].mxu1  ;;  %20626 = vmatpush3.bf16.msra.mxu1 %v20625_v52 }
 0x618   : > { %14426 = vst.msk [vmem:[#allocation5 + $0x150] sm:$0xff] %vm6894_vm12, %v14410_v63  ;;  %v14411_v51 = vadd.f32 %v20302_v7, %v26477_v40  ;;  %v14361_v49 = vpop.f32.mrb[79].mxu1  ;;  %20530 = vmatprep.subr.mxu1 %v22096_v58 }
 0x619   : > { %14424 = vst.msk [vmem:[#allocation5 + $0x140] sm:$0xff] %vm6894_vm12, %v14408_v35  ;;  %v14409_v32 = vadd.f32 %v26477_v40, %v14361_v49  ;;  %v16707_v22 = vld [vmem:[#allocation5 + $0x134] sm:$0xff]  ;;  %v26743_v49 = vld [vmem:[%s26811_s12] ss:$0 sm:$0xff] }
 0x61a   : > { %14427 = vst.msk [vmem:[#allocation5 + $0x158] sm:$0xff] %vm6894_vm12, %v14411_v51  ;;  %v16705_v29 = vld [vmem:[#allocation5 + $0x124] sm:$0xff]  ;;  %v16706_v57 = vld [vmem:[#allocation5 + $0x12c] sm:$0xff] }
 0x61b   : > { %14425 = vst.msk [vmem:[#allocation5 + $0x148] sm:$0xff] %vm6894_vm12, %v14409_v32  ;;  %20531 = vmatpush3.msra.mxu1 %v16631_v8  ;;  %v20628_v19 = vpack.c.bf16 %v16706_v57, %v16705_v29 }
 0x61c   : > { %20627 = vmatprep.subr.bf16.mxu1 %v22094_v11  ;;  %20533 = vmatmul.mubr.msk.f32.vlgmr.msra.gmra.mrb[86].mxu1 %vm16380_vm14, %v26525_v50 }
 0x61d   : > { %20629 = vmatpush3.bf16.msra.mxu1 %v20628_v19  ;;  %20545 = vmatprep.mubr.msk.f32.mxu1 %vm22095_vm0, %v22096_v58 }
 0x61e   : > { %20630 = vmatprep.subr.bf16.mxu1 %v22094_v11 }
 0x620   : > { %v16708_v59 = vld [vmem:[#allocation5 + $0x13c] sm:$0xff] }
 0x621   : > { %v20631_v23 = vpack.c.bf16 %v16708_v59, %v16707_v22  ;;  %v16783_v33 = vld [vmem:[#allocation5 + $0x154] sm:$0xff]  ;;  %v18236_v22 = vld [vmem:[%s26812_s13] ss:$0 sm:$0xff] }
 0x622   : > { %v16709_v15 = vld [vmem:[#allocation5 + $0x144] sm:$0xff] }
 0x623   : > { %20632 = vmatpush3.bf16.msra.mxu1 %v20631_v23 }
 0x624   : > { %20543 = vmatprep.subr.mxu1 %v22096_v58 }
 0x627   : > { %20544 = vmatpush3.msra.mxu1 %v16709_v15 }
 0x628   : > { %20633 = vmatprep.subr.bf16.mxu1 %v22094_v11  ;;  %20546 = vmatmul.mubr.msk.f32.vlgmr.msra.gmra.mrb[88].mxu1 %vm16380_vm14, %v26525_v50 }
 0x629   : > { %20558 = vmatprep.mubr.msk.f32.mxu1 %vm22095_vm0, %v22096_v58 }
 0x64f   : > { %v26695_v28 = vpop.f32.mrb[80].mxu1 }
 0x650   : > { %v20495_v4 = vpop.f32.mrb[81].mxu1  ;;  %v16461_v29 = vmul.f32 %v26743_v49, %v26695_v28  ;;  %v17018_v28 = vld [vmem:[%s26813_s14 + $0x8] sm:$0xff] }
 0x651   : > { %v17017_v4 = vld [vmem:[%s26813_s14] sm:$0xff] }
 0x652   : > { %v16469_v15 = vadd.f32 %v18236_v22, %v16461_v29 }
 0x65b   : > { %v26697_v61 = vpop.f32.mrb[82].mxu1 }
 0x65c   : > { %v20508_v16 = vpop.f32.mrb[83].mxu1  ;;  %v16546_v59 = vmul.f32 %v26743_v49, %v26697_v61 }
 0x65e   : > { %v16547_v16 = vadd.f32 %v18236_v22, %v16546_v59 }
 0x660   : > { %v16548_v61 = vmax.f32 %v16547_v16, 0.0 }
 0x6a1   : > { %v20469_v34 = vpop.f32.mrb[64].mxu0 }
 0x6a2   : > { %v16329_v5 = vadd.f32 %v20469_v34, %v26477_v40  ;;  %v16241_v37 = vpop.f32.mrb[65].mxu0  ;;  %v20651_v34 = vpack.c.bf16 %v17018_v28, %v17017_v4 }
 0x6a3   : > { %v16327_v47 = vadd.f32 %v26477_v40, %v16241_v37  ;;  %v20470_v36 = vpop.f32.mrb[66].mxu0 }
 0x6a4   : > { %16345 = vst.msk [vmem:[#allocation5 + $0x170] sm:$0xff] %vm6894_vm12, %v16329_v5  ;;  %v16330_v0 = vadd.f32 %v20470_v36, %v26477_v40  ;;  %v16244_v60 = vpop.f32.mrb[67].mxu0  ;;  %v16470_v5 = vmax.f32 %v16469_v15, 0.0 }
 0x6a5   : > { %16343 = vst.msk [vmem:[#allocation5 + $0x160] sm:$0xff] %vm6894_vm12, %v16327_v47  ;;  %v16328_v18 = vadd.f32 %v26477_v40, %v16244_v60 }
 0x6a6   : > { %16346 = vst.msk [vmem:[#allocation5 + $0x178] sm:$0xff] %vm6894_vm12, %v16330_v0 }
 0x6a7   : > { %16344 = vst.msk [vmem:[#allocation5 + $0x168] sm:$0xff] %vm6894_vm12, %v16328_v18 }
 0x6a9   : > { %v20473_v17 = vpop.f32.mrb[68].mxu0 }
 0x6aa   : > { %v16333_v25 = vadd.f32 %v20473_v17, %v26477_v40  ;;  %v16257_v27 = vpop.f32.mrb[69].mxu0 }
 0x6ab   : > { %v16331_v24 = vadd.f32 %v26477_v40, %v16257_v27  ;;  %v20474_v53 = vpop.f32.mrb[70].mxu0 }
 0x6ac   : > { %16349 = vst.msk [vmem:[#allocation5 + $0x190] sm:$0xff] %vm6894_vm12, %v16333_v25  ;;  %v16334_v21 = vadd.f32 %v20474_v53, %v26477_v40  ;;  %v16260_v14 = vpop.f32.mrb[71].mxu0  ;;  %v16784_v13 = vld [vmem:[#allocation5 + $0x15c] sm:$0xff] }
 0x6ad   : > { %16347 = vst.msk [vmem:[#allocation5 + $0x180] sm:$0xff] %vm6894_vm12, %v16331_v24  ;;  %v16332_v12 = vadd.f32 %v26477_v40, %v16260_v14  ;;  %v20634_v62 = vpack.c.bf16 %v16784_v13, %v16783_v33  ;;  %v16787_v2 = vld [vmem:[#allocation5 + $0x174] sm:$0xff] }
 0x6ae   : > { %16350 = vst.msk [vmem:[#allocation5 + $0x198] sm:$0xff] %vm6894_vm12, %v16334_v21  ;;  %v16785_v30 = vld [vmem:[#allocation5 + $0x164] sm:$0xff]  ;;  %v16786_v20 = vld [vmem:[#allocation5 + $0x16c] sm:$0xff] }
 0x6af   : > { %16348 = vst.msk [vmem:[#allocation5 + $0x188] sm:$0xff] %vm6894_vm12, %v16332_v12  ;;  %20635 = vmatpush3.bf16.msra.mxu1 %v20634_v62  ;;  %v20637_v43 = vpack.c.bf16 %v16786_v20, %v16785_v30 }
 0x6b0   : > { %20636 = vmatprep.subr.bf16.mxu1 %v22094_v11 }
 0x6b1   : > { %v20477_v45 = vpop.f32.mrb[72].mxu0 }
 0x6b2   : > { %v16337_v38 = vadd.f32 %v20477_v45, %v26477_v40  ;;  %v16273_v54 = vpop.f32.mrb[73].mxu0 }
 0x6b3   : > { %v16335_v42 = vadd.f32 %v26477_v40, %v16273_v54  ;;  %v20478_v41 = vpop.f32.mrb[74].mxu0  ;;  %20638 = vmatpush3.bf16.msra.mxu1 %v20637_v43 }
 0x6b4   : > { %16353 = vst.msk [vmem:[#allocation5 + $0x1b0] sm:$0xff] %vm6894_vm12, %v16337_v38  ;;  %v16338_v56 = vadd.f32 %v20478_v41, %v26477_v40  ;;  %v16276_v10 = vpop.f32.mrb[75].mxu0  ;;  %20556 = vmatprep.subr.mxu1 %v22096_v58 }
 0x6b5   : > { %16351 = vst.msk [vmem:[#allocation5 + $0x1a0] sm:$0xff] %vm6894_vm12, %v16335_v42  ;;  %v16336_v44 = vadd.f32 %v26477_v40, %v16276_v10  ;;  %v16863_v63 = vld [vmem:[#allocation5 + $0x194] sm:$0xff]  ;;  %v18244_v10 = vld [vmem:[%s26814_s15] ss:$0 sm:$0xff] }
 0x6b6   : > { %16354 = vst.msk [vmem:[#allocation5 + $0x1b8] sm:$0xff] %vm6894_vm12, %v16338_v56  ;;  %v16861_v31 = vld [vmem:[#allocation5 + $0x184] sm:$0xff]  ;;  %v16862_v6 = vld [vmem:[#allocation5 + $0x18c] sm:$0xff] }
 0x6b7   : > { %16352 = vst.msk [vmem:[#allocation5 + $0x1a8] sm:$0xff] %vm6894_vm12, %v16336_v44  ;;  %20557 = vmatpush3.msra.mxu1 %v16787_v2  ;;  %v20640_v39 = vpack.c.bf16 %v16862_v6, %v16861_v31 }
 0x6b8   : > { %20639 = vmatprep.subr.bf16.mxu1 %v22094_v11  ;;  %20559 = vmatmul.mubr.msk.f32.vlgmr.msra.gmra.mrb[90].mxu1 %vm16380_vm14, %v26525_v50 }
 0x6b9   : > { %v20481_v9 = vpop.f32.mrb[76].mxu0  ;;  %20641 = vmatpush3.bf16.msra.mxu1 %v20640_v39  ;;  %20571 = vmatprep.mubr.msk.f32.mxu1 %vm22095_vm0, %v22096_v58 }
 0x6ba   : > { %v16341_v26 = vadd.f32 %v20481_v9, %v26477_v40  ;;  %v16289_v46 = vpop.f32.mrb[77].mxu0  ;;  %20642 = vmatprep.subr.bf16.mxu1 %v22094_v11 }
 0x6bb   : > { %v16339_v48 = vadd.f32 %v26477_v40, %v16289_v46  ;;  %v20482_v1 = vpop.f32.mrb[78].mxu0 }
 0x6bc   : > { %16357 = vst.msk [vmem:[#allocation5 + $0x1d0] sm:$0xff] %vm6894_vm12, %v16341_v26  ;;  %v16342_v55 = vadd.f32 %v20482_v1, %v26477_v40  ;;  %v16292_v52 = vpop.f32.mrb[79].mxu0  ;;  %v16864_v3 = vld [vmem:[#allocation5 + $0x19c] sm:$0xff] }
 0x6bd   : > { %16355 = vst.msk [vmem:[#allocation5 + $0x1c0] sm:$0xff] %vm6894_vm12, %v16339_v48  ;;  %v16340_v35 = vadd.f32 %v26477_v40, %v16292_v52  ;;  %v20643_v7 = vpack.c.bf16 %v16864_v3, %v16863_v63  ;;  %v16939_v40 = vld [vmem:[#allocation5 + $0x1b4] sm:$0xff] }
 0x6be   : > { %16358 = vst.msk [vmem:[#allocation5 + $0x1d8] sm:$0xff] %vm6894_vm12, %v16342_v55  ;;  %v16865_v51 = vld [vmem:[#allocation5 + $0x1a4] sm:$0xff] }
 0x6bf   : > { %16356 = vst.msk [vmem:[#allocation5 + $0x1c8] sm:$0xff] %vm6894_vm12, %v16340_v35  ;;  %20644 = vmatpush3.bf16.msra.mxu1 %v20643_v7 }
 0x6c0   : > { %20569 = vmatprep.subr.mxu1 %v22096_v58 }
 0x6c3   : > { %20570 = vmatpush3.msra.mxu1 %v16865_v51 }
 0x6c4   : > { %20645 = vmatprep.subr.bf16.mxu1 %v22094_v11  ;;  %20572 = vmatmul.mubr.msk.f32.vlgmr.msra.gmra.mrb[92].mxu1 %vm16380_vm14, %v26525_v50  ;;  %v16940_v32 = vld [vmem:[#allocation5 + $0x1bc] sm:$0xff] }
 0x6c5   : > { %v20646_v8 = vpack.c.bf16 %v16940_v32, %v16939_v40  ;;  %20584 = vmatprep.mubr.msk.f32.mxu1 %vm22095_vm0, %v22096_v58 }
 0x6c6   : > { %v16941_v57 = vld [vmem:[#allocation5 + $0x1c4] sm:$0xff]  ;;  %v16942_v19 = vld [vmem:[#allocation5 + $0x1cc] sm:$0xff] }
 0x6c7   : > { %20647 = vmatpush3.bf16.msra.mxu1 %v20646_v8  ;;  %v20649_v23 = vpack.c.bf16 %v16942_v19, %v16941_v57 }
 0x6c8   : > { %20648 = vmatprep.subr.bf16.mxu1 %v22094_v11  ;;  %v16943_v11 = vld [vmem:[#allocation5 + $0x1d4] sm:$0xff] }
 0x6cb   : > { %20650 = vmatpush3.bf16.msra.mxu1 %v20649_v23 }
 0x6cc   : > { %20582 = vmatprep.subr.mxu1 %v22096_v58 }
 0x6cf   : > { %20583 = vmatpush3.msra.mxu1 %v16943_v11 }
 0x6d0   : > { %20585 = vmatmul.mubr.msk.f32.vlgmr.msra.gmra.mrb[94].mxu1 %vm16380_vm14, %v26525_v50  ;;  %20652 = vmatprep.subr.bf16.mxu1 %v20651_v34 }
 0x6d1   : > { %20591 = vmatprep.mubr.msk.f32.mxu1 %vm6894_vm12, %v16470_v5  ;;  %20654 = vmatpush3.bf16.msra.mxu1 %v20651_v34 }
 0x6d4   : > { %20592 = vmatmul.mubr.msk.f32.vlgmr.msra.gmra.mrb[96].mxu1 %vm6894_vm12, %v16548_v61 }
 0x6e3   : > { %v16620_v37 = vpop.f32.mrb[84].mxu1 }
 0x6e4   : > { %v16624_v47 = vmul.f32 %v26743_v49, %v16620_v37  ;;  %v20521_v36 = vpop.f32.mrb[85].mxu1 }
 0x6e6   : > { %v16625_v58 = vadd.f32 %v18236_v22, %v16624_v47 }
 0x6e8   : > { %v16626_v0 = vmax.f32 %v16625_v58, 0.0 }
 0x6ea   : > { %20594 = vmatprep.mubr.msk.f32.mxu1 %vm6894_vm12, %v16626_v0 }
 0x6ef   : > { %v16698_v60 = vpop.f32.mrb[86].mxu1 }
 0x6f0   : > { %v16702_v18 = vmul.f32 %v26743_v49, %v16698_v60  ;;  %v20534_v17 = vpop.f32.mrb[87].mxu1 }
 0x6f2   : > { %v16703_v50 = vadd.f32 %v18236_v22, %v16702_v18 }
 0x6f4   : > { %v16704_v25 = vmax.f32 %v16703_v50, 0.0 }
 0x6f6   : > { %20595 = vmatmul.mubr.msk.f32.gmra.mrb[98].mxu1 %vm6894_vm12, %v16704_v25 }
 0x6fb   : > { %v16776_v27 = vpop.f32.mrb[88].mxu1 }
 0x6fc   : > { %v16780_v24 = vmul.f32 %v26743_v49, %v16776_v27  ;;  %v20547_v53 = vpop.f32.mrb[89].mxu1 }
 0x6fe   : > { %v16781_v21 = vadd.f32 %v18236_v22, %v16780_v24 }
 0x700   : > { %v16782_v14 = vmax.f32 %v16781_v21, 0.0 }
 0x702   : > { %20597 = vmatprep.mubr.msk.f32.mxu1 %vm6894_vm12, %v16782_v14 }
 0x78b   : > { %v16854_v33 = vpop.f32.mrb[90].mxu1 }
 0x78c   : > { %v16858_v13 = vmul.f32 %v26743_v49, %v16854_v33  ;;  %v20560_v12 = vpop.f32.mrb[91].mxu1 }
 0x78e   : > { %v16859_v62 = vadd.f32 %v18236_v22, %v16858_v13 }
 0x790   : > { %v16860_v30 = vmax.f32 %v16859_v62, 0.0 }
 0x792   : > { %20598 = vmatmul.mubr.msk.f32.gmra.mrb[100].mxu1 %vm6894_vm12, %v16860_v30 }
 0x797   : > { %v16932_v20 = vpop.f32.mrb[92].mxu1 }
 0x798   : > { %v16936_v45 = vmul.f32 %v26743_v49, %v16932_v20  ;;  %v20573_v43 = vpop.f32.mrb[93].mxu1 }
 0x79a   : > { %v16937_v38 = vadd.f32 %v18236_v22, %v16936_v45 }
 0x79c   : > { %v16938_v54 = vmax.f32 %v16937_v38, 0.0 }
 0x79e   : > { %20600 = vmatprep.mubr.msk.f32.mxu1 %vm6894_vm12, %v16938_v54 }
 0x7a3   : > { %v17010_v42 = vpop.f32.mrb[94].mxu1 }
 0x7a4   : > { %v17014_v41 = vmul.f32 %v26743_v49, %v17010_v42  ;;  %v20586_v56 = vpop.f32.mrb[95].mxu1 }
 0x7a6   : > { %v17015_v44 = vadd.f32 %v18236_v22, %v17014_v41 }
 0x7a7   : > { %v20593_v2 = vpop.f32.mrb[96].mxu1 }
 0x7a8   : > { %v17016_v31 = vmax.f32 %v17015_v44, 0.0  ;;  %v17122_v6 = vadd.f32 %v20593_v2, %v18244_v10  ;;  %v17116_v39 = vpop.f32.mrb[97].mxu1 }
 0x7a9   : > { %v17117_v9 = vadd.f32 %v18244_v10, %v17116_v39 }
 0x7aa   : > { %20601 = vmatmul.mubr.msk.f32.gmra.mrb[102].mxu1 %vm6894_vm12, %v17016_v31  ;;  %17156 = vst.msk [vmem:[%s521_s23 + $0x8] sm:$0xff] %vm1950_vm3, %v17122_v6 }
 0x7ab   : > { %17155 = vst.msk [vmem:[%s521_s23] sm:$0xff] %vm1950_vm3, %v17117_v9 }
 0x7c9   : > { %v20596_v26 = vpop.f32.mrb[98].mxu1 }
 0x7ca   : > { %v17132_v46 = vadd.f32 %v20596_v26, %v18244_v10  ;;  %v17126_v48 = vpop.f32.mrb[99].mxu1 }
 0x7cb   : > { %v17127_v1 = vadd.f32 %v18244_v10, %v17126_v48 }
 0x7cc   : > { %17158 = vst.msk [vmem:[%s521_s23 + $0x18] sm:$0xff] %vm1950_vm3, %v17132_v46 }
 0x7cd   : > { %17157 = vst.msk [vmem:[%s521_s23 + $0x10] sm:$0xff] %vm1950_vm3, %v17127_v1 }
 0x865   : > { %v20599_v55 = vpop.f32.mrb[100].mxu1 }
 0x866   : > { %v17142_v52 = vadd.f32 %v20599_v55, %v18244_v10  ;;  %v17136_v63 = vpop.f32.mrb[101].mxu1 }
 0x867   : > { %v17137_v3 = vadd.f32 %v18244_v10, %v17136_v63 }
 0x868   : > { %17160 = vst.msk [vmem:[%s521_s23 + $0x28] sm:$0xff] %vm1950_vm3, %v17142_v52 }
 0x869   : > { %17159 = vst.msk [vmem:[%s521_s23 + $0x20] sm:$0xff] %vm1950_vm3, %v17137_v3 }
 0x87d   : > { %v20602_v35 = vpop.f32.mrb[102].mxu1 }
 0x87e   : > { %v17152_v7 = vadd.f32 %v20602_v35, %v18244_v10  ;;  %v17146_v51 = vpop.f32.mrb[103].mxu1 }
 0x87f   : > { %v17147_v49 = vadd.f32 %v18244_v10, %v17146_v51 }
 0x880   : > { %17162 = vst.msk [vmem:[%s521_s23 + $0x38] sm:$0xff] %vm1950_vm3, %v17152_v7 }
 0x881   : > { %17161 = vst.msk [vmem:[%s521_s23 + $0x30] sm:$0xff] %vm1950_vm3, %v17147_v49 }
 0x882 PF: > { %s26_s21 = sadd.s32 1, %s22090_s21  }
 0x883   : > { %p23_p4 = scmp.ge.s32.totalorder %s26_s21, 4  }
 0x885   :  { %25 = sbr.rel (!%p23_p4) target bundleno = 2 (0x2), region = 136 }

</bundles_post_ra>
